<compile_context>
chip_gen: v7x
topology: tpu7x:2x2x1
jax: 0.10.0
libtpu: 0.0.40
codegen_flags: <defaults>
</compile_context>

<pallas_src>
import jax
import jax.numpy as jnp
from jax import lax
from jax.experimental import pallas as pl
from jax.experimental.pallas import tpu as pltpu


# ------------------------------ Pallas kernel ------------------------------- #
# grid = (batch, point_tiles); batch is "parallel", point tiles are the running-max
# reduction axis ("arbitrary"). g (per-batch 1024-wide global feature) lives in a
# VMEM scratch; the FC head runs only on the last point tile of each batch.
def stn_fused_kernel(x_ref, w1_ref, b1_ref, w2_ref, b2_ref, w3_ref, b3_ref,
                     wf1_ref, bf1_ref, wf2_ref, bf2_ref, wf3_ref, bf3_ref,
                     iden_ref, y_ref, g_acc):
    t = pl.program_id(1)
    n_tiles = pl.num_programs(1)

    # x block is channels-first [k, TILE_N]; contract its dim 0 against w1's dim 0
    # (transposed-LHS matmul) so the wrapper never transposes x in HBM.
    x = x_ref[0].astype(jnp.bfloat16)                              # [k, TILE_N]
    h1 = lax.dot_general(x, w1_ref[...],
                         dimension_numbers=(((0,), (0,)), ((), ())),
                         preferred_element_type=jnp.float32)       # [TILE_N, 64]
    h1 = jnp.maximum(h1 + b1_ref[...], 0.0)

    h2 = jnp.maximum(
        jnp.dot(h1.astype(jnp.bfloat16), w2_ref[...],
                preferred_element_type=jnp.float32) + b2_ref[...], 0.0)   # [TILE_N, 128]
    h3 = jnp.maximum(
        jnp.dot(h2.astype(jnp.bfloat16), w3_ref[...],
                preferred_element_type=jnp.float32) + b3_ref[...], 0.0)   # [TILE_N, 1024]

    blk_max = jnp.max(h3, axis=0, keepdims=True)                   # [1, 1024]

    @pl.when(t == 0)
    def _():
        g_acc[...] = blk_max

    @pl.when(t > 0)
    def _():
        g_acc[...] = jnp.maximum(g_acc[...], blk_max)

    # FC head + identity add, only once per batch (last point tile).
    @pl.when(t == n_tiles - 1)
    def _():
        g = g_acc[...].astype(jnp.bfloat16)                        # [1, 1024]
        f1 = jnp.maximum(
            jnp.dot(g, wf1_ref[...],
                    preferred_element_type=jnp.float32) + bf1_ref[...], 0.0)   # [1, 512]
        f2 = jnp.maximum(
            jnp.dot(f1.astype(jnp.bfloat16), wf2_ref[...],
                    preferred_element_type=jnp.float32) + bf2_ref[...], 0.0)   # [1, 256]
        y = (jnp.dot(f2.astype(jnp.bfloat16), wf3_ref[...],
                     preferred_element_type=jnp.float32)
             + bf3_ref[...] + iden_ref[...])                       # [1, k*k]
        y_ref[0] = y.astype(y_ref.dtype)


# ------------------------------- JAX wrapper -------------------------------- #
def fold_bn(w, b, bn, eps=1e-5):
    """Fold eval-mode BatchNorm1d into the preceding 1x1-conv weight/bias (f32)."""
    gamma, beta, mean, var = bn
    scale = gamma / jnp.sqrt(var + eps)
    return w * scale[None, :], (b - mean) * scale + beta


def stnkd_forward(x_bkn, params, k, *, tile_n=256):
    """Equivalent of STNkd.forward(x) with x: [B, k, N] (inference-mode BN)."""
    b, k_in, n = x_bkn.shape
    assert k_in == k
    assert n % tile_n == 0, "point count must be a multiple of tile_n"
    n_tiles = n // tile_n

    # Fold BN in f32, then hand the MXU bf16 weights (f32 accumulation in-kernel).
    w1, b1 = fold_bn(params["w1"], params["b1"], params["bn1"])
    w2, b2 = fold_bn(params["w2"], params["b2"], params["bn2"])
    w3, b3 = fold_bn(params["w3"], params["b3"], params["bn3"])
    bf16 = lambda a: a.astype(jnp.bfloat16)

    c1, c2, c3 = w1.shape[1], w2.shape[1], w3.shape[1]             # 64, 128, 1024
    d1 = params["wf1"].shape[1]                                    # 512
    d2 = params["wf2"].shape[1]                                    # 256
    d3 = params["wf3"].shape[1]                                    # k*k
    iden = jnp.eye(k, dtype=jnp.float32).reshape(1, k * k)

    const = lambda bi, ti: (0, 0)                                  # resident weights

    y = pl.pallas_call(
        stn_fused_kernel,
        out_shape=jax.ShapeDtypeStruct((b, 1, d3), jnp.float32),
        grid=(b, n_tiles),
        in_specs=[
            pl.BlockSpec((1, k, tile_n), lambda bi, ti: (bi, 0, ti)),   # x, channels-first
            pl.BlockSpec((k, c1), const),
            pl.BlockSpec((1, c1), const),
            pl.BlockSpec((c1, c2), const),
            pl.BlockSpec((1, c2), const),
            pl.BlockSpec((c2, c3), const),
            pl.BlockSpec((1, c3), const),
            pl.BlockSpec((c3, d1), const),
            pl.BlockSpec((1, d1), const),
            pl.BlockSpec((d1, d2), const),
            pl.BlockSpec((1, d2), const),
            pl.BlockSpec((d2, d3), const),
            pl.BlockSpec((1, d3), const),
            pl.BlockSpec((1, d3), const),
        ],
        out_specs=pl.BlockSpec((1, 1, d3), lambda bi, ti: (bi, 0, 0)),  # lane-dense k*k
        scratch_shapes=[pltpu.VMEM((1, c3), jnp.float32)],              # running max g
        compiler_params=pltpu.CompilerParams(
            dimension_semantics=("parallel", "arbitrary")),
    )(x_bkn.astype(jnp.float32),
      bf16(w1), b1.reshape(1, c1),
      bf16(w2), b2.reshape(1, c2),
      bf16(w3), b3.reshape(1, c3),
      bf16(params["wf1"]), params["bf1"].reshape(1, d1),
      bf16(params["wf2"]), params["bf2"].reshape(1, d2),
      bf16(params["wf3"]), params["bf3"].reshape(1, d3),
      iden)
    return y.reshape(b, k, k)


# -------------------------------- references -------------------------------- #
def stnkd_reference_f32(x_bkn, params, k, eps=1e-5):
    """Pure-f32 reference matching the PyTorch module (eval-mode BN)."""
    xt = jnp.transpose(x_bkn, (0, 2, 1)).astype(jnp.float32)       # [B, N, k]

    def bn(h, p):
        gamma, beta, mean, var = p
        return gamma * (h - mean) / jnp.sqrt(var + eps) + beta

    h = jax.nn.relu(bn(xt @ params["w1"] + params["b1"], params["bn1"]))
    h = jax.nn.relu(bn(h @ params["w2"] + params["b2"], params["bn2"]))
    h = jax.nn.relu(bn(h @ params["w3"] + params["b3"], params["bn3"]))
    g = jnp.max(h, axis=1)                                         # [B, 1024]
    f = jax.nn.relu(g @ params["wf1"] + params["bf1"])
    f = jax.nn.relu(f @ params["wf2"] + params["bf2"])
    y = f @ params["wf3"] + params["bf3"]
    y = y + jnp.eye(k, dtype=jnp.float32).reshape(1, k * k)
    return y.reshape(-1, k, k)


def stnkd_reference_bf16(x_bkn, params, k):
    """Numerics-matched reference: BN folded, bf16 dot operands, f32 accumulation."""
    w1, b1 = fold_bn(params["w1"], params["b1"], params["bn1"])
    w2, b2 = fold_bn(params["w2"], params["b2"], params["bn2"])
    w3, b3 = fold_bn(params["w3"], params["b3"], params["bn3"])
    bf = lambda a: a.astype(jnp.bfloat16)
    mm = lambda a, w: jnp.dot(bf(a), bf(w), preferred_element_type=jnp.float32)

    xt = jnp.transpose(x_bkn, (0, 2, 1)).astype(jnp.float32)       # [B, N, k]
    h = jax.nn.relu(mm(xt, w1) + b1)
    h = jax.nn.relu(mm(h, w2) + b2)
    h = jax.nn.relu(mm(h, w3) + b3)
    g = jnp.max(h, axis=1)
    f = jax.nn.relu(mm(g, params["wf1"]) + params["bf1"])
    f = jax.nn.relu(mm(f, params["wf2"]) + params["bf2"])
    y = mm(f, params["wf3"]) + params["bf3"]
    y = y + jnp.eye(k, dtype=jnp.float32).reshape(1, k * k)
    return y.reshape(-1, k, k)


# ----------------------------------- main ------------------------------------ #
if __name__ == "__main__":
    key = jax.random.PRNGKey(0)
    ks = jax.random.split(key, 16)

    B = 2          # batch
    K = 64         # STNkd k (input channels; output is [B, K, K])
    N = 512        # number of points
    TILE_N = 256   # point tile (fills the 256-wide MXU on v6e/v7x)

    def he(kk, fan_in, shape):
        return jax.random.normal(kk, shape, jnp.float32) * jnp.sqrt(2.0 / fan_in)

    def bn_params(kk, c):
        k1, k2, k3, k4 = jax.random.split(kk, 4)
        gamma = 1.0 + 0.1 * jax.random.normal(k1, (c,), jnp.float32)
        beta = 0.1 * jax.random.normal(k2, (c,), jnp.float32)
        mean = 0.1 * jax.random.normal(k3, (c,), jnp.float32)
        var = jax.random.uniform(k4, (c,), jnp.float32, minval=0.5, maxval=1.5)
        return gamma, beta, mean, var

    params = {
        "w1": he(ks[0], K, (K, 64)),
        "b1": 0.01 * jax.random.normal(ks[1], (64,), jnp.float32),
        "w2": he(ks[2], 64, (64, 128)),
        "b2": 0.01 * jax.random.normal(ks[3], (128,), jnp.float32),
        "w3": he(ks[4], 128, (128, 1024)),
        "b3": 0.01 * jax.random.normal(ks[5], (1024,), jnp.float32),
        "bn1": bn_params(ks[6], 64),
        "bn2": bn_params(ks[7], 128),
        "bn3": bn_params(ks[8], 1024),
        "wf1": he(ks[9], 1024, (1024, 512)),
        "bf1": 0.01 * jax.random.normal(ks[10], (512,), jnp.float32),
        "wf2": he(ks[11], 512, (512, 256)),
        "bf2": 0.01 * jax.random.normal(ks[12], (256,), jnp.float32),
        "wf3": he(ks[13], 256, (256, K * K)),
        "bf3": 0.01 * jax.random.normal(ks[14], (K * K,), jnp.float32),
    }

    x = jax.random.normal(ks[15], (B, K, N), dtype=jnp.float32)

    out = stnkd_forward(x, params, K, tile_n=TILE_N)
    out = jax.block_until_ready(out)
    assert out.shape == (B, K, K)

    # Tight check against a reference with identical bf16-operand / f32-accumulate math.
    ref_bf16 = stnkd_reference_bf16(x, params, K)
    assert jnp.allclose(out, ref_bf16, atol=1e-2, rtol=1e-2), (
        float(jnp.max(jnp.abs(out - ref_bf16))))

    # Bound the bf16 quantization error against the exact f32 / unfolded-BN spec.
    ref_f32 = stnkd_reference_f32(x, params, K)
    rel_err = jnp.linalg.norm(out - ref_f32) / jnp.linalg.norm(ref_f32)
    assert float(rel_err) < 2e-2, float(rel_err)

    print("KERNEL_OK")
</pallas_src>

<mosaic_0001>
module attributes {stable_mosaic.version = 11 : i64} {
  func.func @stn_fused_kernel(%arg0: i32, %arg1: i32, %arg2: memref<1x64x256xf32, #tpu.memory_space<vmem>>, %arg3: memref<64x64xbf16, #tpu.memory_space<vmem>>, %arg4: memref<1x64xf32, #tpu.memory_space<vmem>>, %arg5: memref<64x128xbf16, #tpu.memory_space<vmem>>, %arg6: memref<1x128xf32, #tpu.memory_space<vmem>>, %arg7: memref<128x1024xbf16, #tpu.memory_space<vmem>>, %arg8: memref<1x1024xf32, #tpu.memory_space<vmem>>, %arg9: memref<1024x512xbf16, #tpu.memory_space<vmem>>, %arg10: memref<1x512xf32, #tpu.memory_space<vmem>>, %arg11: memref<512x256xbf16, #tpu.memory_space<vmem>>, %arg12: memref<1x256xf32, #tpu.memory_space<vmem>>, %arg13: memref<256x4096xbf16, #tpu.memory_space<vmem>>, %arg14: memref<1x4096xf32, #tpu.memory_space<vmem>>, %arg15: memref<1x4096xf32, #tpu.memory_space<vmem>>, %arg16: memref<1x1x4096xf32, #tpu.memory_space<vmem>>, %arg17: memref<1x1024xf32, #tpu.memory_space<vmem>>) attributes {dimension_semantics = [#tpu.dimension_semantics<parallel>, #tpu.dimension_semantics<arbitrary>], iteration_bounds = array<i64: 2, 2>, scalar_prefetch = 0 : i64, scratch_operands = 1 : i64, tpu.core_type = #tpu.core_type<tc>, window_params = [{transform_indices = @transform_0, window_bounds = array<i64: 1, 64, 256>}, {pipeline_mode = #tpu.pipeline_mode<synchronous>, transform_indices = @transform_1, window_bounds = array<i64: 64, 64>}, {pipeline_mode = #tpu.pipeline_mode<synchronous>, transform_indices = @transform_2, window_bounds = array<i64: 1, 64>}, {pipeline_mode = #tpu.pipeline_mode<synchronous>, transform_indices = @transform_3, window_bounds = array<i64: 64, 128>}, {pipeline_mode = #tpu.pipeline_mode<synchronous>, transform_indices = @transform_4, window_bounds = array<i64: 1, 128>}, {pipeline_mode = #tpu.pipeline_mode<synchronous>, transform_indices = @transform_5, window_bounds = array<i64: 128, 1024>}, {pipeline_mode = #tpu.pipeline_mode<synchronous>, transform_indices = @transform_6, window_bounds = array<i64: 1, 1024>}, {pipeline_mode = #tpu.pipeline_mode<synchronous>, transform_indices = @transform_7, window_bounds = array<i64: 1024, 512>}, {pipeline_mode = #tpu.pipeline_mode<synchronous>, transform_indices = @transform_8, window_bounds = array<i64: 1, 512>}, {pipeline_mode = #tpu.pipeline_mode<synchronous>, transform_indices = @transform_9, window_bounds = array<i64: 512, 256>}, {pipeline_mode = #tpu.pipeline_mode<synchronous>, transform_indices = @transform_10, window_bounds = array<i64: 1, 256>}, {pipeline_mode = #tpu.pipeline_mode<synchronous>, transform_indices = @transform_11, window_bounds = array<i64: 256, 4096>}, {pipeline_mode = #tpu.pipeline_mode<synchronous>, transform_indices = @transform_12, window_bounds = array<i64: 1, 4096>}, {pipeline_mode = #tpu.pipeline_mode<synchronous>, transform_indices = @transform_13, window_bounds = array<i64: 1, 4096>}, {transform_indices = @transform_14, window_bounds = array<i64: 1, 1, 4096>}]} {
    %c0 = arith.constant 0 : index
    %c0_0 = arith.constant 0 : index
    %c0_1 = arith.constant 0 : index
    %0 = vector.load %arg2[%c0, %c0_0, %c0_1] : memref<1x64x256xf32, #tpu.memory_space<vmem>>, vector<1x64x256xf32>
    %1 = vector.shape_cast %0 : vector<1x64x256xf32> to vector<64x256xf32>
    %2 = arith.truncf %1 : vector<64x256xf32> to vector<64x256xbf16>
    %c0_2 = arith.constant 0 : index
    %c0_3 = arith.constant 0 : index
    %3 = vector.load %arg3[%c0_2, %c0_3] : memref<64x64xbf16, #tpu.memory_space<vmem>>, vector<64x64xbf16>
    %cst = arith.constant dense<0.000000e+00> : vector<256x64xf32>
    %4 = tpu.matmul %2, %3, %cst {dimension_numbers = #tpu.dot_dimension_numbers<[0], [0], [1], [1], [0, 1, 1, 1], [], []>} : vector<64x256xbf16>, vector<64x64xbf16>, vector<256x64xf32> -> vector<256x64xf32>
    %c0_4 = arith.constant 0 : index
    %c0_5 = arith.constant 0 : index
    %5 = vector.load %arg4[%c0_4, %c0_5] : memref<1x64xf32, #tpu.memory_space<vmem>>, vector<1x64xf32>
    %6 = vector.broadcast %5 : vector<1x64xf32> to vector<256x64xf32>
    %7 = arith.addf %4, %6 : vector<256x64xf32>
    %cst_6 = arith.constant 0.000000e+00 : f32
    %8 = vector.broadcast %cst_6 : f32 to vector<256x64xf32>
    %9 = arith.maximumf %7, %8 : vector<256x64xf32>
    %10 = arith.truncf %9 : vector<256x64xf32> to vector<256x64xbf16>
    %c0_7 = arith.constant 0 : index
    %c0_8 = arith.constant 0 : index
    %11 = vector.load %arg5[%c0_7, %c0_8] : memref<64x128xbf16, #tpu.memory_space<vmem>>, vector<64x128xbf16>
    %cst_9 = arith.constant dense<0.000000e+00> : vector<256x128xf32>
    %12 = tpu.matmul %10, %11, %cst_9 {dimension_numbers = #tpu.dot_dimension_numbers<[1], [0], [0], [1], [0, 0, 1, 1], [], []>} : vector<256x64xbf16>, vector<64x128xbf16>, vector<256x128xf32> -> vector<256x128xf32>
    %c0_10 = arith.constant 0 : index
    %c0_11 = arith.constant 0 : index
    %13 = vector.load %arg6[%c0_10, %c0_11] : memref<1x128xf32, #tpu.memory_space<vmem>>, vector<1x128xf32>
    %14 = vector.broadcast %13 : vector<1x128xf32> to vector<256x128xf32>
    %15 = arith.addf %12, %14 : vector<256x128xf32>
    %cst_12 = arith.constant 0.000000e+00 : f32
    %16 = vector.broadcast %cst_12 : f32 to vector<256x128xf32>
    %17 = arith.maximumf %15, %16 : vector<256x128xf32>
    %18 = arith.truncf %17 : vector<256x128xf32> to vector<256x128xbf16>
    %c0_13 = arith.constant 0 : index
    %c0_14 = arith.constant 0 : index
    %19 = vector.load %arg7[%c0_13, %c0_14] : memref<128x1024xbf16, #tpu.memory_space<vmem>>, vector<128x1024xbf16>
    %cst_15 = arith.constant dense<0.000000e+00> : vector<256x1024xf32>
    %20 = tpu.matmul %18, %19, %cst_15 {dimension_numbers = #tpu.dot_dimension_numbers<[1], [0], [0], [1], [0, 0, 1, 1], [], []>} : vector<256x128xbf16>, vector<128x1024xbf16>, vector<256x1024xf32> -> vector<256x1024xf32>
    %c0_16 = arith.constant 0 : index
    %c0_17 = arith.constant 0 : index
    %21 = vector.load %arg8[%c0_16, %c0_17] : memref<1x1024xf32, #tpu.memory_space<vmem>>, vector<1x1024xf32>
    %22 = vector.broadcast %21 : vector<1x1024xf32> to vector<256x1024xf32>
    %23 = arith.addf %20, %22 : vector<256x1024xf32>
    %cst_18 = arith.constant 0.000000e+00 : f32
    %24 = vector.broadcast %cst_18 : f32 to vector<256x1024xf32>
    %25 = arith.maximumf %23, %24 : vector<256x1024xf32>
    %cst_19 = arith.constant dense<0xFF800000> : vector<1024xf32>
    %26 = vector.multi_reduction <maximumf>, %25, %cst_19 [0] : vector<256x1024xf32> to vector<1024xf32>
    %27 = vector.shape_cast %26 : vector<1024xf32> to vector<1x1024xf32>
    %c0_i32 = arith.constant 0 : i32
    %28 = arith.cmpi eq, %arg1, %c0_i32 : i32
    %29 = arith.extui %28 : i1 to i32
    %c0_i32_20 = arith.constant 0 : i32
    %30 = arith.cmpi ne, %29, %c0_i32_20 : i32
    scf.if %30 {
      %c0_24 = arith.constant 0 : index
      %c0_25 = arith.constant 0 : index
      %37 = vector.load %arg17[%c0_24, %c0_25] : memref<1x1024xf32, #tpu.memory_space<vmem>>, vector<1x1024xf32>
      tpu.vector_store %arg17[%c0_24, %c0_25], %27 {strides = array<i32>} : memref<1x1024xf32, #tpu.memory_space<vmem>>, vector<1x1024xf32>,
    } else {
    }
    %c0_i32_21 = arith.constant 0 : i32
    %31 = arith.cmpi sgt, %arg1, %c0_i32_21 : i32
    %32 = arith.extui %31 : i1 to i32
    %c0_i32_22 = arith.constant 0 : i32
    %33 = arith.cmpi ne, %32, %c0_i32_22 : i32
    scf.if %33 {
      %c0_24 = arith.constant 0 : index
      %c0_25 = arith.constant 0 : index
      %37 = vector.load %arg17[%c0_24, %c0_25] : memref<1x1024xf32, #tpu.memory_space<vmem>>, vector<1x1024xf32>
      %38 = arith.maximumf %37, %27 : vector<1x1024xf32>
      %c0_26 = arith.constant 0 : index
      %c0_27 = arith.constant 0 : index
      %39 = vector.load %arg17[%c0_26, %c0_27] : memref<1x1024xf32, #tpu.memory_space<vmem>>, vector<1x1024xf32>
      tpu.vector_store %arg17[%c0_26, %c0_27], %38 {strides = array<i32>} : memref<1x1024xf32, #tpu.memory_space<vmem>>, vector<1x1024xf32>,
    } else {
    }
    %c1_i32 = arith.constant 1 : i32
    %34 = arith.cmpi eq, %arg1, %c1_i32 : i32
    %35 = arith.extui %34 : i1 to i32
    %c0_i32_23 = arith.constant 0 : i32
    %36 = arith.cmpi ne, %35, %c0_i32_23 : i32
    scf.if %36 {
      %c0_24 = arith.constant 0 : index
      %c0_25 = arith.constant 0 : index
      %37 = vector.load %arg17[%c0_24, %c0_25] : memref<1x1024xf32, #tpu.memory_space<vmem>>, vector<1x1024xf32>
      %38 = arith.truncf %37 : vector<1x1024xf32> to vector<1x1024xbf16>
      %c0_26 = arith.constant 0 : index
      %c0_27 = arith.constant 0 : index
      %39 = vector.load %arg9[%c0_26, %c0_27] : memref<1024x512xbf16, #tpu.memory_space<vmem>>, vector<1024x512xbf16>
      %cst_28 = arith.constant dense<0.000000e+00> : vector<1x512xf32>
      %40 = tpu.matmul %38, %39, %cst_28 {dimension_numbers = #tpu.dot_dimension_numbers<[1], [0], [0], [1], [0, 0, 1, 1], [], []>} : vector<1x1024xbf16>, vector<1024x512xbf16>, vector<1x512xf32> -> vector<1x512xf32>
      %c0_29 = arith.constant 0 : index
      %c0_30 = arith.constant 0 : index
      %41 = vector.load %arg10[%c0_29, %c0_30] : memref<1x512xf32, #tpu.memory_space<vmem>>, vector<1x512xf32>
      %42 = arith.addf %40, %41 : vector<1x512xf32>
      %cst_31 = arith.constant 0.000000e+00 : f32
      %43 = vector.broadcast %cst_31 : f32 to vector<1x512xf32>
      %44 = arith.maximumf %42, %43 : vector<1x512xf32>
      %45 = arith.truncf %44 : vector<1x512xf32> to vector<1x512xbf16>
      %c0_32 = arith.constant 0 : index
      %c0_33 = arith.constant 0 : index
      %46 = vector.load %arg11[%c0_32, %c0_33] : memref<512x256xbf16, #tpu.memory_space<vmem>>, vector<512x256xbf16>
      %cst_34 = arith.constant dense<0.000000e+00> : vector<1x256xf32>
      %47 = tpu.matmul %45, %46, %cst_34 {dimension_numbers = #tpu.dot_dimension_numbers<[1], [0], [0], [1], [0, 0, 1, 1], [], []>} : vector<1x512xbf16>, vector<512x256xbf16>, vector<1x256xf32> -> vector<1x256xf32>
      %c0_35 = arith.constant 0 : index
      %c0_36 = arith.constant 0 : index
      %48 = vector.load %arg12[%c0_35, %c0_36] : memref<1x256xf32, #tpu.memory_space<vmem>>, vector<1x256xf32>
      %49 = arith.addf %47, %48 : vector<1x256xf32>
      %cst_37 = arith.constant 0.000000e+00 : f32
      %50 = vector.broadcast %cst_37 : f32 to vector<1x256xf32>
      %51 = arith.maximumf %49, %50 : vector<1x256xf32>
      %52 = arith.truncf %51 : vector<1x256xf32> to vector<1x256xbf16>
      %c0_38 = arith.constant 0 : index
      %c0_39 = arith.constant 0 : index
      %53 = vector.load %arg13[%c0_38, %c0_39] : memref<256x4096xbf16, #tpu.memory_space<vmem>>, vector<256x4096xbf16>
      %cst_40 = arith.constant dense<0.000000e+00> : vector<1x4096xf32>
      %54 = tpu.matmul %52, %53, %cst_40 {dimension_numbers = #tpu.dot_dimension_numbers<[1], [0], [0], [1], [0, 0, 1, 1], [], []>} : vector<1x256xbf16>, vector<256x4096xbf16>, vector<1x4096xf32> -> vector<1x4096xf32>
      %c0_41 = arith.constant 0 : index
      %c0_42 = arith.constant 0 : index
      %55 = vector.load %arg14[%c0_41, %c0_42] : memref<1x4096xf32, #tpu.memory_space<vmem>>, vector<1x4096xf32>
      %56 = arith.addf %54, %55 : vector<1x4096xf32>
      %c0_43 = arith.constant 0 : index
      %c0_44 = arith.constant 0 : index
      %57 = vector.load %arg15[%c0_43, %c0_44] : memref<1x4096xf32, #tpu.memory_space<vmem>>, vector<1x4096xf32>
      %58 = arith.addf %56, %57 : vector<1x4096xf32>
      %c0_45 = arith.constant 0 : index
      %c0_46 = arith.constant 0 : index
      %c0_47 = arith.constant 0 : index
      %59 = vector.load %arg16[%c0_45, %c0_46, %c0_47] : memref<1x1x4096xf32, #tpu.memory_space<vmem>>, vector<1x1x4096xf32>
      %60 = vector.shape_cast %59 : vector<1x1x4096xf32> to vector<1x4096xf32>
      %61 = vector.shape_cast %58 : vector<1x4096xf32> to vector<1x1x4096xf32>
      tpu.vector_store %arg16[%c0_45, %c0_46, %c0_47], %61 {strides = array<i32>} : memref<1x1x4096xf32, #tpu.memory_space<vmem>>, vector<1x1x4096xf32>,
    } else {
    }
    return
  }
  func.func @transform_0(%arg0: i32, %arg1: i32) -> (i32, i32, i32) {
    %c0_i32 = arith.constant 0 : i32
    %c0_i32_0 = arith.constant 0 : i32
    return %arg0, %c0_i32, %arg1 : i32, i32, i32
  }
  func.func @transform_1(%arg0: i32, %arg1: i32) -> (i32, i32) {
    %c0_i32 = arith.constant 0 : i32
    %c0_i32_0 = arith.constant 0 : i32
    %c0_i32_1 = arith.constant 0 : i32
    return %c0_i32, %c0_i32_0 : i32, i32
  }
  func.func @transform_2(%arg0: i32, %arg1: i32) -> (i32, i32) {
    %c0_i32 = arith.constant 0 : i32
    %c0_i32_0 = arith.constant 0 : i32
    %c0_i32_1 = arith.constant 0 : i32
    return %c0_i32, %c0_i32_0 : i32, i32
  }
  func.func @transform_3(%arg0: i32, %arg1: i32) -> (i32, i32) {
    %c0_i32 = arith.constant 0 : i32
    %c0_i32_0 = arith.constant 0 : i32
    %c0_i32_1 = arith.constant 0 : i32
    return %c0_i32, %c0_i32_0 : i32, i32
  }
  func.func @transform_4(%arg0: i32, %arg1: i32) -> (i32, i32) {
    %c0_i32 = arith.constant 0 : i32
    %c0_i32_0 = arith.constant 0 : i32
    %c0_i32_1 = arith.constant 0 : i32
    return %c0_i32, %c0_i32_0 : i32, i32
  }
  func.func @transform_5(%arg0: i32, %arg1: i32) -> (i32, i32) {
    %c0_i32 = arith.constant 0 : i32
    %c0_i32_0 = arith.constant 0 : i32
    %c0_i32_1 = arith.constant 0 : i32
    return %c0_i32, %c0_i32_0 : i32, i32
  }
  func.func @transform_6(%arg0: i32, %arg1: i32) -> (i32, i32) {
    %c0_i32 = arith.constant 0 : i32
    %c0_i32_0 = arith.constant 0 : i32
    %c0_i32_1 = arith.constant 0 : i32
    return %c0_i32, %c0_i32_0 : i32, i32
  }
  func.func @transform_7(%arg0: i32, %arg1: i32) -> (i32, i32) {
    %c0_i32 = arith.constant 0 : i32
    %c0_i32_0 = arith.constant 0 : i32
    %c0_i32_1 = arith.constant 0 : i32
    return %c0_i32, %c0_i32_0 : i32, i32
  }
  func.func @transform_8(%arg0: i32, %arg1: i32) -> (i32, i32) {
    %c0_i32 = arith.constant 0 : i32
    %c0_i32_0 = arith.constant 0 : i32
    %c0_i32_1 = arith.constant 0 : i32
    return %c0_i32, %c0_i32_0 : i32, i32
  }
  func.func @transform_9(%arg0: i32, %arg1: i32) -> (i32, i32) {
    %c0_i32 = arith.constant 0 : i32
    %c0_i32_0 = arith.constant 0 : i32
    %c0_i32_1 = arith.constant 0 : i32
    return %c0_i32, %c0_i32_0 : i32, i32
  }
  func.func @transform_10(%arg0: i32, %arg1: i32) -> (i32, i32) {
    %c0_i32 = arith.constant 0 : i32
    %c0_i32_0 = arith.constant 0 : i32
    %c0_i32_1 = arith.constant 0 : i32
    return %c0_i32, %c0_i32_0 : i32, i32
  }
  func.func @transform_11(%arg0: i32, %arg1: i32) -> (i32, i32) {
    %c0_i32 = arith.constant 0 : i32
    %c0_i32_0 = arith.constant 0 : i32
    %c0_i32_1 = arith.constant 0 : i32
    return %c0_i32, %c0_i32_0 : i32, i32
  }
  func.func @transform_12(%arg0: i32, %arg1: i32) -> (i32, i32) {
    %c0_i32 = arith.constant 0 : i32
    %c0_i32_0 = arith.constant 0 : i32
    %c0_i32_1 = arith.constant 0 : i32
    return %c0_i32, %c0_i32_0 : i32, i32
  }
  func.func @transform_13(%arg0: i32, %arg1: i32) -> (i32, i32) {
    %c0_i32 = arith.constant 0 : i32
    %c0_i32_0 = arith.constant 0 : i32
    %c0_i32_1 = arith.constant 0 : i32
    return %c0_i32, %c0_i32_0 : i32, i32
  }
  func.func @transform_14(%arg0: i32, %arg1: i32) -> (i32, i32, i32) {
    %c0_i32 = arith.constant 0 : i32
    %c0_i32_0 = arith.constant 0 : i32
    %c0_i32_1 = arith.constant 0 : i32
    return %arg0, %c0_i32, %c0_i32_0 : i32, i32, i32
  }
}

</mosaic_0001>

<bundles_post_ra>
// kernel: tpu_custom_call.1
= control target key start
LH: loop header
LB: loop body
LE: loop exit
PB: predicated region body
PF: predicated region fallthrough
CT: control target
= control target key end

     0   :  { %s14187_s0 = inlined_call_operand.hbm [shape: f32[2,64,512], index: 0, kind: input, shape index: {}]   ;;  %s14188_s1 = inlined_call_operand.hbm [shape: bf16[64,64], index: 1, kind: input, shape index: {}]   ;;  %s14189_s2 = inlined_call_operand.hbm [shape: f32[1,64], index: 2, kind: input, shape index: {}]   ;;  %s14190_s3 = inlined_call_operand.hbm [shape: bf16[64,128], index: 3, kind: input, shape index: {}]   ;;  %s14191_s4 = inlined_call_operand.hbm [shape: f32[1,128], index: 4, kind: input, shape index: {}]   ;;  %s14192_s5 = inlined_call_operand.hbm [shape: bf16[128,1024], index: 5, kind: input, shape index: {}]   ;;  %s14193_s6 = inlined_call_operand.hbm [shape: f32[1,1024], index: 6, kind: input, shape index: {}]   ;;  %s14194_s7 = inlined_call_operand.hbm [shape: bf16[1024,512], index: 7, kind: input, shape index: {}]   ;;  %s14195_s8 = inlined_call_operand.hbm [shape: f32[1,512], index: 8, kind: input, shape index: {}]   ;;  %s14196_s9 = inlined_call_operand.hbm [shape: bf16[512,256], index: 9, kind: input, shape index: {}]   ;;  %s14197_s10 = inlined_call_operand.hbm [shape: f32[1,256], index: 10, kind: input, shape index: {}]   ;;  %s14198_s11 = inlined_call_operand.hbm [shape: bf16[256,4096], index: 11, kind: input, shape index: {}]   ;;  %s14199_s12 = inlined_call_operand.hbm [shape: f32[1,4096], index: 12, kind: input, shape index: {}]   ;;  %s14200_s13 = inlined_call_operand.hbm [shape: f32[1,4096], index: 13, kind: input, shape index: {}]   ;;  %s14201_s14 = inlined_call_operand.hbm [shape: f32[2,1,4096], index: 14, kind: output, shape index: {}]  }
   0x1   :  { %14221 = sst [smem:[#allocation47_spill]] %s14187_s0 }
   0x2   :  { %14222 = sst [smem:[#allocation48_spill]] %s14188_s1 }
   0x3   :  { %14223 = sst [smem:[#allocation49_spill]] %s14189_s2 }
   0x4   :  { %14224 = sst [smem:[#allocation50_spill]] %s14190_s3 }
   0x5   :  { %14225 = sst [smem:[#allocation51_spill]] %s14191_s4 }
   0x6   :  { %14226 = sst [smem:[#allocation52_spill]] %s14192_s5 }
   0x7   :  { %14227 = sst [smem:[#allocation53_spill]] %s14193_s6 }
   0x8   :  { %14228 = sst [smem:[#allocation54_spill]] %s14194_s7 }
   0x9   :  { %14229 = sst [smem:[#allocation55_spill]] %s14195_s8 }
   0xa   :  { %14230 = sst [smem:[#allocation56_spill]] %s14201_s14 }
   0xb   :  { %19 = vsyncpa [#allocation4], 0 }
   0xc   :  { %21 = vsyncpa [#allocation4 + $0x1], 0 }
   0xd   :  { %22 = vsyncpa [#allocation7], 0 }
   0xe   :  { %23 = vsyncpa [#allocation10], 0 }
   0xf   :  { %24 = vsyncpa [#allocation13], 0 }
  0x10   :  { %25 = vsyncpa [#allocation16], 0 }
  0x11   :  { %26 = vsyncpa [#allocation19], 0 }
  0x12   :  { %27 = vsyncpa [#allocation22], 0 }
  0x13   :  { %28 = vsyncpa [#allocation25], 0 }
  0x14   :  { %29 = vsyncpa [#allocation5], 0 }
  0x15   :  { %31 = vsyncpa [#allocation5 + $0x1], 0  ;;  %s12716_s29 = smov 0   ;;  %s12718_s30 = smov 0  }
  0x16   :  { %s12720_s15 = smov 0   ;;  %s12722_s16 = smov 0  }
  0x17   :  { %s12724_s17 = smov 0   ;;  %s12726_s18 = smov 0  }
  0x18   :  { %s12728_s19 = smov 0   ;;  %s12730_s20 = smov 0  }
  0x19   :  { %s12732_s21 = smov 0   ;;  %s12734_s22 = smov 0  }
  0x1a   :  { %s12736_s23 = smov 0  }
  0x1b LB: > { %14231 = sst [smem:[#allocation36_spill]] %s12571_s29  ;;  %s14203_s24 = sadd.s32 4294967295, %s12611_s23   ;;  %s12611_s23 = sphi %s12736_s23, %s37_s23   ;;  %s12607_s22 = sphi %s12734_s22, %s14297_s22   ;;  %s12603_s21 = sphi %s12732_s21, %s14296_s21   ;;  %s12599_s20 = sphi %s12730_s20, %s14292_s20   ;;  %s12595_s19 = sphi %s12728_s19, %s14295_s19   ;;  %s12591_s18 = sphi %s12726_s18, %s14294_s18   ;;  %s12587_s17 = sphi %s12724_s17, %s14291_s17   ;;  %s12583_s16 = sphi %s12722_s16, %s14290_s16   ;;  %s12579_s15 = sphi %s12720_s15, %s14293_s15   ;;  %s12575_s30 = sphi %s12718_s30, %s14289_s30   ;;  %s12571_s29 = sphi %s12716_s29, %s14288_s29  }
  0x1c   : > { %14232 = sst [smem:[#allocation37_spill]] %s12575_s30  ;;  %p10193_p0 = scmp.ge.s32.totalorder %s12611_s23, 1 }
  0x1d   : > { %14233 = sst [smem:[#allocation38_spill]] %s12579_s15  ;;  %p12775_p1 = scmp.eq.s32.totalorder %s14203_s24, 0 }
  0x1e   : > { %14234 = sst [smem:[#allocation39_spill]] %s12583_s16  ;;  %p381_p2 = scmp.lt.s32.totalorder %s12611_s23, 5 }
  0x1f   : > { %14235 = sst [smem:[#allocation40_spill]] %s12587_s17  ;;  %s12613_s27 = smov [#allocation6]  }
  0x20   : > { %14236 = sst [smem:[#allocation41_spill]] %s12591_s18  ;;  %p12780_p3 = pnand %p10193_p0, %p381_p2 }
  0x21   : > { %14237 = sst [smem:[#allocation42_spill]] %s12595_s19  ;;  %s393_s28 = sshll.u32 %s12613_s27, 4  ;;  %s12784_s28 = int_to_ptr.vmem [resolvable:$true] %s393_s28 }
  0x22   : > { %14238 = sst [smem:[#allocation43_spill]] %s12599_s20  ;;  %p11385_p4 = pneg %p12780_p3 }
  0x23   : > { %14239 = sst [smem:[#allocation44_spill]] %s12607_s22  ;;  %s12614_s24 = smov [#allocation9]  }
  0x24   : > { %s14240_s25 = scalar_select %p12775_p1, 1, 0 }
  0x25   : > { %s14242_s26 = scalar_select %p12780_p3, 1, 0 }
  0x26   : > { %14241 = sst [smem:[#allocation45_spill]] %s14240_s25  ;;  %p12790_p5 = pnand %p11385_p4, %p12775_p1 }
  0x27   : > { %14243 = sst [smem:[#allocation46_spill]] %s14242_s26  ;;  %s417_s20 = sshll.u32 %s12614_s24, 4  ;;  %s12794_s20 = int_to_ptr.vmem [resolvable:$true] %s417_s20 }
  0x28   : > { %s12615_s19 = smov [#allocation12]   ;;  %s14245_s1 = sld [smem:[#allocation48_spill]] }
  0x29   : > { %s12796_s0 = sshll.u32 %s12615_s19, 4  ;;  %p12806_p7 = pneg %p12790_p5  ;;  %s442_s0 = int_to_ptr.vmem [resolvable:$true] %s12796_s0 }
  0x2e   : > { %s12067_s27 = scalar_lea.hbm %s14245_s1, 512 }
  0x2f   : > { %p12068_p6 = scmp.ne.s32.totalorder %s14245_s1, %s12067_s27  ;;  %p12074_p10 = scmp.lt.u32.totalorder %s12067_s27, %s14245_s1 }
  0x31   : > { %p12070_p8 = pnand %p12806_p7, %p12068_p6 }
  0x33   : > { %p12071_p9 = pneg %p12070_p8 }
  0x35   : > { %p12076_p11 = pnand %p12074_p10, %p12071_p9 }
  0x37   : > { %12079 = shalt.err (!%p12076_p11)
}
  0x38   : > { %s12080_s29 = scalar_lea.vmem %s12784_s28, 512  ;;  %p12088_p2 = scmp.lt.s32.totalorder %s12784_s28, %s12784_s28 }
  0x39   : > { %p12081_p12 = scmp.ne.s32.totalorder %s12784_s28, %s12080_s29  ;;  %p12089_p4 = scmp.lt.s32.totalorder %s12080_s29, %s12080_s29 }
  0x3b   : > { %p12083_p13 = pnand %p12081_p12, %p12806_p7  ;;  %p12090_p6 = por %p12089_p4, %p12088_p2 }
  0x3d   : > { %p12084_p0 = pneg %p12083_p13 }
  0x3f   : > { %p12091_p8 = pnand %p12090_p6, %p12084_p0 }
  0x41   : > { %12094 = shalt.err (!%p12091_p8)
}
  0x42   : > { %s12616_s30 = smov 64   ;;  %s12617_s15 = smov 4  }
  0x43   : > { %11388 = dma.hbm_to_vmem [thread:$0]  (!%p12790_p5), %s14245_s1, 512, %s12784_s28, [#allocation7], %s12616_s30, %s12616_s30, %s12617_s15  }
  0x44   : > { %s14247_s3 = sld [smem:[#allocation50_spill]] }
  0x4a   : > { %s12095_s16 = scalar_lea.hbm %s14247_s3, 512 }
  0x4b   : > { %p12096_p9 = scmp.ne.s32.totalorder %s14247_s3, %s12095_s16  ;;  %p12102_p12 = scmp.lt.u32.totalorder %s12095_s16, %s14247_s3 }
  0x4d   : > { %p12098_p10 = pnand %p12096_p9, %p12806_p7 }
  0x4f   : > { %p12099_p11 = pneg %p12098_p10 }
  0x51   : > { %p12104_p13 = pnand %p12102_p12, %p12099_p11 }
  0x53   : > { %12107 = shalt.err (!%p12104_p13)
}
  0x54   : > { %s12108_s28 = scalar_lea.vmem %s12794_s20, 512  ;;  %p12116_p6 = scmp.lt.s32.totalorder %s12794_s20, %s12794_s20 }
  0x55   : > { %p12109_p0 = scmp.ne.s32.totalorder %s12794_s20, %s12108_s28  ;;  %p12117_p8 = scmp.lt.s32.totalorder %s12108_s28, %s12108_s28 }
  0x57   : > { %p12111_p2 = pnand %p12109_p0, %p12806_p7  ;;  %p12118_p9 = por %p12117_p8, %p12116_p6 }
  0x59   : > { %p12112_p4 = pneg %p12111_p2 }
  0x5b   : > { %p12119_p10 = pnand %p12118_p9, %p12112_p4 }
  0x5d   : > { %12122 = shalt.err (!%p12119_p10)
}
  0x5e   : > { %11394 = dma.hbm_to_vmem [thread:$0]  (!%p12790_p5), %s14247_s3, 512, %s12794_s20, [#allocation10], %s12616_s30, %s12616_s30, %s12617_s15  }
  0x5f   : > { %s14248_s5 = sld [smem:[#allocation52_spill]] }
  0x65   : > { %s12123_s26 = scalar_lea.hbm %s14248_s5, 8192 }
  0x66   : > { %p12124_p11 = scmp.ne.s32.totalorder %s14248_s5, %s12123_s26  ;;  %p12130_p0 = scmp.lt.u32.totalorder %s12123_s26, %s14248_s5 }
  0x68   : > { %p12126_p12 = pnand %p12124_p11, %p12806_p7 }
  0x6a   : > { %p12127_p13 = pneg %p12126_p12 }
  0x6c   : > { %p12132_p2 = pnand %p12130_p0, %p12127_p13 }
  0x6e   : > { %12135 = shalt.err (!%p12132_p2)
}
  0x6f   : > { %s12136_s28 = scalar_lea.vmem %s442_s0, 8192  ;;  %p12144_p9 = scmp.lt.s32.totalorder %s442_s0, %s442_s0 }
  0x70   : > { %p12137_p4 = scmp.ne.s32.totalorder %s442_s0, %s12136_s28  ;;  %p12145_p10 = scmp.lt.s32.totalorder %s12136_s28, %s12136_s28 }
  0x72   : > { %p12139_p6 = pnand %p12137_p4, %p12806_p7  ;;  %p12146_p3 = por %p12145_p10, %p12144_p9 }
  0x74   : > { %p12140_p8 = pneg %p12139_p6 }
  0x76   : > { %p12147_p1 = pnand %p12146_p3, %p12140_p8 }
  0x78   : > { %12150 = shalt.err (!%p12147_p1)
}
  0x79   : > { %s14217_s20 = smov 512   ;;  %s12619_s30 = smov 32  }
  0x7a   : > { %11400 = dma.hbm_to_vmem [thread:$0]  (!%p12790_p5), %s14248_s5, 8192, %s442_s0, [#allocation13], %s14217_s20, %s14217_s20, %s12619_s30  }
  0x7b   : > { %s12620_s17 = smov [#allocation15]   ;;  %s14249_s7 = sld [smem:[#allocation54_spill]] }
  0x7c   : > { %s465_s18 = sshll.u32 %s12620_s17, 4  ;;  %s466_s18 = int_to_ptr.vmem [resolvable:$true] %s465_s18 }
  0x81   : > { %s12151_s27 = scalar_lea.hbm %s14249_s7, 32768 }
  0x82   : > { %p12152_p1 = scmp.ne.s32.totalorder %s14249_s7, %s12151_s27  ;;  %p12158_p12 = scmp.lt.u32.totalorder %s12151_s27, %s14249_s7 }
  0x84   : > { %p12154_p3 = pnand %p12152_p1, %p12806_p7 }
  0x86   : > { %p12155_p11 = pneg %p12154_p3 }
  0x88   : > { %p12160_p13 = pnand %p12158_p12, %p12155_p11 }
  0x8a   : > { %12163 = shalt.err (!%p12160_p13)
}
  0x8b   : > { %s12164_s0 = scalar_lea.vmem %s466_s18, 32768  ;;  %p12172_p6 = scmp.lt.s32.totalorder %s466_s18, %s466_s18 }
  0x8c   : > { %p12165_p0 = scmp.ne.s32.totalorder %s466_s18, %s12164_s0  ;;  %p12173_p8 = scmp.lt.s32.totalorder %s12164_s0, %s12164_s0 }
  0x8e   : > { %p12167_p2 = pnand %p12165_p0, %p12806_p7  ;;  %p12174_p9 = por %p12173_p8, %p12172_p6 }
  0x90   : > { %p12168_p4 = pneg %p12167_p2 }
  0x92   : > { %p12175_p10 = pnand %p12174_p9, %p12168_p4 }
  0x94   : > { %12178 = shalt.err (!%p12175_p10)
}
  0x95   : > { %s14218_s30 = smov 256   ;;  %s14219_s15 = smov 16  }
  0x96   : > { %11406 = dma.hbm_to_vmem [thread:$0]  (!%p12790_p5), %s14249_s7, 32768, %s466_s18, [#allocation16], %s14218_s30, %s14218_s30, %s14219_s15  }
  0x97   : > { %s12623_s22 = smov [#allocation18]   ;;  %s12179_s19 = scalar_lea.hbm %s14196_s9, 8192 }
  0x98   : > { %s489_s26 = sshll.u32 %s12623_s22, 4  ;;  %p12180_p1 = scmp.ne.s32.totalorder %s14196_s9, %s12179_s19  ;;  %s490_s26 = int_to_ptr.vmem [resolvable:$true] %s489_s26 }
  0x99   : > { %p12186_p12 = scmp.lt.u32.totalorder %s12179_s19, %s14196_s9 }
  0x9a   : > { %p12182_p3 = pnand %p12180_p1, %p12806_p7 }
  0x9c   : > { %p12183_p11 = pneg %p12182_p3 }
  0x9e   : > { %p12188_p13 = pnand %p12186_p12, %p12183_p11 }
  0xa0   : > { %12191 = shalt.err (!%p12188_p13)
}
  0xa1   : > { %s12192_s18 = scalar_lea.vmem %s490_s26, 8192  ;;  %p12200_p6 = scmp.lt.s32.totalorder %s490_s26, %s490_s26 }
  0xa2   : > { %p12193_p0 = scmp.ne.s32.totalorder %s490_s26, %s12192_s18  ;;  %p12201_p8 = scmp.lt.s32.totalorder %s12192_s18, %s12192_s18 }
  0xa4   : > { %p12195_p2 = pnand %p12193_p0, %p12806_p7  ;;  %p12202_p9 = por %p12201_p8, %p12200_p6 }
  0xa6   : > { %p12196_p4 = pneg %p12195_p2 }
  0xa8   : > { %p12203_p10 = pnand %p12202_p9, %p12196_p4 }
  0xaa   : > { %12206 = shalt.err (!%p12203_p10)
}
  0xab   : > { %s12624_s16 = smov 128   ;;  %s12625_s17 = smov 8  }
  0xac   : > { %11412 = dma.hbm_to_vmem [thread:$0]  (!%p12790_p5), %s14196_s9, 8192, %s490_s26, [#allocation19], %s12624_s16, %s12624_s16, %s12625_s17  }
  0xad   : > { %s12626_s27 = smov [#allocation21]   ;;  %s12207_s28 = scalar_lea.hbm %s14198_s11, 65536 }
  0xae   : > { %s513_s24 = sshll.u32 %s12626_s27, 4  ;;  %p12208_p1 = scmp.ne.s32.totalorder %s14198_s11, %s12207_s28  ;;  %s514_s24 = int_to_ptr.vmem [resolvable:$true] %s513_s24 }
  0xaf   : > { %p12214_p12 = scmp.lt.u32.totalorder %s12207_s28, %s14198_s11 }
  0xb0   : > { %p12210_p3 = pnand %p12208_p1, %p12806_p7 }
  0xb2   : > { %p12211_p11 = pneg %p12210_p3 }
  0xb4   : > { %p12216_p13 = pnand %p12214_p12, %p12211_p11 }
  0xb6   : > { %12219 = shalt.err (!%p12216_p13)
}
  0xb7   : > { %s12220_s26 = scalar_lea.vmem %s514_s24, 65536  ;;  %p12228_p6 = scmp.lt.s32.totalorder %s514_s24, %s514_s24 }
  0xb8   : > { %p12221_p0 = scmp.ne.s32.totalorder %s514_s24, %s12220_s26  ;;  %p12229_p8 = scmp.lt.s32.totalorder %s12220_s26, %s12220_s26 }
  0xba   : > { %p12223_p2 = pnand %p12221_p0, %p12806_p7  ;;  %p12230_p9 = por %p12229_p8, %p12228_p6 }
  0xbc   : > { %p12224_p4 = pneg %p12223_p2 }
  0xbe   : > { %p12231_p10 = pnand %p12230_p9, %p12224_p4 }
  0xc0   : > { %12234 = shalt.err (!%p12231_p10)
}
  0xc1   : > { %s12627_s17 = smov 2048   ;;  %s12628_s30 = smov [#allocation8]  }
  0xc2   : > { %11418 = dma.hbm_to_vmem [thread:$0]  (!%p12790_p5), %s14198_s11, 65536, %s514_s24, [#allocation22], %s12627_s17, %s12627_s17, %s12624_s16  }
  0xc3   : > { %s407_s15 = sshll.u32 %s12628_s30, 4  ;;  %s12629_s27 = smov [#allocation11]   ;;  %s408_s15 = int_to_ptr.vmem [resolvable:$true] %s407_s15 }
  0xc4   : > { %s431_s19 = sshll.u32 %s12629_s27, 4  ;;  %s14250_s2 = sld [smem:[#allocation49_spill]]  ;;  %s432_s19 = int_to_ptr.vmem [resolvable:$true] %s431_s19 }
  0xca   : > { %s12235_s0 = scalar_lea.hbm %s14250_s2, 16 }
  0xcb   : > { %p12236_p1 = scmp.ne.s32.totalorder %s14250_s2, %s12235_s0  ;;  %p12242_p12 = scmp.lt.u32.totalorder %s12235_s0, %s14250_s2 }
  0xcd   : > { %p12238_p3 = pnand %p12236_p1, %p12806_p7 }
  0xcf   : > { %p12239_p11 = pneg %p12238_p3 }
  0xd1   : > { %p12244_p13 = pnand %p12242_p12, %p12239_p11 }
  0xd3   : > { %12247 = shalt.err (!%p12244_p13)
}
  0xd4   : > { %s12248_s16 = scalar_lea.vmem %s408_s15, 16  ;;  %s12255_s24 = scalar_lea.vmem %s408_s15, 32 }
  0xd5   : > { %p12249_p0 = scmp.ne.s32.totalorder %s408_s15, %s12248_s16  ;;  %p12256_p6 = scmp.lt.s32.totalorder %s408_s15, %s408_s15 }
  0xd6   : > { %p12257_p8 = scmp.lt.s32.totalorder %s12255_s24, %s12248_s16 }
  0xd7   : > { %p12251_p2 = pnand %p12249_p0, %p12806_p7 }
  0xd8   : > { %p12258_p9 = por %p12257_p8, %p12256_p6 }
  0xd9   : > { %p12252_p4 = pneg %p12251_p2 }
  0xdb   : > { %p12259_p10 = pnand %p12258_p9, %p12252_p4 }
  0xdd   : > { %12262 = shalt.err (!%p12259_p10)
}
  0xde   : > { %11391 = dma.hbm_to_vmem [thread:$0]  (!%p12790_p5), %s14250_s2, 16, %s408_s15, [#allocation7]  }
  0xdf   : > { %s14251_s4 = sld [smem:[#allocation51_spill]] }
  0xe5   : > { %s12263_s27 = scalar_lea.hbm %s14251_s4, 16 }
  0xe6   : > { %p12264_p1 = scmp.ne.s32.totalorder %s14251_s4, %s12263_s27  ;;  %p12270_p12 = scmp.lt.u32.totalorder %s12263_s27, %s14251_s4 }
  0xe8   : > { %p12266_p3 = pnand %p12264_p1, %p12806_p7 }
  0xea   : > { %p12267_p11 = pneg %p12266_p3 }
  0xec   : > { %p12272_p13 = pnand %p12270_p12, %p12267_p11 }
  0xee   : > { %12275 = shalt.err (!%p12272_p13)
}
  0xef   : > { %s12276_s26 = scalar_lea.vmem %s432_s19, 16  ;;  %s12283_s15 = scalar_lea.vmem %s432_s19, 32 }
  0xf0   : > { %p12277_p0 = scmp.ne.s32.totalorder %s432_s19, %s12276_s26  ;;  %p12284_p6 = scmp.lt.s32.totalorder %s432_s19, %s432_s19 }
  0xf1   : > { %p12285_p8 = scmp.lt.s32.totalorder %s12283_s15, %s12276_s26 }
  0xf2   : > { %p12279_p2 = pnand %p12277_p0, %p12806_p7 }
  0xf3   : > { %p12286_p9 = por %p12285_p8, %p12284_p6 }
  0xf4   : > { %p12280_p4 = pneg %p12279_p2 }
  0xf6   : > { %p12287_p10 = pnand %p12286_p9, %p12280_p4 }
  0xf8   : > { %12290 = shalt.err (!%p12287_p10)
}
  0xf9   : > { %11397 = dma.hbm_to_vmem [thread:$0]  (!%p12790_p5), %s14251_s4, 16, %s432_s19, [#allocation10]  }
  0xfa   : > { %s12630_s24 = smov [#allocation14]   ;;  %s12631_s22 = smov [#allocation17]  }
  0xfb   : > { %s455_s17 = sshll.u32 %s12630_s24, 4  ;;  %s479_s1 = sshll.u32 %s12631_s22, 4  ;;  %s456_s17 = int_to_ptr.vmem [resolvable:$true] %s455_s17  ;;  %s480_s1 = int_to_ptr.vmem [resolvable:$true] %s479_s1 }
  0xfc   : > { %s14252_s6 = sld [smem:[#allocation53_spill]] }
 0x102   : > { %s12291_s29 = scalar_lea.hbm %s14252_s6, 128 }
 0x103   : > { %p12292_p1 = scmp.ne.s32.totalorder %s14252_s6, %s12291_s29  ;;  %p12298_p12 = scmp.lt.u32.totalorder %s12291_s29, %s14252_s6 }
 0x105   : > { %p12294_p3 = pnand %p12292_p1, %p12806_p7 }
 0x107   : > { %p12295_p11 = pneg %p12294_p3 }
 0x109   : > { %p12300_p13 = pnand %p12298_p12, %p12295_p11 }
 0x10b   : > { %12303 = shalt.err (!%p12300_p13)
}
 0x10c   : > { %s12304_s19 = scalar_lea.vmem %s456_s17, 128  ;;  %p12312_p6 = scmp.lt.s32.totalorder %s456_s17, %s456_s17 }
 0x10d   : > { %p12305_p0 = scmp.ne.s32.totalorder %s456_s17, %s12304_s19  ;;  %p12313_p8 = scmp.lt.s32.totalorder %s12304_s19, %s12304_s19 }
 0x10f   : > { %p12307_p2 = pnand %p12305_p0, %p12806_p7  ;;  %p12314_p9 = por %p12313_p8, %p12312_p6 }
 0x111   : > { %p12308_p4 = pneg %p12307_p2 }
 0x113   : > { %p12315_p10 = pnand %p12314_p9, %p12308_p4 }
 0x115   : > { %12318 = shalt.err (!%p12315_p10)
}
 0x116   : > { %11403 = dma.hbm_to_vmem [thread:$0]  (!%p12790_p5), %s14252_s6, 128, %s456_s17, [#allocation13]  }
 0x117   : > { %s14253_s8 = sld [smem:[#allocation55_spill]] }
 0x11d   : > { %s12319_s22 = scalar_lea.hbm %s14253_s8, 64 }
 0x11e   : > { %p12320_p1 = scmp.ne.s32.totalorder %s14253_s8, %s12319_s22  ;;  %p12326_p12 = scmp.lt.u32.totalorder %s12319_s22, %s14253_s8 }
 0x120   : > { %p12322_p3 = pnand %p12320_p1, %p12806_p7 }
 0x122   : > { %p12323_p11 = pneg %p12322_p3 }
 0x124   : > { %p12328_p13 = pnand %p12326_p12, %p12323_p11 }
 0x126   : > { %12331 = shalt.err (!%p12328_p13)
}
 0x127   : > { %s12332_s0 = scalar_lea.vmem %s480_s1, 64  ;;  %p12340_p6 = scmp.lt.s32.totalorder %s480_s1, %s480_s1 }
 0x128   : > { %p12333_p0 = scmp.ne.s32.totalorder %s480_s1, %s12332_s0  ;;  %p12341_p8 = scmp.lt.s32.totalorder %s12332_s0, %s12332_s0 }
 0x12a   : > { %p12335_p2 = pnand %p12333_p0, %p12806_p7  ;;  %p12342_p9 = por %p12341_p8, %p12340_p6 }
 0x12c   : > { %p12336_p4 = pneg %p12335_p2 }
 0x12e   : > { %p12343_p10 = pnand %p12342_p9, %p12336_p4 }
 0x130   : > { %12346 = shalt.err (!%p12343_p10)
}
 0x131   : > { %11409 = dma.hbm_to_vmem [thread:$0]  (!%p12790_p5), %s14253_s8, 64, %s480_s1, [#allocation16]  }
 0x132   : > { %s12632_s26 = smov [#allocation20]   ;;  %s12633_s15 = smov [#allocation23]  }
 0x133   : > { %s503_s19 = sshll.u32 %s12632_s26, 4  ;;  %s527_s20 = sshll.u32 %s12633_s15, 4  ;;  %s504_s19 = int_to_ptr.vmem [resolvable:$true] %s503_s19  ;;  %s528_s20 = int_to_ptr.vmem [resolvable:$true] %s527_s20 }
 0x134   : > { %s12347_s22 = scalar_lea.hbm %s14197_s10, 32 }
 0x135   : > { %p12348_p1 = scmp.ne.s32.totalorder %s14197_s10, %s12347_s22  ;;  %p12354_p12 = scmp.lt.u32.totalorder %s12347_s22, %s14197_s10 }
 0x137   : > { %p12350_p3 = pnand %p12348_p1, %p12806_p7 }
 0x139   : > { %p12351_p11 = pneg %p12350_p3 }
 0x13b   : > { %p12356_p13 = pnand %p12354_p12, %p12351_p11 }
 0x13d   : > { %12359 = shalt.err (!%p12356_p13)
}
 0x13e   : > { %s12360_s1 = scalar_lea.vmem %s504_s19, 32  ;;  %p12368_p6 = scmp.lt.s32.totalorder %s504_s19, %s504_s19 }
 0x13f   : > { %p12361_p0 = scmp.ne.s32.totalorder %s504_s19, %s12360_s1  ;;  %p12369_p8 = scmp.lt.s32.totalorder %s12360_s1, %s12360_s1 }
 0x141   : > { %p12363_p2 = pnand %p12361_p0, %p12806_p7  ;;  %p12370_p9 = por %p12369_p8, %p12368_p6 }
 0x143   : > { %p12364_p4 = pneg %p12363_p2 }
 0x145   : > { %p12371_p10 = pnand %p12370_p9, %p12364_p4 }
 0x147   : > { %12374 = shalt.err (!%p12371_p10)
}
 0x148   : > { %11415 = dma.hbm_to_vmem [thread:$0]  (!%p12790_p5), %s14197_s10, 32, %s504_s19, [#allocation19]  }
 0x149   : > { %s12375_s15 = scalar_lea.hbm %s14199_s12, 512 }
 0x14a   : > { %p12376_p1 = scmp.ne.s32.totalorder %s14199_s12, %s12375_s15  ;;  %p12382_p12 = scmp.lt.u32.totalorder %s12375_s15, %s14199_s12 }
 0x14c   : > { %p12378_p3 = pnand %p12376_p1, %p12806_p7 }
 0x14e   : > { %p12379_p11 = pneg %p12378_p3 }
 0x150   : > { %p12384_p13 = pnand %p12382_p12, %p12379_p11 }
 0x152   : > { %12387 = shalt.err (!%p12384_p13)
}
 0x153   : > { %s12388_s27 = scalar_lea.vmem %s528_s20, 512  ;;  %p12396_p6 = scmp.lt.s32.totalorder %s528_s20, %s528_s20 }
 0x154   : > { %p12389_p0 = scmp.ne.s32.totalorder %s528_s20, %s12388_s27  ;;  %p12397_p8 = scmp.lt.s32.totalorder %s12388_s27, %s12388_s27 }
 0x156   : > { %p12391_p2 = pnand %p12389_p0, %p12806_p7  ;;  %p12398_p9 = por %p12397_p8, %p12396_p6 }
 0x158   : > { %p12392_p4 = pneg %p12391_p2 }
 0x15a   : > { %p12399_p10 = pnand %p12398_p9, %p12392_p4 }
 0x15c   : > { %12402 = shalt.err (!%p12399_p10)
}
 0x15d   : > { %11421 = dma.hbm_to_vmem [thread:$0]  (!%p12790_p5), %s14199_s12, 512, %s528_s20, [#allocation22]  }
 0x15e   : > { %s12634_s28 = smov [#allocation24]   ;;  %s12403_s18 = scalar_lea.hbm %s14200_s13, 512 }
 0x15f   : > { %s538_s1 = sshll.u32 %s12634_s28, 4  ;;  %p12404_p1 = scmp.ne.s32.totalorder %s14200_s13, %s12403_s18  ;;  %s539_s1 = int_to_ptr.vmem [resolvable:$true] %s538_s1 }
 0x160   : > { %p12410_p12 = scmp.lt.u32.totalorder %s12403_s18, %s14200_s13 }
 0x161   : > { %p12406_p3 = pnand %p12404_p1, %p12806_p7 }
 0x163   : > { %p12407_p11 = pneg %p12406_p3 }
 0x165   : > { %p12412_p13 = pnand %p12410_p12, %p12407_p11 }
 0x167   : > { %12415 = shalt.err (!%p12412_p13)
}
 0x168   : > { %s12416_s20 = scalar_lea.vmem %s539_s1, 512  ;;  %p12424_p6 = scmp.lt.s32.totalorder %s539_s1, %s539_s1 }
 0x169   : > { %p12417_p0 = scmp.ne.s32.totalorder %s539_s1, %s12416_s20  ;;  %p12425_p8 = scmp.lt.s32.totalorder %s12416_s20, %s12416_s20 }
 0x16b   : > { %p12419_p2 = pnand %p12417_p0, %p12806_p7  ;;  %p12426_p9 = por %p12425_p8, %p12424_p6 }
 0x16d   : > { %p12420_p4 = pneg %p12419_p2 }
 0x16f   : > { %p12427_p10 = pnand %p12426_p9, %p12420_p4 }
 0x171   : > { %12430 = shalt.err (!%p12427_p10)
}
 0x172   : > { %s14254_s27 = sld [smem:[#allocation44_spill]]  ;;  %s14255_s19 = sld [smem:[#allocation41_spill]] }
 0x173   : > { %s14256_s29 = sld [smem:[#allocation40_spill]]  ;;  %s14257_s25 = sld [smem:[#allocation39_spill]] }
 0x174   : > { %s14258_s28 = sld [smem:[#allocation38_spill]]  ;;  %s10192_s17 = sadd.s32 4294967294, %s12611_s23  }
 0x175   : > { %11424 = dma.hbm_to_vmem [thread:$0]  (!%p12790_p5), %s14200_s13, 512, %s539_s1, [#allocation25]  }
 0x176   : > { %s14259_s0 = sld [smem:[#allocation45_spill]]  ;;  %s14260_s18 = sld [smem:[#allocation37_spill]] }
 0x177   : > { %s46_s14 = sadd.s32 1, %s12603_s21  ;;  %p66_p3 = scmp.eq.s32.totalorder %s12611_s23, 0 }
 0x178   : > { %p47_p7 = scmp.ge.s32.totalorder %s46_s14, 2  ;;  %s49_s26 = sadd.s32 1, %s14254_s27 }
 0x179   : > { %s58_s15 = sadd.s32 1, %s14255_s19  ;;  %p65_p1 = scmp.ne.s32.totalorder %s14255_s19, %s14256_s29 }
 0x17a   : > { %s14299_s14 = smov (%p47_p7, %s46_s14), 0  ;;  %s14301_s26 = smov (!%p47_p7, %s49_s26), %s14254_s27 }
 0x17b   : > { %s54_s16 = ssub.s32 %s12603_s21, %s14299_s14  ;;  %s14261_s1 = sld [smem:[#allocation36_spill]] }
 0x17c   : > { %p51_p5 = scmp.ge.s32.totalorder %s14301_s26, 2  ;;  %p71_p11 = scmp.ne.s32.totalorder %s14256_s29, %s14257_s25 }
 0x17d   : > { %p13068_p12 = por %p66_p3, %p65_p1  ;;  %s357_s20 = sadd.s32 1, %s14258_s28 }
 0x17e   : > { %s14303_s26 = smov (%p51_p5, %s14301_s26), 0  ;;  %p14263_p13 = scmp.ne.s32.totalorder %s14259_s0, 0 }
 0x17f   : > { %p367_p2 = scmp.ne.s32.totalorder %s14258_s28, %s14260_s18  ;;  %s53_s30 = ssub.s32 %s14254_s27, %s14303_s26 }
 0x180   : > { %p13077_p0 = por %p14263_p13, %p71_p11  ;;  %s14265_s29 = sadd.s32 4294967295, %s12611_s23  }
 0x181   : > { %p368_p4 = scmp.eq.s32.totalorder %s14265_s29, 3  ;;  %s55_s25 = sor.u32 %s54_s16, %s53_s30 }
 0x182   : > { %p355_p6 = scmp.eq.s32.totalorder %s53_s30, 0  ;;  %p56_p8 = scmp.eq.s32.totalorder %s55_s25, 0 }
 0x183   : > { %p13087_p9 = por %p368_p4, %p367_p2  ;;  %p373_p10 = scmp.ne.s32.totalorder %s14260_s18, %s14261_s1 }
 0x184   : > { %s14305_s28 = smov (!%p355_p6, %s14258_s28), %s357_s20  ;;  %p374_p7 = scmp.eq.s32.totalorder %s10192_s17, 3 }
 0x185   : > { %s14266_s2 = scalar_select %p13087_p9, 1, 0 }
 0x186   : > { %s13095_s0 = scalar_select %p56_p8, %s14255_s19, %s58_s15  }
 0x187   : > { %p11446_p1 = scmp.lt.s32.totalorder %s12611_s23, 4  ;;  %s549_s3 = sand.u32 1, %s14255_s19  }
 0x188   : > { %p13101_p3 = por %p374_p7, %p373_p10  ;;  %s10208_s16 = sshll.u32 %s549_s3, 7 }
 0x189   : > { %s10209_s30 = sshll.u32 %s12603_s21, 1  ;;  %s10210_s29 = sshll.u32 %s14254_s27, 5 }
 0x18a   : > { %s14267_s4 = scalar_select %p13101_p3, 1, 0 }
 0x18b   : > { %s559_s25 = sadd.s32 %s10210_s29, %s10209_s30  ;;  %s553_s5 = scalar_lea.vmem [#allocation3], %s10208_s16 }
 0x18c   : > { %s562_s6 = sshll.u32 %s553_s5, 4  ;;  %s10211_s7 = sshll.u32 %s559_s25, 7  ;;  %s13107_s6 = int_to_ptr.vmem [resolvable:$true] %s562_s6 }
 0x18d   : > { %s14268_s8 = sld [smem:[#allocation47_spill]]  ;;  %p13116_p5 = pnand %p11446_p1, %p13068_p12 }
 0x18e   : > { %s13120_s5 = scalar_lea.sflag [#allocation4], %s549_s3 }
 0x18f   : > { %p12433_p13 = pneg %p13116_p5 }
 0x193   : > { %s13112_s18 = scalar_lea.hbm %s14268_s8, %s10211_s7  ;;  %s12436_s1 = scalar_lea.hbm %s14268_s8, 8192 }
 0x194   : > { %s12431_s27 = scalar_lea.hbm %s13112_s18, 2048  ;;  %p12437_p12 = scmp.lt.u32.totalorder %s13112_s18, %s14268_s8 }
 0x195   : > { %p12432_p11 = scmp.ne.s32.totalorder %s13112_s18, %s12431_s27  ;;  %p12438_p6 = scmp.lt.u32.totalorder %s12436_s1, %s12431_s27 }
 0x196   : > { %p12440_p10 = scmp.lt.u32.totalorder %s12431_s27, %s13112_s18 }
 0x197   : > { %p12434_p2 = pnand %p12433_p13, %p12432_p11  ;;  %p12439_p8 = por %p12438_p6, %p12437_p12 }
 0x199   : > { %p12435_p4 = pneg %p12434_p2  ;;  %p12441_p7 = por %p12440_p10, %p12439_p8 }
 0x19b   : > { %p12442_p1 = pnand %p12441_p7, %p12435_p4 }
 0x19d   : > { %12445 = shalt.err (!%p12442_p1)
}
 0x19e   : > { %s12446_s3 = scalar_lea.vmem %s13107_s6, 2048  ;;  %s12635_s30 = smov [#allocation3]  }
 0x19f   : > { %p12447_p11 = scmp.ne.s32.totalorder %s13107_s6, %s12446_s3  ;;  %s12451_s29 = sshll.u32 %s12635_s30, 4  ;;  %s12452_s29 = int_to_ptr.vmem [resolvable:$false] %s12451_s29 }
 0x1a0   : > { %s12453_s25 = scalar_lea.vmem %s12452_s29, 4096  ;;  %p12454_p9 = scmp.lt.s32.totalorder %s13107_s6, %s12452_s29 }
 0x1a1   : > { %p12449_p2 = pnand %p12447_p11, %p12433_p13  ;;  %p12455_p12 = scmp.lt.s32.totalorder %s12453_s25, %s12446_s3 }
 0x1a3   : > { %p12450_p3 = pneg %p12449_p2  ;;  %p12456_p6 = por %p12455_p12, %p12454_p9 }
 0x1a5   : > { %p12457_p8 = pnand %p12456_p6, %p12450_p3 }
 0x1a7   : > { %12460 = shalt.err (!%p12457_p8)
}
 0x1a8   : > { %s14270_s20 = smov 16   ;;  %s14271_s15 = smov 256  }
 0x1a9   : > { %s14272_s27 = smov 512   ;;  %s14273_s7 = sld [smem:[#allocation46_spill]] }
 0x1aa   : > { %11428 = dma.hbm_to_vmem [thread:$0]  (!%p13116_p5), %s13112_s18, 2048, %s13107_s6, %s13120_s5, %s14272_s27, %s14271_s15, %s14270_s20  }
 0x1af   : > { %p14274_p13 = scmp.ne.s32.totalorder %s14273_s7, 0 }
 0x1b0   : > { %s14275_s17 = sld [smem:[#allocation40_spill]] (!%p14274_p13) }
 0x1b1   : > { %574 = sbr.rel (%p14274_p13) target bundleno = 3068 (0xbfc), region = 76 }
 0x1b6   : > { %s576_s1 = sand.u32 (!%p14274_p13), 1, %s14275_s17  }
 0x1b7   : > { %s10213_s24 = sshll.u32 (!%p14274_p13), %s576_s1, 7  ;;  %s577_s16 = scalar_lea.sflag (!%p14274_p13), [#allocation4], %s576_s1 }
 0x1b8   : > { %s13154_s3 = scalar_lea.vmem [#allocation3], %s10213_s24 }
 0x1b9   : > { %12534 = dma.done.wait (%p13077_p0), %s577_s16, 2048  }
 0x1ba   : > { %12536 = vsyncadd (%p13077_p0), %s577_s16, 4294965248  ;;  %s14276_s19 = sld [smem:[#allocation45_spill]] }
 0x1c0   : > { %p14277_p9 = scmp.ne.s32.totalorder %s14276_s19, 0 }
 0x1c2   : > { %12538 = dma.done.wait (%p14277_p9), [#allocation7], 528  }
 0x1c3   : > { %12540 = vsyncadd (%p14277_p9), [#allocation7], 4294966768 }
 0x1c4   : > { %12542 = dma.done.wait (%p14277_p9), [#allocation10], 528  }
 0x1c5   : > { %12544 = vsyncadd (%p14277_p9), [#allocation10], 4294966768 }
 0x1c6   : > { %12546 = dma.done.wait (%p14277_p9), [#allocation13], 8320  }
 0x1c7   : > { %12548 = vsyncadd (%p14277_p9), [#allocation13], 4294958976 }
 0x1c8   : > { %12550 = dma.done.wait (%p14277_p9), [#allocation16], 32832  }
 0x1c9   : > { %12552 = vsyncadd (%p14277_p9), [#allocation16], 4294934464 }
 0x1ca   : > { %12554 = dma.done.wait (%p14277_p9), [#allocation19], 8224  }
 0x1cb   : > { %12556 = vsyncadd (%p14277_p9), [#allocation19], 4294959072 }
 0x1cc   : > { %12558 = dma.done.wait (%p14277_p9), [#allocation22], 66048  }
 0x1cd   : > { %12560 = vsyncadd (%p14277_p9), [#allocation22], 4294901248 }
 0x1ce   : > { %12562 = dma.done.wait (%p14277_p9), [#allocation25], 512  }
 0x1cf   : > { %12564 = vsyncadd (%p14277_p9), [#allocation25], 4294966784  ;;  %s14278_s6 = sld [smem:[#allocation37_spill]]  ;;  %v679_v0 = vld [vmem:[%s13154_s3] sm:$0xff]  ;;  %v681_v1 = vld [vmem:[%s13154_s3 + $0x10] sm:$0xff]  ;;  %vm774_vm0 = vcmask 523264  }
 0x1d0   : > { %v683_v2 = vld [vmem:[%s13154_s3 + $0x20] sm:$0xff]  ;;  %v695_v3 = vpack.c.bf16 %v681_v1, %v679_v0  ;;  %v685_v4 = vld [vmem:[%s13154_s3 + $0x30] sm:$0xff]  ;;  %v680_v5 = vld [vmem:[%s13154_s3 + $0x8] sm:$0xff]  ;;  %s14279_s30 = sld [smem:[#allocation42_spill]] }
 0x1d1   : > { %v697_v6 = vpack.c.bf16 %v685_v4, %v683_v2  ;;  %v682_v7 = vld [vmem:[%s13154_s3 + $0x18] sm:$0xff]  ;;  %v684_v8 = vld [vmem:[%s13154_s3 + $0x28] sm:$0xff]  ;;  %v687_v10 = vld [vmem:[%s13154_s3 + $0x40] sm:$0xff] }
 0x1d2   : > { %718 = vxpose.xlu0.c.b16.start [1/4] (short) %v695_v3, 128  ;;  %v686_v9 = vld [vmem:[%s13154_s3 + $0x38] sm:$0xff]  ;;  %v689_v11 = vld [vmem:[%s13154_s3 + $0x50] sm:$0xff]  ;;  %v696_v12 = vpack.c.bf16 %v682_v7, %v680_v5  ;;  %v688_v13 = vld [vmem:[%s13154_s3 + $0x48] sm:$0xff] }
 0x1d3   : > { %v690_v14 = vld [vmem:[%s13154_s3 + $0x58] sm:$0xff]  ;;  %v691_v15 = vld [vmem:[%s13154_s3 + $0x60] sm:$0xff]  ;;  %v698_v16 = vpack.c.bf16 %v686_v9, %v684_v8  ;;  %v699_v18 = vpack.c.bf16 %v689_v11, %v687_v10  ;;  %v11576_v19 = vld [vmem:[#allocation6 + $0x8] sm:$0xff]  }
 0x1d4   : > { %734 = vxpose.xlu1.c.b16.start [1/4] (short) %v696_v12, 128  ;;  %v11575_v17 = vld [vmem:[#allocation6] sm:$0xff]   ;;  %v693_v20 = vld [vmem:[%s13154_s3 + $0x70] sm:$0xff]  ;;  %v692_v21 = vld [vmem:[%s13154_s3 + $0x68] sm:$0xff]  ;;  %v700_v24 = vpack.c.bf16 %v690_v14, %v688_v13 }
 0x1d5   : > { %s674_s22 = sand.u32 1, %s14278_s6   ;;  %11215 = vmatprep.subr.bf16.mxu0 %v11575_v17  ;;  %v694_v22 = vld [vmem:[%s13154_s3 + $0x78] sm:$0xff]  ;;  %v11577_v23 = vld [vmem:[#allocation6 + $0x10] sm:$0xff]   ;;  %v701_v25 = vpack.c.bf16 %v693_v20, %v691_v15  ;;  %v11579_v28 = vld [vmem:[#allocation9] sm:$0xff]  }
 0x1d6   : > { %s13191_s18 = sshll.u32 %s674_s22, 5  ;;  %719 = vxpose.xlu0.c.b16.cont [2/4] (short) %v697_v6, 128  ;;  %11216 = vmatpush3.bf16.msra.mxu0 %v11575_v17  ;;  %v702_v26 = vpack.c.bf16 %v694_v22, %v692_v21  ;;  %v11578_v27 = vld [vmem:[#allocation6 + $0x18] sm:$0xff]   ;;  %v11580_v29 = vld [vmem:[#allocation9 + $0x8] sm:$0xff]   ;;  %p10334_p0 = scmp.ne.s32.totalorder %s14279_s30, 0 }
 0x1d7   : > { %11217 = vmatprep.subr.bf16.mxu0 %v11576_v19  ;;  %11255 = vmatprep.subr.bf16.mxu1 %v11579_v28  ;;  %v11581_v46 = vld [vmem:[#allocation9 + $0x10] sm:$0xff]   ;;  %v11582_v47 = vld [vmem:[#allocation9 + $0x18] sm:$0xff]   ;;  %v1328_v48 = vld [vmem:[#allocation12] sm:$0xff]  ;;  %s13795_s5 = scalar_lea.vmem [#allocation26], %s13191_s18 }
 0x1d8   : > { %735 = vxpose.xlu1.c.b16.cont [2/4] (short) %v698_v16, 128  ;;  %11256 = vmatpush3.bf16.msra.mxu1 %v11579_v28  ;;  %v1332_v49 = vld [vmem:[#allocation12 + $0x20] sm:$0xff]  ;;  %v13225_v50 = vld [vmem:[#allocation12 + $0x8] sm:$0xff]  ;;  %v13233_v16 = vld [vmem:[#allocation8] ss:$0 sm:$0xff] }
 0x1d9   : > { %11257 = vmatprep.subr.bf16.mxu1 %v11580_v29  ;;  %v10270_v51 = vcombine.low %v1328_v48, %v1332_v49  ;;  %v10271_v52 = vcombine.high %v1328_v48, %v1332_v49  ;;  %v13227_v53 = vld [vmem:[#allocation12 + $0x28] sm:$0xff]  ;;  %v1336_v54 = vld [vmem:[#allocation12 + $0x40] sm:$0xff] }
 0x1da   : > { %720 = vxpose.xlu0.c.b16.cont [3/4] (short) %v699_v18, 128  ;;  %11218 = vmatpush3.bf16.msra.mxu0 %v11576_v19  ;;  %v1340_v55 = vld [vmem:[#allocation12 + $0x60] sm:$0xff]  ;;  %v10272_v56 = vcombine.low %v13225_v50, %v13227_v53  ;;  %v10273_v57 = vcombine.high %v13225_v50, %v13227_v53 }
 0x1db   : > { %11219 = vmatprep.subr.bf16.mxu0 %v11577_v23  ;;  %v10279_v58 = vcombine.high %v1336_v54, %v1340_v55  ;;  %v1344_v59 = vld [vmem:[#allocation12 + $0x80] sm:$0xff]  ;;  %v10278_v61 = vcombine.low %v1336_v54, %v1340_v55 }
 0x1dc   : > { %736 = vxpose.xlu1.c.b16.cont [3/4] (short) %v700_v24, 128  ;;  %11258 = vmatpush3.bf16.msra.mxu1 %v11580_v29  ;;  %v1348_v60 = vld [vmem:[#allocation12 + $0xa0] sm:$0xff]  ;;  %v1337_v29 = vld [vmem:[#allocation12 + $0x48] sm:$0xff] }
 0x1dd   : > { %11259 = vmatprep.subr.bf16.mxu1 %v11581_v46  ;;  %v10287_v62 = vcombine.high %v1344_v59, %v1348_v60  ;;  %v1352_v63 = vld [vmem:[#allocation12 + $0xc0] sm:$0xff]  ;;  %v10286_v1 = vcombine.low %v1344_v59, %v1348_v60 }
 0x1de   : > { %721 = vxpose.xlu0.c.b16.end [4/4] (short) %v701_v25, 128  ;;  %11220 = vmatpush3.bf16.msra.mxu0 %v11577_v23  ;;  %v1356_v0 = vld [vmem:[#allocation12 + $0xe0] sm:$0xff] }
 0x1df   : > { %11221 = vmatprep.subr.bf16.mxu0 %v11578_v27  ;;  %v10295_v2 = vcombine.high %v1352_v63, %v1356_v0  ;;  %v1360_v3 = vld [vmem:[#allocation12 + $0x100] sm:$0xff]  ;;  %v10294_v5 = vcombine.low %v1352_v63, %v1356_v0 }
 0x1e0   : > { %737 = vxpose.xlu1.c.b16.end [4/4] (short) %v702_v26, 128  ;;  %11260 = vmatpush3.bf16.msra.mxu1 %v11581_v46  ;;  %v1364_v4 = vld [vmem:[#allocation12 + $0x120] sm:$0xff] }
 0x1e1   : > { %11261 = vmatprep.subr.bf16.mxu1 %v11582_v47  ;;  %v10303_v6 = vcombine.high %v1360_v3, %v1364_v4  ;;  %v1368_v7 = vld [vmem:[#allocation12 + $0x140] sm:$0xff]  ;;  %v10302_v9 = vcombine.low %v1360_v3, %v1364_v4 }
 0x1e2   : > { %11222 = vmatpush3.bf16.msra.mxu0 %v11578_v27  ;;  %v1372_v8 = vld [vmem:[#allocation12 + $0x160] sm:$0xff] }
 0x1e3   : > { %1754 = vmatprep.subr.bf16.mxu0 %v10271_v52  ;;  %v10311_v10 = vcombine.high %v1368_v7, %v1372_v8  ;;  %v1376_v11 = vld [vmem:[#allocation12 + $0x180] sm:$0xff]  ;;  %v10310_v13 = vcombine.low %v1368_v7, %v1372_v8  ;;  %v1357_v52 = vld [vmem:[#allocation12 + $0xe8] sm:$0xff] }
 0x1e4   : > { %11262 = vmatpush3.bf16.msra.mxu1 %v11582_v47  ;;  %v1380_v12 = vld [vmem:[#allocation12 + $0x1a0] sm:$0xff]  ;;  %v1369_v8 = vld [vmem:[#allocation12 + $0x148] sm:$0xff] }
 0x1e5   : > { %1947 = vmatprep.subr.bf16.mxu1 %v10273_v57  ;;  %v10319_v14 = vcombine.high %v1376_v11, %v1380_v12  ;;  %v10318_v15 = vcombine.low %v1376_v11, %v1380_v12 }
 0x238   : > { %v726_v30 = vpop.trf.xlu0 }
 0x239   : > { %11223 = vmatprep.mubr.msk.bf16.mxu0 %vm774_vm0, %v726_v30  ;;  %v1341_v30 = vld [vmem:[#allocation12 + $0x68] sm:$0xff] }
 0x23a   : > { %v742_v36 = vpop.trf.xlu1  ;;  %v10280_v46 = vcombine.low %v1337_v29, %v1341_v30 }
 0x23c   : > { %v727_v31 = vpop.trf.xlu0 }
 0x23d   : > { %11224 = vmatmul.mubr.msk.bf16.vlgmr.msra.gmra.mrb[0].mxu0 %vm774_vm0, %v727_v31 }
 0x23e   : > { %v743_v39 = vpop.trf.xlu1  ;;  %1755 = vmatpush1.bf16.msra.mxu0 %v10270_v51  ;;  %v1353_v51 = vld [vmem:[#allocation12 + $0xc8] sm:$0xff] }
 0x23f   : > { %1756 = vmatprep.subr.bf16.mxu0 %v10279_v58  ;;  %v10296_v4 = vcombine.low %v1353_v51, %v1357_v52 }
 0x240   : > { %v728_v32 = vpop.trf.xlu0 }
 0x241   : > { %11227 = vmatprep.mubr.msk.bf16.mxu0 %vm774_vm0, %v728_v32 }
 0x242   : > { %v744_v40 = vpop.trf.xlu1  ;;  %1757 = vmatpush1.bf16.msra.mxu0 %v10278_v61  ;;  %v10297_v61 = vcombine.high %v1353_v51, %v1357_v52 }
 0x243   : > { %1758 = vmatprep.subr.bf16.mxu0 %v10287_v62  ;;  %v1365_v62 = vld [vmem:[#allocation12 + $0x128] sm:$0xff] }
 0x244   : > { %v729_v33 = vpop.trf.xlu0 }
 0x245   : > { %11228 = vmatmul.mubr.msk.bf16.gmra.mrb[4].mxu0 %vm774_vm0, %v729_v33 }
 0x246   : > { %v745_v41 = vpop.trf.xlu1  ;;  %1759 = vmatpush1.bf16.msra.mxu0 %v10286_v1 }
 0x247   : > { %1760 = vmatprep.subr.bf16.mxu0 %v10295_v2 }
 0x248   : > { %v730_v34 = vpop.trf.xlu0 }
 0x249   : > { %11231 = vmatprep.mubr.msk.bf16.mxu0 %vm774_vm0, %v730_v34 }
 0x24a   : > { %v746_v42 = vpop.trf.xlu1  ;;  %1761 = vmatpush1.bf16.msra.mxu0 %v10294_v5 }
 0x24b   : > { %1762 = vmatprep.subr.bf16.mxu0 %v10303_v6 }
 0x24c   : > { %v731_v35 = vpop.trf.xlu0 }
 0x24d   : > { %11232 = vmatmul.mubr.msk.bf16.gmra.mrb[8].mxu0 %vm774_vm0, %v731_v35 }
 0x24e   : > { %v747_v43 = vpop.trf.xlu1  ;;  %1763 = vmatpush1.bf16.msra.mxu0 %v10302_v9  ;;  %v1373_v9 = vld [vmem:[#allocation12 + $0x168] sm:$0xff] }
 0x24f   : > { %1764 = vmatprep.subr.bf16.mxu0 %v10311_v10 }
 0x250   : > { %v732_v37 = vpop.trf.xlu0 }
 0x251   : > { %11235 = vmatprep.mubr.msk.bf16.mxu0 %vm774_vm0, %v732_v37 }
 0x252   : > { %v748_v44 = vpop.trf.xlu1  ;;  %1765 = vmatpush1.bf16.msra.mxu0 %v10310_v13 }
 0x253   : > { %1766 = vmatprep.subr.bf16.mxu0 %v10319_v14 }
 0x254   : > { %v733_v38 = vpop.trf.xlu0 }
 0x255   : > { %11236 = vmatmul.mubr.msk.bf16.gmra.mrb[12].mxu0 %vm774_vm0, %v733_v38 }
 0x256   : > { %11239 = vmatprep.mubr.msk.bf16.mxu0 %vm774_vm0, %v742_v36  ;;  %v749_v45 = vpop.trf.xlu1  ;;  %1767 = vmatpush1.bf16.msra.mxu0 %v10318_v15  ;;  %v10281_v36 = vcombine.high %v1337_v29, %v1341_v30 }
 0x25d   : > { %11240 = vmatmul.mubr.msk.bf16.gmra.mrb[16].mxu0 %vm774_vm0, %v743_v39  ;;  %v1345_v39 = vld [vmem:[#allocation12 + $0x88] sm:$0xff] }
 0x25e   : > { %11243 = vmatprep.mubr.msk.bf16.mxu0 %vm774_vm0, %v744_v40  ;;  %v1349_v40 = vld [vmem:[#allocation12 + $0xa8] sm:$0xff] }
 0x25f   : > { %v10289_v48 = vcombine.high %v1345_v39, %v1349_v40  ;;  %v10288_v58 = vcombine.low %v1345_v39, %v1349_v40 }
 0x265   : > { %11244 = vmatmul.mubr.msk.bf16.gmra.mrb[20].mxu0 %vm774_vm0, %v745_v41 }
 0x266   : > { %11247 = vmatprep.mubr.msk.bf16.mxu0 %vm774_vm0, %v746_v42 }
 0x26d   : > { %11248 = vmatmul.mubr.msk.bf16.gmra.mrb[24].mxu0 %vm774_vm0, %v747_v43 }
 0x26e   : > { %11251 = vmatprep.mubr.msk.bf16.mxu0 %vm774_vm0, %v748_v44 }
 0x275   : > { %11252 = vmatmul.mubr.msk.bf16.gmra.mrb[28].mxu0 %vm774_vm0, %v749_v45 }
 0x310   : > { %v11225_v17 = vpop.f32.mrb[0].mxu0 }
 0x311   : > { %v866_v18 = vadd.f32 %v11225_v17, %v13233_v16  ;;  %v857_v19 = vpop.f32.mrb[1].mxu0  ;;  %v10313_v17 = vcombine.high %v1369_v8, %v1373_v9 }
 0x312   : > { %v858_v20 = vadd.f32 %v13233_v16, %v857_v19  ;;  %v11226_v21 = vpop.f32.mrb[2].mxu0 }
 0x313   : > { %v869_v22 = vadd.f32 %v11226_v21, %v13233_v16  ;;  %v860_v23 = vpop.f32.mrb[3].mxu0  ;;  %v986_v25 = vmax.f32 %v866_v18, 0.0  ;;  %v1381_v21 = vld [vmem:[#allocation12 + $0x1a8] sm:$0xff] }
 0x314   : > { %v861_v24 = vadd.f32 %v13233_v16, %v860_v23  ;;  %v984_v27 = vmax.f32 %v858_v20, 0.0  ;;  %v1377_v20 = vld [vmem:[#allocation12 + $0x188] sm:$0xff] }
 0x315   : > { %v987_v26 = vmax.f32 %v869_v22, 0.0  ;;  %v10321_v29 = vcombine.high %v1377_v20, %v1381_v21 }
 0x316   : > { %v985_v28 = vmax.f32 %v861_v24, 0.0 }
 0x317   : > { %v1017_v31 = vpack.c.bf16 %v987_v26, %v986_v25 }
 0x318   : > { %v11229_v32 = vpop.f32.mrb[4].mxu0  ;;  %v1016_v33 = vpack.c.bf16 %v985_v28, %v984_v27  ;;  %v10312_v27 = vcombine.low %v1369_v8, %v1373_v9 }
 0x319   : > { %v882_v34 = vadd.f32 %v11229_v32, %v13233_v16  ;;  %v873_v35 = vpop.f32.mrb[5].mxu0 }
 0x31a   : > { %v874_v37 = vadd.f32 %v13233_v16, %v873_v35  ;;  %11263 = vmatprep.mubr.msk.bf16.mxu1 %vm774_vm0, %v1016_v33  ;;  %v11230_v38 = vpop.f32.mrb[6].mxu0 }
 0x31b   : > { %v990_v41 = vmax.f32 %v882_v34, 0.0  ;;  %v885_v42 = vadd.f32 %v11230_v38, %v13233_v16  ;;  %11264 = vmatmul.mubr.msk.bf16.vlgmr.msra.gmra.mrb[0].mxu1 %vm774_vm0, %v1017_v31  ;;  %v876_v43 = vpop.f32.mrb[7].mxu0  ;;  %v10320_v34 = vcombine.low %v1377_v20, %v1381_v21 }
 0x31c   : > { %v988_v44 = vmax.f32 %v874_v37, 0.0  ;;  %v877_v45 = vadd.f32 %v13233_v16, %v876_v43  ;;  %1948 = vmatpush1.bf16.msra.mxu1 %v10272_v56  ;;  %v1361_v56 = vld [vmem:[#allocation12 + $0x108] sm:$0xff] }
 0x31d   : > { %v991_v47 = vmax.f32 %v885_v42, 0.0  ;;  %1949 = vmatprep.subr.bf16.mxu1 %v10281_v36  ;;  %v10305_v6 = vcombine.high %v1361_v56, %v1365_v62  ;;  %v10304_v13 = vcombine.low %v1361_v56, %v1365_v62 }
 0x31e   : > { %v989_v49 = vmax.f32 %v877_v45, 0.0 }
 0x31f   : > { %v1019_v54 = vpack.c.bf16 %v991_v47, %v990_v41 }
 0x320   : > { %v1018_v55 = vpack.c.bf16 %v989_v49, %v988_v44  ;;  %v11233_v57 = vpop.f32.mrb[8].mxu0  ;;  %1950 = vmatpush1.bf16.msra.mxu1 %v10280_v46 }
 0x321   : > { %v898_v59 = vadd.f32 %v11233_v57, %v13233_v16  ;;  %v889_v60 = vpop.f32.mrb[9].mxu0  ;;  %1951 = vmatprep.subr.bf16.mxu1 %v10289_v48 }
 0x322   : > { %11267 = vmatprep.mubr.msk.bf16.mxu1 %vm774_vm0, %v1018_v55  ;;  %v890_v50 = vadd.f32 %v13233_v16, %v889_v60  ;;  %v11234_v53 = vpop.f32.mrb[10].mxu0 }
 0x323   : > { %11268 = vmatmul.mubr.msk.bf16.gmra.mrb[4].mxu1 %vm774_vm0, %v1019_v54  ;;  %v994_v63 = vmax.f32 %v898_v59, 0.0  ;;  %v901_v0 = vadd.f32 %v11234_v53, %v13233_v16  ;;  %v892_v1 = vpop.f32.mrb[11].mxu0 }
 0x324   : > { %v992_v2 = vmax.f32 %v890_v50, 0.0  ;;  %v893_v3 = vadd.f32 %v13233_v16, %v892_v1  ;;  %1952 = vmatpush1.bf16.msra.mxu1 %v10288_v58 }
 0x325   : > { %v995_v5 = vmax.f32 %v901_v0, 0.0  ;;  %1953 = vmatprep.subr.bf16.mxu1 %v10297_v61 }
 0x326   : > { %v993_v7 = vmax.f32 %v893_v3, 0.0 }
 0x327   : > { %v1021_v10 = vpack.c.bf16 %v995_v5, %v994_v63 }
 0x328   : > { %v1020_v11 = vpack.c.bf16 %v993_v7, %v992_v2  ;;  %v11237_v12 = vpop.f32.mrb[12].mxu0  ;;  %1954 = vmatpush1.bf16.msra.mxu1 %v10296_v4 }
 0x329   : > { %v914_v14 = vadd.f32 %v11237_v12, %v13233_v16  ;;  %v905_v15 = vpop.f32.mrb[13].mxu0  ;;  %1955 = vmatprep.subr.bf16.mxu1 %v10305_v6 }
 0x32a   : > { %11271 = vmatprep.mubr.msk.bf16.mxu1 %vm774_vm0, %v1020_v11  ;;  %v906_v18 = vadd.f32 %v13233_v16, %v905_v15  ;;  %v11238_v19 = vpop.f32.mrb[14].mxu0 }
 0x32b   : > { %11272 = vmatmul.mubr.msk.bf16.gmra.mrb[8].mxu1 %vm774_vm0, %v1021_v10  ;;  %v998_v22 = vmax.f32 %v914_v14, 0.0  ;;  %v917_v23 = vadd.f32 %v11238_v19, %v13233_v16  ;;  %v908_v24 = vpop.f32.mrb[15].mxu0 }
 0x32c   : > { %v996_v25 = vmax.f32 %v906_v18, 0.0  ;;  %v909_v26 = vadd.f32 %v13233_v16, %v908_v24  ;;  %1956 = vmatpush1.bf16.msra.mxu1 %v10304_v13 }
 0x32d   : > { %v999_v28 = vmax.f32 %v917_v23, 0.0  ;;  %1957 = vmatprep.subr.bf16.mxu1 %v10313_v17 }
 0x32e   : > { %v997_v30 = vmax.f32 %v909_v26, 0.0 }
 0x32f   : > { %v1023_v31 = vpack.c.bf16 %v999_v28, %v998_v22  ;;  %v1388_v28 = vld [vmem:[#allocation12 + $0x1e0] sm:$0xff] }
 0x330   : > { %v1022_v32 = vpack.c.bf16 %v997_v30, %v996_v25  ;;  %v11241_v33 = vpop.f32.mrb[16].mxu0  ;;  %1958 = vmatpush1.bf16.msra.mxu1 %v10312_v27  ;;  %v1384_v27 = vld [vmem:[#allocation12 + $0x1c0] sm:$0xff] }
 0x331   : > { %v930_v35 = vadd.f32 %v11241_v33, %v13233_v16  ;;  %v921_v36 = vpop.f32.mrb[17].mxu0  ;;  %1959 = vmatprep.subr.bf16.mxu1 %v10321_v29  ;;  %v1385_v29 = vld [vmem:[#allocation12 + $0x1c8] sm:$0xff]  ;;  %v10326_v30 = vcombine.low %v1384_v27, %v1388_v28 }
 0x332   : > { %11275 = vmatprep.mubr.msk.bf16.mxu1 %vm774_vm0, %v1022_v32  ;;  %v922_v37 = vadd.f32 %v13233_v16, %v921_v36  ;;  %v11242_v38 = vpop.f32.mrb[18].mxu0  ;;  %v1389_v32 = vld [vmem:[#allocation12 + $0x1e8] sm:$0xff]  ;;  %v1334_v36 = vld [vmem:[#allocation12 + $0x30] sm:$0xff] }
 0x333   : > { %11276 = vmatmul.mubr.msk.bf16.gmra.mrb[12].mxu1 %vm774_vm0, %v1023_v31  ;;  %v1002_v39 = vmax.f32 %v930_v35, 0.0  ;;  %v933_v40 = vadd.f32 %v11242_v38, %v13233_v16  ;;  %v924_v41 = vpop.f32.mrb[19].mxu0  ;;  %v10327_v31 = vcombine.high %v1384_v27, %v1388_v28  ;;  %v10328_v33 = vcombine.low %v1385_v29, %v1389_v32  ;;  %v1330_v35 = vld [vmem:[#allocation12 + $0x10] sm:$0xff] }
 0x334   : > { %v1000_v42 = vmax.f32 %v922_v37, 0.0  ;;  %v925_v43 = vadd.f32 %v13233_v16, %v924_v41  ;;  %1960 = vmatpush1.bf16.msra.mxu1 %v10320_v34  ;;  %v10329_v34 = vcombine.high %v1385_v29, %v1389_v32  ;;  %v1331_v37 = vld [vmem:[#allocation12 + $0x18] sm:$0xff]  ;;  %v10274_v38 = vcombine.low %v1330_v35, %v1334_v36 }
 0x335   : > { %v1003_v44 = vmax.f32 %v933_v40, 0.0  ;;  %1768 = vmatprep.subr.bf16.mxu0 %v10327_v31  ;;  %v1335_v40 = vld [vmem:[#allocation12 + $0x38] sm:$0xff] }
 0x336   : > { %v1001_v45 = vmax.f32 %v925_v43, 0.0  ;;  %1961 = vmatprep.subr.bf16.mxu1 %v10329_v34  ;;  %1769 = vmatpush1.bf16.msra.mxu0 %v10326_v30  ;;  %v10276_v41 = vcombine.low %v1331_v37, %v1335_v40  ;;  %v13288_v43 = vld [vmem:[#allocation11] ss:$0 sm:$0xff]  ;;  %v1362_v34 = vld [vmem:[#allocation12 + $0x110] sm:$0xff] }
 0x337   : > { %v1025_v46 = vpack.c.bf16 %v1003_v44, %v1002_v39  ;;  %v10275_v39 = vcombine.high %v1330_v35, %v1334_v36 }
 0x338   : > { %v1024_v47 = vpack.c.bf16 %v1001_v45, %v1000_v42  ;;  %v11245_v48 = vpop.f32.mrb[20].mxu0  ;;  %1962 = vmatpush1.bf16.msra.mxu1 %v10328_v33  ;;  %v10277_v42 = vcombine.high %v1331_v37, %v1335_v40  ;;  %v1366_v37 = vld [vmem:[#allocation12 + $0x130] sm:$0xff] }
 0x339   : > { %v946_v49 = vadd.f32 %v11245_v48, %v13233_v16  ;;  %v937_v51 = vpop.f32.mrb[21].mxu0  ;;  %2140 = vmatprep.subr.bf16.mxu0 %v10275_v39  ;;  %v1367_v39 = vld [vmem:[#allocation12 + $0x138] sm:$0xff] }
 0x33a   : > { %11279 = vmatprep.mubr.msk.bf16.mxu1 %vm774_vm0, %v1024_v47  ;;  %v938_v52 = vadd.f32 %v13233_v16, %v937_v51  ;;  %v11246_v54 = vpop.f32.mrb[22].mxu0  ;;  %2333 = vmatprep.subr.bf16.mxu1 %v10277_v42 }
 0x33b   : > { %11280 = vmatmul.mubr.msk.bf16.gmra.mrb[16].mxu1 %vm774_vm0, %v1025_v46  ;;  %v1006_v55 = vmax.f32 %v946_v49, 0.0  ;;  %v949_v57 = vadd.f32 %v11246_v54, %v13233_v16  ;;  %v940_v58 = vpop.f32.mrb[23].mxu0 }
 0x33c   : > { %v1004_v59 = vmax.f32 %v938_v52, 0.0  ;;  %v941_v60 = vadd.f32 %v13233_v16, %v940_v58 }
 0x33d   : > { %v1007_v61 = vmax.f32 %v949_v57, 0.0  ;;  %v1338_v57 = vld [vmem:[#allocation12 + $0x50] sm:$0xff] }
 0x33e   : > { %v1005_v50 = vmax.f32 %v941_v60, 0.0  ;;  %v1342_v60 = vld [vmem:[#allocation12 + $0x70] sm:$0xff] }
 0x33f   : > { %v1027_v53 = vpack.c.bf16 %v1007_v61, %v1006_v55  ;;  %v1339_v61 = vld [vmem:[#allocation12 + $0x58] sm:$0xff] }
 0x340   : > { %v1026_v56 = vpack.c.bf16 %v1005_v50, %v1004_v59  ;;  %v11249_v62 = vpop.f32.mrb[24].mxu0  ;;  %v1343_v50 = vld [vmem:[#allocation12 + $0x78] sm:$0xff] }
 0x341   : > { %v962_v63 = vadd.f32 %v11249_v62, %v13233_v16  ;;  %v953_v0 = vpop.f32.mrb[25].mxu0 }
 0x342   : > { %11283 = vmatprep.mubr.msk.bf16.mxu1 %vm774_vm0, %v1026_v56  ;;  %v954_v1 = vadd.f32 %v13233_v16, %v953_v0  ;;  %v11250_v2 = vpop.f32.mrb[26].mxu0 }
 0x343   : > { %11284 = vmatmul.mubr.msk.bf16.gmra.mrb[20].mxu1 %vm774_vm0, %v1027_v53  ;;  %v1010_v3 = vmax.f32 %v962_v63, 0.0  ;;  %v965_v4 = vadd.f32 %v11250_v2, %v13233_v16  ;;  %v956_v5 = vpop.f32.mrb[27].mxu0  ;;  %v1346_v63 = vld [vmem:[#allocation12 + $0x90] sm:$0xff]  ;;  %v10283_v2 = vcombine.high %v1338_v57, %v1342_v60 }
 0x344   : > { %v1008_v6 = vmax.f32 %v954_v1, 0.0  ;;  %v957_v7 = vadd.f32 %v13233_v16, %v956_v5  ;;  %v1347_v5 = vld [vmem:[#allocation12 + $0x98] sm:$0xff] }
 0x345   : > { %v1011_v8 = vmax.f32 %v965_v4, 0.0  ;;  %v1350_v4 = vld [vmem:[#allocation12 + $0xb0] sm:$0xff] }
 0x346   : > { %v1009_v9 = vmax.f32 %v957_v7, 0.0  ;;  %v10290_v28 = vcombine.low %v1346_v63, %v1350_v4 }
 0x347   : > { %v1029_v10 = vpack.c.bf16 %v1011_v8, %v1010_v3  ;;  %v10285_v3 = vcombine.high %v1339_v61, %v1343_v50 }
 0x348   : > { %v1028_v11 = vpack.c.bf16 %v1009_v9, %v1008_v6  ;;  %v11253_v12 = vpop.f32.mrb[28].mxu0  ;;  %v1351_v6 = vld [vmem:[#allocation12 + $0xb8] sm:$0xff] }
 0x349   : > { %v978_v13 = vadd.f32 %v11253_v12, %v13233_v16  ;;  %v969_v14 = vpop.f32.mrb[29].mxu0  ;;  %v10282_v12 = vcombine.low %v1338_v57, %v1342_v60  ;;  %v10292_v29 = vcombine.low %v1347_v5, %v1351_v6  ;;  %v1371_v57 = vld [vmem:[#allocation12 + $0x158] sm:$0xff] }
 0x34a   : > { %11287 = vmatprep.mubr.msk.bf16.mxu1 %vm774_vm0, %v1028_v11  ;;  %v970_v15 = vadd.f32 %v13233_v16, %v969_v14  ;;  %v11254_v17 = vpop.f32.mrb[30].mxu0 }
 0x34b   : > { %11288 = vmatmul.mubr.msk.bf16.gmra.mrb[24].mxu1 %vm774_vm0, %v1029_v10  ;;  %v1014_v18 = vmax.f32 %v978_v13, 0.0  ;;  %v981_v19 = vadd.f32 %v11254_v17, %v13233_v16  ;;  %v972_v20 = vpop.f32.mrb[31].mxu0  ;;  %v10284_v13 = vcombine.low %v1339_v61, %v1343_v50  ;;  %v10291_v17 = vcombine.high %v1346_v63, %v1350_v4 }
 0x34c   : > { %v1012_v21 = vmax.f32 %v970_v15, 0.0  ;;  %v973_v22 = vadd.f32 %v13233_v16, %v972_v20  ;;  %v12636_v16 = vmov 0   ;;  %v1354_v20 = vld [vmem:[#allocation12 + $0xd0] sm:$0xff]  ;;  %v10306_v50 = vcombine.low %v1362_v34, %v1366_v37 }
 0x34d   : > { %v1015_v23 = vmax.f32 %v981_v19, 0.0  ;;  %1786 = vmatprep.mubr.bf16.mxu0 %v12636_v16 }
 0x34e   : > { %v1013_v24 = vmax.f32 %v973_v22, 0.0  ;;  %v1358_v22 = vld [vmem:[#allocation12 + $0xf0] sm:$0xff] }
 0x34f   : > { %v1031_v25 = vpack.c.bf16 %v1015_v23, %v1014_v18  ;;  %v10293_v18 = vcombine.high %v1347_v5, %v1351_v6  ;;  %v1355_v23 = vld [vmem:[#allocation12 + $0xd8] sm:$0xff]  ;;  %v10299_v32 = vcombine.high %v1354_v20, %v1358_v22  ;;  %v1382_v6 = vld [vmem:[#allocation12 + $0x1b0] sm:$0xff] }
 0x350   : > { %v1030_v26 = vpack.c.bf16 %v1013_v24, %v1012_v21  ;;  %v1359_v24 = vld [vmem:[#allocation12 + $0xf8] sm:$0xff] }
 0x351   : > { %v10301_v33 = vcombine.high %v1355_v23, %v1359_v24 }
 0x352   : > { %11291 = vmatprep.mubr.msk.bf16.mxu1 %vm774_vm0, %v1030_v26 }
 0x353   : > { %11292 = vmatmul.mubr.msk.bf16.gmra.mrb[28].mxu1 %vm774_vm0, %v1031_v25 }
 0x354   : > { %1979 = vmatprep.mubr.bf16.mxu1 %v12636_v16 }
 0x3ee   : > { %v11265_v44 = vpop.f32.mrb[0].mxu1 }
 0x3ef   : > { %v1162_v45 = vadd.f32 %v11265_v44, %v13288_v43  ;;  %v1153_v46 = vpop.f32.mrb[1].mxu1 }
 0x3f0   : > { %v1154_v47 = vadd.f32 %v13288_v43, %v1153_v46  ;;  %v11266_v48 = vpop.f32.mrb[2].mxu1  ;;  %v10298_v46 = vcombine.low %v1354_v20, %v1358_v22  ;;  %v1386_v20 = vld [vmem:[#allocation12 + $0x1d0] sm:$0xff] }
 0x3f1   : > { %v1165_v49 = vadd.f32 %v11266_v48, %v13288_v43  ;;  %v1156_v51 = vpop.f32.mrb[3].mxu1  ;;  %v1282_v54 = vmax.f32 %v1162_v45, 0.0  ;;  %v1390_v22 = vld [vmem:[#allocation12 + $0x1f0] sm:$0xff] }
 0x3f2   : > { %v1157_v52 = vadd.f32 %v13288_v43, %v1156_v51  ;;  %v1280_v58 = vmax.f32 %v1154_v47, 0.0  ;;  %v10300_v47 = vcombine.low %v1355_v23, %v1359_v24  ;;  %v1387_v23 = vld [vmem:[#allocation12 + $0x1d8] sm:$0xff] }
 0x3f3   : > { %v1283_v55 = vmax.f32 %v1165_v49, 0.0  ;;  %v10307_v49 = vcombine.high %v1362_v34, %v1366_v37  ;;  %v1391_v24 = vld [vmem:[#allocation12 + $0x1f8] sm:$0xff]  ;;  %v10331_v34 = vcombine.high %v1386_v20, %v1390_v22 }
 0x3f4   : > { %v1281_v59 = vmax.f32 %v1157_v52, 0.0  ;;  %v1370_v52 = vld [vmem:[#allocation12 + $0x150] sm:$0xff] }
 0x3f5   : > { %v13294_v53 = vpack.c.bf16 %v1283_v55, %v1282_v54  ;;  %v1374_v55 = vld [vmem:[#allocation12 + $0x170] sm:$0xff] }
 0x3f6   : > { %v13296_v56 = vpack.c.bf16 %v1281_v59, %v1280_v58  ;;  %v11269_v62 = vpop.f32.mrb[4].mxu1  ;;  %v1375_v58 = vld [vmem:[#allocation12 + $0x178] sm:$0xff] }
 0x3f7   : > { %v1178_v0 = vadd.f32 %v11269_v62, %v13288_v43  ;;  %v1169_v1 = vpop.f32.mrb[5].mxu1 }
 0x3f8   : > { %v1170_v7 = vadd.f32 %v13288_v43, %v1169_v1  ;;  %1787 = vmatmul.mubr.bf16.vlgmr.msra.gmra.mrb[32].mxu0 %v13296_v56  ;;  %1980 = vmatmul.mubr.bf16.vlgmr.msra.gmra.mrb[32].mxu1 %v13296_v56  ;;  %v11270_v8 = vpop.f32.mrb[6].mxu1  ;;  %v10315_v1 = vcombine.high %v1370_v52, %v1374_v55 }
 0x3f9   : > { %v1286_v9 = vmax.f32 %v1178_v0, 0.0  ;;  %2141 = vmatpush1.bf16.msra.mxu0 %v10274_v38  ;;  %2334 = vmatpush1.bf16.msra.mxu1 %v10276_v41  ;;  %v1181_v10 = vadd.f32 %v11270_v8, %v13288_v43  ;;  %v1172_v11 = vpop.f32.mrb[7].mxu1  ;;  %v1363_v38 = vld [vmem:[#allocation12 + $0x118] sm:$0xff] }
 0x3fa   : > { %v1284_v14 = vmax.f32 %v1170_v7, 0.0  ;;  %v1173_v15 = vadd.f32 %v13288_v43, %v1172_v11  ;;  %1796 = vmatprep.mubr.bf16.mxu0 %v12636_v16  ;;  %1989 = vmatprep.mubr.bf16.mxu1 %v12636_v16  ;;  %v10309_v51 = vcombine.high %v1363_v38, %v1367_v39  ;;  %v10308_v62 = vcombine.low %v1363_v38, %v1367_v39  ;;  %v1379_v7 = vld [vmem:[#allocation12 + $0x198] sm:$0xff] }
 0x3fb   : > { %v1287_v19 = vmax.f32 %v1181_v10, 0.0  ;;  %2142 = vmatprep.subr.bf16.mxu0 %v10283_v2  ;;  %2335 = vmatprep.subr.bf16.mxu1 %v10285_v3  ;;  %v10317_v2 = vcombine.high %v1371_v57, %v1375_v58  ;;  %v1378_v3 = vld [vmem:[#allocation12 + $0x190] sm:$0xff]  ;;  %v1383_v8 = vld [vmem:[#allocation12 + $0x1b8] sm:$0xff] }
 0x3fc   : > { %v1285_v21 = vmax.f32 %v1173_v15, 0.0  ;;  %v10316_v15 = vcombine.low %v1371_v57, %v1375_v58 }
 0x3fd   : > { %v13306_v25 = vpack.c.bf16 %v1287_v19, %v1286_v9  ;;  %2143 = vmatpush1.bf16.msra.mxu0 %v10282_v12  ;;  %2336 = vmatpush1.bf16.msra.mxu1 %v10284_v13  ;;  %v10325_v19 = vcombine.high %v1379_v7, %v1383_v8 }
 0x3fe   : > { %v13308_v26 = vpack.c.bf16 %v1285_v21, %v1284_v14  ;;  %v11273_v27 = vpop.f32.mrb[8].mxu1  ;;  %2144 = vmatprep.subr.bf16.mxu0 %v10291_v17  ;;  %2337 = vmatprep.subr.bf16.mxu1 %v10293_v18  ;;  %v10314_v14 = vcombine.low %v1370_v52, %v1374_v55  ;;  %v10323_v18 = vcombine.high %v1378_v3, %v1382_v6 }
 0x3ff   : > { %v1194_v30 = vadd.f32 %v11273_v27, %v13288_v43  ;;  %v1185_v31 = vpop.f32.mrb[9].mxu1 }
 0x400   : > { %1797 = vmatmul.mubr.bf16.gmra.mrb[36].mxu0 %v13294_v53  ;;  %1990 = vmatmul.mubr.bf16.gmra.mrb[36].mxu1 %v13294_v53  ;;  %v1186_v35 = vadd.f32 %v13288_v43, %v1185_v31  ;;  %v11274_v36 = vpop.f32.mrb[10].mxu1  ;;  %v10324_v31 = vcombine.low %v1379_v7, %v1383_v8 }
 0x401   : > { %v1290_v40 = vmax.f32 %v1194_v30, 0.0  ;;  %1806 = vmatprep.mubr.bf16.mxu0 %v12636_v16  ;;  %1999 = vmatprep.mubr.bf16.mxu1 %v12636_v16  ;;  %v1197_v41 = vadd.f32 %v11274_v36, %v13288_v43  ;;  %v1188_v42 = vpop.f32.mrb[11].mxu1  ;;  %v10322_v30 = vcombine.low %v1378_v3, %v1382_v6 }
 0x402   : > { %v1288_v44 = vmax.f32 %v1186_v35, 0.0  ;;  %v1189_v45 = vadd.f32 %v13288_v43, %v1188_v42  ;;  %2145 = vmatpush1.bf16.msra.mxu0 %v10290_v28  ;;  %2338 = vmatpush1.bf16.msra.mxu1 %v10292_v29  ;;  %v10333_v35 = vcombine.high %v1387_v23, %v1391_v24 }
 0x403   : > { %v1291_v48 = vmax.f32 %v1197_v41, 0.0  ;;  %2146 = vmatprep.subr.bf16.mxu0 %v10299_v32  ;;  %2339 = vmatprep.subr.bf16.mxu1 %v10301_v33 }
 0x404   : > { %v1289_v54 = vmax.f32 %v1189_v45, 0.0  ;;  %v10332_v45 = vcombine.low %v1387_v23, %v1391_v24 }
 0x405   : > { %v13318_v59 = vpack.c.bf16 %v1291_v48, %v1290_v40 }
 0x406   : > { %v13320_v60 = vpack.c.bf16 %v1289_v54, %v1288_v44  ;;  %v11277_v61 = vpop.f32.mrb[12].mxu1  ;;  %2147 = vmatpush1.bf16.msra.mxu0 %v10298_v46  ;;  %2340 = vmatpush1.bf16.msra.mxu1 %v10300_v47  ;;  %v10330_v44 = vcombine.low %v1386_v20, %v1390_v22 }
 0x407   : > { %v1210_v63 = vadd.f32 %v11277_v61, %v13288_v43  ;;  %v1201_v0 = vpop.f32.mrb[13].mxu1  ;;  %2148 = vmatprep.subr.bf16.mxu0 %v10307_v49  ;;  %2341 = vmatprep.subr.bf16.mxu1 %v10309_v51 }
 0x408   : > { %1807 = vmatmul.mubr.bf16.gmra.mrb[40].mxu0 %v13308_v26  ;;  %2000 = vmatmul.mubr.bf16.gmra.mrb[40].mxu1 %v13308_v26  ;;  %v1202_v4 = vadd.f32 %v13288_v43, %v1201_v0  ;;  %v11278_v5 = vpop.f32.mrb[14].mxu1 }
 0x409   : > { %1816 = vmatprep.mubr.bf16.mxu0 %v12636_v16  ;;  %2009 = vmatprep.mubr.bf16.mxu1 %v12636_v16  ;;  %v1294_v9 = vmax.f32 %v1210_v63, 0.0  ;;  %v1213_v10 = vadd.f32 %v11278_v5, %v13288_v43  ;;  %v1204_v11 = vpop.f32.mrb[15].mxu1 }
 0x40a   : > { %v1292_v12 = vmax.f32 %v1202_v4, 0.0  ;;  %v1205_v13 = vadd.f32 %v13288_v43, %v1204_v11  ;;  %2149 = vmatpush1.bf16.msra.mxu0 %v10306_v50  ;;  %2342 = vmatpush1.bf16.msra.mxu1 %v10308_v62 }
 0x40b   : > { %v1295_v17 = vmax.f32 %v1213_v10, 0.0  ;;  %2150 = vmatprep.subr.bf16.mxu0 %v10315_v1  ;;  %2343 = vmatprep.subr.bf16.mxu1 %v10317_v2 }
 0x40c   : > { %v1293_v21 = vmax.f32 %v1205_v13, 0.0 }
 0x40d   : > { %v13330_v27 = vpack.c.bf16 %v1295_v17, %v1294_v9 }
 0x40e   : > { %v13332_v28 = vpack.c.bf16 %v1293_v21, %v1292_v12  ;;  %v11281_v29 = vpop.f32.mrb[16].mxu1  ;;  %2151 = vmatpush1.bf16.msra.mxu0 %v10314_v14  ;;  %2344 = vmatpush1.bf16.msra.mxu1 %v10316_v15 }
 0x40f   : > { %v1226_v32 = vadd.f32 %v11281_v29, %v13288_v43  ;;  %v1217_v33 = vpop.f32.mrb[17].mxu1  ;;  %2152 = vmatprep.subr.bf16.mxu0 %v10323_v18  ;;  %2345 = vmatprep.subr.bf16.mxu1 %v10325_v19 }
 0x410   : > { %1817 = vmatmul.mubr.bf16.gmra.mrb[44].mxu0 %v13306_v25  ;;  %2010 = vmatmul.mubr.bf16.gmra.mrb[44].mxu1 %v13306_v25  ;;  %v1218_v36 = vadd.f32 %v13288_v43, %v1217_v33  ;;  %v11282_v37 = vpop.f32.mrb[18].mxu1 }
 0x411   : > { %1826 = vmatprep.mubr.bf16.mxu0 %v12636_v16  ;;  %2019 = vmatprep.mubr.bf16.mxu1 %v12636_v16  ;;  %v1298_v38 = vmax.f32 %v1226_v32, 0.0  ;;  %v1229_v39 = vadd.f32 %v11282_v37, %v13288_v43  ;;  %v1220_v40 = vpop.f32.mrb[19].mxu1 }
 0x412   : > { %v1296_v41 = vmax.f32 %v1218_v36, 0.0  ;;  %v1221_v42 = vadd.f32 %v13288_v43, %v1220_v40  ;;  %2153 = vmatpush1.bf16.msra.mxu0 %v10322_v30  ;;  %2346 = vmatpush1.bf16.msra.mxu1 %v10324_v31 }
 0x413   : > { %v1299_v46 = vmax.f32 %v1229_v39, 0.0  ;;  %2154 = vmatprep.subr.bf16.mxu0 %v10331_v34  ;;  %2347 = vmatprep.subr.bf16.mxu1 %v10333_v35 }
 0x414   : > { %v1297_v47 = vmax.f32 %v1221_v42, 0.0 }
 0x415   : > { %v13342_v48 = vpack.c.bf16 %v1299_v46, %v1298_v38 }
 0x416   : > { %v13344_v49 = vpack.c.bf16 %v1297_v47, %v1296_v41  ;;  %v11285_v51 = vpop.f32.mrb[20].mxu1  ;;  %2155 = vmatpush1.bf16.msra.mxu0 %v10330_v44  ;;  %2348 = vmatpush1.bf16.msra.mxu1 %v10332_v45 }
 0x417   : > { %v1242_v52 = vadd.f32 %v11285_v51, %v13288_v43  ;;  %v1233_v54 = vpop.f32.mrb[21].mxu1 }
 0x418   : > { %1827 = vmatmul.mubr.bf16.gmra.mrb[48].mxu0 %v13320_v60  ;;  %2020 = vmatmul.mubr.bf16.gmra.mrb[48].mxu1 %v13320_v60  ;;  %v1234_v55 = vadd.f32 %v13288_v43, %v1233_v54  ;;  %v11286_v57 = vpop.f32.mrb[22].mxu1 }
 0x419   : > { %1836 = vmatprep.mubr.bf16.mxu0 %v12636_v16  ;;  %2029 = vmatprep.mubr.bf16.mxu1 %v12636_v16  ;;  %v1302_v58 = vmax.f32 %v1242_v52, 0.0  ;;  %v1245_v61 = vadd.f32 %v11286_v57, %v13288_v43  ;;  %v1236_v50 = vpop.f32.mrb[23].mxu1 }
 0x41a   : > { %v1300_v62 = vmax.f32 %v1234_v55, 0.0  ;;  %v1237_v63 = vadd.f32 %v13288_v43, %v1236_v50 }
 0x41b   : > { %v1303_v0 = vmax.f32 %v1245_v61, 0.0 }
 0x41c   : > { %v1301_v1 = vmax.f32 %v1237_v63, 0.0 }
 0x41d   : > { %v13354_v2 = vpack.c.bf16 %v1303_v0, %v1302_v58 }
 0x41e   : > { %v13356_v3 = vpack.c.bf16 %v1301_v1, %v1300_v62  ;;  %v11289_v4 = vpop.f32.mrb[24].mxu1 }
 0x41f   : > { %v1258_v5 = vadd.f32 %v11289_v4, %v13288_v43  ;;  %v1249_v6 = vpop.f32.mrb[25].mxu1 }
 0x420   : > { %1837 = vmatmul.mubr.bf16.gmra.mrb[52].mxu0 %v13318_v59  ;;  %2030 = vmatmul.mubr.bf16.gmra.mrb[52].mxu1 %v13318_v59  ;;  %v1250_v7 = vadd.f32 %v13288_v43, %v1249_v6  ;;  %v11290_v8 = vpop.f32.mrb[26].mxu1 }
 0x421   : > { %1846 = vmatprep.mubr.bf16.mxu0 %v12636_v16  ;;  %2039 = vmatprep.mubr.bf16.mxu1 %v12636_v16  ;;  %v1306_v9 = vmax.f32 %v1258_v5, 0.0  ;;  %v1261_v10 = vadd.f32 %v11290_v8, %v13288_v43  ;;  %v1252_v11 = vpop.f32.mrb[27].mxu1 }
 0x422   : > { %v1304_v12 = vmax.f32 %v1250_v7, 0.0  ;;  %v1253_v13 = vadd.f32 %v13288_v43, %v1252_v11 }
 0x423   : > { %v1307_v14 = vmax.f32 %v1261_v10, 0.0 }
 0x424   : > { %v1305_v15 = vmax.f32 %v1253_v13, 0.0 }
 0x425   : > { %v13366_v17 = vpack.c.bf16 %v1307_v14, %v1306_v9 }
 0x426   : > { %v13368_v18 = vpack.c.bf16 %v1305_v15, %v1304_v12  ;;  %v11293_v19 = vpop.f32.mrb[28].mxu1 }
 0x427   : > { %v1274_v20 = vadd.f32 %v11293_v19, %v13288_v43  ;;  %v1265_v21 = vpop.f32.mrb[29].mxu1 }
 0x428   : > { %1847 = vmatmul.mubr.bf16.gmra.mrb[56].mxu0 %v13332_v28  ;;  %2040 = vmatmul.mubr.bf16.gmra.mrb[56].mxu1 %v13332_v28  ;;  %v1266_v22 = vadd.f32 %v13288_v43, %v1265_v21  ;;  %v11294_v23 = vpop.f32.mrb[30].mxu1 }
 0x429   : > { %1856 = vmatprep.mubr.bf16.mxu0 %v12636_v16  ;;  %2049 = vmatprep.mubr.bf16.mxu1 %v12636_v16  ;;  %v1310_v24 = vmax.f32 %v1274_v20, 0.0  ;;  %v1277_v29 = vadd.f32 %v11294_v23, %v13288_v43  ;;  %v1268_v30 = vpop.f32.mrb[31].mxu1 }
 0x42a   : > { %v1308_v31 = vmax.f32 %v1266_v22, 0.0  ;;  %v1269_v32 = vadd.f32 %v13288_v43, %v1268_v30  ;;  %v1394_v43 = vlaneseq }
 0x42b   : > { %v1311_v33 = vmax.f32 %v1277_v29, 0.0 }
 0x42c   : > { %v1309_v34 = vmax.f32 %v1269_v32, 0.0 }
 0x42d   : > { %v13378_v35 = vpack.c.bf16 %v1311_v33, %v1310_v24 }
 0x42e   : > { %v13380_v36 = vpack.c.bf16 %v1309_v34, %v1308_v31 }
 0x430   : > { %1857 = vmatmul.mubr.bf16.gmra.mrb[60].mxu0 %v13330_v27  ;;  %2050 = vmatmul.mubr.bf16.gmra.mrb[60].mxu1 %v13330_v27 }
 0x431   : > { %1866 = vmatprep.mubr.bf16.mxu0 %v12636_v16  ;;  %2059 = vmatprep.mubr.bf16.mxu1 %v12636_v16 }
 0x438   : > { %1867 = vmatmul.mubr.bf16.gmra.mrb[64].mxu0 %v13344_v49  ;;  %2060 = vmatmul.mubr.bf16.gmra.mrb[64].mxu1 %v13344_v49 }
 0x439   : > { %1876 = vmatprep.mubr.bf16.mxu0 %v12636_v16  ;;  %2069 = vmatprep.mubr.bf16.mxu1 %v12636_v16 }
 0x440   : > { %1877 = vmatmul.mubr.bf16.gmra.mrb[68].mxu0 %v13342_v48  ;;  %2070 = vmatmul.mubr.bf16.gmra.mrb[68].mxu1 %v13342_v48 }
 0x441   : > { %1886 = vmatprep.mubr.bf16.mxu0 %v12636_v16  ;;  %2079 = vmatprep.mubr.bf16.mxu1 %v12636_v16 }
 0x448   : > { %1887 = vmatmul.mubr.bf16.gmra.mrb[72].mxu0 %v13356_v3  ;;  %2080 = vmatmul.mubr.bf16.gmra.mrb[72].mxu1 %v13356_v3 }
 0x449   : > { %1896 = vmatprep.mubr.bf16.mxu0 %v12636_v16  ;;  %2089 = vmatprep.mubr.bf16.mxu1 %v12636_v16 }
 0x450   : > { %1897 = vmatmul.mubr.bf16.gmra.mrb[76].mxu0 %v13354_v2  ;;  %2090 = vmatmul.mubr.bf16.gmra.mrb[76].mxu1 %v13354_v2 }
 0x451   : > { %1906 = vmatprep.mubr.bf16.mxu0 %v12636_v16  ;;  %2099 = vmatprep.mubr.bf16.mxu1 %v12636_v16 }
 0x458   : > { %1907 = vmatmul.mubr.bf16.gmra.mrb[80].mxu0 %v13368_v18  ;;  %2100 = vmatmul.mubr.bf16.gmra.mrb[80].mxu1 %v13368_v18 }
 0x459   : > { %1916 = vmatprep.mubr.bf16.mxu0 %v12636_v16  ;;  %2109 = vmatprep.mubr.bf16.mxu1 %v12636_v16 }
 0x460   : > { %1917 = vmatmul.mubr.bf16.gmra.mrb[84].mxu0 %v13366_v17  ;;  %2110 = vmatmul.mubr.bf16.gmra.mrb[84].mxu1 %v13366_v17 }
 0x461   : > { %1926 = vmatprep.mubr.bf16.mxu0 %v12636_v16  ;;  %2119 = vmatprep.mubr.bf16.mxu1 %v12636_v16 }
 0x468   : > { %1927 = vmatmul.mubr.bf16.gmra.mrb[88].mxu0 %v13380_v36  ;;  %2120 = vmatmul.mubr.bf16.gmra.mrb[88].mxu1 %v13380_v36 }
 0x469   : > { %1936 = vmatprep.mubr.bf16.mxu0 %v12636_v16  ;;  %2129 = vmatprep.mubr.bf16.mxu1 %v12636_v16 }
 0x470   : > { %1937 = vmatmul.mubr.bf16.gmra.mrb[92].mxu0 %v13378_v35  ;;  %2130 = vmatmul.mubr.bf16.gmra.mrb[92].mxu1 %v13378_v35 }
 0x471   : > { %2172 = vmatprep.mubr.bf16.mxu0 %v12636_v16  ;;  %2365 = vmatprep.mubr.bf16.mxu1 %v12636_v16 }
 0x478   : > { %2173 = vmatmul.mubr.bf16.vlgmr.msra.gmra.mrb[96].mxu0 %v13296_v56  ;;  %2366 = vmatmul.mubr.bf16.vlgmr.msra.gmra.mrb[96].mxu1 %v13296_v56 }
 0x479   : > { %2182 = vmatprep.mubr.bf16.mxu0 %v12636_v16  ;;  %2375 = vmatprep.mubr.bf16.mxu1 %v12636_v16 }
 0x480   : > { %2183 = vmatmul.mubr.bf16.gmra.mrb[100].mxu0 %v13294_v53  ;;  %2376 = vmatmul.mubr.bf16.gmra.mrb[100].mxu1 %v13294_v53  ;;  %v13456_v53 = vshrl.u32 %v1394_v43, 7 }
 0x481   : > { %2192 = vmatprep.mubr.bf16.mxu0 %v12636_v16  ;;  %2385 = vmatprep.mubr.bf16.mxu1 %v12636_v16 }
 0x482   : > { %v13461_v56 = vsub.s32 0, %v13456_v53 }
 0x488   : > { %2193 = vmatmul.mubr.bf16.gmra.mrb[104].mxu0 %v13308_v26  ;;  %2386 = vmatmul.mubr.bf16.gmra.mrb[104].mxu1 %v13308_v26  ;;  %v1392_v26 = vld [vmem:[#allocation14] sm:$0xff] }
 0x489   : > { %2202 = vmatprep.mubr.bf16.mxu0 %v12636_v16  ;;  %2395 = vmatprep.mubr.bf16.mxu1 %v12636_v16 }
 0x490   : > { %2203 = vmatmul.mubr.bf16.gmra.mrb[108].mxu0 %v13306_v25  ;;  %2396 = vmatmul.mubr.bf16.gmra.mrb[108].mxu1 %v13306_v25  ;;  %v13464_v25 = vsub.s32 2, %v13456_v53 }
 0x491   : > { %2212 = vmatprep.mubr.bf16.mxu0 %v12636_v16  ;;  %2405 = vmatprep.mubr.bf16.mxu1 %v12636_v16 }
 0x498   : > { %2213 = vmatmul.mubr.bf16.gmra.mrb[112].mxu0 %v13320_v60  ;;  %2406 = vmatmul.mubr.bf16.gmra.mrb[112].mxu1 %v13320_v60  ;;  %v13470_v60 = vsub.s32 3, %v13456_v53 }
 0x499   : > { %2222 = vmatprep.mubr.bf16.mxu0 %v12636_v16  ;;  %2415 = vmatprep.mubr.bf16.mxu1 %v12636_v16 }
 0x49a   : > { %v13484_v38 = vrot.slane %v1392_v26, %v13470_v60 }
 0x4a0   : > { %2223 = vmatmul.mubr.bf16.gmra.mrb[116].mxu0 %v13318_v59  ;;  %2416 = vmatmul.mubr.bf16.gmra.mrb[116].mxu1 %v13318_v59  ;;  %v13467_v59 = vsub.s32 1, %v13456_v53 }
 0x4a1   : > { %2232 = vmatprep.mubr.bf16.mxu0 %v12636_v16  ;;  %2425 = vmatprep.mubr.bf16.mxu1 %v12636_v16 }
 0x4a2   : > { %v13481_v37 = vrot.slane %v1392_v26, %v13467_v59 }
 0x4a8   : > { %2233 = vmatmul.mubr.bf16.gmra.mrb[120].mxu0 %v13332_v28  ;;  %2426 = vmatmul.mubr.bf16.gmra.mrb[120].mxu1 %v13332_v28  ;;  %v13478_v28 = vrot.slane %v1392_v26, %v13464_v25 }
 0x4a9   : > { %2242 = vmatprep.mubr.bf16.mxu0 %v12636_v16  ;;  %2435 = vmatprep.mubr.bf16.mxu1 %v12636_v16 }
 0x4b0   : > { %2243 = vmatmul.mubr.bf16.gmra.mrb[124].mxu0 %v13330_v27  ;;  %2436 = vmatmul.mubr.bf16.gmra.mrb[124].mxu1 %v13330_v27  ;;  %v13475_v27 = vrot.slane %v1392_v26, %v13461_v56 }
 0x4b1   : > { %2252 = vmatprep.mubr.bf16.mxu0 %v12636_v16  ;;  %2445 = vmatprep.mubr.bf16.mxu1 %v12636_v16 }
 0x4b8   : > { %2253 = vmatmul.mubr.bf16.gmra.mrb[128].mxu0 %v13344_v49  ;;  %2446 = vmatmul.mubr.bf16.gmra.mrb[128].mxu1 %v13344_v49 }
 0x4b9   : > { %2262 = vmatprep.mubr.bf16.mxu0 %v12636_v16  ;;  %2455 = vmatprep.mubr.bf16.mxu1 %v12636_v16 }
 0x4c0   : > { %2263 = vmatmul.mubr.bf16.gmra.mrb[132].mxu0 %v13342_v48  ;;  %2456 = vmatmul.mubr.bf16.gmra.mrb[132].mxu1 %v13342_v48 }
 0x4c1   : > { %2272 = vmatprep.mubr.bf16.mxu0 %v12636_v16  ;;  %2465 = vmatprep.mubr.bf16.mxu1 %v12636_v16 }
 0x4c8   : > { %2273 = vmatmul.mubr.bf16.gmra.mrb[136].mxu0 %v13356_v3  ;;  %2466 = vmatmul.mubr.bf16.gmra.mrb[136].mxu1 %v13356_v3 }
 0x4c9   : > { %2282 = vmatprep.mubr.bf16.mxu0 %v12636_v16  ;;  %2475 = vmatprep.mubr.bf16.mxu1 %v12636_v16 }
 0x4cb   : > { %v1788_v39 = vpop.f32.mrb[32].mxu0  ;;  %v1981_v40 = vpop.f32.mrb[32].mxu1 }
 0x4cc   : > { %v1789_v41 = vadd.f32 %v1788_v39, %v13475_v27  ;;  %v1982_v42 = vadd.f32 %v1981_v40, %v13478_v28  ;;  %v1790_v44 = vpop.f32.mrb[33].mxu0  ;;  %v1983_v45 = vpop.f32.mrb[33].mxu1 }
 0x4cd   : > { %v1791_v46 = vadd.f32 %v1790_v44, %v13481_v37  ;;  %v1984_v47 = vadd.f32 %v1983_v45, %v13484_v38  ;;  %v1792_v48 = vpop.f32.mrb[34].mxu0  ;;  %v1985_v49 = vpop.f32.mrb[34].mxu1 }
 0x4ce   : > { %v1793_v51 = vadd.f32 %v1792_v48, %v13475_v27  ;;  %v1986_v52 = vadd.f32 %v1985_v49, %v13478_v28  ;;  %v1794_v54 = vpop.f32.mrb[35].mxu0  ;;  %v1987_v55 = vpop.f32.mrb[35].mxu1  ;;  %v2526_v61 = vmax.f32 %v1789_v41, 0.0  ;;  %v2528_v50 = vmax.f32 %v1982_v42, 0.0 }
 0x4cf   : > { %v1795_v57 = vadd.f32 %v1794_v54, %v13481_v37  ;;  %v1988_v58 = vadd.f32 %v1987_v55, %v13484_v38  ;;  %v2527_v0 = vmax.f32 %v1791_v46, 0.0  ;;  %v2529_v1 = vmax.f32 %v1984_v47, 0.0 }
 0x4d0   : > { %v2534_v62 = vmax.f32 %v1793_v51, 0.0  ;;  %v2536_v63 = vmax.f32 %v1986_v52, 0.0  ;;  %2283 = vmatmul.mubr.bf16.gmra.mrb[140].mxu0 %v13354_v2  ;;  %2476 = vmatmul.mubr.bf16.gmra.mrb[140].mxu1 %v13354_v2 }
 0x4d1   : > { %v2535_v3 = vmax.f32 %v1795_v57, 0.0  ;;  %v2537_v4 = vmax.f32 %v1988_v58, 0.0  ;;  %2292 = vmatprep.mubr.bf16.mxu0 %v12636_v16  ;;  %2485 = vmatprep.mubr.bf16.mxu1 %v12636_v16 }
 0x4d2   : > { %v2782_v5 = vmax.f32 %v2526_v61, %v2534_v62  ;;  %v2856_v6 = vmax.f32 %v2528_v50, %v2536_v63 }
 0x4d3   : > { %v2819_v7 = vmax.f32 %v2527_v0, %v2535_v3  ;;  %v2893_v8 = vmax.f32 %v2529_v1, %v2537_v4  ;;  %v1798_v9 = vpop.f32.mrb[36].mxu0  ;;  %v1991_v10 = vpop.f32.mrb[36].mxu1 }
 0x4d4   : > { %v1799_v11 = vadd.f32 %v1798_v9, %v13475_v27  ;;  %v1992_v12 = vadd.f32 %v1991_v10, %v13478_v28  ;;  %v1800_v13 = vpop.f32.mrb[37].mxu0  ;;  %v1993_v2 = vpop.f32.mrb[37].mxu1 }
 0x4d5   : > { %v1801_v14 = vadd.f32 %v1800_v13, %v13481_v37  ;;  %v1994_v15 = vadd.f32 %v1993_v2, %v13484_v38  ;;  %v1802_v19 = vpop.f32.mrb[38].mxu0  ;;  %v1995_v20 = vpop.f32.mrb[38].mxu1 }
 0x4d6   : > { %v2542_v21 = vmax.f32 %v1799_v11, 0.0  ;;  %v2544_v22 = vmax.f32 %v1992_v12, 0.0  ;;  %v1803_v23 = vadd.f32 %v1802_v19, %v13475_v27  ;;  %v1996_v24 = vadd.f32 %v1995_v20, %v13478_v28  ;;  %v1804_v29 = vpop.f32.mrb[39].mxu0  ;;  %v1997_v30 = vpop.f32.mrb[39].mxu1 }
 0x4d7   : > { %v2543_v31 = vmax.f32 %v1801_v14, 0.0  ;;  %v2545_v32 = vmax.f32 %v1994_v15, 0.0  ;;  %v1805_v33 = vadd.f32 %v1804_v29, %v13481_v37  ;;  %v1998_v34 = vadd.f32 %v1997_v30, %v13484_v38 }
 0x4d8   : > { %v2783_v43 = vmax.f32 %v2782_v5, %v2542_v21  ;;  %v2857_v26 = vmax.f32 %v2856_v6, %v2544_v22  ;;  %v2550_v39 = vmax.f32 %v1803_v23, 0.0  ;;  %v2552_v40 = vmax.f32 %v1996_v24, 0.0  ;;  %2293 = vmatmul.mubr.bf16.gmra.mrb[144].mxu0 %v13368_v18  ;;  %2486 = vmatmul.mubr.bf16.gmra.mrb[144].mxu1 %v13368_v18 }
 0x4d9   : > { %v2820_v41 = vmax.f32 %v2819_v7, %v2543_v31  ;;  %v2894_v42 = vmax.f32 %v2893_v8, %v2545_v32  ;;  %v2551_v44 = vmax.f32 %v1805_v33, 0.0  ;;  %v2553_v45 = vmax.f32 %v1998_v34, 0.0  ;;  %2302 = vmatprep.mubr.bf16.mxu0 %v12636_v16  ;;  %2495 = vmatprep.mubr.bf16.mxu1 %v12636_v16 }
 0x4da   : > { %v2784_v46 = vmax.f32 %v2783_v43, %v2550_v39  ;;  %v2858_v47 = vmax.f32 %v2857_v26, %v2552_v40 }
 0x4db   : > { %v2821_v48 = vmax.f32 %v2820_v41, %v2551_v44  ;;  %v2895_v49 = vmax.f32 %v2894_v42, %v2553_v45  ;;  %v1808_v51 = vpop.f32.mrb[40].mxu0  ;;  %v2001_v52 = vpop.f32.mrb[40].mxu1 }
 0x4dc   : > { %v1809_v54 = vadd.f32 %v1808_v51, %v13475_v27  ;;  %v2002_v55 = vadd.f32 %v2001_v52, %v13478_v28  ;;  %v1810_v57 = vpop.f32.mrb[41].mxu0  ;;  %v2003_v18 = vpop.f32.mrb[41].mxu1 }
 0x4dd   : > { %v1811_v58 = vadd.f32 %v1810_v57, %v13481_v37  ;;  %v2004_v61 = vadd.f32 %v2003_v18, %v13484_v38  ;;  %v1812_v50 = vpop.f32.mrb[42].mxu0  ;;  %v2005_v62 = vpop.f32.mrb[42].mxu1 }
 0x4de   : > { %v2558_v63 = vmax.f32 %v1809_v54, 0.0  ;;  %v2560_v0 = vmax.f32 %v2002_v55, 0.0  ;;  %v1813_v1 = vadd.f32 %v1812_v50, %v13475_v27  ;;  %v2006_v3 = vadd.f32 %v2005_v62, %v13478_v28  ;;  %v1814_v4 = vpop.f32.mrb[43].mxu0  ;;  %v2007_v5 = vpop.f32.mrb[43].mxu1 }
 0x4df   : > { %v2559_v6 = vmax.f32 %v1811_v58, 0.0  ;;  %v2561_v7 = vmax.f32 %v2004_v61, 0.0  ;;  %v1815_v8 = vadd.f32 %v1814_v4, %v13481_v37  ;;  %v2008_v9 = vadd.f32 %v2007_v5, %v13484_v38 }
 0x4e0   : > { %v2785_v10 = vmax.f32 %v2784_v46, %v2558_v63  ;;  %v2859_v11 = vmax.f32 %v2858_v47, %v2560_v0  ;;  %v2566_v12 = vmax.f32 %v1813_v1, 0.0  ;;  %v2568_v13 = vmax.f32 %v2006_v3, 0.0  ;;  %2303 = vmatmul.mubr.bf16.gmra.mrb[148].mxu0 %v13366_v17  ;;  %2496 = vmatmul.mubr.bf16.gmra.mrb[148].mxu1 %v13366_v17 }
 0x4e1   : > { %v2822_v2 = vmax.f32 %v2821_v48, %v2559_v6  ;;  %v2896_v14 = vmax.f32 %v2895_v49, %v2561_v7  ;;  %v2567_v15 = vmax.f32 %v1815_v8, 0.0  ;;  %v2569_v19 = vmax.f32 %v2008_v9, 0.0  ;;  %2312 = vmatprep.mubr.bf16.mxu0 %v12636_v16  ;;  %2505 = vmatprep.mubr.bf16.mxu1 %v12636_v16 }
 0x4e2   : > { %v2786_v20 = vmax.f32 %v2785_v10, %v2566_v12  ;;  %v2860_v21 = vmax.f32 %v2859_v11, %v2568_v13 }
 0x4e3   : > { %v2823_v22 = vmax.f32 %v2822_v2, %v2567_v15  ;;  %v2897_v23 = vmax.f32 %v2896_v14, %v2569_v19  ;;  %v1818_v24 = vpop.f32.mrb[44].mxu0  ;;  %v2011_v29 = vpop.f32.mrb[44].mxu1 }
 0x4e4   : > { %v1819_v30 = vadd.f32 %v1818_v24, %v13475_v27  ;;  %v2012_v31 = vadd.f32 %v2011_v29, %v13478_v28  ;;  %v1820_v32 = vpop.f32.mrb[45].mxu0  ;;  %v2013_v17 = vpop.f32.mrb[45].mxu1 }
 0x4e5   : > { %v1821_v33 = vadd.f32 %v1820_v32, %v13481_v37  ;;  %v2014_v34 = vadd.f32 %v2013_v17, %v13484_v38  ;;  %v1822_v43 = vpop.f32.mrb[46].mxu0  ;;  %v2015_v26 = vpop.f32.mrb[46].mxu1 }
 0x4e6   : > { %v2574_v39 = vmax.f32 %v1819_v30, 0.0  ;;  %v2576_v40 = vmax.f32 %v2012_v31, 0.0  ;;  %v1823_v41 = vadd.f32 %v1822_v43, %v13475_v27  ;;  %v2016_v42 = vadd.f32 %v2015_v26, %v13478_v28  ;;  %v1824_v44 = vpop.f32.mrb[47].mxu0  ;;  %v2017_v45 = vpop.f32.mrb[47].mxu1 }
 0x4e7   : > { %v2575_v46 = vmax.f32 %v1821_v33, 0.0  ;;  %v2577_v47 = vmax.f32 %v2014_v34, 0.0  ;;  %v1825_v48 = vadd.f32 %v1824_v44, %v13481_v37  ;;  %v2018_v49 = vadd.f32 %v2017_v45, %v13484_v38 }
 0x4e8   : > { %v2787_v51 = vmax.f32 %v2786_v20, %v2574_v39  ;;  %v2861_v52 = vmax.f32 %v2860_v21, %v2576_v40  ;;  %v2582_v54 = vmax.f32 %v1823_v41, 0.0  ;;  %v2584_v55 = vmax.f32 %v2016_v42, 0.0  ;;  %2313 = vmatmul.mubr.bf16.gmra.mrb[152].mxu0 %v13380_v36  ;;  %2506 = vmatmul.mubr.bf16.gmra.mrb[152].mxu1 %v13380_v36 }
 0x4e9   : > { %v2824_v57 = vmax.f32 %v2823_v22, %v2575_v46  ;;  %v2898_v18 = vmax.f32 %v2897_v23, %v2577_v47  ;;  %v2583_v58 = vmax.f32 %v1825_v48, 0.0  ;;  %v2585_v61 = vmax.f32 %v2018_v49, 0.0  ;;  %2322 = vmatprep.mubr.bf16.mxu0 %v12636_v16  ;;  %2515 = vmatprep.mubr.bf16.mxu1 %v12636_v16 }
 0x4ea   : > { %v2788_v50 = vmax.f32 %v2787_v51, %v2582_v54  ;;  %v2862_v62 = vmax.f32 %v2861_v52, %v2584_v55 }
 0x4eb   : > { %v2825_v63 = vmax.f32 %v2824_v57, %v2583_v58  ;;  %v2899_v0 = vmax.f32 %v2898_v18, %v2585_v61  ;;  %v1828_v1 = vpop.f32.mrb[48].mxu0  ;;  %v2021_v3 = vpop.f32.mrb[48].mxu1 }
 0x4ec   : > { %v1829_v4 = vadd.f32 %v1828_v1, %v13475_v27  ;;  %v2022_v5 = vadd.f32 %v2021_v3, %v13478_v28  ;;  %v1830_v6 = vpop.f32.mrb[49].mxu0  ;;  %v2023_v36 = vpop.f32.mrb[49].mxu1 }
 0x4ed   : > { %v1831_v7 = vadd.f32 %v1830_v6, %v13481_v37  ;;  %v2024_v8 = vadd.f32 %v2023_v36, %v13484_v38  ;;  %v1832_v9 = vpop.f32.mrb[50].mxu0  ;;  %v2025_v10 = vpop.f32.mrb[50].mxu1 }
 0x4ee   : > { %v2590_v11 = vmax.f32 %v1829_v4, 0.0  ;;  %v2592_v16 = vmax.f32 %v2022_v5, 0.0  ;;  %v1833_v12 = vadd.f32 %v1832_v9, %v13475_v27  ;;  %v2026_v13 = vadd.f32 %v2025_v10, %v13478_v28  ;;  %v1834_v2 = vpop.f32.mrb[51].mxu0  ;;  %v2027_v14 = vpop.f32.mrb[51].mxu1 }
 0x4ef   : > { %v2591_v15 = vmax.f32 %v1831_v7, 0.0  ;;  %v2593_v19 = vmax.f32 %v2024_v8, 0.0  ;;  %v1835_v20 = vadd.f32 %v1834_v2, %v13481_v37  ;;  %v2028_v21 = vadd.f32 %v2027_v14, %v13484_v38 }
 0x4f0   : > { %v2789_v22 = vmax.f32 %v2788_v50, %v2590_v11  ;;  %v2863_v23 = vmax.f32 %v2862_v62, %v2592_v16  ;;  %v2598_v24 = vmax.f32 %v1833_v12, 0.0  ;;  %v2600_v29 = vmax.f32 %v2026_v13, 0.0  ;;  %2323 = vmatmul.mubr.bf16.gmra.mrb[156].mxu0 %v13378_v35  ;;  %2516 = vmatmul.mubr.bf16.gmra.mrb[156].mxu1 %v13378_v35 }
 0x4f1   : > { %v2826_v30 = vmax.f32 %v2825_v63, %v2591_v15  ;;  %v2900_v31 = vmax.f32 %v2899_v0, %v2593_v19  ;;  %v2599_v32 = vmax.f32 %v1835_v20, 0.0  ;;  %v2601_v17 = vmax.f32 %v2028_v21, 0.0 }
 0x4f2   : > { %v2790_v33 = vmax.f32 %v2789_v22, %v2598_v24  ;;  %v2864_v34 = vmax.f32 %v2863_v23, %v2600_v29 }
 0x4f3   : > { %v2827_v43 = vmax.f32 %v2826_v30, %v2599_v32  ;;  %v2901_v26 = vmax.f32 %v2900_v31, %v2601_v17  ;;  %v1838_v39 = vpop.f32.mrb[52].mxu0  ;;  %v2031_v40 = vpop.f32.mrb[52].mxu1 }
 0x4f4   : > { %v1839_v41 = vadd.f32 %v1838_v39, %v13475_v27  ;;  %v2032_v42 = vadd.f32 %v2031_v40, %v13478_v28  ;;  %v1840_v44 = vpop.f32.mrb[53].mxu0  ;;  %v2033_v45 = vpop.f32.mrb[53].mxu1 }
 0x4f5   : > { %v1841_v46 = vadd.f32 %v1840_v44, %v13481_v37  ;;  %v2034_v35 = vadd.f32 %v2033_v45, %v13484_v38  ;;  %v1842_v47 = vpop.f32.mrb[54].mxu0  ;;  %v2035_v48 = vpop.f32.mrb[54].mxu1 }
 0x4f6   : > { %v2606_v49 = vmax.f32 %v1839_v41, 0.0  ;;  %v2608_v51 = vmax.f32 %v2032_v42, 0.0  ;;  %v1843_v52 = vadd.f32 %v1842_v47, %v13475_v27  ;;  %v2036_v54 = vadd.f32 %v2035_v48, %v13478_v28  ;;  %v1844_v55 = vpop.f32.mrb[55].mxu0  ;;  %v2037_v57 = vpop.f32.mrb[55].mxu1 }
 0x4f7   : > { %v2607_v18 = vmax.f32 %v1841_v46, 0.0  ;;  %v2609_v58 = vmax.f32 %v2034_v35, 0.0  ;;  %v1845_v61 = vadd.f32 %v1844_v55, %v13481_v37  ;;  %v2038_v50 = vadd.f32 %v2037_v57, %v13484_v38 }
 0x4f8   : > { %v2791_v62 = vmax.f32 %v2790_v33, %v2606_v49  ;;  %v2865_v63 = vmax.f32 %v2864_v34, %v2608_v51  ;;  %v2614_v0 = vmax.f32 %v1843_v52, 0.0  ;;  %v2616_v1 = vmax.f32 %v2036_v54, 0.0 }
 0x4f9   : > { %v2828_v3 = vmax.f32 %v2827_v43, %v2607_v18  ;;  %v2902_v4 = vmax.f32 %v2901_v26, %v2609_v58  ;;  %v2615_v5 = vmax.f32 %v1845_v61, 0.0  ;;  %v2617_v6 = vmax.f32 %v2038_v50, 0.0 }
 0x4fa   : > { %v2792_v36 = vmax.f32 %v2791_v62, %v2614_v0  ;;  %v2866_v7 = vmax.f32 %v2865_v63, %v2616_v1 }
 0x4fb   : > { %v2829_v8 = vmax.f32 %v2828_v3, %v2615_v5  ;;  %v2903_v9 = vmax.f32 %v2902_v4, %v2617_v6  ;;  %v1848_v10 = vpop.f32.mrb[56].mxu0  ;;  %v2041_v11 = vpop.f32.mrb[56].mxu1 }
 0x4fc   : > { %v1849_v16 = vadd.f32 %v1848_v10, %v13475_v27  ;;  %v2042_v12 = vadd.f32 %v2041_v11, %v13478_v28  ;;  %v1850_v13 = vpop.f32.mrb[57].mxu0  ;;  %v2043_v2 = vpop.f32.mrb[57].mxu1 }
 0x4fd   : > { %v1851_v14 = vadd.f32 %v1850_v13, %v13481_v37  ;;  %v2044_v15 = vadd.f32 %v2043_v2, %v13484_v38  ;;  %v1852_v19 = vpop.f32.mrb[58].mxu0  ;;  %v2045_v20 = vpop.f32.mrb[58].mxu1 }
 0x4fe   : > { %v2622_v21 = vmax.f32 %v1849_v16, 0.0  ;;  %v2624_v22 = vmax.f32 %v2042_v12, 0.0  ;;  %v1853_v23 = vadd.f32 %v1852_v19, %v13475_v27  ;;  %v2046_v24 = vadd.f32 %v2045_v20, %v13478_v28  ;;  %v1854_v29 = vpop.f32.mrb[59].mxu0  ;;  %v2047_v30 = vpop.f32.mrb[59].mxu1 }
 0x4ff   : > { %v2623_v31 = vmax.f32 %v1851_v14, 0.0  ;;  %v2625_v32 = vmax.f32 %v2044_v15, 0.0  ;;  %v1855_v17 = vadd.f32 %v1854_v29, %v13481_v37  ;;  %v2048_v33 = vadd.f32 %v2047_v30, %v13484_v38 }
 0x500   : > { %v2793_v34 = vmax.f32 %v2792_v36, %v2622_v21  ;;  %v2867_v43 = vmax.f32 %v2866_v7, %v2624_v22  ;;  %v2630_v26 = vmax.f32 %v1853_v23, 0.0  ;;  %v2632_v39 = vmax.f32 %v2046_v24, 0.0 }
 0x501   : > { %v2830_v40 = vmax.f32 %v2829_v8, %v2623_v31  ;;  %v2904_v41 = vmax.f32 %v2903_v9, %v2625_v32  ;;  %v2631_v42 = vmax.f32 %v1855_v17, 0.0  ;;  %v2633_v44 = vmax.f32 %v2048_v33, 0.0 }
 0x502   : > { %v2794_v45 = vmax.f32 %v2793_v34, %v2630_v26  ;;  %v2868_v46 = vmax.f32 %v2867_v43, %v2632_v39 }
 0x503   : > { %v2831_v35 = vmax.f32 %v2830_v40, %v2631_v42  ;;  %v2905_v47 = vmax.f32 %v2904_v41, %v2633_v44  ;;  %v1858_v48 = vpop.f32.mrb[60].mxu0  ;;  %v2051_v49 = vpop.f32.mrb[60].mxu1 }
 0x504   : > { %v1859_v51 = vadd.f32 %v1858_v48, %v13475_v27  ;;  %v2052_v52 = vadd.f32 %v2051_v49, %v13478_v28  ;;  %v1860_v54 = vpop.f32.mrb[61].mxu0  ;;  %v2053_v55 = vpop.f32.mrb[61].mxu1 }
 0x505   : > { %v1861_v57 = vadd.f32 %v1860_v54, %v13481_v37  ;;  %v2054_v18 = vadd.f32 %v2053_v55, %v13484_v38  ;;  %v1862_v58 = vpop.f32.mrb[62].mxu0  ;;  %v2055_v61 = vpop.f32.mrb[62].mxu1 }
 0x506   : > { %v2638_v50 = vmax.f32 %v1859_v51, 0.0  ;;  %v2640_v62 = vmax.f32 %v2052_v52, 0.0  ;;  %v1863_v63 = vadd.f32 %v1862_v58, %v13475_v27  ;;  %v2056_v0 = vadd.f32 %v2055_v61, %v13478_v28  ;;  %v1864_v1 = vpop.f32.mrb[63].mxu0  ;;  %v2057_v3 = vpop.f32.mrb[63].mxu1 }
 0x507   : > { %v2639_v4 = vmax.f32 %v1861_v57, 0.0  ;;  %v2641_v5 = vmax.f32 %v2054_v18, 0.0  ;;  %v1865_v6 = vadd.f32 %v1864_v1, %v13481_v37  ;;  %v2058_v36 = vadd.f32 %v2057_v3, %v13484_v38 }
 0x508   : > { %v2795_v7 = vmax.f32 %v2794_v45, %v2638_v50  ;;  %v2869_v8 = vmax.f32 %v2868_v46, %v2640_v62  ;;  %v2646_v9 = vmax.f32 %v1863_v63, 0.0  ;;  %v2648_v10 = vmax.f32 %v2056_v0, 0.0 }
 0x509   : > { %v2832_v11 = vmax.f32 %v2831_v35, %v2639_v4  ;;  %v2906_v16 = vmax.f32 %v2905_v47, %v2641_v5  ;;  %v2647_v12 = vmax.f32 %v1865_v6, 0.0  ;;  %v2649_v13 = vmax.f32 %v2058_v36, 0.0 }
 0x50a   : > { %v2796_v2 = vmax.f32 %v2795_v7, %v2646_v9  ;;  %v2870_v14 = vmax.f32 %v2869_v8, %v2648_v10 }
 0x50b   : > { %v2833_v15 = vmax.f32 %v2832_v11, %v2647_v12  ;;  %v2907_v19 = vmax.f32 %v2906_v16, %v2649_v13  ;;  %v1868_v20 = vpop.f32.mrb[64].mxu0  ;;  %v2061_v21 = vpop.f32.mrb[64].mxu1 }
 0x50c   : > { %v1869_v22 = vadd.f32 %v1868_v20, %v13475_v27  ;;  %v2062_v23 = vadd.f32 %v2061_v21, %v13478_v28  ;;  %v1870_v24 = vpop.f32.mrb[65].mxu0  ;;  %v2063_v29 = vpop.f32.mrb[65].mxu1 }
 0x50d   : > { %v1871_v30 = vadd.f32 %v1870_v24, %v13481_v37  ;;  %v2064_v31 = vadd.f32 %v2063_v29, %v13484_v38  ;;  %v1872_v32 = vpop.f32.mrb[66].mxu0  ;;  %v2065_v17 = vpop.f32.mrb[66].mxu1 }
 0x50e   : > { %v2654_v33 = vmax.f32 %v1869_v22, 0.0  ;;  %v2656_v34 = vmax.f32 %v2062_v23, 0.0  ;;  %v1873_v43 = vadd.f32 %v1872_v32, %v13475_v27  ;;  %v2066_v26 = vadd.f32 %v2065_v17, %v13478_v28  ;;  %v1874_v39 = vpop.f32.mrb[67].mxu0  ;;  %v2067_v40 = vpop.f32.mrb[67].mxu1 }
 0x50f   : > { %v2655_v41 = vmax.f32 %v1871_v30, 0.0  ;;  %v2657_v42 = vmax.f32 %v2064_v31, 0.0  ;;  %v1875_v44 = vadd.f32 %v1874_v39, %v13481_v37  ;;  %v2068_v45 = vadd.f32 %v2067_v40, %v13484_v38 }
 0x510   : > { %v2797_v46 = vmax.f32 %v2796_v2, %v2654_v33  ;;  %v2871_v35 = vmax.f32 %v2870_v14, %v2656_v34  ;;  %v2662_v47 = vmax.f32 %v1873_v43, 0.0  ;;  %v2664_v48 = vmax.f32 %v2066_v26, 0.0 }
 0x511   : > { %v2834_v49 = vmax.f32 %v2833_v15, %v2655_v41  ;;  %v2908_v51 = vmax.f32 %v2907_v19, %v2657_v42  ;;  %v2663_v52 = vmax.f32 %v1875_v44, 0.0  ;;  %v2665_v54 = vmax.f32 %v2068_v45, 0.0 }
 0x512   : > { %v2798_v55 = vmax.f32 %v2797_v46, %v2662_v47  ;;  %v2872_v57 = vmax.f32 %v2871_v35, %v2664_v48 }
 0x513   : > { %v2835_v18 = vmax.f32 %v2834_v49, %v2663_v52  ;;  %v2909_v58 = vmax.f32 %v2908_v51, %v2665_v54  ;;  %v1878_v61 = vpop.f32.mrb[68].mxu0  ;;  %v2071_v50 = vpop.f32.mrb[68].mxu1 }
 0x514   : > { %v1879_v62 = vadd.f32 %v1878_v61, %v13475_v27  ;;  %v2072_v63 = vadd.f32 %v2071_v50, %v13478_v28  ;;  %v1880_v0 = vpop.f32.mrb[69].mxu0  ;;  %v2073_v1 = vpop.f32.mrb[69].mxu1 }
 0x515   : > { %v1881_v3 = vadd.f32 %v1880_v0, %v13481_v37  ;;  %v2074_v4 = vadd.f32 %v2073_v1, %v13484_v38  ;;  %v1882_v5 = vpop.f32.mrb[70].mxu0  ;;  %v2075_v6 = vpop.f32.mrb[70].mxu1 }
 0x516   : > { %v2670_v36 = vmax.f32 %v1879_v62, 0.0  ;;  %v2672_v7 = vmax.f32 %v2072_v63, 0.0  ;;  %v1883_v8 = vadd.f32 %v1882_v5, %v13475_v27  ;;  %v2076_v9 = vadd.f32 %v2075_v6, %v13478_v28  ;;  %v1884_v10 = vpop.f32.mrb[71].mxu0  ;;  %v2077_v11 = vpop.f32.mrb[71].mxu1 }
 0x517   : > { %v2671_v16 = vmax.f32 %v1881_v3, 0.0  ;;  %v2673_v12 = vmax.f32 %v2074_v4, 0.0  ;;  %v1885_v13 = vadd.f32 %v1884_v10, %v13481_v37  ;;  %v2078_v2 = vadd.f32 %v2077_v11, %v13484_v38 }
 0x518   : > { %v2799_v14 = vmax.f32 %v2798_v55, %v2670_v36  ;;  %v2873_v15 = vmax.f32 %v2872_v57, %v2672_v7  ;;  %v2678_v19 = vmax.f32 %v1883_v8, 0.0  ;;  %v2680_v20 = vmax.f32 %v2076_v9, 0.0 }
 0x519   : > { %v2836_v21 = vmax.f32 %v2835_v18, %v2671_v16  ;;  %v2910_v22 = vmax.f32 %v2909_v58, %v2673_v12  ;;  %v2679_v23 = vmax.f32 %v1885_v13, 0.0  ;;  %v2681_v24 = vmax.f32 %v2078_v2, 0.0 }
 0x51a   : > { %v2800_v29 = vmax.f32 %v2799_v14, %v2678_v19  ;;  %v2874_v30 = vmax.f32 %v2873_v15, %v2680_v20 }
 0x51b   : > { %v2837_v31 = vmax.f32 %v2836_v21, %v2679_v23  ;;  %v2911_v32 = vmax.f32 %v2910_v22, %v2681_v24  ;;  %v1888_v17 = vpop.f32.mrb[72].mxu0  ;;  %v2081_v33 = vpop.f32.mrb[72].mxu1 }
 0x51c   : > { %v1889_v34 = vadd.f32 %v1888_v17, %v13475_v27  ;;  %v2082_v43 = vadd.f32 %v2081_v33, %v13478_v28  ;;  %v1890_v26 = vpop.f32.mrb[73].mxu0  ;;  %v2083_v39 = vpop.f32.mrb[73].mxu1 }
 0x51d   : > { %v1891_v40 = vadd.f32 %v1890_v26, %v13481_v37  ;;  %v2084_v41 = vadd.f32 %v2083_v39, %v13484_v38  ;;  %v1892_v42 = vpop.f32.mrb[74].mxu0  ;;  %v2085_v44 = vpop.f32.mrb[74].mxu1 }
 0x51e   : > { %v2686_v45 = vmax.f32 %v1889_v34, 0.0  ;;  %v2688_v46 = vmax.f32 %v2082_v43, 0.0  ;;  %v1893_v35 = vadd.f32 %v1892_v42, %v13475_v27  ;;  %v2086_v47 = vadd.f32 %v2085_v44, %v13478_v28  ;;  %v1894_v48 = vpop.f32.mrb[75].mxu0  ;;  %v2087_v49 = vpop.f32.mrb[75].mxu1 }
 0x51f   : > { %v2687_v51 = vmax.f32 %v1891_v40, 0.0  ;;  %v2689_v52 = vmax.f32 %v2084_v41, 0.0  ;;  %v1895_v54 = vadd.f32 %v1894_v48, %v13481_v37  ;;  %v2088_v55 = vadd.f32 %v2087_v49, %v13484_v38 }
 0x520   : > { %v2801_v57 = vmax.f32 %v2800_v29, %v2686_v45  ;;  %v2875_v18 = vmax.f32 %v2874_v30, %v2688_v46  ;;  %v2694_v58 = vmax.f32 %v1893_v35, 0.0  ;;  %v2696_v61 = vmax.f32 %v2086_v47, 0.0 }
 0x521   : > { %v2838_v50 = vmax.f32 %v2837_v31, %v2687_v51  ;;  %v2912_v62 = vmax.f32 %v2911_v32, %v2689_v52  ;;  %v2695_v63 = vmax.f32 %v1895_v54, 0.0  ;;  %v2697_v0 = vmax.f32 %v2088_v55, 0.0 }
 0x522   : > { %v2802_v1 = vmax.f32 %v2801_v57, %v2694_v58  ;;  %v2876_v3 = vmax.f32 %v2875_v18, %v2696_v61 }
 0x523   : > { %v2839_v4 = vmax.f32 %v2838_v50, %v2695_v63  ;;  %v2913_v5 = vmax.f32 %v2912_v62, %v2697_v0  ;;  %v1898_v6 = vpop.f32.mrb[76].mxu0  ;;  %v2091_v36 = vpop.f32.mrb[76].mxu1 }
 0x524   : > { %v1899_v7 = vadd.f32 %v1898_v6, %v13475_v27  ;;  %v2092_v8 = vadd.f32 %v2091_v36, %v13478_v28  ;;  %v1900_v9 = vpop.f32.mrb[77].mxu0  ;;  %v2093_v10 = vpop.f32.mrb[77].mxu1 }
 0x525   : > { %v1901_v11 = vadd.f32 %v1900_v9, %v13481_v37  ;;  %v2094_v16 = vadd.f32 %v2093_v10, %v13484_v38  ;;  %v1902_v12 = vpop.f32.mrb[78].mxu0  ;;  %v2095_v13 = vpop.f32.mrb[78].mxu1 }
 0x526   : > { %v2702_v2 = vmax.f32 %v1899_v7, 0.0  ;;  %v2704_v14 = vmax.f32 %v2092_v8, 0.0  ;;  %v1903_v15 = vadd.f32 %v1902_v12, %v13475_v27  ;;  %v2096_v19 = vadd.f32 %v2095_v13, %v13478_v28  ;;  %v1904_v20 = vpop.f32.mrb[79].mxu0  ;;  %v2097_v21 = vpop.f32.mrb[79].mxu1 }
 0x527   : > { %v2703_v22 = vmax.f32 %v1901_v11, 0.0  ;;  %v2705_v23 = vmax.f32 %v2094_v16, 0.0  ;;  %v1905_v24 = vadd.f32 %v1904_v20, %v13481_v37  ;;  %v2098_v29 = vadd.f32 %v2097_v21, %v13484_v38 }
 0x528   : > { %v2803_v30 = vmax.f32 %v2802_v1, %v2702_v2  ;;  %v2877_v31 = vmax.f32 %v2876_v3, %v2704_v14  ;;  %v2710_v32 = vmax.f32 %v1903_v15, 0.0  ;;  %v2712_v17 = vmax.f32 %v2096_v19, 0.0 }
 0x529   : > { %v2840_v33 = vmax.f32 %v2839_v4, %v2703_v22  ;;  %v2914_v34 = vmax.f32 %v2913_v5, %v2705_v23  ;;  %v2711_v43 = vmax.f32 %v1905_v24, 0.0  ;;  %v2713_v26 = vmax.f32 %v2098_v29, 0.0 }
 0x52a   : > { %v2804_v39 = vmax.f32 %v2803_v30, %v2710_v32  ;;  %v2878_v40 = vmax.f32 %v2877_v31, %v2712_v17 }
 0x52b   : > { %v2841_v41 = vmax.f32 %v2840_v33, %v2711_v43  ;;  %v2915_v42 = vmax.f32 %v2914_v34, %v2713_v26  ;;  %v1908_v44 = vpop.f32.mrb[80].mxu0  ;;  %v2101_v45 = vpop.f32.mrb[80].mxu1 }
 0x52c   : > { %v1909_v46 = vadd.f32 %v1908_v44, %v13475_v27  ;;  %v2102_v35 = vadd.f32 %v2101_v45, %v13478_v28  ;;  %v1910_v47 = vpop.f32.mrb[81].mxu0  ;;  %v2103_v48 = vpop.f32.mrb[81].mxu1 }
 0x52d   : > { %v1911_v49 = vadd.f32 %v1910_v47, %v13481_v37  ;;  %v2104_v51 = vadd.f32 %v2103_v48, %v13484_v38  ;;  %v1912_v52 = vpop.f32.mrb[82].mxu0  ;;  %v2105_v54 = vpop.f32.mrb[82].mxu1 }
 0x52e   : > { %v2718_v55 = vmax.f32 %v1909_v46, 0.0  ;;  %v2720_v57 = vmax.f32 %v2102_v35, 0.0  ;;  %v1913_v18 = vadd.f32 %v1912_v52, %v13475_v27  ;;  %v2106_v58 = vadd.f32 %v2105_v54, %v13478_v28  ;;  %v1914_v61 = vpop.f32.mrb[83].mxu0  ;;  %v2107_v50 = vpop.f32.mrb[83].mxu1 }
 0x52f   : > { %v2719_v62 = vmax.f32 %v1911_v49, 0.0  ;;  %v2721_v63 = vmax.f32 %v2104_v51, 0.0  ;;  %v1915_v0 = vadd.f32 %v1914_v61, %v13481_v37  ;;  %v2108_v1 = vadd.f32 %v2107_v50, %v13484_v38 }
 0x530   : > { %v2805_v3 = vmax.f32 %v2804_v39, %v2718_v55  ;;  %v2879_v4 = vmax.f32 %v2878_v40, %v2720_v57  ;;  %v2726_v5 = vmax.f32 %v1913_v18, 0.0  ;;  %v2728_v6 = vmax.f32 %v2106_v58, 0.0 }
 0x531   : > { %v2842_v36 = vmax.f32 %v2841_v41, %v2719_v62  ;;  %v2916_v7 = vmax.f32 %v2915_v42, %v2721_v63  ;;  %v2727_v8 = vmax.f32 %v1915_v0, 0.0  ;;  %v2729_v9 = vmax.f32 %v2108_v1, 0.0 }
 0x532   : > { %v2806_v10 = vmax.f32 %v2805_v3, %v2726_v5  ;;  %v2880_v11 = vmax.f32 %v2879_v4, %v2728_v6  ;;  %v13621_v50 = vsub.s32 4, %v13456_v53  ;;  %v13624_v62 = vsub.s32 6, %v13456_v53 }
 0x533   : > { %v2843_v16 = vmax.f32 %v2842_v36, %v2727_v8  ;;  %v2917_v12 = vmax.f32 %v2916_v7, %v2729_v9  ;;  %v1918_v13 = vpop.f32.mrb[84].mxu0  ;;  %v2111_v2 = vpop.f32.mrb[84].mxu1  ;;  %v13629_v4 = vsub.s32 5, %v13456_v53  ;;  %v13632_v5 = vsub.s32 7, %v13456_v53 }
 0x534   : > { %v1919_v14 = vadd.f32 %v1918_v13, %v13475_v27  ;;  %v2112_v15 = vadd.f32 %v2111_v2, %v13478_v28  ;;  %v1920_v19 = vpop.f32.mrb[85].mxu0  ;;  %v2113_v20 = vpop.f32.mrb[85].mxu1 }
 0x535   : > { %v1921_v21 = vadd.f32 %v1920_v19, %v13481_v37  ;;  %v2114_v22 = vadd.f32 %v2113_v20, %v13484_v38  ;;  %v1922_v23 = vpop.f32.mrb[86].mxu0  ;;  %v2115_v24 = vpop.f32.mrb[86].mxu1 }
 0x536   : > { %v2734_v29 = vmax.f32 %v1919_v14, 0.0  ;;  %v2736_v30 = vmax.f32 %v2112_v15, 0.0  ;;  %v1923_v31 = vadd.f32 %v1922_v23, %v13475_v27  ;;  %v2116_v32 = vadd.f32 %v2115_v24, %v13478_v28  ;;  %v1924_v17 = vpop.f32.mrb[87].mxu0  ;;  %v2117_v33 = vpop.f32.mrb[87].mxu1 }
 0x537   : > { %v2735_v34 = vmax.f32 %v1921_v21, 0.0  ;;  %v2737_v43 = vmax.f32 %v2114_v22, 0.0  ;;  %v1925_v26 = vadd.f32 %v1924_v17, %v13481_v37  ;;  %v2118_v39 = vadd.f32 %v2117_v33, %v13484_v38 }
 0x538   : > { %v2807_v40 = vmax.f32 %v2806_v10, %v2734_v29  ;;  %v2881_v41 = vmax.f32 %v2880_v11, %v2736_v30  ;;  %v2742_v42 = vmax.f32 %v1923_v31, 0.0  ;;  %v2744_v44 = vmax.f32 %v2116_v32, 0.0 }
 0x539   : > { %v2844_v45 = vmax.f32 %v2843_v16, %v2735_v34  ;;  %v2918_v46 = vmax.f32 %v2917_v12, %v2737_v43  ;;  %v2743_v35 = vmax.f32 %v1925_v26, 0.0  ;;  %v2745_v47 = vmax.f32 %v2118_v39, 0.0  ;;  %v11583_v39 = vld [vmem:[#allocation14] sm:$0xff] }
 0x53a   : > { %v2808_v48 = vmax.f32 %v2807_v40, %v2742_v42  ;;  %v2882_v49 = vmax.f32 %v2881_v41, %v2744_v44  ;;  %v13641_v40 = vrot.slane %v11583_v39, %v13621_v50  ;;  %v13644_v41 = vrot.slane %v11583_v39, %v13624_v62 }
 0x53b   : > { %v2845_v51 = vmax.f32 %v2844_v45, %v2743_v35  ;;  %v2919_v52 = vmax.f32 %v2918_v46, %v2745_v47  ;;  %v1928_v54 = vpop.f32.mrb[88].mxu0  ;;  %v2121_v55 = vpop.f32.mrb[88].mxu1  ;;  %v13649_v35 = vrot.slane %v11583_v39, %v13629_v4  ;;  %v13652_v47 = vrot.slane %v11583_v39, %v13632_v5 }
 0x53c   : > { %v1929_v57 = vadd.f32 %v1928_v54, %v13475_v27  ;;  %v2122_v18 = vadd.f32 %v2121_v55, %v13478_v28  ;;  %v1930_v58 = vpop.f32.mrb[89].mxu0  ;;  %v2123_v61 = vpop.f32.mrb[89].mxu1 }
 0x53d   : > { %v1931_v63 = vadd.f32 %v1930_v58, %v13481_v37  ;;  %v2124_v0 = vadd.f32 %v2123_v61, %v13484_v38  ;;  %v1932_v1 = vpop.f32.mrb[90].mxu0  ;;  %v2125_v3 = vpop.f32.mrb[90].mxu1 }
 0x53e   : > { %v2750_v6 = vmax.f32 %v1929_v57, 0.0  ;;  %v2752_v36 = vmax.f32 %v2122_v18, 0.0  ;;  %v1933_v7 = vadd.f32 %v1932_v1, %v13475_v27  ;;  %v2126_v8 = vadd.f32 %v2125_v3, %v13478_v28  ;;  %v1934_v9 = vpop.f32.mrb[91].mxu0  ;;  %v2127_v10 = vpop.f32.mrb[91].mxu1 }
 0x53f   : > { %v2751_v11 = vmax.f32 %v1931_v63, 0.0  ;;  %v2753_v16 = vmax.f32 %v2124_v0, 0.0  ;;  %v1935_v12 = vadd.f32 %v1934_v9, %v13481_v37  ;;  %v2128_v13 = vadd.f32 %v2127_v10, %v13484_v38 }
 0x540   : > { %v2809_v2 = vmax.f32 %v2808_v48, %v2750_v6  ;;  %v2883_v14 = vmax.f32 %v2882_v49, %v2752_v36  ;;  %v2758_v15 = vmax.f32 %v1933_v7, 0.0  ;;  %v2760_v19 = vmax.f32 %v2126_v8, 0.0 }
 0x541   : > { %v2846_v20 = vmax.f32 %v2845_v51, %v2751_v11  ;;  %v2920_v21 = vmax.f32 %v2919_v52, %v2753_v16  ;;  %v2759_v22 = vmax.f32 %v1935_v12, 0.0  ;;  %v2761_v23 = vmax.f32 %v2128_v13, 0.0 }
 0x542   : > { %v2810_v24 = vmax.f32 %v2809_v2, %v2758_v15  ;;  %v2884_v29 = vmax.f32 %v2883_v14, %v2760_v19 }
 0x543   : > { %v2847_v30 = vmax.f32 %v2846_v20, %v2759_v22  ;;  %v2921_v31 = vmax.f32 %v2920_v21, %v2761_v23  ;;  %v1938_v32 = vpop.f32.mrb[92].mxu0  ;;  %v2131_v17 = vpop.f32.mrb[92].mxu1 }
 0x544   : > { %v1939_v33 = vadd.f32 %v1938_v32, %v13475_v27  ;;  %v2132_v34 = vadd.f32 %v2131_v17, %v13478_v28  ;;  %v1940_v43 = vpop.f32.mrb[93].mxu0  ;;  %v2133_v26 = vpop.f32.mrb[93].mxu1 }
 0x545   : > { %v1941_v42 = vadd.f32 %v1940_v43, %v13481_v37  ;;  %v2134_v44 = vadd.f32 %v2133_v26, %v13484_v38  ;;  %v1942_v45 = vpop.f32.mrb[94].mxu0  ;;  %v2135_v46 = vpop.f32.mrb[94].mxu1 }
 0x546   : > { %v2766_v48 = vmax.f32 %v1939_v33, 0.0  ;;  %v2768_v49 = vmax.f32 %v2132_v34, 0.0  ;;  %v1943_v51 = vadd.f32 %v1942_v45, %v13475_v27  ;;  %v2136_v52 = vadd.f32 %v2135_v46, %v13478_v28  ;;  %v1944_v54 = vpop.f32.mrb[95].mxu0  ;;  %v2137_v55 = vpop.f32.mrb[95].mxu1 }
 0x547   : > { %v2767_v57 = vmax.f32 %v1941_v42, 0.0  ;;  %v2769_v18 = vmax.f32 %v2134_v44, 0.0  ;;  %v1945_v58 = vadd.f32 %v1944_v54, %v13481_v37  ;;  %v2138_v61 = vadd.f32 %v2137_v55, %v13484_v38 }
 0x548   : > { %v2811_v63 = vmax.f32 %v2810_v24, %v2766_v48  ;;  %v2885_v0 = vmax.f32 %v2884_v29, %v2768_v49  ;;  %v2774_v1 = vmax.f32 %v1943_v51, 0.0  ;;  %v2776_v3 = vmax.f32 %v2136_v52, 0.0 }
 0x549   : > { %v2848_v6 = vmax.f32 %v2847_v30, %v2767_v57  ;;  %v2922_v36 = vmax.f32 %v2921_v31, %v2769_v18  ;;  %v2775_v7 = vmax.f32 %v1945_v58, 0.0  ;;  %v2777_v8 = vmax.f32 %v2138_v61, 0.0 }
 0x54a   : > { %v2812_v9 = vmax.f32 %v2811_v63, %v2774_v1  ;;  %v2886_v27 = vmax.f32 %v2885_v0, %v2776_v3 }
 0x54b   : > { %v2849_v10 = vmax.f32 %v2848_v6, %v2775_v7  ;;  %v2923_v28 = vmax.f32 %v2922_v36, %v2777_v8  ;;  %v2174_v11 = vpop.f32.mrb[96].mxu0  ;;  %v2367_v16 = vpop.f32.mrb[96].mxu1 }
 0x54c   : > { %v2813_v12 = vrot.slane %v2812_v9, 4  ;;  %v2887_v13 = vrot.slane %v2886_v27, 4  ;;  %v2175_v37 = vadd.f32 %v2174_v11, %v13641_v40  ;;  %v2368_v38 = vadd.f32 %v2367_v16, %v13644_v41  ;;  %v2176_v2 = vpop.f32.mrb[97].mxu0  ;;  %v2369_v14 = vpop.f32.mrb[97].mxu1 }
 0x54d   : > { %v2850_v15 = vrot.slane %v2849_v10, 4  ;;  %v2924_v19 = vrot.slane %v2923_v28, 4  ;;  %v2177_v20 = vadd.f32 %v2176_v2, %v13649_v35  ;;  %v2370_v21 = vadd.f32 %v2369_v14, %v13652_v47  ;;  %v2178_v22 = vpop.f32.mrb[98].mxu0  ;;  %v2371_v23 = vpop.f32.mrb[98].mxu1 }
 0x54e   : > { %v2814_v24 = vmax.f32 %v2812_v9, %v2813_v12  ;;  %v2888_v29 = vmax.f32 %v2886_v27, %v2887_v13  ;;  %v2530_v30 = vmax.f32 %v2175_v37, 0.0  ;;  %v2532_v31 = vmax.f32 %v2368_v38, 0.0  ;;  %v2180_v32 = vpop.f32.mrb[99].mxu0  ;;  %v2373_v17 = vpop.f32.mrb[99].mxu1 }
 0x54f   : > { %v2851_v33 = vmax.f32 %v2849_v10, %v2850_v15  ;;  %v2925_v34 = vmax.f32 %v2923_v28, %v2924_v19  ;;  %v2531_v43 = vmax.f32 %v2177_v20, 0.0  ;;  %v2533_v26 = vmax.f32 %v2370_v21, 0.0 }
 0x550   : > { %v2815_v39 = vrot.slane %v2814_v24, 2  ;;  %v2889_v42 = vrot.slane %v2888_v29, 2  ;;  %v2179_v44 = vadd.f32 %v2178_v22, %v13641_v40  ;;  %v2372_v45 = vadd.f32 %v2371_v23, %v13644_v41 }
 0x551   : > { %v2852_v46 = vrot.slane %v2851_v33, 2  ;;  %v2926_v48 = vrot.slane %v2925_v34, 2  ;;  %v2181_v49 = vadd.f32 %v2180_v32, %v13649_v35  ;;  %v2374_v51 = vadd.f32 %v2373_v17, %v13652_v47 }
 0x552   : > { %v2816_v52 = vmax.f32 %v2814_v24, %v2815_v39  ;;  %v2890_v54 = vmax.f32 %v2888_v29, %v2889_v42  ;;  %v2538_v55 = vmax.f32 %v2179_v44, 0.0  ;;  %v2540_v57 = vmax.f32 %v2372_v45, 0.0 }
 0x553   : > { %v2853_v18 = vmax.f32 %v2851_v33, %v2852_v46  ;;  %v2927_v58 = vmax.f32 %v2925_v34, %v2926_v48  ;;  %v2539_v61 = vmax.f32 %v2181_v49, 0.0  ;;  %v2541_v63 = vmax.f32 %v2374_v51, 0.0  ;;  %v2184_v0 = vpop.f32.mrb[100].mxu0  ;;  %v2377_v1 = vpop.f32.mrb[100].mxu1 }
 0x554   : > { %v2817_v3 = vrot.slane %v2816_v52, 1  ;;  %v2891_v6 = vrot.slane %v2890_v54, 1  ;;  %v2930_v36 = vmax.f32 %v2530_v30, %v2538_v55  ;;  %v3004_v7 = vmax.f32 %v2532_v31, %v2540_v57  ;;  %v2186_v8 = vpop.f32.mrb[101].mxu0  ;;  %v2379_v9 = vpop.f32.mrb[101].mxu1 }
 0x555   : > { %v2854_v27 = vrot.slane %v2853_v18, 1  ;;  %v2928_v10 = vrot.slane %v2927_v58, 1  ;;  %v2967_v28 = vmax.f32 %v2531_v43, %v2539_v61  ;;  %v3041_v11 = vmax.f32 %v2533_v26, %v2541_v63  ;;  %v2188_v16 = vpop.f32.mrb[102].mxu0  ;;  %v2381_v12 = vpop.f32.mrb[102].mxu1 }
 0x556   : > { %v13666_v13 = vmax.f32 %v2816_v52, %v2817_v3  ;;  %v13668_v37 = vmax.f32 %v2890_v54, %v2891_v6  ;;  %v2185_v38 = vadd.f32 %v2184_v0, %v13641_v40  ;;  %v2378_v2 = vadd.f32 %v2377_v1, %v13644_v41  ;;  %v2190_v14 = vpop.f32.mrb[103].mxu0  ;;  %v2383_v15 = vpop.f32.mrb[103].mxu1 }
 0x557   : > { %v13672_v19 = vmax.f32 %v2853_v18, %v2854_v27  ;;  %v13674_v20 = vmax.f32 %v2927_v58, %v2928_v10  ;;  %v2187_v21 = vadd.f32 %v2186_v8, %v13649_v35  ;;  %v2380_v22 = vadd.f32 %v2379_v9, %v13652_v47 }
 0x558   : > { %v2546_v23 = vmax.f32 %v2185_v38, 0.0  ;;  %v2548_v24 = vmax.f32 %v2378_v2, 0.0  ;;  %v2189_v29 = vadd.f32 %v2188_v16, %v13641_v40  ;;  %v2382_v30 = vadd.f32 %v2381_v12, %v13644_v41 }
 0x559   : > { %v2547_v31 = vmax.f32 %v2187_v21, 0.0  ;;  %v2549_v32 = vmax.f32 %v2380_v22, 0.0  ;;  %v2191_v17 = vadd.f32 %v2190_v14, %v13649_v35  ;;  %v2384_v33 = vadd.f32 %v2383_v15, %v13652_v47 }
 0x55a   : > { %v2931_v34 = vmax.f32 %v2930_v36, %v2546_v23  ;;  %v3005_v43 = vmax.f32 %v3004_v7, %v2548_v24  ;;  %v2554_v26 = vmax.f32 %v2189_v29, 0.0  ;;  %v2556_v39 = vmax.f32 %v2382_v30, 0.0 }
 0x55b   : > { %v2968_v42 = vmax.f32 %v2967_v28, %v2547_v31  ;;  %v3042_v44 = vmax.f32 %v3041_v11, %v2549_v32  ;;  %v2555_v45 = vmax.f32 %v2191_v17, 0.0  ;;  %v2557_v46 = vmax.f32 %v2384_v33, 0.0  ;;  %v2194_v48 = vpop.f32.mrb[104].mxu0  ;;  %v2387_v49 = vpop.f32.mrb[104].mxu1 }
 0x55c   : > { %v2932_v51 = vmax.f32 %v2931_v34, %v2554_v26  ;;  %v3006_v52 = vmax.f32 %v3005_v43, %v2556_v39  ;;  %v2195_v54 = vadd.f32 %v2194_v48, %v13641_v40  ;;  %v2388_v55 = vadd.f32 %v2387_v49, %v13644_v41  ;;  %v2196_v57 = vpop.f32.mrb[105].mxu0  ;;  %v2389_v18 = vpop.f32.mrb[105].mxu1 }
 0x55d   : > { %v2969_v58 = vmax.f32 %v2968_v42, %v2555_v45  ;;  %v3043_v61 = vmax.f32 %v3042_v44, %v2557_v46  ;;  %v2197_v63 = vadd.f32 %v2196_v57, %v13649_v35  ;;  %v2390_v0 = vadd.f32 %v2389_v18, %v13652_v47  ;;  %v2198_v1 = vpop.f32.mrb[106].mxu0  ;;  %v2391_v3 = vpop.f32.mrb[106].mxu1 }
 0x55e   : > { %v2562_v6 = vmax.f32 %v2195_v54, 0.0  ;;  %v2564_v36 = vmax.f32 %v2388_v55, 0.0  ;;  %v2199_v7 = vadd.f32 %v2198_v1, %v13641_v40  ;;  %v2392_v8 = vadd.f32 %v2391_v3, %v13644_v41  ;;  %v2200_v9 = vpop.f32.mrb[107].mxu0  ;;  %v2393_v27 = vpop.f32.mrb[107].mxu1 }
 0x55f   : > { %v2563_v10 = vmax.f32 %v2197_v63, 0.0  ;;  %v2565_v28 = vmax.f32 %v2390_v0, 0.0  ;;  %v2201_v11 = vadd.f32 %v2200_v9, %v13649_v35  ;;  %v2394_v16 = vadd.f32 %v2393_v27, %v13652_v47 }
 0x560   : > { %v2933_v12 = vmax.f32 %v2932_v51, %v2562_v6  ;;  %v3007_v38 = vmax.f32 %v3006_v52, %v2564_v36  ;;  %v2570_v2 = vmax.f32 %v2199_v7, 0.0  ;;  %v2572_v14 = vmax.f32 %v2392_v8, 0.0 }
 0x561   : > { %v2970_v15 = vmax.f32 %v2969_v58, %v2563_v10  ;;  %v3044_v21 = vmax.f32 %v3043_v61, %v2565_v28  ;;  %v2571_v22 = vmax.f32 %v2201_v11, 0.0  ;;  %v2573_v23 = vmax.f32 %v2394_v16, 0.0 }
 0x562   : > { %v2934_v24 = vmax.f32 %v2933_v12, %v2570_v2  ;;  %v3008_v29 = vmax.f32 %v3007_v38, %v2572_v14 }
 0x563   : > { %v2971_v30 = vmax.f32 %v2970_v15, %v2571_v22  ;;  %v3045_v31 = vmax.f32 %v3044_v21, %v2573_v23  ;;  %v2204_v32 = vpop.f32.mrb[108].mxu0  ;;  %v2397_v17 = vpop.f32.mrb[108].mxu1 }
 0x564   : > { %v2205_v33 = vadd.f32 %v2204_v32, %v13641_v40  ;;  %v2398_v34 = vadd.f32 %v2397_v17, %v13644_v41  ;;  %v2206_v43 = vpop.f32.mrb[109].mxu0  ;;  %v2399_v26 = vpop.f32.mrb[109].mxu1 }
 0x565   : > { %v2207_v39 = vadd.f32 %v2206_v43, %v13649_v35  ;;  %v2400_v42 = vadd.f32 %v2399_v26, %v13652_v47  ;;  %v2208_v44 = vpop.f32.mrb[110].mxu0  ;;  %v2401_v45 = vpop.f32.mrb[110].mxu1 }
 0x566   : > { %v2578_v46 = vmax.f32 %v2205_v33, 0.0  ;;  %v2580_v48 = vmax.f32 %v2398_v34, 0.0  ;;  %v2209_v49 = vadd.f32 %v2208_v44, %v13641_v40  ;;  %v2402_v51 = vadd.f32 %v2401_v45, %v13644_v41  ;;  %v2210_v52 = vpop.f32.mrb[111].mxu0  ;;  %v2403_v54 = vpop.f32.mrb[111].mxu1 }
 0x567   : > { %v2579_v55 = vmax.f32 %v2207_v39, 0.0  ;;  %v2581_v57 = vmax.f32 %v2400_v42, 0.0  ;;  %v2211_v18 = vadd.f32 %v2210_v52, %v13649_v35  ;;  %v2404_v58 = vadd.f32 %v2403_v54, %v13652_v47 }
 0x568   : > { %v2935_v61 = vmax.f32 %v2934_v24, %v2578_v46  ;;  %v3009_v63 = vmax.f32 %v3008_v29, %v2580_v48  ;;  %v2586_v0 = vmax.f32 %v2209_v49, 0.0  ;;  %v2588_v1 = vmax.f32 %v2402_v51, 0.0 }
 0x569   : > { %v2972_v3 = vmax.f32 %v2971_v30, %v2579_v55  ;;  %v3046_v6 = vmax.f32 %v3045_v31, %v2581_v57  ;;  %v2587_v36 = vmax.f32 %v2211_v18, 0.0  ;;  %v2589_v7 = vmax.f32 %v2404_v58, 0.0 }
 0x56a   : > { %v2936_v8 = vmax.f32 %v2935_v61, %v2586_v0  ;;  %v3010_v9 = vmax.f32 %v3009_v63, %v2588_v1 }
 0x56b   : > { %v2973_v27 = vmax.f32 %v2972_v3, %v2587_v36  ;;  %v3047_v10 = vmax.f32 %v3046_v6, %v2589_v7  ;;  %v2214_v28 = vpop.f32.mrb[112].mxu0  ;;  %v2407_v11 = vpop.f32.mrb[112].mxu1 }
 0x56c   : > { %v2215_v16 = vadd.f32 %v2214_v28, %v13641_v40  ;;  %v2408_v12 = vadd.f32 %v2407_v11, %v13644_v41  ;;  %v2216_v38 = vpop.f32.mrb[113].mxu0  ;;  %v2409_v2 = vpop.f32.mrb[113].mxu1 }
 0x56d   : > { %v2217_v14 = vadd.f32 %v2216_v38, %v13649_v35  ;;  %v2410_v15 = vadd.f32 %v2409_v2, %v13652_v47  ;;  %v2218_v21 = vpop.f32.mrb[114].mxu0  ;;  %v2411_v22 = vpop.f32.mrb[114].mxu1 }
 0x56e   : > { %v2594_v23 = vmax.f32 %v2215_v16, 0.0  ;;  %v2596_v24 = vmax.f32 %v2408_v12, 0.0  ;;  %v2219_v29 = vadd.f32 %v2218_v21, %v13641_v40  ;;  %v2412_v30 = vadd.f32 %v2411_v22, %v13644_v41  ;;  %v2220_v31 = vpop.f32.mrb[115].mxu0  ;;  %v2413_v32 = vpop.f32.mrb[115].mxu1 }
 0x56f   : > { %v2595_v17 = vmax.f32 %v2217_v14, 0.0  ;;  %v2597_v33 = vmax.f32 %v2410_v15, 0.0  ;;  %v2221_v34 = vadd.f32 %v2220_v31, %v13649_v35  ;;  %v2414_v43 = vadd.f32 %v2413_v32, %v13652_v47 }
 0x570   : > { %v2937_v26 = vmax.f32 %v2936_v8, %v2594_v23  ;;  %v3011_v39 = vmax.f32 %v3010_v9, %v2596_v24  ;;  %v2602_v42 = vmax.f32 %v2219_v29, 0.0  ;;  %v2604_v44 = vmax.f32 %v2412_v30, 0.0 }
 0x571   : > { %v2974_v45 = vmax.f32 %v2973_v27, %v2595_v17  ;;  %v3048_v46 = vmax.f32 %v3047_v10, %v2597_v33  ;;  %v2603_v48 = vmax.f32 %v2221_v34, 0.0  ;;  %v2605_v49 = vmax.f32 %v2414_v43, 0.0 }
 0x572   : > { %v2938_v51 = vmax.f32 %v2937_v26, %v2602_v42  ;;  %v3012_v52 = vmax.f32 %v3011_v39, %v2604_v44 }
 0x573   : > { %v2975_v54 = vmax.f32 %v2974_v45, %v2603_v48  ;;  %v3049_v55 = vmax.f32 %v3048_v46, %v2605_v49  ;;  %v2224_v57 = vpop.f32.mrb[116].mxu0  ;;  %v2417_v18 = vpop.f32.mrb[116].mxu1 }
 0x574   : > { %v2225_v58 = vadd.f32 %v2224_v57, %v13641_v40  ;;  %v2418_v61 = vadd.f32 %v2417_v18, %v13644_v41  ;;  %v2226_v63 = vpop.f32.mrb[117].mxu0  ;;  %v2419_v0 = vpop.f32.mrb[117].mxu1 }
 0x575   : > { %v2227_v1 = vadd.f32 %v2226_v63, %v13649_v35  ;;  %v2420_v3 = vadd.f32 %v2419_v0, %v13652_v47  ;;  %v2228_v6 = vpop.f32.mrb[118].mxu0  ;;  %v2421_v36 = vpop.f32.mrb[118].mxu1 }
 0x576   : > { %v2610_v7 = vmax.f32 %v2225_v58, 0.0  ;;  %v2612_v8 = vmax.f32 %v2418_v61, 0.0  ;;  %v2229_v9 = vadd.f32 %v2228_v6, %v13641_v40  ;;  %v2422_v27 = vadd.f32 %v2421_v36, %v13644_v41  ;;  %v2230_v10 = vpop.f32.mrb[119].mxu0  ;;  %v2423_v28 = vpop.f32.mrb[119].mxu1 }
 0x577   : > { %v2611_v11 = vmax.f32 %v2227_v1, 0.0  ;;  %v2613_v16 = vmax.f32 %v2420_v3, 0.0  ;;  %v2231_v12 = vadd.f32 %v2230_v10, %v13649_v35  ;;  %v2424_v38 = vadd.f32 %v2423_v28, %v13652_v47 }
 0x578   : > { %v2939_v2 = vmax.f32 %v2938_v51, %v2610_v7  ;;  %v3013_v14 = vmax.f32 %v3012_v52, %v2612_v8  ;;  %v2618_v15 = vmax.f32 %v2229_v9, 0.0  ;;  %v2620_v21 = vmax.f32 %v2422_v27, 0.0 }
 0x579   : > { %v2976_v22 = vmax.f32 %v2975_v54, %v2611_v11  ;;  %v3050_v23 = vmax.f32 %v3049_v55, %v2613_v16  ;;  %v2619_v24 = vmax.f32 %v2231_v12, 0.0  ;;  %v2621_v29 = vmax.f32 %v2424_v38, 0.0 }
 0x57a   : > { %v2940_v30 = vmax.f32 %v2939_v2, %v2618_v15  ;;  %v3014_v31 = vmax.f32 %v3013_v14, %v2620_v21 }
 0x57b   : > { %v2977_v32 = vmax.f32 %v2976_v22, %v2619_v24  ;;  %v3051_v17 = vmax.f32 %v3050_v23, %v2621_v29  ;;  %v2234_v33 = vpop.f32.mrb[120].mxu0  ;;  %v2427_v34 = vpop.f32.mrb[120].mxu1 }
 0x57c   : > { %v2235_v43 = vadd.f32 %v2234_v33, %v13641_v40  ;;  %v2428_v26 = vadd.f32 %v2427_v34, %v13644_v41  ;;  %v2236_v39 = vpop.f32.mrb[121].mxu0  ;;  %v2429_v42 = vpop.f32.mrb[121].mxu1 }
 0x57d   : > { %v2237_v44 = vadd.f32 %v2236_v39, %v13649_v35  ;;  %v2430_v45 = vadd.f32 %v2429_v42, %v13652_v47  ;;  %v2238_v46 = vpop.f32.mrb[122].mxu0  ;;  %v2431_v48 = vpop.f32.mrb[122].mxu1 }
 0x57e   : > { %v2626_v49 = vmax.f32 %v2235_v43, 0.0  ;;  %v2628_v51 = vmax.f32 %v2428_v26, 0.0  ;;  %v2239_v52 = vadd.f32 %v2238_v46, %v13641_v40  ;;  %v2432_v54 = vadd.f32 %v2431_v48, %v13644_v41  ;;  %v2240_v55 = vpop.f32.mrb[123].mxu0  ;;  %v2433_v57 = vpop.f32.mrb[123].mxu1 }
 0x57f   : > { %v2627_v18 = vmax.f32 %v2237_v44, 0.0  ;;  %v2629_v58 = vmax.f32 %v2430_v45, 0.0  ;;  %v2241_v61 = vadd.f32 %v2240_v55, %v13649_v35  ;;  %v2434_v63 = vadd.f32 %v2433_v57, %v13652_v47 }
 0x580   : > { %v2941_v0 = vmax.f32 %v2940_v30, %v2626_v49  ;;  %v3015_v1 = vmax.f32 %v3014_v31, %v2628_v51  ;;  %v2634_v3 = vmax.f32 %v2239_v52, 0.0  ;;  %v2636_v6 = vmax.f32 %v2432_v54, 0.0 }
 0x581   : > { %v2978_v36 = vmax.f32 %v2977_v32, %v2627_v18  ;;  %v3052_v7 = vmax.f32 %v3051_v17, %v2629_v58  ;;  %v2635_v8 = vmax.f32 %v2241_v61, 0.0  ;;  %v2637_v9 = vmax.f32 %v2434_v63, 0.0 }
 0x582   : > { %v2942_v27 = vmax.f32 %v2941_v0, %v2634_v3  ;;  %v3016_v10 = vmax.f32 %v3015_v1, %v2636_v6 }
 0x583   : > { %v2979_v28 = vmax.f32 %v2978_v36, %v2635_v8  ;;  %v3053_v11 = vmax.f32 %v3052_v7, %v2637_v9  ;;  %v2244_v16 = vpop.f32.mrb[124].mxu0  ;;  %v2437_v12 = vpop.f32.mrb[124].mxu1 }
 0x584   : > { %v2245_v38 = vadd.f32 %v2244_v16, %v13641_v40  ;;  %v2438_v2 = vadd.f32 %v2437_v12, %v13644_v41  ;;  %v2246_v14 = vpop.f32.mrb[125].mxu0  ;;  %v2439_v15 = vpop.f32.mrb[125].mxu1 }
 0x585   : > { %v2247_v21 = vadd.f32 %v2246_v14, %v13649_v35  ;;  %v2440_v22 = vadd.f32 %v2439_v15, %v13652_v47  ;;  %v2248_v23 = vpop.f32.mrb[126].mxu0  ;;  %v2441_v24 = vpop.f32.mrb[126].mxu1 }
 0x586   : > { %v2642_v29 = vmax.f32 %v2245_v38, 0.0  ;;  %v2644_v30 = vmax.f32 %v2438_v2, 0.0  ;;  %v2249_v31 = vadd.f32 %v2248_v23, %v13641_v40  ;;  %v2442_v32 = vadd.f32 %v2441_v24, %v13644_v41  ;;  %v2250_v17 = vpop.f32.mrb[127].mxu0  ;;  %v2443_v33 = vpop.f32.mrb[127].mxu1 }
 0x587   : > { %v2643_v34 = vmax.f32 %v2247_v21, 0.0  ;;  %v2645_v43 = vmax.f32 %v2440_v22, 0.0  ;;  %v2251_v26 = vadd.f32 %v2250_v17, %v13649_v35  ;;  %v2444_v39 = vadd.f32 %v2443_v33, %v13652_v47 }
 0x588   : > { %v2943_v42 = vmax.f32 %v2942_v27, %v2642_v29  ;;  %v3017_v44 = vmax.f32 %v3016_v10, %v2644_v30  ;;  %v2650_v45 = vmax.f32 %v2249_v31, 0.0  ;;  %v2652_v46 = vmax.f32 %v2442_v32, 0.0 }
 0x589   : > { %v2980_v48 = vmax.f32 %v2979_v28, %v2643_v34  ;;  %v3054_v49 = vmax.f32 %v3053_v11, %v2645_v43  ;;  %v2651_v51 = vmax.f32 %v2251_v26, 0.0  ;;  %v2653_v52 = vmax.f32 %v2444_v39, 0.0 }
 0x58a   : > { %v2944_v54 = vmax.f32 %v2943_v42, %v2650_v45  ;;  %v3018_v55 = vmax.f32 %v3017_v44, %v2652_v46 }
 0x58b   : > { %v2981_v57 = vmax.f32 %v2980_v48, %v2651_v51  ;;  %v3055_v18 = vmax.f32 %v3054_v49, %v2653_v52  ;;  %v2254_v58 = vpop.f32.mrb[128].mxu0  ;;  %v2447_v61 = vpop.f32.mrb[128].mxu1 }
 0x58c   : > { %v2255_v63 = vadd.f32 %v2254_v58, %v13641_v40  ;;  %v2448_v0 = vadd.f32 %v2447_v61, %v13644_v41  ;;  %v2256_v1 = vpop.f32.mrb[129].mxu0  ;;  %v2449_v3 = vpop.f32.mrb[129].mxu1 }
 0x58d   : > { %v2257_v6 = vadd.f32 %v2256_v1, %v13649_v35  ;;  %v2450_v36 = vadd.f32 %v2449_v3, %v13652_v47  ;;  %v2258_v7 = vpop.f32.mrb[130].mxu0  ;;  %v2451_v8 = vpop.f32.mrb[130].mxu1 }
 0x58e   : > { %v2658_v9 = vmax.f32 %v2255_v63, 0.0  ;;  %v2660_v27 = vmax.f32 %v2448_v0, 0.0  ;;  %v2259_v10 = vadd.f32 %v2258_v7, %v13641_v40  ;;  %v2452_v28 = vadd.f32 %v2451_v8, %v13644_v41  ;;  %v2260_v11 = vpop.f32.mrb[131].mxu0  ;;  %v2453_v16 = vpop.f32.mrb[131].mxu1 }
 0x58f   : > { %v2659_v12 = vmax.f32 %v2257_v6, 0.0  ;;  %v2661_v38 = vmax.f32 %v2450_v36, 0.0  ;;  %v2261_v2 = vadd.f32 %v2260_v11, %v13649_v35  ;;  %v2454_v14 = vadd.f32 %v2453_v16, %v13652_v47 }
 0x590   : > { %v2945_v15 = vmax.f32 %v2944_v54, %v2658_v9  ;;  %v3019_v21 = vmax.f32 %v3018_v55, %v2660_v27  ;;  %v2666_v22 = vmax.f32 %v2259_v10, 0.0  ;;  %v2668_v23 = vmax.f32 %v2452_v28, 0.0 }
 0x591   : > { %v2982_v24 = vmax.f32 %v2981_v57, %v2659_v12  ;;  %v3056_v29 = vmax.f32 %v3055_v18, %v2661_v38  ;;  %v2667_v30 = vmax.f32 %v2261_v2, 0.0  ;;  %v2669_v31 = vmax.f32 %v2454_v14, 0.0 }
 0x592   : > { %v2946_v32 = vmax.f32 %v2945_v15, %v2666_v22  ;;  %v3020_v17 = vmax.f32 %v3019_v21, %v2668_v23 }
 0x593   : > { %v2983_v33 = vmax.f32 %v2982_v24, %v2667_v30  ;;  %v3057_v34 = vmax.f32 %v3056_v29, %v2669_v31  ;;  %v2264_v43 = vpop.f32.mrb[132].mxu0  ;;  %v2457_v26 = vpop.f32.mrb[132].mxu1 }
 0x594   : > { %v2265_v39 = vadd.f32 %v2264_v43, %v13641_v40  ;;  %v2458_v42 = vadd.f32 %v2457_v26, %v13644_v41  ;;  %v2266_v44 = vpop.f32.mrb[133].mxu0  ;;  %v2459_v45 = vpop.f32.mrb[133].mxu1 }
 0x595   : > { %v2267_v46 = vadd.f32 %v2266_v44, %v13649_v35  ;;  %v2460_v48 = vadd.f32 %v2459_v45, %v13652_v47  ;;  %v2268_v49 = vpop.f32.mrb[134].mxu0  ;;  %v2461_v51 = vpop.f32.mrb[134].mxu1 }
 0x596   : > { %v2674_v52 = vmax.f32 %v2265_v39, 0.0  ;;  %v2676_v54 = vmax.f32 %v2458_v42, 0.0  ;;  %v2269_v55 = vadd.f32 %v2268_v49, %v13641_v40  ;;  %v2462_v57 = vadd.f32 %v2461_v51, %v13644_v41  ;;  %v2270_v18 = vpop.f32.mrb[135].mxu0  ;;  %v2463_v58 = vpop.f32.mrb[135].mxu1 }
 0x597   : > { %v2675_v61 = vmax.f32 %v2267_v46, 0.0  ;;  %v2677_v63 = vmax.f32 %v2460_v48, 0.0  ;;  %v2271_v0 = vadd.f32 %v2270_v18, %v13649_v35  ;;  %v2464_v1 = vadd.f32 %v2463_v58, %v13652_v47 }
 0x598   : > { %v2947_v3 = vmax.f32 %v2946_v32, %v2674_v52  ;;  %v3021_v6 = vmax.f32 %v3020_v17, %v2676_v54  ;;  %v2682_v36 = vmax.f32 %v2269_v55, 0.0  ;;  %v2684_v7 = vmax.f32 %v2462_v57, 0.0 }
 0x599   : > { %v2984_v8 = vmax.f32 %v2983_v33, %v2675_v61  ;;  %v3058_v9 = vmax.f32 %v3057_v34, %v2677_v63  ;;  %v2683_v27 = vmax.f32 %v2271_v0, 0.0  ;;  %v2685_v10 = vmax.f32 %v2464_v1, 0.0 }
 0x59a   : > { %v2948_v28 = vmax.f32 %v2947_v3, %v2682_v36  ;;  %v3022_v11 = vmax.f32 %v3021_v6, %v2684_v7 }
 0x59b   : > { %v2985_v16 = vmax.f32 %v2984_v8, %v2683_v27  ;;  %v3059_v12 = vmax.f32 %v3058_v9, %v2685_v10  ;;  %v2274_v38 = vpop.f32.mrb[136].mxu0  ;;  %v2467_v2 = vpop.f32.mrb[136].mxu1 }
 0x59c   : > { %v2275_v14 = vadd.f32 %v2274_v38, %v13641_v40  ;;  %v2468_v15 = vadd.f32 %v2467_v2, %v13644_v41  ;;  %v2276_v21 = vpop.f32.mrb[137].mxu0  ;;  %v2469_v22 = vpop.f32.mrb[137].mxu1 }
 0x59d   : > { %v2277_v23 = vadd.f32 %v2276_v21, %v13649_v35  ;;  %v2470_v24 = vadd.f32 %v2469_v22, %v13652_v47  ;;  %v2278_v29 = vpop.f32.mrb[138].mxu0  ;;  %v2471_v30 = vpop.f32.mrb[138].mxu1 }
 0x59e   : > { %v2690_v31 = vmax.f32 %v2275_v14, 0.0  ;;  %v2692_v32 = vmax.f32 %v2468_v15, 0.0  ;;  %v2279_v17 = vadd.f32 %v2278_v29, %v13641_v40  ;;  %v2472_v33 = vadd.f32 %v2471_v30, %v13644_v41  ;;  %v2280_v34 = vpop.f32.mrb[139].mxu0  ;;  %v2473_v43 = vpop.f32.mrb[139].mxu1 }
 0x59f   : > { %v2691_v26 = vmax.f32 %v2277_v23, 0.0  ;;  %v2693_v39 = vmax.f32 %v2470_v24, 0.0  ;;  %v2281_v42 = vadd.f32 %v2280_v34, %v13649_v35  ;;  %v2474_v44 = vadd.f32 %v2473_v43, %v13652_v47 }
 0x5a0   : > { %v2949_v45 = vmax.f32 %v2948_v28, %v2690_v31  ;;  %v3023_v46 = vmax.f32 %v3022_v11, %v2692_v32  ;;  %v2698_v48 = vmax.f32 %v2279_v17, 0.0  ;;  %v2700_v49 = vmax.f32 %v2472_v33, 0.0 }
 0x5a1   : > { %v2986_v51 = vmax.f32 %v2985_v16, %v2691_v26  ;;  %v3060_v52 = vmax.f32 %v3059_v12, %v2693_v39  ;;  %v2699_v54 = vmax.f32 %v2281_v42, 0.0  ;;  %v2701_v55 = vmax.f32 %v2474_v44, 0.0 }
 0x5a2   : > { %v2950_v57 = vmax.f32 %v2949_v45, %v2698_v48  ;;  %v3024_v18 = vmax.f32 %v3023_v46, %v2700_v49 }
 0x5a3   : > { %v2987_v58 = vmax.f32 %v2986_v51, %v2699_v54  ;;  %v3061_v61 = vmax.f32 %v3060_v52, %v2701_v55  ;;  %v2284_v63 = vpop.f32.mrb[140].mxu0  ;;  %v2477_v0 = vpop.f32.mrb[140].mxu1 }
 0x5a4   : > { %v2285_v1 = vadd.f32 %v2284_v63, %v13641_v40  ;;  %v2478_v3 = vadd.f32 %v2477_v0, %v13644_v41  ;;  %v2286_v6 = vpop.f32.mrb[141].mxu0  ;;  %v2479_v36 = vpop.f32.mrb[141].mxu1 }
 0x5a5   : > { %v2287_v7 = vadd.f32 %v2286_v6, %v13649_v35  ;;  %v2480_v8 = vadd.f32 %v2479_v36, %v13652_v47  ;;  %v2288_v9 = vpop.f32.mrb[142].mxu0  ;;  %v2481_v27 = vpop.f32.mrb[142].mxu1 }
 0x5a6   : > { %v2706_v10 = vmax.f32 %v2285_v1, 0.0  ;;  %v2708_v28 = vmax.f32 %v2478_v3, 0.0  ;;  %v2289_v11 = vadd.f32 %v2288_v9, %v13641_v40  ;;  %v2482_v16 = vadd.f32 %v2481_v27, %v13644_v41  ;;  %v2290_v12 = vpop.f32.mrb[143].mxu0  ;;  %v2483_v38 = vpop.f32.mrb[143].mxu1 }
 0x5a7   : > { %v2707_v2 = vmax.f32 %v2287_v7, 0.0  ;;  %v2709_v14 = vmax.f32 %v2480_v8, 0.0  ;;  %v2291_v15 = vadd.f32 %v2290_v12, %v13649_v35  ;;  %v2484_v21 = vadd.f32 %v2483_v38, %v13652_v47 }
 0x5a8   : > { %v2951_v22 = vmax.f32 %v2950_v57, %v2706_v10  ;;  %v3025_v23 = vmax.f32 %v3024_v18, %v2708_v28  ;;  %v2714_v24 = vmax.f32 %v2289_v11, 0.0  ;;  %v2716_v29 = vmax.f32 %v2482_v16, 0.0 }
 0x5a9   : > { %v2988_v30 = vmax.f32 %v2987_v58, %v2707_v2  ;;  %v3062_v31 = vmax.f32 %v3061_v61, %v2709_v14  ;;  %v2715_v32 = vmax.f32 %v2291_v15, 0.0  ;;  %v2717_v17 = vmax.f32 %v2484_v21, 0.0 }
 0x5aa   : > { %v2952_v33 = vmax.f32 %v2951_v22, %v2714_v24  ;;  %v3026_v34 = vmax.f32 %v3025_v23, %v2716_v29 }
 0x5ab   : > { %v2989_v43 = vmax.f32 %v2988_v30, %v2715_v32  ;;  %v3063_v26 = vmax.f32 %v3062_v31, %v2717_v17  ;;  %v2294_v39 = vpop.f32.mrb[144].mxu0  ;;  %v2487_v42 = vpop.f32.mrb[144].mxu1 }
 0x5ac   : > { %v2295_v44 = vadd.f32 %v2294_v39, %v13641_v40  ;;  %v2488_v45 = vadd.f32 %v2487_v42, %v13644_v41  ;;  %v2296_v46 = vpop.f32.mrb[145].mxu0  ;;  %v2489_v48 = vpop.f32.mrb[145].mxu1 }
 0x5ad   : > { %v2297_v49 = vadd.f32 %v2296_v46, %v13649_v35  ;;  %v2490_v51 = vadd.f32 %v2489_v48, %v13652_v47  ;;  %v2298_v52 = vpop.f32.mrb[146].mxu0  ;;  %v2491_v54 = vpop.f32.mrb[146].mxu1 }
 0x5ae   : > { %v2722_v55 = vmax.f32 %v2295_v44, 0.0  ;;  %v2724_v57 = vmax.f32 %v2488_v45, 0.0  ;;  %v2299_v18 = vadd.f32 %v2298_v52, %v13641_v40  ;;  %v2492_v58 = vadd.f32 %v2491_v54, %v13644_v41  ;;  %v2300_v61 = vpop.f32.mrb[147].mxu0  ;;  %v2493_v63 = vpop.f32.mrb[147].mxu1 }
 0x5af   : > { %v2723_v0 = vmax.f32 %v2297_v49, 0.0  ;;  %v2725_v1 = vmax.f32 %v2490_v51, 0.0  ;;  %v2301_v3 = vadd.f32 %v2300_v61, %v13649_v35  ;;  %v2494_v6 = vadd.f32 %v2493_v63, %v13652_v47 }
 0x5b0   : > { %v2953_v36 = vmax.f32 %v2952_v33, %v2722_v55  ;;  %v3027_v7 = vmax.f32 %v3026_v34, %v2724_v57  ;;  %v2730_v8 = vmax.f32 %v2299_v18, 0.0  ;;  %v2732_v9 = vmax.f32 %v2492_v58, 0.0 }
 0x5b1   : > { %v2990_v27 = vmax.f32 %v2989_v43, %v2723_v0  ;;  %v3064_v10 = vmax.f32 %v3063_v26, %v2725_v1  ;;  %v2731_v28 = vmax.f32 %v2301_v3, 0.0  ;;  %v2733_v11 = vmax.f32 %v2494_v6, 0.0 }
 0x5b2   : > { %v2954_v16 = vmax.f32 %v2953_v36, %v2730_v8  ;;  %v3028_v12 = vmax.f32 %v3027_v7, %v2732_v9 }
 0x5b3   : > { %v2991_v38 = vmax.f32 %v2990_v27, %v2731_v28  ;;  %v3065_v2 = vmax.f32 %v3064_v10, %v2733_v11  ;;  %v2304_v14 = vpop.f32.mrb[148].mxu0  ;;  %v2497_v15 = vpop.f32.mrb[148].mxu1 }
 0x5b4   : > { %v2305_v21 = vadd.f32 %v2304_v14, %v13641_v40  ;;  %v2498_v22 = vadd.f32 %v2497_v15, %v13644_v41  ;;  %v2306_v23 = vpop.f32.mrb[149].mxu0  ;;  %v2499_v24 = vpop.f32.mrb[149].mxu1 }
 0x5b5   : > { %v2307_v29 = vadd.f32 %v2306_v23, %v13649_v35  ;;  %v2500_v30 = vadd.f32 %v2499_v24, %v13652_v47  ;;  %v2308_v31 = vpop.f32.mrb[150].mxu0  ;;  %v2501_v32 = vpop.f32.mrb[150].mxu1 }
 0x5b6   : > { %v2738_v17 = vmax.f32 %v2305_v21, 0.0  ;;  %v2740_v33 = vmax.f32 %v2498_v22, 0.0  ;;  %v2309_v34 = vadd.f32 %v2308_v31, %v13641_v40  ;;  %v2502_v43 = vadd.f32 %v2501_v32, %v13644_v41  ;;  %v2310_v26 = vpop.f32.mrb[151].mxu0  ;;  %v2503_v39 = vpop.f32.mrb[151].mxu1 }
 0x5b7   : > { %v2739_v42 = vmax.f32 %v2307_v29, 0.0  ;;  %v2741_v44 = vmax.f32 %v2500_v30, 0.0  ;;  %v2311_v45 = vadd.f32 %v2310_v26, %v13649_v35  ;;  %v2504_v46 = vadd.f32 %v2503_v39, %v13652_v47 }
 0x5b8   : > { %v2955_v48 = vmax.f32 %v2954_v16, %v2738_v17  ;;  %v3029_v49 = vmax.f32 %v3028_v12, %v2740_v33  ;;  %v2746_v51 = vmax.f32 %v2309_v34, 0.0  ;;  %v2748_v52 = vmax.f32 %v2502_v43, 0.0 }
 0x5b9   : > { %v2992_v54 = vmax.f32 %v2991_v38, %v2739_v42  ;;  %v3066_v55 = vmax.f32 %v3065_v2, %v2741_v44  ;;  %v2747_v57 = vmax.f32 %v2311_v45, 0.0  ;;  %v2749_v18 = vmax.f32 %v2504_v46, 0.0 }
 0x5ba   : > { %v2956_v58 = vmax.f32 %v2955_v48, %v2746_v51  ;;  %v3030_v61 = vmax.f32 %v3029_v49, %v2748_v52 }
 0x5bb   : > { %v2993_v63 = vmax.f32 %v2992_v54, %v2747_v57  ;;  %v3067_v0 = vmax.f32 %v3066_v55, %v2749_v18  ;;  %v2314_v1 = vpop.f32.mrb[152].mxu0  ;;  %v2507_v3 = vpop.f32.mrb[152].mxu1 }
 0x5bc   : > { %v2315_v6 = vadd.f32 %v2314_v1, %v13641_v40  ;;  %v2508_v36 = vadd.f32 %v2507_v3, %v13644_v41  ;;  %v2316_v7 = vpop.f32.mrb[153].mxu0  ;;  %v2509_v8 = vpop.f32.mrb[153].mxu1 }
 0x5bd   : > { %v2317_v9 = vadd.f32 %v2316_v7, %v13649_v35  ;;  %v2510_v27 = vadd.f32 %v2509_v8, %v13652_v47  ;;  %v2318_v10 = vpop.f32.mrb[154].mxu0  ;;  %v2511_v28 = vpop.f32.mrb[154].mxu1 }
 0x5be   : > { %v2754_v11 = vmax.f32 %v2315_v6, 0.0  ;;  %v2756_v16 = vmax.f32 %v2508_v36, 0.0  ;;  %v2319_v12 = vadd.f32 %v2318_v10, %v13641_v40  ;;  %v2512_v38 = vadd.f32 %v2511_v28, %v13644_v41  ;;  %v2320_v2 = vpop.f32.mrb[155].mxu0  ;;  %v2513_v14 = vpop.f32.mrb[155].mxu1 }
 0x5bf   : > { %v2755_v15 = vmax.f32 %v2317_v9, 0.0  ;;  %v2757_v21 = vmax.f32 %v2510_v27, 0.0  ;;  %v2321_v22 = vadd.f32 %v2320_v2, %v13649_v35  ;;  %v2514_v23 = vadd.f32 %v2513_v14, %v13652_v47 }
 0x5c0   : > { %v2957_v24 = vmax.f32 %v2956_v58, %v2754_v11  ;;  %v3031_v29 = vmax.f32 %v3030_v61, %v2756_v16  ;;  %v2762_v30 = vmax.f32 %v2319_v12, 0.0  ;;  %v2764_v31 = vmax.f32 %v2512_v38, 0.0 }
 0x5c1   : > { %v2994_v32 = vmax.f32 %v2993_v63, %v2755_v15  ;;  %v3068_v17 = vmax.f32 %v3067_v0, %v2757_v21  ;;  %v2763_v33 = vmax.f32 %v2321_v22, 0.0  ;;  %v2765_v34 = vmax.f32 %v2514_v23, 0.0 }
 0x5c2   : > { %v2958_v43 = vmax.f32 %v2957_v24, %v2762_v30  ;;  %v3032_v26 = vmax.f32 %v3031_v29, %v2764_v31 }
 0x5c3   : > { %v2995_v39 = vmax.f32 %v2994_v32, %v2763_v33  ;;  %v3069_v42 = vmax.f32 %v3068_v17, %v2765_v34  ;;  %v2324_v44 = vpop.f32.mrb[156].mxu0  ;;  %v2517_v45 = vpop.f32.mrb[156].mxu1 }
 0x5c4   : > { %v2325_v46 = vadd.f32 %v2324_v44, %v13641_v40  ;;  %v2518_v48 = vadd.f32 %v2517_v45, %v13644_v41  ;;  %v2326_v49 = vpop.f32.mrb[157].mxu0  ;;  %v2519_v51 = vpop.f32.mrb[157].mxu1 }
 0x5c5   : > { %v2327_v52 = vadd.f32 %v2326_v49, %v13649_v35  ;;  %v2520_v54 = vadd.f32 %v2519_v51, %v13652_v47  ;;  %v2328_v55 = vpop.f32.mrb[158].mxu0  ;;  %v2521_v57 = vpop.f32.mrb[158].mxu1  ;;  %v12637_v51 = vmov (!%p10334_p0), 1966171168  }
 0x5c6   : > { %v2770_v18 = vmax.f32 %v2325_v46, 0.0  ;;  %v2772_v58 = vmax.f32 %v2518_v48, 0.0  ;;  %v2329_v61 = vadd.f32 %v2328_v55, %v13641_v40  ;;  %v2522_v63 = vadd.f32 %v2521_v57, %v13644_v41  ;;  %v2330_v0 = vpop.f32.mrb[159].mxu0  ;;  %v2523_v1 = vpop.f32.mrb[159].mxu1 }
 0x5c7   : > { %v2771_v3 = vmax.f32 %v2327_v52, 0.0  ;;  %v2773_v6 = vmax.f32 %v2520_v54, 0.0  ;;  %v2331_v36 = vadd.f32 %v2330_v0, %v13649_v35  ;;  %v2524_v7 = vadd.f32 %v2523_v1, %v13652_v47 }
 0x5c8   : > { %v2959_v8 = vmax.f32 %v2958_v43, %v2770_v18  ;;  %v3033_v9 = vmax.f32 %v3032_v26, %v2772_v58  ;;  %v2778_v27 = vmax.f32 %v2329_v61, 0.0  ;;  %v2780_v10 = vmax.f32 %v2522_v63, 0.0 }
 0x5c9   : > { %v2996_v28 = vmax.f32 %v2995_v39, %v2771_v3  ;;  %v3070_v11 = vmax.f32 %v3069_v42, %v2773_v6  ;;  %v2779_v16 = vmax.f32 %v2331_v36, 0.0  ;;  %v2781_v12 = vmax.f32 %v2524_v7, 0.0 }
 0x5ca   : > { %v2960_v38 = vmax.f32 %v2959_v8, %v2778_v27  ;;  %v3034_v40 = vmax.f32 %v3033_v9, %v2780_v10  ;;  %v3095_v52 = vunpack.c.l.s4 (!%p10334_p0), %v12637_v51  ;;  %v3090_v54 = vcombine.low (!%p10334_p0), %v13666_v13, %v13672_v19 }
 0x5cb   : > { %v2997_v2 = vmax.f32 %v2996_v28, %v2779_v16  ;;  %v3071_v41 = vmax.f32 %v3070_v11, %v2781_v12  ;;  %v3091_v55 = vcombine.low (!%p10334_p0), %v13668_v37, %v13674_v20 }
 0x5cc   : > { %v2961_v14 = vrot.slane %v2960_v38, 4  ;;  %v3035_v15 = vrot.slane %v3034_v40, 4  ;;  %v3096_v58 = vunpack.c.0.s8 (!%p10334_p0), %v3095_v52 }
 0x5cd   : > { %v2998_v21 = vrot.slane %v2997_v2, 4  ;;  %v3072_v22 = vrot.slane %v3071_v41, 4 }
 0x5ce   : > { %v2962_v23 = vmax.f32 %v2960_v38, %v2961_v14  ;;  %v3036_v35 = vmax.f32 %v3034_v40, %v3035_v15  ;;  %v3099_v61 = vsub.s32 (!%p10334_p0), %v3096_v58, %v13456_v53 }
 0x5cf   : > { %v2999_v24 = vmax.f32 %v2997_v2, %v2998_v21  ;;  %v3073_v47 = vmax.f32 %v3071_v41, %v3072_v22 }
 0x5d0   : > { %v2963_v29 = vrot.slane %v2962_v23, 2  ;;  %v3037_v30 = vrot.slane %v3036_v35, 2  ;;  %v3100_v63 = vrot.slane (!%p10334_p0), %v3090_v54, %v3099_v61  ;;  %v3107_v0 = vrot.slane (!%p10334_p0), %v3091_v55, %v3099_v61 }
 0x5d1   : > { %v3000_v31 = vrot.slane %v2999_v24, 2  ;;  %v3074_v32 = vrot.slane %v3073_v47, 2  ;;  %3081 = sbr.rel (%p10334_p0) target bundleno = 1508 (0x5e4), region = 136 }
 0x5d2   : > { %v2964_v17 = vmax.f32 %v2962_v23, %v2963_v29  ;;  %v3038_v33 = vmax.f32 %v3036_v35, %v3037_v30  ;;  %v3122_v6 = vcombine.low (!%p10334_p0), %v3100_v63, %v3107_v0 }
 0x5d3   : > { %v3001_v34 = vmax.f32 %v2999_v24, %v3000_v31  ;;  %v3075_v43 = vmax.f32 %v3073_v47, %v3074_v32 }
 0x5d4   : > { %v2965_v26 = vrot.slane %v2964_v17, 1  ;;  %v3039_v39 = vrot.slane %v3038_v33, 1  ;;  %v3130_v7 = vrot.slane (!%p10334_p0), %v3122_v6, %v3099_v61 }
 0x5d5   : > { %v3002_v42 = vrot.slane %v3001_v34, 1  ;;  %v3076_v44 = vrot.slane %v3075_v43, 1 }
 0x5d6   : > { %v2966_v45 = vmax.f32 %v2964_v17, %v2965_v26  ;;  %v3040_v46 = vmax.f32 %v3038_v33, %v3039_v39 }
 0x5d7   : > { %v3003_v48 = vmax.f32 %v3001_v34, %v3002_v42  ;;  %v3077_v49 = vmax.f32 %v3075_v43, %v3076_v44 }
 0x5d9   : > { %v3092_v57 = vcombine.low %v2966_v45, %v3003_v48  ;;  %v3093_v18 = vcombine.low %v3040_v46, %v3077_v49 }
 0x5db   : > { %v3114_v1 = vrot.slane %v3092_v57, %v3099_v61  ;;  %v3121_v3 = vrot.slane %v3093_v18, %v3099_v61 }
 0x5dd   : > { %v3123_v36 = vcombine.low %v3114_v1, %v3121_v3 }
 0x5df   : > { %v3137_v8 = vrot.slane %v3123_v36, %v3099_v61 }
 0x5e1   : > { %v3138_v9 = vcombine.low %v3130_v7, %v3137_v8 }
 0x5e3   : > { %3140 = vst [vmem:[#allocation2] sm:$0xff] %v3138_v9 }
 0x5e4 PF: > { %s14280_s29 = sld [smem:[#allocation42_spill]] }
 0x5ea   : > { %p10335_p3 = scmp.le.s32.totalorder %s14280_s29, 0 }
 0x5eb   : > { %v12638_v27 = vmov (!%p10335_p3), 1966171168   ;;  %v3154_v28 = vcombine.low (!%p10335_p3), %v13666_v13, %v13672_v19  ;;  %v3155_v11 = vcombine.low (!%p10335_p3), %v13668_v37, %v13674_v20  ;;  %v3156_v16 = vcombine.low (!%p10335_p3), %v2966_v45, %v3003_v48  ;;  %v3145_v24 = vld [vmem:[#allocation2] sm:$0xff] (!%p10335_p3) }
 0x5ec   : > { %3144 = sbr.rel (%p10335_p3) target bundleno = 1533 (0x5fd), region = 140  ;;  %v3159_v10 = vunpack.c.l.s4 (!%p10335_p3), %v12638_v27  ;;  %v3157_v12 = vcombine.low (!%p10335_p3), %v3040_v46, %v3077_v49 }
 0x5ee   : > { %v3160_v38 = vunpack.c.0.s8 (!%p10335_p3), %v3159_v10 }
 0x5f0   : > { %v3163_v40 = vsub.s32 (!%p10335_p3), %v3160_v38, %v13456_v53 }
 0x5f2   : > { %v3164_v2 = vrot.slane (!%p10335_p3), %v3154_v28, %v3163_v40  ;;  %v3171_v41 = vrot.slane (!%p10335_p3), %v3155_v11, %v3163_v40  ;;  %v3178_v14 = vrot.slane (!%p10335_p3), %v3156_v16, %v3163_v40  ;;  %v3185_v15 = vrot.slane (!%p10335_p3), %v3157_v12, %v3163_v40 }
 0x5f4   : > { %v3186_v21 = vcombine.low %v3164_v2, %v3171_v41  ;;  %v3187_v22 = vcombine.low %v3178_v14, %v3185_v15 }
 0x5f6   : > { %v3194_v23 = vrot.slane %v3186_v21, %v3163_v40  ;;  %v3201_v35 = vrot.slane %v3187_v22, %v3163_v40 }
 0x5f8   : > { %v3202_v47 = vcombine.low %v3194_v23, %v3201_v35 }
 0x5fa   : > { %v3204_v29 = vmax.f32 %v3145_v24, %v3202_v47 }
 0x5fc   : > { %3205 = vst [vmem:[#allocation2] sm:$0xff] %v3204_v29 }
 0x5fd PF: > { %s14281_s25 = sld [smem:[#allocation42_spill]] }
 0x603   : > { %p10336_p5 = scmp.ne.s32.totalorder %s14281_s25, 1 }
 0x604   : > { %v11584_v13 = vld [vmem:[#allocation15 + $0x4] ss:$16 sps:$4 sm:$0xff] (!%p10336_p5)   ;;  %v11586_v37 = vld [vmem:[#allocation15 + $0xc] ss:$16 sps:$4 sm:$0xff] (!%p10336_p5)   ;;  %v11588_v19 = vld [vmem:[#allocation15] ss:$16 sps:$4 sm:$0xff] (!%p10336_p5)  }
 0x605   : > { %3209 = sbr.rel (%p10336_p5) target bundleno = 3041 (0xbe1), region = 144  ;;  %4818 = vmatprep.subr.bf16.mxu0 (!%p10336_p5), %v11584_v13  ;;  %v11589_v20 = vld [vmem:[#allocation15 + $0x8] ss:$16 sps:$4 sm:$0xff] (!%p10336_p5)   ;;  %4982 = vmatprep.subr.bf16.mxu1 (!%p10336_p5), %v11586_v37  ;;  %v11590_v30 = vld [vmem:[#allocation15 + $0x24] ss:$16 sps:$4 sm:$0xff] (!%p10336_p5)   ;;  %v13810_v14 = vld [vmem:[#allocation2] sm:$0xff] (!%p10336_p5) }
 0x606   : > { %4819 = vmatpush1.bf16.msra.mxu0 (!%p10336_p5), %v11588_v19  ;;  %4983 = vmatpush1.bf16.msra.mxu1 (!%p10336_p5), %v11589_v20  ;;  %v11592_v31 = vld [vmem:[#allocation15 + $0x2c] ss:$16 sps:$4 sm:$0xff] (!%p10336_p5)   ;;  %v11594_v32 = vld [vmem:[#allocation15 + $0x20] ss:$16 sps:$4 sm:$0xff] (!%p10336_p5)   ;;  %v11595_v17 = vld [vmem:[#allocation15 + $0x28] ss:$16 sps:$4 sm:$0xff] (!%p10336_p5)   ;;  %v3219_v21 = vrot.slane (!%p10336_p5), %v13810_v14, %v13467_v59 }
 0x607   : > { %4820 = vmatprep.subr.bf16.mxu0 (!%p10336_p5), %v11590_v30  ;;  %4984 = vmatprep.subr.bf16.mxu1 (!%p10336_p5), %v11592_v31  ;;  %v11596_v33 = vld [vmem:[#allocation15 + $0x44] ss:$16 sps:$4 sm:$0xff] (!%p10336_p5)   ;;  %v11598_v34 = vld [vmem:[#allocation15 + $0x4c] ss:$16 sps:$4 sm:$0xff] (!%p10336_p5)   ;;  %v11600_v43 = vld [vmem:[#allocation15 + $0x40] ss:$16 sps:$4 sm:$0xff] (!%p10336_p5)  }
 0x608   : > { %v11601_v26 = vld [vmem:[#allocation15 + $0x48] ss:$16 sps:$4 sm:$0xff] (!%p10336_p5)   ;;  %v11602_v39 = vld [vmem:[#allocation15 + $0x64] ss:$16 sps:$4 sm:$0xff] (!%p10336_p5)   ;;  %v11604_v42 = vld [vmem:[#allocation15 + $0x6c] ss:$16 sps:$4 sm:$0xff] (!%p10336_p5)   ;;  %v3253_v24 = vpack.c.bf16 (!%p10336_p5), %v3219_v21, %v3219_v21 }
 0x609   : > { %v11606_v44 = vld [vmem:[#allocation15 + $0x60] ss:$16 sps:$4 sm:$0xff] (!%p10336_p5)   ;;  %v11607_v45 = vld [vmem:[#allocation15 + $0x68] ss:$16 sps:$4 sm:$0xff] (!%p10336_p5)   ;;  %v11608_v46 = vld [vmem:[#allocation15 + $0x84] ss:$16 sps:$4 sm:$0xff] (!%p10336_p5)  }
 0x60a   : > { %4821 = vmatpush1.bf16.msra.mxu0 (!%p10336_p5), %v11594_v32  ;;  %4985 = vmatpush1.bf16.msra.mxu1 (!%p10336_p5), %v11595_v17  ;;  %v11610_v48 = vld [vmem:[#allocation15 + $0x8c] ss:$16 sps:$4 sm:$0xff] (!%p10336_p5)   ;;  %v11612_v49 = vld [vmem:[#allocation15 + $0x80] ss:$16 sps:$4 sm:$0xff] (!%p10336_p5)   ;;  %v11613_v51 = vld [vmem:[#allocation15 + $0x88] ss:$16 sps:$4 sm:$0xff] (!%p10336_p5)  }
 0x60b   : > { %4822 = vmatprep.subr.bf16.mxu0 (!%p10336_p5), %v11596_v33  ;;  %4986 = vmatprep.subr.bf16.mxu1 (!%p10336_p5), %v11598_v34  ;;  %v11614_v52 = vld [vmem:[#allocation15 + $0xa4] ss:$16 sps:$4 sm:$0xff] (!%p10336_p5)   ;;  %v11616_v54 = vld [vmem:[#allocation15 + $0xac] ss:$16 sps:$4 sm:$0xff] (!%p10336_p5)   ;;  %v11618_v55 = vld [vmem:[#allocation15 + $0xa0] ss:$16 sps:$4 sm:$0xff] (!%p10336_p5)  }
 0x60c   : > { %v11619_v57 = vld [vmem:[#allocation15 + $0xa8] ss:$16 sps:$4 sm:$0xff]   ;;  %v11620_v18 = vld [vmem:[#allocation15 + $0xc4] ss:$16 sps:$4 sm:$0xff]   ;;  %v11622_v58 = vld [vmem:[#allocation15 + $0xcc] ss:$16 sps:$4 sm:$0xff]   ;;  %4850 = vmatprep.mubr.bf16.mxu0 %v3253_v24  ;;  %5014 = vmatprep.mubr.bf16.mxu1 %v3253_v24 }
 0x60d   : > { %v11624_v61 = vld [vmem:[#allocation15 + $0xc0] ss:$16 sps:$4 sm:$0xff]   ;;  %v11625_v63 = vld [vmem:[#allocation15 + $0xc8] ss:$16 sps:$4 sm:$0xff]   ;;  %v11626_v0 = vld [vmem:[#allocation15 + $0xe4] ss:$16 sps:$4 sm:$0xff]  }
 0x60e   : > { %4823 = vmatpush1.bf16.msra.mxu0 %v11600_v43  ;;  %4987 = vmatpush1.bf16.msra.mxu1 %v11601_v26  ;;  %v11628_v1 = vld [vmem:[#allocation15 + $0xec] ss:$16 sps:$4 sm:$0xff]   ;;  %v11630_v3 = vld [vmem:[#allocation15 + $0xe0] ss:$16 sps:$4 sm:$0xff]   ;;  %v11631_v6 = vld [vmem:[#allocation15 + $0xe8] ss:$16 sps:$4 sm:$0xff]   ;;  %v3215_v26 = vrot.slane %v13810_v14, %v13461_v56 }
 0x60f   : > { %4824 = vmatprep.subr.bf16.mxu0 %v11602_v39  ;;  %4988 = vmatprep.subr.bf16.mxu1 %v11604_v42  ;;  %v11632_v36 = vld [vmem:[#allocation15 + $0x104] ss:$16 sps:$4 sm:$0xff]   ;;  %v11634_v7 = vld [vmem:[#allocation15 + $0x10c] ss:$16 sps:$4 sm:$0xff]   ;;  %v11636_v8 = vld [vmem:[#allocation15 + $0x100] ss:$16 sps:$4 sm:$0xff]  }
 0x610   : > { %v11637_v9 = vld [vmem:[#allocation15 + $0x108] ss:$16 sps:$4 sm:$0xff]   ;;  %v11638_v27 = vld [vmem:[#allocation15 + $0x124] ss:$16 sps:$4 sm:$0xff]   ;;  %v11640_v10 = vld [vmem:[#allocation15 + $0x12c] ss:$16 sps:$4 sm:$0xff]  }
 0x611   : > { %v11642_v28 = vld [vmem:[#allocation15 + $0x120] ss:$16 sps:$4 sm:$0xff]   ;;  %v11643_v11 = vld [vmem:[#allocation15 + $0x128] ss:$16 sps:$4 sm:$0xff]   ;;  %v11644_v16 = vld [vmem:[#allocation15 + $0x144] ss:$16 sps:$4 sm:$0xff]  }
 0x612   : > { %4825 = vmatpush1.bf16.msra.mxu0 %v11606_v44  ;;  %4989 = vmatpush1.bf16.msra.mxu1 %v11607_v45  ;;  %v11646_v12 = vld [vmem:[#allocation15 + $0x14c] ss:$16 sps:$4 sm:$0xff]   ;;  %v11648_v38 = vld [vmem:[#allocation15 + $0x140] ss:$16 sps:$4 sm:$0xff]   ;;  %v11649_v40 = vld [vmem:[#allocation15 + $0x148] ss:$16 sps:$4 sm:$0xff]   ;;  %v3227_v45 = vrot.slane %v13810_v14, %v13470_v60 }
 0x613   : > { %4826 = vmatprep.subr.bf16.mxu0 %v11608_v46  ;;  %4990 = vmatprep.subr.bf16.mxu1 %v11610_v48  ;;  %v11650_v2 = vld [vmem:[#allocation15 + $0x164] ss:$16 sps:$4 sm:$0xff]   ;;  %v11652_v41 = vld [vmem:[#allocation15 + $0x16c] ss:$16 sps:$4 sm:$0xff]   ;;  %v11654_v15 = vld [vmem:[#allocation15 + $0x160] ss:$16 sps:$4 sm:$0xff]   ;;  %v3252_v48 = vpack.c.bf16 %v3215_v26, %v3215_v26 }
 0x614   : > { %v11655_v22 = vld [vmem:[#allocation15 + $0x168] ss:$16 sps:$4 sm:$0xff]   ;;  %v11656_v23 = vld [vmem:[#allocation15 + $0x184] ss:$16 sps:$4 sm:$0xff]   ;;  %v11658_v35 = vld [vmem:[#allocation15 + $0x18c] ss:$16 sps:$4 sm:$0xff]  }
 0x615   : > { %v11660_v47 = vld [vmem:[#allocation15 + $0x180] ss:$16 sps:$4 sm:$0xff]   ;;  %v11661_v29 = vld [vmem:[#allocation15 + $0x188] ss:$16 sps:$4 sm:$0xff]   ;;  %v11662_v13 = vld [vmem:[#allocation15 + $0x1a4] ss:$16 sps:$4 sm:$0xff]  }
 0x616   : > { %4827 = vmatpush1.bf16.msra.mxu0 %v11612_v49  ;;  %4991 = vmatpush1.bf16.msra.mxu1 %v11613_v51  ;;  %v11664_v37 = vld [vmem:[#allocation15 + $0x1ac] ss:$16 sps:$4 sm:$0xff]   ;;  %v11666_v19 = vld [vmem:[#allocation15 + $0x1a0] ss:$16 sps:$4 sm:$0xff]   ;;  %v11667_v20 = vld [vmem:[#allocation15 + $0x1a8] ss:$16 sps:$4 sm:$0xff]  }
 0x617   : > { %4828 = vmatprep.subr.bf16.mxu0 %v11614_v52  ;;  %4992 = vmatprep.subr.bf16.mxu1 %v11616_v54  ;;  %v11668_v30 = vld [vmem:[#allocation15 + $0x1c4] ss:$16 sps:$4 sm:$0xff]   ;;  %v11670_v31 = vld [vmem:[#allocation15 + $0x1cc] ss:$16 sps:$4 sm:$0xff]   ;;  %v11672_v32 = vld [vmem:[#allocation15 + $0x1c0] ss:$16 sps:$4 sm:$0xff]   ;;  %v3255_v54 = vpack.c.bf16 %v3227_v45, %v3227_v45 }
 0x618   : > { %v11673_v17 = vld [vmem:[#allocation15 + $0x1c8] ss:$16 sps:$4 sm:$0xff]   ;;  %v11674_v33 = vld [vmem:[#allocation15 + $0x1e4] ss:$16 sps:$4 sm:$0xff]   ;;  %v11676_v34 = vld [vmem:[#allocation15 + $0x1ec] ss:$16 sps:$4 sm:$0xff]  }
 0x619   : > { %v11678_v43 = vld [vmem:[#allocation15 + $0x1e0] ss:$16 sps:$4 sm:$0xff]   ;;  %v11679_v39 = vld [vmem:[#allocation15 + $0x1e8] ss:$16 sps:$4 sm:$0xff]   ;;  %v11682_v42 = vld [vmem:[#allocation15 + $0x204] ss:$16 sps:$4 sm:$0xff]  }
 0x61a   : > { %4829 = vmatpush1.bf16.msra.mxu0 %v11618_v55  ;;  %4993 = vmatpush1.bf16.msra.mxu1 %v11619_v57  ;;  %v11685_v44 = vld [vmem:[#allocation15 + $0x20c] ss:$16 sps:$4 sm:$0xff]   ;;  %v11680_v46 = vld [vmem:[#allocation15 + $0x200] ss:$16 sps:$4 sm:$0xff]   ;;  %v11683_v49 = vld [vmem:[#allocation15 + $0x208] ss:$16 sps:$4 sm:$0xff]  }
 0x61b   : > { %4830 = vmatprep.subr.bf16.mxu0 %v11620_v18  ;;  %4994 = vmatprep.subr.bf16.mxu1 %v11622_v58  ;;  %v11688_v51 = vld [vmem:[#allocation15 + $0x224] ss:$16 sps:$4 sm:$0xff]   ;;  %v11691_v52 = vld [vmem:[#allocation15 + $0x22c] ss:$16 sps:$4 sm:$0xff]   ;;  %v11686_v55 = vld [vmem:[#allocation15 + $0x220] ss:$16 sps:$4 sm:$0xff]  }
 0x61c   : > { %v11689_v57 = vld [vmem:[#allocation15 + $0x228] ss:$16 sps:$4 sm:$0xff]   ;;  %v11694_v18 = vld [vmem:[#allocation15 + $0x244] ss:$16 sps:$4 sm:$0xff]   ;;  %v11697_v58 = vld [vmem:[#allocation15 + $0x24c] ss:$16 sps:$4 sm:$0xff]  }
 0x61d   : > { %v11725_v21 = vld [vmem:[#allocation15 + $0x2e8] ss:$16 sps:$4 sm:$0xff]   ;;  %v11757_v26 = vld [vmem:[#allocation15 + $0x38c] ss:$16 sps:$4 sm:$0xff]  }
 0x61e   : > { %4831 = vmatpush1.bf16.msra.mxu0 %v11624_v61  ;;  %4995 = vmatpush1.bf16.msra.mxu1 %v11625_v63  ;;  %v11692_v61 = vld [vmem:[#allocation15 + $0x240] ss:$16 sps:$4 sm:$0xff]   ;;  %v11695_v63 = vld [vmem:[#allocation15 + $0x248] ss:$16 sps:$4 sm:$0xff]   ;;  %v11763_v45 = vld [vmem:[#allocation15 + $0x3ac] ss:$16 sps:$4 sm:$0xff]  }
 0x61f   : > { %4832 = vmatprep.subr.bf16.mxu0 %v11626_v0  ;;  %4996 = vmatprep.subr.bf16.mxu1 %v11628_v1  ;;  %v11700_v0 = vld [vmem:[#allocation15 + $0x264] ss:$16 sps:$4 sm:$0xff]   ;;  %v11703_v1 = vld [vmem:[#allocation15 + $0x26c] ss:$16 sps:$4 sm:$0xff]   ;;  %v11731_v24 = vld [vmem:[#allocation15 + $0x308] ss:$16 sps:$4 sm:$0xff]  }
 0x622   : > { %4833 = vmatpush1.bf16.msra.mxu0 %v11630_v3  ;;  %4997 = vmatpush1.bf16.msra.mxu1 %v11631_v6  ;;  %v11698_v3 = vld [vmem:[#allocation15 + $0x260] ss:$16 sps:$4 sm:$0xff]   ;;  %v11701_v6 = vld [vmem:[#allocation15 + $0x268] ss:$16 sps:$4 sm:$0xff]  }
 0x623   : > { %4834 = vmatprep.subr.bf16.mxu0 %v11632_v36  ;;  %4998 = vmatprep.subr.bf16.mxu1 %v11634_v7  ;;  %v11706_v36 = vld [vmem:[#allocation15 + $0x284] ss:$16 sps:$4 sm:$0xff]   ;;  %v11709_v7 = vld [vmem:[#allocation15 + $0x28c] ss:$16 sps:$4 sm:$0xff]  }
 0x626   : > { %4835 = vmatpush1.bf16.msra.mxu0 %v11636_v8  ;;  %4999 = vmatpush1.bf16.msra.mxu1 %v11637_v9  ;;  %v11704_v8 = vld [vmem:[#allocation15 + $0x280] ss:$16 sps:$4 sm:$0xff]   ;;  %v11707_v9 = vld [vmem:[#allocation15 + $0x288] ss:$16 sps:$4 sm:$0xff]  }
 0x627   : > { %4836 = vmatprep.subr.bf16.mxu0 %v11638_v27  ;;  %5000 = vmatprep.subr.bf16.mxu1 %v11640_v10  ;;  %v11712_v27 = vld [vmem:[#allocation15 + $0x2a4] ss:$16 sps:$4 sm:$0xff]   ;;  %v11715_v10 = vld [vmem:[#allocation15 + $0x2ac] ss:$16 sps:$4 sm:$0xff]  }
 0x62a   : > { %4837 = vmatpush1.bf16.msra.mxu0 %v11642_v28  ;;  %5001 = vmatpush1.bf16.msra.mxu1 %v11643_v11  ;;  %v11710_v28 = vld [vmem:[#allocation15 + $0x2a0] ss:$16 sps:$4 sm:$0xff]   ;;  %v11713_v11 = vld [vmem:[#allocation15 + $0x2a8] ss:$16 sps:$4 sm:$0xff]  }
 0x62b   : > { %4838 = vmatprep.subr.bf16.mxu0 %v11644_v16  ;;  %5002 = vmatprep.subr.bf16.mxu1 %v11646_v12  ;;  %v11718_v16 = vld [vmem:[#allocation15 + $0x2c4] ss:$16 sps:$4 sm:$0xff]   ;;  %v11721_v12 = vld [vmem:[#allocation15 + $0x2cc] ss:$16 sps:$4 sm:$0xff]  }
 0x62e   : > { %4839 = vmatpush1.bf16.msra.mxu0 %v11648_v38  ;;  %5003 = vmatpush1.bf16.msra.mxu1 %v11649_v40  ;;  %v11716_v38 = vld [vmem:[#allocation15 + $0x2c0] ss:$16 sps:$4 sm:$0xff]   ;;  %v11719_v40 = vld [vmem:[#allocation15 + $0x2c8] ss:$16 sps:$4 sm:$0xff]  }
 0x62f   : > { %4840 = vmatprep.subr.bf16.mxu0 %v11650_v2  ;;  %5004 = vmatprep.subr.bf16.mxu1 %v11652_v41  ;;  %v11724_v2 = vld [vmem:[#allocation15 + $0x2e4] ss:$16 sps:$4 sm:$0xff]   ;;  %v11727_v41 = vld [vmem:[#allocation15 + $0x2ec] ss:$16 sps:$4 sm:$0xff]  }
 0x632   : > { %4841 = vmatpush1.bf16.msra.mxu0 %v11654_v15  ;;  %5005 = vmatpush1.bf16.msra.mxu1 %v11655_v22  ;;  %v11722_v15 = vld [vmem:[#allocation15 + $0x2e0] ss:$16 sps:$4 sm:$0xff]   ;;  %v11730_v22 = vld [vmem:[#allocation15 + $0x304] ss:$16 sps:$4 sm:$0xff]  }
 0x633   : > { %4842 = vmatprep.subr.bf16.mxu0 %v11656_v23  ;;  %5006 = vmatprep.subr.bf16.mxu1 %v11658_v35  ;;  %v11733_v23 = vld [vmem:[#allocation15 + $0x30c] ss:$16 sps:$4 sm:$0xff]   ;;  %v11728_v35 = vld [vmem:[#allocation15 + $0x300] ss:$16 sps:$4 sm:$0xff]  }
 0x636   : > { %4843 = vmatpush1.bf16.msra.mxu0 %v11660_v47  ;;  %5007 = vmatpush1.bf16.msra.mxu1 %v11661_v29  ;;  %v11736_v47 = vld [vmem:[#allocation15 + $0x324] ss:$16 sps:$4 sm:$0xff]   ;;  %v11739_v29 = vld [vmem:[#allocation15 + $0x32c] ss:$16 sps:$4 sm:$0xff]  }
 0x637   : > { %4844 = vmatprep.subr.bf16.mxu0 %v11662_v13  ;;  %5008 = vmatprep.subr.bf16.mxu1 %v11664_v37  ;;  %v11734_v13 = vld [vmem:[#allocation15 + $0x320] ss:$16 sps:$4 sm:$0xff]   ;;  %v11737_v37 = vld [vmem:[#allocation15 + $0x328] ss:$16 sps:$4 sm:$0xff]  }
 0x63a   : > { %4845 = vmatpush1.bf16.msra.mxu0 %v11666_v19  ;;  %5009 = vmatpush1.bf16.msra.mxu1 %v11667_v20  ;;  %v11742_v19 = vld [vmem:[#allocation15 + $0x344] ss:$16 sps:$4 sm:$0xff]   ;;  %v11745_v20 = vld [vmem:[#allocation15 + $0x34c] ss:$16 sps:$4 sm:$0xff]  }
 0x63b   : > { %4846 = vmatprep.subr.bf16.mxu0 %v11668_v30  ;;  %5010 = vmatprep.subr.bf16.mxu1 %v11670_v31  ;;  %v11740_v30 = vld [vmem:[#allocation15 + $0x340] ss:$16 sps:$4 sm:$0xff]   ;;  %v11743_v31 = vld [vmem:[#allocation15 + $0x348] ss:$16 sps:$4 sm:$0xff]  }
 0x63e   : > { %4847 = vmatpush1.bf16.msra.mxu0 %v11672_v32  ;;  %5011 = vmatpush1.bf16.msra.mxu1 %v11673_v17  ;;  %v11748_v32 = vld [vmem:[#allocation15 + $0x364] ss:$16 sps:$4 sm:$0xff]   ;;  %v11751_v17 = vld [vmem:[#allocation15 + $0x36c] ss:$16 sps:$4 sm:$0xff]  }
 0x63f   : > { %4848 = vmatprep.subr.bf16.mxu0 %v11674_v33  ;;  %5012 = vmatprep.subr.bf16.mxu1 %v11676_v34  ;;  %v11746_v33 = vld [vmem:[#allocation15 + $0x360] ss:$16 sps:$4 sm:$0xff]   ;;  %v11749_v34 = vld [vmem:[#allocation15 + $0x368] ss:$16 sps:$4 sm:$0xff]  }
 0x642   : > { %4849 = vmatpush1.bf16.msra.mxu0 %v11678_v43  ;;  %5013 = vmatpush1.bf16.msra.mxu1 %v11679_v39  ;;  %v11754_v43 = vld [vmem:[#allocation15 + $0x384] ss:$16 sps:$4 sm:$0xff]   ;;  %v11752_v39 = vld [vmem:[#allocation15 + $0x380] ss:$16 sps:$4 sm:$0xff]  }
 0x643   : > { %4859 = vmatprep.subr.bf16.mxu0 %v11682_v42  ;;  %5023 = vmatprep.subr.bf16.mxu1 %v11685_v44  ;;  %v11755_v42 = vld [vmem:[#allocation15 + $0x388] ss:$16 sps:$4 sm:$0xff]   ;;  %v11760_v44 = vld [vmem:[#allocation15 + $0x3a4] ss:$16 sps:$4 sm:$0xff]  }
 0x645   : > { %4851 = vmatmul.mubr.bf16.vlgmr.msra.gmra.mrb[0].mxu0 %v3252_v48  ;;  %5015 = vmatmul.mubr.bf16.vlgmr.msra.gmra.mrb[0].mxu1 %v3252_v48  ;;  %v11761_v48 = vld [vmem:[#allocation15 + $0x3a8] ss:$16 sps:$4 sm:$0xff]  }
 0x646   : > { %4860 = vmatpush1.bf16.msra.mxu0 %v11680_v46  ;;  %5024 = vmatpush1.bf16.msra.mxu1 %v11683_v49  ;;  %v11758_v46 = vld [vmem:[#allocation15 + $0x3a0] ss:$16 sps:$4 sm:$0xff]   ;;  %v11766_v49 = vld [vmem:[#allocation15 + $0x3c4] ss:$16 sps:$4 sm:$0xff]  }
 0x647   : > { %4861 = vmatprep.subr.bf16.mxu0 %v11688_v51  ;;  %5025 = vmatprep.subr.bf16.mxu1 %v11691_v52  ;;  %v11769_v51 = vld [vmem:[#allocation15 + $0x3cc] ss:$16 sps:$4 sm:$0xff]   ;;  %v11764_v52 = vld [vmem:[#allocation15 + $0x3c0] ss:$16 sps:$4 sm:$0xff]  }
 0x648   : > { %4891 = vmatprep.mubr.bf16.mxu0 %v3255_v54  ;;  %5055 = vmatprep.mubr.bf16.mxu1 %v3255_v54  ;;  %v11767_v54 = vld [vmem:[#allocation15 + $0x3c8] ss:$16 sps:$4 sm:$0xff]  }
 0x64a   : > { %4862 = vmatpush1.bf16.msra.mxu0 %v11686_v55  ;;  %5026 = vmatpush1.bf16.msra.mxu1 %v11689_v57  ;;  %v11772_v55 = vld [vmem:[#allocation15 + $0x3e4] ss:$16 sps:$4 sm:$0xff]   ;;  %v11775_v57 = vld [vmem:[#allocation15 + $0x3ec] ss:$16 sps:$4 sm:$0xff]  }
 0x64b   : > { %4863 = vmatprep.subr.bf16.mxu0 %v11694_v18  ;;  %5027 = vmatprep.subr.bf16.mxu1 %v11697_v58  ;;  %v11770_v18 = vld [vmem:[#allocation15 + $0x3e0] ss:$16 sps:$4 sm:$0xff]   ;;  %v3223_v58 = vrot.slane %v13810_v14, %v13464_v25 }
 0x64e   : > { %4864 = vmatpush1.bf16.msra.mxu0 %v11692_v61  ;;  %5028 = vmatpush1.bf16.msra.mxu1 %v11695_v63  ;;  %v11773_v61 = vld [vmem:[#allocation15 + $0x3e8] ss:$16 sps:$4 sm:$0xff]   ;;  %v11778_v63 = vld [vmem:[#allocation15 + $0x404] ss:$16 sps:$4 sm:$0xff]  }
 0x64f   : > { %4865 = vmatprep.subr.bf16.mxu0 %v11700_v0  ;;  %5029 = vmatprep.subr.bf16.mxu1 %v11703_v1  ;;  %v11781_v0 = vld [vmem:[#allocation15 + $0x40c] ss:$16 sps:$4 sm:$0xff]   ;;  %v3235_v1 = vrot.slane %v13810_v14, %v13629_v4 }
 0x650   : > { %v11793_v14 = vld [vmem:[#allocation15 + $0x44c] ss:$16 sps:$4 sm:$0xff]  }
 0x652   : > { %4866 = vmatpush1.bf16.msra.mxu0 %v11698_v3  ;;  %5030 = vmatpush1.bf16.msra.mxu1 %v11701_v6  ;;  %v11776_v3 = vld [vmem:[#allocation15 + $0x400] ss:$16 sps:$4 sm:$0xff]   ;;  %v3254_v6 = vpack.c.bf16 %v3223_v58, %v3223_v58 }
 0x653   : > { %4867 = vmatprep.subr.bf16.mxu0 %v11706_v36  ;;  %5031 = vmatprep.subr.bf16.mxu1 %v11709_v7  ;;  %v11779_v36 = vld [vmem:[#allocation15 + $0x408] ss:$16 sps:$4 sm:$0xff]   ;;  %v11784_v7 = vld [vmem:[#allocation15 + $0x424] ss:$16 sps:$4 sm:$0xff]   ;;  %v11848_v58 = vld [vmem:[#allocation15 + $0x580] ss:$16 sps:$4 sm:$0xff]  }
 0x656   : > { %4868 = vmatpush1.bf16.msra.mxu0 %v11704_v8  ;;  %5032 = vmatpush1.bf16.msra.mxu1 %v11707_v9  ;;  %v11787_v8 = vld [vmem:[#allocation15 + $0x42c] ss:$16 sps:$4 sm:$0xff]   ;;  %v3257_v9 = vpack.c.bf16 %v3235_v1, %v3235_v1  ;;  %v11854_v1 = vld [vmem:[#allocation15 + $0x5a0] ss:$16 sps:$4 sm:$0xff]  }
 0x657   : > { %4869 = vmatprep.subr.bf16.mxu0 %v11712_v27  ;;  %5033 = vmatprep.subr.bf16.mxu1 %v11715_v10  ;;  %v11782_v27 = vld [vmem:[#allocation15 + $0x420] ss:$16 sps:$4 sm:$0xff]   ;;  %v11785_v10 = vld [vmem:[#allocation15 + $0x428] ss:$16 sps:$4 sm:$0xff]  }
 0x65a   : > { %4870 = vmatpush1.bf16.msra.mxu0 %v11710_v28  ;;  %5034 = vmatpush1.bf16.msra.mxu1 %v11713_v11  ;;  %v11790_v28 = vld [vmem:[#allocation15 + $0x444] ss:$16 sps:$4 sm:$0xff]   ;;  %v11788_v11 = vld [vmem:[#allocation15 + $0x440] ss:$16 sps:$4 sm:$0xff]  }
 0x65b   : > { %4871 = vmatprep.subr.bf16.mxu0 %v11718_v16  ;;  %5035 = vmatprep.subr.bf16.mxu1 %v11721_v12  ;;  %v11791_v16 = vld [vmem:[#allocation15 + $0x448] ss:$16 sps:$4 sm:$0xff]   ;;  %v11796_v12 = vld [vmem:[#allocation15 + $0x464] ss:$16 sps:$4 sm:$0xff]  }
 0x65e   : > { %4872 = vmatpush1.bf16.msra.mxu0 %v11716_v38  ;;  %5036 = vmatpush1.bf16.msra.mxu1 %v11719_v40  ;;  %v11799_v38 = vld [vmem:[#allocation15 + $0x46c] ss:$16 sps:$4 sm:$0xff]   ;;  %v11794_v40 = vld [vmem:[#allocation15 + $0x460] ss:$16 sps:$4 sm:$0xff]  }
 0x65f   : > { %4873 = vmatprep.subr.bf16.mxu0 %v11724_v2  ;;  %5037 = vmatprep.subr.bf16.mxu1 %v11727_v41  ;;  %v11797_v2 = vld [vmem:[#allocation15 + $0x468] ss:$16 sps:$4 sm:$0xff]   ;;  %v11802_v41 = vld [vmem:[#allocation15 + $0x484] ss:$16 sps:$4 sm:$0xff]  }
 0x662   : > { %4874 = vmatpush1.bf16.msra.mxu0 %v11722_v15  ;;  %5038 = vmatpush1.bf16.msra.mxu1 %v11725_v21  ;;  %v11805_v15 = vld [vmem:[#allocation15 + $0x48c] ss:$16 sps:$4 sm:$0xff]   ;;  %v11800_v21 = vld [vmem:[#allocation15 + $0x480] ss:$16 sps:$4 sm:$0xff]  }
 0x663   : > { %4875 = vmatprep.subr.bf16.mxu0 %v11730_v22  ;;  %5039 = vmatprep.subr.bf16.mxu1 %v11733_v23  ;;  %v11803_v22 = vld [vmem:[#allocation15 + $0x488] ss:$16 sps:$4 sm:$0xff]   ;;  %v11808_v23 = vld [vmem:[#allocation15 + $0x4a4] ss:$16 sps:$4 sm:$0xff]  }
 0x666   : > { %4876 = vmatpush1.bf16.msra.mxu0 %v11728_v35  ;;  %5040 = vmatpush1.bf16.msra.mxu1 %v11731_v24  ;;  %v11811_v35 = vld [vmem:[#allocation15 + $0x4ac] ss:$16 sps:$4 sm:$0xff]   ;;  %v11806_v24 = vld [vmem:[#allocation15 + $0x4a0] ss:$16 sps:$4 sm:$0xff]  }
 0x667   : > { %4877 = vmatprep.subr.bf16.mxu0 %v11736_v47  ;;  %5041 = vmatprep.subr.bf16.mxu1 %v11739_v29  ;;  %v11809_v47 = vld [vmem:[#allocation15 + $0x4a8] ss:$16 sps:$4 sm:$0xff]   ;;  %v11814_v29 = vld [vmem:[#allocation15 + $0x4c4] ss:$16 sps:$4 sm:$0xff]  }
 0x66a   : > { %4878 = vmatpush1.bf16.msra.mxu0 %v11734_v13  ;;  %5042 = vmatpush1.bf16.msra.mxu1 %v11737_v37  ;;  %v11817_v13 = vld [vmem:[#allocation15 + $0x4cc] ss:$16 sps:$4 sm:$0xff]   ;;  %v11812_v37 = vld [vmem:[#allocation15 + $0x4c0] ss:$16 sps:$4 sm:$0xff]  }
 0x66b   : > { %4879 = vmatprep.subr.bf16.mxu0 %v11742_v19  ;;  %5043 = vmatprep.subr.bf16.mxu1 %v11745_v20  ;;  %v11815_v19 = vld [vmem:[#allocation15 + $0x4c8] ss:$16 sps:$4 sm:$0xff]   ;;  %v11820_v20 = vld [vmem:[#allocation15 + $0x4e4] ss:$16 sps:$4 sm:$0xff]  }
 0x66e   : > { %4880 = vmatpush1.bf16.msra.mxu0 %v11740_v30  ;;  %5044 = vmatpush1.bf16.msra.mxu1 %v11743_v31  ;;  %v11823_v30 = vld [vmem:[#allocation15 + $0x4ec] ss:$16 sps:$4 sm:$0xff]   ;;  %v11818_v31 = vld [vmem:[#allocation15 + $0x4e0] ss:$16 sps:$4 sm:$0xff]  }
 0x66f   : > { %4881 = vmatprep.subr.bf16.mxu0 %v11748_v32  ;;  %5045 = vmatprep.subr.bf16.mxu1 %v11751_v17  ;;  %v11821_v32 = vld [vmem:[#allocation15 + $0x4e8] ss:$16 sps:$4 sm:$0xff]   ;;  %v11826_v17 = vld [vmem:[#allocation15 + $0x504] ss:$16 sps:$4 sm:$0xff]  }
 0x672   : > { %4882 = vmatpush1.bf16.msra.mxu0 %v11746_v33  ;;  %5046 = vmatpush1.bf16.msra.mxu1 %v11749_v34  ;;  %v11829_v33 = vld [vmem:[#allocation15 + $0x50c] ss:$16 sps:$4 sm:$0xff]   ;;  %v11824_v34 = vld [vmem:[#allocation15 + $0x500] ss:$16 sps:$4 sm:$0xff]  }
 0x673   : > { %4883 = vmatprep.subr.bf16.mxu0 %v11754_v43  ;;  %5047 = vmatprep.subr.bf16.mxu1 %v11757_v26  ;;  %v11827_v43 = vld [vmem:[#allocation15 + $0x508] ss:$16 sps:$4 sm:$0xff]   ;;  %v11832_v26 = vld [vmem:[#allocation15 + $0x524] ss:$16 sps:$4 sm:$0xff]  }
 0x676   : > { %4884 = vmatpush1.bf16.msra.mxu0 %v11752_v39  ;;  %5048 = vmatpush1.bf16.msra.mxu1 %v11755_v42  ;;  %v11835_v39 = vld [vmem:[#allocation15 + $0x52c] ss:$16 sps:$4 sm:$0xff]   ;;  %v11830_v42 = vld [vmem:[#allocation15 + $0x520] ss:$16 sps:$4 sm:$0xff]  }
 0x677   : > { %4885 = vmatprep.subr.bf16.mxu0 %v11760_v44  ;;  %5049 = vmatprep.subr.bf16.mxu1 %v11763_v45  ;;  %v11833_v44 = vld [vmem:[#allocation15 + $0x528] ss:$16 sps:$4 sm:$0xff]   ;;  %v11838_v45 = vld [vmem:[#allocation15 + $0x544] ss:$16 sps:$4 sm:$0xff]  }
 0x67a   : > { %4886 = vmatpush1.bf16.msra.mxu0 %v11758_v46  ;;  %5050 = vmatpush1.bf16.msra.mxu1 %v11761_v48  ;;  %v11841_v46 = vld [vmem:[#allocation15 + $0x54c] ss:$16 sps:$4 sm:$0xff]   ;;  %v11836_v48 = vld [vmem:[#allocation15 + $0x540] ss:$16 sps:$4 sm:$0xff]  }
 0x67b   : > { %4887 = vmatprep.subr.bf16.mxu0 %v11766_v49  ;;  %5051 = vmatprep.subr.bf16.mxu1 %v11769_v51  ;;  %v11839_v49 = vld [vmem:[#allocation15 + $0x548] ss:$16 sps:$4 sm:$0xff]   ;;  %v11844_v51 = vld [vmem:[#allocation15 + $0x564] ss:$16 sps:$4 sm:$0xff]  }
 0x67e   : > { %4888 = vmatpush1.bf16.msra.mxu0 %v11764_v52  ;;  %5052 = vmatpush1.bf16.msra.mxu1 %v11767_v54  ;;  %v11847_v52 = vld [vmem:[#allocation15 + $0x56c] ss:$16 sps:$4 sm:$0xff]   ;;  %v11842_v54 = vld [vmem:[#allocation15 + $0x560] ss:$16 sps:$4 sm:$0xff]  }
 0x67f   : > { %4889 = vmatprep.subr.bf16.mxu0 %v11772_v55  ;;  %5053 = vmatprep.subr.bf16.mxu1 %v11775_v57  ;;  %v11845_v55 = vld [vmem:[#allocation15 + $0x568] ss:$16 sps:$4 sm:$0xff]   ;;  %v11850_v57 = vld [vmem:[#allocation15 + $0x584] ss:$16 sps:$4 sm:$0xff]  }
 0x682   : > { %4890 = vmatpush1.bf16.msra.mxu0 %v11770_v18  ;;  %5054 = vmatpush1.bf16.msra.mxu1 %v11773_v61  ;;  %v11853_v18 = vld [vmem:[#allocation15 + $0x58c] ss:$16 sps:$4 sm:$0xff]   ;;  %v11851_v61 = vld [vmem:[#allocation15 + $0x588] ss:$16 sps:$4 sm:$0xff]  }
 0x683   : > { %4900 = vmatprep.subr.bf16.mxu0 %v11778_v63  ;;  %5064 = vmatprep.subr.bf16.mxu1 %v11781_v0  ;;  %v11856_v63 = vld [vmem:[#allocation15 + $0x5a4] ss:$16 sps:$4 sm:$0xff]   ;;  %v11859_v0 = vld [vmem:[#allocation15 + $0x5ac] ss:$16 sps:$4 sm:$0xff]  }
 0x685   : > { %4892 = vmatmul.mubr.bf16.vlgmr.msra.gmra.mrb[0].mxu0 %v3254_v6  ;;  %5056 = vmatmul.mubr.bf16.vlgmr.msra.gmra.mrb[0].mxu1 %v3254_v6  ;;  %v11862_v6 = vld [vmem:[#allocation15 + $0x5c4] ss:$16 sps:$4 sm:$0xff]  }
 0x686   : > { %4901 = vmatpush1.bf16.msra.mxu0 %v11776_v3  ;;  %5065 = vmatpush1.bf16.msra.mxu1 %v11779_v36  ;;  %v11857_v3 = vld [vmem:[#allocation15 + $0x5a8] ss:$16 sps:$4 sm:$0xff]   ;;  %v11865_v36 = vld [vmem:[#allocation15 + $0x5cc] ss:$16 sps:$4 sm:$0xff]  }
 0x687   : > { %4902 = vmatprep.subr.bf16.mxu0 %v11784_v7  ;;  %5066 = vmatprep.subr.bf16.mxu1 %v11787_v8  ;;  %v11860_v7 = vld [vmem:[#allocation15 + $0x5c0] ss:$16 sps:$4 sm:$0xff]   ;;  %v11863_v8 = vld [vmem:[#allocation15 + $0x5c8] ss:$16 sps:$4 sm:$0xff]  }
 0x688   : > { %4932 = vmatprep.mubr.bf16.mxu0 %v3257_v9  ;;  %5096 = vmatprep.mubr.bf16.mxu1 %v3257_v9  ;;  %v11868_v9 = vld [vmem:[#allocation15 + $0x5e4] ss:$16 sps:$4 sm:$0xff]  }
 0x68a   : > { %4903 = vmatpush1.bf16.msra.mxu0 %v11782_v27  ;;  %5067 = vmatpush1.bf16.msra.mxu1 %v11785_v10  ;;  %v11871_v27 = vld [vmem:[#allocation15 + $0x5ec] ss:$16 sps:$4 sm:$0xff]   ;;  %v11866_v10 = vld [vmem:[#allocation15 + $0x5e0] ss:$16 sps:$4 sm:$0xff]  }
 0x68b   : > { %4904 = vmatprep.subr.bf16.mxu0 %v11790_v28  ;;  %5068 = vmatprep.subr.bf16.mxu1 %v11793_v14  ;;  %v13822_v28 = vld [vmem:[#allocation2] sm:$0xff] }
 0x68c   : > { %v3231_v14 = vrot.slane %v13822_v28, %v13621_v50 }
 0x68e   : > { %4905 = vmatpush1.bf16.msra.mxu0 %v11788_v11  ;;  %5069 = vmatpush1.bf16.msra.mxu1 %v11791_v16  ;;  %v11869_v11 = vld [vmem:[#allocation15 + $0x5e8] ss:$16 sps:$4 sm:$0xff]   ;;  %v11874_v16 = vld [vmem:[#allocation15 + $0x604] ss:$16 sps:$4 sm:$0xff]  }
 0x68f   : > { %4906 = vmatprep.subr.bf16.mxu0 %v11796_v12  ;;  %5070 = vmatprep.subr.bf16.mxu1 %v11799_v38  ;;  %v11877_v12 = vld [vmem:[#allocation15 + $0x60c] ss:$16 sps:$4 sm:$0xff]   ;;  %v11872_v38 = vld [vmem:[#allocation15 + $0x600] ss:$16 sps:$4 sm:$0xff]  }
 0x692   : > { %4907 = vmatpush1.bf16.msra.mxu0 %v11794_v40  ;;  %5071 = vmatpush1.bf16.msra.mxu1 %v11797_v2  ;;  %v11875_v40 = vld [vmem:[#allocation15 + $0x608] ss:$16 sps:$4 sm:$0xff]   ;;  %v3243_v2 = vrot.slane %v13822_v28, %v13632_v5 }
 0x693   : > { %4908 = vmatprep.subr.bf16.mxu0 %v11802_v41  ;;  %5072 = vmatprep.subr.bf16.mxu1 %v11805_v15  ;;  %v3256_v41 = vpack.c.bf16 %v3231_v14, %v3231_v14  ;;  %v11880_v15 = vld [vmem:[#allocation15 + $0x624] ss:$16 sps:$4 sm:$0xff]   ;;  %v11949_v14 = vld [vmem:[#allocation15 + $0x78c] ss:$16 sps:$4 sm:$0xff]  }
 0x696   : > { %4909 = vmatpush1.bf16.msra.mxu0 %v11800_v21  ;;  %5073 = vmatpush1.bf16.msra.mxu1 %v11803_v22  ;;  %v11883_v21 = vld [vmem:[#allocation15 + $0x62c] ss:$16 sps:$4 sm:$0xff]   ;;  %v11878_v22 = vld [vmem:[#allocation15 + $0x620] ss:$16 sps:$4 sm:$0xff]  }
 0x697   : > { %4910 = vmatprep.subr.bf16.mxu0 %v11808_v23  ;;  %5074 = vmatprep.subr.bf16.mxu1 %v11811_v35  ;;  %v11881_v23 = vld [vmem:[#allocation15 + $0x628] ss:$16 sps:$4 sm:$0xff]   ;;  %v3259_v35 = vpack.c.bf16 %v3243_v2, %v3243_v2 }
 0x698   : > { %v11953_v2 = vld [vmem:[#allocation15 + $0x7a8] ss:$16 sps:$4 sm:$0xff]  }
 0x69a   : > { %4911 = vmatpush1.bf16.msra.mxu0 %v11806_v24  ;;  %5075 = vmatpush1.bf16.msra.mxu1 %v11809_v47  ;;  %v11886_v24 = vld [vmem:[#allocation15 + $0x644] ss:$16 sps:$4 sm:$0xff]   ;;  %v11889_v47 = vld [vmem:[#allocation15 + $0x64c] ss:$16 sps:$4 sm:$0xff]  }
 0x69b   : > { %4912 = vmatprep.subr.bf16.mxu0 %v11814_v29  ;;  %5076 = vmatprep.subr.bf16.mxu1 %v11817_v13  ;;  %v11884_v29 = vld [vmem:[#allocation15 + $0x640] ss:$16 sps:$4 sm:$0xff]   ;;  %v11887_v13 = vld [vmem:[#allocation15 + $0x648] ss:$16 sps:$4 sm:$0xff]  }
 0x69e   : > { %4913 = vmatpush1.bf16.msra.mxu0 %v11812_v37  ;;  %5077 = vmatpush1.bf16.msra.mxu1 %v11815_v19  ;;  %v11892_v37 = vld [vmem:[#allocation15 + $0x664] ss:$16 sps:$4 sm:$0xff]   ;;  %v11895_v19 = vld [vmem:[#allocation15 + $0x66c] ss:$16 sps:$4 sm:$0xff]  }
 0x69f   : > { %4914 = vmatprep.subr.bf16.mxu0 %v11820_v20  ;;  %5078 = vmatprep.subr.bf16.mxu1 %v11823_v30  ;;  %v11890_v20 = vld [vmem:[#allocation15 + $0x660] ss:$16 sps:$4 sm:$0xff]   ;;  %v11893_v30 = vld [vmem:[#allocation15 + $0x668] ss:$16 sps:$4 sm:$0xff]  }
 0x6a2   : > { %4915 = vmatpush1.bf16.msra.mxu0 %v11818_v31  ;;  %5079 = vmatpush1.bf16.msra.mxu1 %v11821_v32  ;;  %v11898_v31 = vld [vmem:[#allocation15 + $0x684] ss:$16 sps:$4 sm:$0xff]   ;;  %v11901_v32 = vld [vmem:[#allocation15 + $0x68c] ss:$16 sps:$4 sm:$0xff]  }
 0x6a3   : > { %4916 = vmatprep.subr.bf16.mxu0 %v11826_v17  ;;  %5080 = vmatprep.subr.bf16.mxu1 %v11829_v33  ;;  %v11896_v17 = vld [vmem:[#allocation15 + $0x680] ss:$16 sps:$4 sm:$0xff]   ;;  %v11899_v33 = vld [vmem:[#allocation15 + $0x688] ss:$16 sps:$4 sm:$0xff]  }
 0x6a6   : > { %4917 = vmatpush1.bf16.msra.mxu0 %v11824_v34  ;;  %5081 = vmatpush1.bf16.msra.mxu1 %v11827_v43  ;;  %v11904_v34 = vld [vmem:[#allocation15 + $0x6a4] ss:$16 sps:$4 sm:$0xff]   ;;  %v11907_v43 = vld [vmem:[#allocation15 + $0x6ac] ss:$16 sps:$4 sm:$0xff]  }
 0x6a7   : > { %4918 = vmatprep.subr.bf16.mxu0 %v11832_v26  ;;  %5082 = vmatprep.subr.bf16.mxu1 %v11835_v39  ;;  %v11902_v26 = vld [vmem:[#allocation15 + $0x6a0] ss:$16 sps:$4 sm:$0xff]   ;;  %v11905_v39 = vld [vmem:[#allocation15 + $0x6a8] ss:$16 sps:$4 sm:$0xff]  }
 0x6aa   : > { %4919 = vmatpush1.bf16.msra.mxu0 %v11830_v42  ;;  %5083 = vmatpush1.bf16.msra.mxu1 %v11833_v44  ;;  %v11910_v42 = vld [vmem:[#allocation15 + $0x6c4] ss:$16 sps:$4 sm:$0xff]   ;;  %v11913_v44 = vld [vmem:[#allocation15 + $0x6cc] ss:$16 sps:$4 sm:$0xff]  }
 0x6ab   : > { %4920 = vmatprep.subr.bf16.mxu0 %v11838_v45  ;;  %5084 = vmatprep.subr.bf16.mxu1 %v11841_v46  ;;  %v11908_v45 = vld [vmem:[#allocation15 + $0x6c0] ss:$16 sps:$4 sm:$0xff]   ;;  %v11911_v46 = vld [vmem:[#allocation15 + $0x6c8] ss:$16 sps:$4 sm:$0xff]  }
 0x6ae   : > { %4921 = vmatpush1.bf16.msra.mxu0 %v11836_v48  ;;  %5085 = vmatpush1.bf16.msra.mxu1 %v11839_v49  ;;  %v11916_v48 = vld [vmem:[#allocation15 + $0x6e4] ss:$16 sps:$4 sm:$0xff]   ;;  %v11919_v49 = vld [vmem:[#allocation15 + $0x6ec] ss:$16 sps:$4 sm:$0xff]  }
 0x6af   : > { %4922 = vmatprep.subr.bf16.mxu0 %v11844_v51  ;;  %5086 = vmatprep.subr.bf16.mxu1 %v11847_v52  ;;  %v11914_v51 = vld [vmem:[#allocation15 + $0x6e0] ss:$16 sps:$4 sm:$0xff]   ;;  %v11917_v52 = vld [vmem:[#allocation15 + $0x6e8] ss:$16 sps:$4 sm:$0xff]  }
 0x6b2   : > { %4923 = vmatpush1.bf16.msra.mxu0 %v11842_v54  ;;  %5087 = vmatpush1.bf16.msra.mxu1 %v11845_v55  ;;  %v11922_v54 = vld [vmem:[#allocation15 + $0x704] ss:$16 sps:$4 sm:$0xff]   ;;  %v11925_v55 = vld [vmem:[#allocation15 + $0x70c] ss:$16 sps:$4 sm:$0xff]  }
 0x6b3   : > { %4924 = vmatprep.subr.bf16.mxu0 %v11850_v57  ;;  %5088 = vmatprep.subr.bf16.mxu1 %v11853_v18  ;;  %v11920_v57 = vld [vmem:[#allocation15 + $0x700] ss:$16 sps:$4 sm:$0xff]   ;;  %v11923_v18 = vld [vmem:[#allocation15 + $0x708] ss:$16 sps:$4 sm:$0xff]  }
 0x6b6   : > { %4925 = vmatpush1.bf16.msra.mxu0 %v11848_v58  ;;  %5089 = vmatpush1.bf16.msra.mxu1 %v11851_v61  ;;  %v11928_v58 = vld [vmem:[#allocation15 + $0x724] ss:$16 sps:$4 sm:$0xff]   ;;  %v11931_v61 = vld [vmem:[#allocation15 + $0x72c] ss:$16 sps:$4 sm:$0xff]  }
 0x6b7   : > { %4926 = vmatprep.subr.bf16.mxu0 %v11856_v63  ;;  %5090 = vmatprep.subr.bf16.mxu1 %v11859_v0  ;;  %v11926_v63 = vld [vmem:[#allocation15 + $0x720] ss:$16 sps:$4 sm:$0xff]   ;;  %v11929_v0 = vld [vmem:[#allocation15 + $0x728] ss:$16 sps:$4 sm:$0xff]  }
 0x6ba   : > { %4927 = vmatpush1.bf16.msra.mxu0 %v11854_v1  ;;  %5091 = vmatpush1.bf16.msra.mxu1 %v11857_v3  ;;  %v11934_v1 = vld [vmem:[#allocation15 + $0x744] ss:$16 sps:$4 sm:$0xff]   ;;  %v11937_v3 = vld [vmem:[#allocation15 + $0x74c] ss:$16 sps:$4 sm:$0xff]  }
 0x6bb   : > { %4928 = vmatprep.subr.bf16.mxu0 %v11862_v6  ;;  %5092 = vmatprep.subr.bf16.mxu1 %v11865_v36  ;;  %v11932_v6 = vld [vmem:[#allocation15 + $0x740] ss:$16 sps:$4 sm:$0xff]   ;;  %v11935_v36 = vld [vmem:[#allocation15 + $0x748] ss:$16 sps:$4 sm:$0xff]  }
 0x6be   : > { %4929 = vmatpush1.bf16.msra.mxu0 %v11860_v7  ;;  %5093 = vmatpush1.bf16.msra.mxu1 %v11863_v8  ;;  %v11940_v7 = vld [vmem:[#allocation15 + $0x764] ss:$16 sps:$4 sm:$0xff]   ;;  %v11943_v8 = vld [vmem:[#allocation15 + $0x76c] ss:$16 sps:$4 sm:$0xff]  }
 0x6bf   : > { %4930 = vmatprep.subr.bf16.mxu0 %v11868_v9  ;;  %5094 = vmatprep.subr.bf16.mxu1 %v11871_v27  ;;  %v11938_v9 = vld [vmem:[#allocation15 + $0x760] ss:$16 sps:$4 sm:$0xff]   ;;  %v11941_v27 = vld [vmem:[#allocation15 + $0x768] ss:$16 sps:$4 sm:$0xff]  }
 0x6c2   : > { %4931 = vmatpush1.bf16.msra.mxu0 %v11866_v10  ;;  %5095 = vmatpush1.bf16.msra.mxu1 %v11869_v11  ;;  %v11946_v10 = vld [vmem:[#allocation15 + $0x784] ss:$16 sps:$4 sm:$0xff]   ;;  %v11944_v11 = vld [vmem:[#allocation15 + $0x780] ss:$16 sps:$4 sm:$0xff]  }
 0x6c3   : > { %4941 = vmatprep.subr.bf16.mxu0 %v11874_v16  ;;  %5105 = vmatprep.subr.bf16.mxu1 %v11877_v12  ;;  %v11947_v16 = vld [vmem:[#allocation15 + $0x788] ss:$16 sps:$4 sm:$0xff]   ;;  %v11952_v12 = vld [vmem:[#allocation15 + $0x7a4] ss:$16 sps:$4 sm:$0xff]  }
 0x6c5   : > { %4933 = vmatmul.mubr.bf16.vlgmr.msra.gmra.mrb[0].mxu0 %v3256_v41  ;;  %5097 = vmatmul.mubr.bf16.vlgmr.msra.gmra.mrb[0].mxu1 %v3256_v41  ;;  %v11958_v41 = vld [vmem:[#allocation15 + $0x7c4] ss:$16 sps:$4 sm:$0xff]  }
 0x6c6   : > { %4942 = vmatpush1.bf16.msra.mxu0 %v11872_v38  ;;  %5106 = vmatpush1.bf16.msra.mxu1 %v11875_v40  ;;  %v11955_v38 = vld [vmem:[#allocation15 + $0x7ac] ss:$16 sps:$4 sm:$0xff]   ;;  %v11950_v40 = vld [vmem:[#allocation15 + $0x7a0] ss:$16 sps:$4 sm:$0xff]  }
 0x6c7   : > { %4943 = vmatprep.subr.bf16.mxu0 %v11880_v15  ;;  %5107 = vmatprep.subr.bf16.mxu1 %v11883_v21  ;;  %v11961_v15 = vld [vmem:[#allocation15 + $0x7cc] ss:$16 sps:$4 sm:$0xff]   ;;  %v11956_v21 = vld [vmem:[#allocation15 + $0x7c0] ss:$16 sps:$4 sm:$0xff]  }
 0x6c8   : > { %4973 = vmatprep.mubr.bf16.mxu0 %v3259_v35  ;;  %5137 = vmatprep.mubr.bf16.mxu1 %v3259_v35  ;;  %v11967_v35 = vld [vmem:[#allocation15 + $0x7ec] ss:$16 sps:$4 sm:$0xff]  }
 0x6ca   : > { %4944 = vmatpush1.bf16.msra.mxu0 %v11878_v22  ;;  %5108 = vmatpush1.bf16.msra.mxu1 %v11881_v23  ;;  %v11959_v22 = vld [vmem:[#allocation15 + $0x7c8] ss:$16 sps:$4 sm:$0xff]   ;;  %v11964_v23 = vld [vmem:[#allocation15 + $0x7e4] ss:$16 sps:$4 sm:$0xff]  }
 0x6cb   : > { %4945 = vmatprep.subr.bf16.mxu0 %v11886_v24  ;;  %5109 = vmatprep.subr.bf16.mxu1 %v11889_v47  ;;  %v3239_v24 = vrot.slane %v13822_v28, %v13624_v62  ;;  %v11962_v47 = vld [vmem:[#allocation15 + $0x7e0] ss:$16 sps:$4 sm:$0xff]   ;;  %v11974_v28 = vld [vmem:[#allocation18 + $0x20] ss:$8 sps:$4 sm:$0xff]  }
 0x6ce   : > { %4946 = vmatpush1.bf16.msra.mxu0 %v11884_v29  ;;  %5110 = vmatpush1.bf16.msra.mxu1 %v11887_v13  ;;  %v11965_v29 = vld [vmem:[#allocation15 + $0x7e8] ss:$16 sps:$4 sm:$0xff]  }
 0x6cf   : > { %4947 = vmatprep.subr.bf16.mxu0 %v11892_v37  ;;  %5111 = vmatprep.subr.bf16.mxu1 %v11895_v19  ;;  %v11970_v13 = vld [vmem:[#allocation18 + $0x4] ss:$8 sps:$4 sm:$0xff]   ;;  %v3258_v37 = vpack.c.bf16 %v3239_v24, %v3239_v24  ;;  %v11968_v19 = vld [vmem:[#allocation18] ss:$8 sps:$4 sm:$0xff]  }
 0x6d2   : > { %4948 = vmatpush1.bf16.msra.mxu0 %v11890_v20  ;;  %5112 = vmatpush1.bf16.msra.mxu1 %v11893_v30  ;;  %v11973_v20 = vld [vmem:[#allocation18 + $0x14] ss:$8 sps:$4 sm:$0xff]   ;;  %v11971_v30 = vld [vmem:[#allocation18 + $0x10] ss:$8 sps:$4 sm:$0xff]  }
 0x6d3   : > { %4949 = vmatprep.subr.bf16.mxu0 %v11898_v31  ;;  %5113 = vmatprep.subr.bf16.mxu1 %v11901_v32  ;;  %v11976_v31 = vld [vmem:[#allocation18 + $0x24] ss:$8 sps:$4 sm:$0xff]   ;;  %v11979_v32 = vld [vmem:[#allocation18 + $0x34] ss:$8 sps:$4 sm:$0xff]  }
 0x6d6   : > { %4950 = vmatpush1.bf16.msra.mxu0 %v11896_v17  ;;  %5114 = vmatpush1.bf16.msra.mxu1 %v11899_v33  ;;  %v11977_v17 = vld [vmem:[#allocation18 + $0x30] ss:$8 sps:$4 sm:$0xff]   ;;  %v11982_v33 = vld [vmem:[#allocation18 + $0x44] ss:$8 sps:$4 sm:$0xff]  }
 0x6d7   : > { %4951 = vmatprep.subr.bf16.mxu0 %v11904_v34  ;;  %5115 = vmatprep.subr.bf16.mxu1 %v11907_v43  ;;  %v11980_v34 = vld [vmem:[#allocation18 + $0x40] ss:$8 sps:$4 sm:$0xff]   ;;  %v11985_v43 = vld [vmem:[#allocation18 + $0x54] ss:$8 sps:$4 sm:$0xff]  }
 0x6da   : > { %4952 = vmatpush1.bf16.msra.mxu0 %v11902_v26  ;;  %5116 = vmatpush1.bf16.msra.mxu1 %v11905_v39  ;;  %v11983_v26 = vld [vmem:[#allocation18 + $0x50] ss:$8 sps:$4 sm:$0xff]   ;;  %v11988_v39 = vld [vmem:[#allocation18 + $0x64] ss:$8 sps:$4 sm:$0xff]  }
 0x6db   : > { %4953 = vmatprep.subr.bf16.mxu0 %v11910_v42  ;;  %5117 = vmatprep.subr.bf16.mxu1 %v11913_v44  ;;  %v11986_v42 = vld [vmem:[#allocation18 + $0x60] ss:$8 sps:$4 sm:$0xff]   ;;  %v11991_v44 = vld [vmem:[#allocation18 + $0x74] ss:$8 sps:$4 sm:$0xff]  }
 0x6de   : > { %4954 = vmatpush1.bf16.msra.mxu0 %v11908_v45  ;;  %5118 = vmatpush1.bf16.msra.mxu1 %v11911_v46  ;;  %v11989_v45 = vld [vmem:[#allocation18 + $0x70] ss:$8 sps:$4 sm:$0xff]   ;;  %v11994_v46 = vld [vmem:[#allocation18 + $0x84] ss:$8 sps:$4 sm:$0xff]  }
 0x6df   : > { %4955 = vmatprep.subr.bf16.mxu0 %v11916_v48  ;;  %5119 = vmatprep.subr.bf16.mxu1 %v11919_v49  ;;  %v11992_v48 = vld [vmem:[#allocation18 + $0x80] ss:$8 sps:$4 sm:$0xff]   ;;  %v11997_v49 = vld [vmem:[#allocation18 + $0x94] ss:$8 sps:$4 sm:$0xff]  }
 0x6e2   : > { %4956 = vmatpush1.bf16.msra.mxu0 %v11914_v51  ;;  %5120 = vmatpush1.bf16.msra.mxu1 %v11917_v52  ;;  %v11995_v51 = vld [vmem:[#allocation18 + $0x90] ss:$8 sps:$4 sm:$0xff]   ;;  %v12000_v52 = vld [vmem:[#allocation18 + $0xa4] ss:$8 sps:$4 sm:$0xff]  }
 0x6e3   : > { %4957 = vmatprep.subr.bf16.mxu0 %v11922_v54  ;;  %5121 = vmatprep.subr.bf16.mxu1 %v11925_v55  ;;  %v11998_v54 = vld [vmem:[#allocation18 + $0xa0] ss:$8 sps:$4 sm:$0xff]   ;;  %v12003_v55 = vld [vmem:[#allocation18 + $0xb4] ss:$8 sps:$4 sm:$0xff]  }
 0x6e6   : > { %4958 = vmatpush1.bf16.msra.mxu0 %v11920_v57  ;;  %5122 = vmatpush1.bf16.msra.mxu1 %v11923_v18  ;;  %v12001_v57 = vld [vmem:[#allocation18 + $0xb0] ss:$8 sps:$4 sm:$0xff]   ;;  %v12006_v18 = vld [vmem:[#allocation18 + $0xc4] ss:$8 sps:$4 sm:$0xff]  }
 0x6e7   : > { %4959 = vmatprep.subr.bf16.mxu0 %v11928_v58  ;;  %5123 = vmatprep.subr.bf16.mxu1 %v11931_v61  ;;  %v12004_v58 = vld [vmem:[#allocation18 + $0xc0] ss:$8 sps:$4 sm:$0xff]   ;;  %v12009_v61 = vld [vmem:[#allocation18 + $0xd4] ss:$8 sps:$4 sm:$0xff]  }
 0x6ea   : > { %4960 = vmatpush1.bf16.msra.mxu0 %v11926_v63  ;;  %5124 = vmatpush1.bf16.msra.mxu1 %v11929_v0  ;;  %v12007_v63 = vld [vmem:[#allocation18 + $0xd0] ss:$8 sps:$4 sm:$0xff]   ;;  %v12012_v0 = vld [vmem:[#allocation18 + $0xe4] ss:$8 sps:$4 sm:$0xff]  }
 0x6eb   : > { %4961 = vmatprep.subr.bf16.mxu0 %v11934_v1  ;;  %5125 = vmatprep.subr.bf16.mxu1 %v11937_v3  ;;  %v12010_v1 = vld [vmem:[#allocation18 + $0xe0] ss:$8 sps:$4 sm:$0xff]   ;;  %v12015_v3 = vld [vmem:[#allocation18 + $0xf4] ss:$8 sps:$4 sm:$0xff]  }
 0x6ee   : > { %4962 = vmatpush1.bf16.msra.mxu0 %v11932_v6  ;;  %5126 = vmatpush1.bf16.msra.mxu1 %v11935_v36  ;;  %v12013_v6 = vld [vmem:[#allocation18 + $0xf0] ss:$8 sps:$4 sm:$0xff]   ;;  %v12018_v36 = vld [vmem:[#allocation18 + $0x104] ss:$8 sps:$4 sm:$0xff]  }
 0x6ef   : > { %4963 = vmatprep.subr.bf16.mxu0 %v11940_v7  ;;  %5127 = vmatprep.subr.bf16.mxu1 %v11943_v8  ;;  %v5636_v7 = vld [vmem:[#allocation21] sm:$0xff] }
 0x6f0   : > { %v5652_v8 = vld [vmem:[#allocation21 + $0x80] sm:$0xff] }
 0x6f2   : > { %4964 = vmatpush1.bf16.msra.mxu0 %v11938_v9  ;;  %5128 = vmatpush1.bf16.msra.mxu1 %v11941_v27  ;;  %v10657_v9 = vcombine.low %v5636_v7, %v5652_v8  ;;  %v10658_v27 = vcombine.high %v5636_v7, %v5652_v8 }
 0x6f3   : > { %4965 = vmatprep.subr.bf16.mxu0 %v11946_v10  ;;  %5129 = vmatprep.subr.bf16.mxu1 %v11949_v14  ;;  %v5668_v10 = vld [vmem:[#allocation21 + $0x100] sm:$0xff] }
 0x6f4   : > { %v5684_v14 = vld [vmem:[#allocation21 + $0x180] sm:$0xff] }
 0x6f6   : > { %4966 = vmatpush1.bf16.msra.mxu0 %v11944_v11  ;;  %5130 = vmatpush1.bf16.msra.mxu1 %v11947_v16  ;;  %v10690_v11 = vcombine.high %v5668_v10, %v5684_v14  ;;  %v10689_v16 = vcombine.low %v5668_v10, %v5684_v14 }
 0x6f7   : > { %4967 = vmatprep.subr.bf16.mxu0 %v11952_v12  ;;  %5131 = vmatprep.subr.bf16.mxu1 %v11955_v38  ;;  %v5700_v12 = vld [vmem:[#allocation21 + $0x200] sm:$0xff] }
 0x6f8   : > { %v5716_v38 = vld [vmem:[#allocation21 + $0x280] sm:$0xff] }
 0x6fa   : > { %4968 = vmatpush1.bf16.msra.mxu0 %v11950_v40  ;;  %5132 = vmatpush1.bf16.msra.mxu1 %v11953_v2  ;;  %v10722_v40 = vcombine.high %v5700_v12, %v5716_v38  ;;  %v10721_v2 = vcombine.low %v5700_v12, %v5716_v38 }
 0x6fb   : > { %4969 = vmatprep.subr.bf16.mxu0 %v11958_v41  ;;  %5133 = vmatprep.subr.bf16.mxu1 %v11961_v15  ;;  %v5732_v41 = vld [vmem:[#allocation21 + $0x300] sm:$0xff] }
 0x6fc   : > { %v5748_v15 = vld [vmem:[#allocation21 + $0x380] sm:$0xff] }
 0x6fe   : > { %4970 = vmatpush1.bf16.msra.mxu0 %v11956_v21  ;;  %5134 = vmatpush1.bf16.msra.mxu1 %v11959_v22  ;;  %v10754_v21 = vcombine.high %v5732_v41, %v5748_v15  ;;  %v10753_v22 = vcombine.low %v5732_v41, %v5748_v15 }
 0x6ff   : > { %4971 = vmatprep.subr.bf16.mxu0 %v11964_v23  ;;  %5135 = vmatprep.subr.bf16.mxu1 %v11967_v35  ;;  %v5764_v23 = vld [vmem:[#allocation21 + $0x400] sm:$0xff] }
 0x700   : > { %v5780_v35 = vld [vmem:[#allocation21 + $0x480] sm:$0xff] }
 0x701   : > { %v10786_v24 = vcombine.high %v5764_v23, %v5780_v35 }
 0x702   : > { %4972 = vmatpush1.bf16.msra.mxu0 %v11962_v47  ;;  %5136 = vmatpush1.bf16.msra.mxu1 %v11965_v29  ;;  %v10785_v47 = vcombine.low %v5764_v23, %v5780_v35  ;;  %v5796_v29 = vld [vmem:[#allocation21 + $0x500] sm:$0xff] }
 0x703   : > { %5550 = vmatprep.subr.bf16.mxu0 %v11970_v13  ;;  %8876 = vmatprep.subr.bf16.mxu1 %v10658_v27  ;;  %v5812_v13 = vld [vmem:[#allocation21 + $0x580] sm:$0xff] }
 0x705   : > { %4974 = vmatmul.mubr.bf16.vlgmr.msra.gmra.mrb[0].mxu0 %v3258_v37  ;;  %5138 = vmatmul.mubr.bf16.vlgmr.msra.gmra.mrb[0].mxu1 %v3258_v37  ;;  %v10818_v37 = vcombine.high %v5796_v29, %v5812_v13 }
 0x706   : > { %5551 = vmatpush1.bf16.msra.mxu0 %v11968_v19  ;;  %8877 = vmatpush1.bf16.msra.mxu1 %v10657_v9  ;;  %v10817_v19 = vcombine.low %v5796_v29, %v5812_v13  ;;  %v12016_v29 = vld [vmem:[#allocation18 + $0x100] ss:$8 sps:$4 sm:$0xff]  }
 0x707   : > { %5552 = vmatprep.subr.bf16.mxu0 %v11973_v20  ;;  %8878 = vmatprep.subr.bf16.mxu1 %v10690_v11  ;;  %v5828_v20 = vld [vmem:[#allocation21 + $0x600] sm:$0xff] }
 0x70a   : > { %5553 = vmatpush1.bf16.msra.mxu0 %v11971_v30  ;;  %8879 = vmatpush1.bf16.msra.mxu1 %v10689_v16  ;;  %v5844_v30 = vld [vmem:[#allocation21 + $0x680] sm:$0xff] }
 0x70b   : > { %5554 = vmatprep.subr.bf16.mxu0 %v11976_v31  ;;  %8880 = vmatprep.subr.bf16.mxu1 %v10722_v40  ;;  %v10850_v31 = vcombine.high %v5828_v20, %v5844_v30 }
 0x70e   : > { %5555 = vmatpush1.bf16.msra.mxu0 %v11974_v28  ;;  %8881 = vmatpush1.bf16.msra.mxu1 %v10721_v2  ;;  %v10849_v28 = vcombine.low %v5828_v20, %v5844_v30  ;;  %v12019_v20 = vld [vmem:[#allocation18 + $0x110] ss:$8 sps:$4 sm:$0xff]   ;;  %v12024_v30 = vld [vmem:[#allocation18 + $0x124] ss:$8 sps:$4 sm:$0xff]  }
 0x70f   : > { %5556 = vmatprep.subr.bf16.mxu0 %v11979_v32  ;;  %8882 = vmatprep.subr.bf16.mxu1 %v10754_v21  ;;  %v5860_v32 = vld [vmem:[#allocation21 + $0x700] sm:$0xff] }
 0x712   : > { %5557 = vmatpush1.bf16.msra.mxu0 %v11977_v17  ;;  %8883 = vmatpush1.bf16.msra.mxu1 %v10753_v22  ;;  %v5876_v17 = vld [vmem:[#allocation21 + $0x780] sm:$0xff] }
 0x713   : > { %5558 = vmatprep.subr.bf16.mxu0 %v11982_v33  ;;  %8884 = vmatprep.subr.bf16.mxu1 %v10786_v24  ;;  %v10882_v33 = vcombine.high %v5860_v32, %v5876_v17 }
 0x716   : > { %5559 = vmatpush1.bf16.msra.mxu0 %v11980_v34  ;;  %8885 = vmatpush1.bf16.msra.mxu1 %v10785_v47  ;;  %v10881_v34 = vcombine.low %v5860_v32, %v5876_v17  ;;  %v12025_v32 = vld [vmem:[#allocation18 + $0x130] ss:$8 sps:$4 sm:$0xff]   ;;  %v12030_v17 = vld [vmem:[#allocation18 + $0x144] ss:$8 sps:$4 sm:$0xff]  }
 0x717   : > { %5560 = vmatprep.subr.bf16.mxu0 %v11985_v43  ;;  %8886 = vmatprep.subr.bf16.mxu1 %v10818_v37  ;;  %v5892_v43 = vld [vmem:[#allocation21 + $0x800] sm:$0xff]  ;;  %v12021_v37 = vld [vmem:[#allocation18 + $0x114] ss:$8 sps:$4 sm:$0xff]  }
 0x71a   : > { %5561 = vmatpush1.bf16.msra.mxu0 %v11983_v26  ;;  %8887 = vmatpush1.bf16.msra.mxu1 %v10817_v19  ;;  %v5908_v26 = vld [vmem:[#allocation21 + $0x880] sm:$0xff] }
 0x71b   : > { %5562 = vmatprep.subr.bf16.mxu0 %v11988_v39  ;;  %8888 = vmatprep.subr.bf16.mxu1 %v10850_v31  ;;  %v10914_v39 = vcombine.high %v5892_v43, %v5908_v26  ;;  %v12022_v31 = vld [vmem:[#allocation18 + $0x120] ss:$8 sps:$4 sm:$0xff]  }
 0x71e   : > { %5563 = vmatpush1.bf16.msra.mxu0 %v11986_v42  ;;  %8889 = vmatpush1.bf16.msra.mxu1 %v10849_v28  ;;  %v10913_v42 = vcombine.low %v5892_v43, %v5908_v26  ;;  %v12027_v28 = vld [vmem:[#allocation18 + $0x134] ss:$8 sps:$4 sm:$0xff]   ;;  %v12031_v43 = vld [vmem:[#allocation18 + $0x150] ss:$8 sps:$4 sm:$0xff]   ;;  %v12036_v26 = vld [vmem:[#allocation18 + $0x164] ss:$8 sps:$4 sm:$0xff]  }
 0x71f   : > { %5564 = vmatprep.subr.bf16.mxu0 %v11991_v44  ;;  %8890 = vmatprep.subr.bf16.mxu1 %v10882_v33  ;;  %v5924_v44 = vld [vmem:[#allocation21 + $0x900] sm:$0xff] }
 0x720   : > { %v12028_v33 = vld [vmem:[#allocation18 + $0x140] ss:$8 sps:$4 sm:$0xff]  }
 0x722   : > { %5565 = vmatpush1.bf16.msra.mxu0 %v11989_v45  ;;  %8891 = vmatpush1.bf16.msra.mxu1 %v10881_v34  ;;  %v5940_v45 = vld [vmem:[#allocation21 + $0x980] sm:$0xff]  ;;  %v12033_v34 = vld [vmem:[#allocation18 + $0x154] ss:$8 sps:$4 sm:$0xff]  }
 0x723   : > { %5566 = vmatprep.subr.bf16.mxu0 %v11994_v46  ;;  %8892 = vmatprep.subr.bf16.mxu1 %v10914_v39  ;;  %v10946_v46 = vcombine.high %v5924_v44, %v5940_v45  ;;  %v12034_v39 = vld [vmem:[#allocation18 + $0x160] ss:$8 sps:$4 sm:$0xff]  }
 0x726   : > { %5567 = vmatpush1.bf16.msra.mxu0 %v11992_v48  ;;  %8893 = vmatpush1.bf16.msra.mxu1 %v10913_v42  ;;  %v10945_v48 = vcombine.low %v5924_v44, %v5940_v45  ;;  %v12039_v42 = vld [vmem:[#allocation18 + $0x174] ss:$8 sps:$4 sm:$0xff]   ;;  %v12037_v44 = vld [vmem:[#allocation18 + $0x170] ss:$8 sps:$4 sm:$0xff]   ;;  %v12042_v45 = vld [vmem:[#allocation18 + $0x184] ss:$8 sps:$4 sm:$0xff]  }
 0x727   : > { %5568 = vmatprep.subr.bf16.mxu0 %v11997_v49  ;;  %8894 = vmatprep.subr.bf16.mxu1 %v10946_v46  ;;  %v5956_v49 = vld [vmem:[#allocation21 + $0xa00] sm:$0xff] }
 0x728   : > { %v12040_v46 = vld [vmem:[#allocation18 + $0x180] ss:$8 sps:$4 sm:$0xff]  }
 0x72a   : > { %5569 = vmatpush1.bf16.msra.mxu0 %v11995_v51  ;;  %v5972_v51 = vld [vmem:[#allocation21 + $0xa80] sm:$0xff]  ;;  %8895 = vmatpush1.bf16.msra.mxu1 %v10945_v48  ;;  %v12045_v48 = vld [vmem:[#allocation18 + $0x194] ss:$8 sps:$4 sm:$0xff]  }
 0x72b   : > { %5570 = vmatprep.subr.bf16.mxu0 %v12000_v52  ;;  %v10978_v52 = vcombine.high %v5956_v49, %v5972_v51 }
 0x72d   : > { %8896 = vmatprep.subr.bf16.mxu1 %v10978_v52  ;;  %v12046_v52 = vld [vmem:[#allocation18 + $0x1a0] ss:$8 sps:$4 sm:$0xff]  }
 0x72e   : > { %5571 = vmatpush1.bf16.msra.mxu0 %v11998_v54  ;;  %v10977_v54 = vcombine.low %v5956_v49, %v5972_v51  ;;  %v12043_v49 = vld [vmem:[#allocation18 + $0x190] ss:$8 sps:$4 sm:$0xff]   ;;  %v12048_v51 = vld [vmem:[#allocation18 + $0x1a4] ss:$8 sps:$4 sm:$0xff]  }
 0x72f   : > { %5572 = vmatprep.subr.bf16.mxu0 %v12003_v55  ;;  %v5988_v55 = vld [vmem:[#allocation21 + $0xb00] sm:$0xff] }
 0x730   : > { %8897 = vmatpush1.bf16.msra.mxu1 %v10977_v54  ;;  %v12051_v54 = vld [vmem:[#allocation18 + $0x1b4] ss:$8 sps:$4 sm:$0xff]  }
 0x732   : > { %5573 = vmatpush1.bf16.msra.mxu0 %v12001_v57  ;;  %v6004_v57 = vld [vmem:[#allocation21 + $0xb80] sm:$0xff] }
 0x733   : > { %5574 = vmatprep.subr.bf16.mxu0 %v12006_v18  ;;  %v11010_v18 = vcombine.high %v5988_v55, %v6004_v57 }
 0x735   : > { %8898 = vmatprep.subr.bf16.mxu1 %v11010_v18  ;;  %v12052_v18 = vld [vmem:[#allocation18 + $0x1c0] ss:$8 sps:$4 sm:$0xff]  }
 0x736   : > { %5575 = vmatpush1.bf16.msra.mxu0 %v12004_v58  ;;  %v11009_v58 = vcombine.low %v5988_v55, %v6004_v57  ;;  %v12049_v55 = vld [vmem:[#allocation18 + $0x1b0] ss:$8 sps:$4 sm:$0xff]   ;;  %v12054_v57 = vld [vmem:[#allocation18 + $0x1c4] ss:$8 sps:$4 sm:$0xff]  }
 0x737   : > { %5576 = vmatprep.subr.bf16.mxu0 %v12009_v61  ;;  %v6020_v61 = vld [vmem:[#allocation21 + $0xc00] sm:$0xff] }
 0x738   : > { %8899 = vmatpush1.bf16.msra.mxu1 %v11009_v58  ;;  %v12057_v58 = vld [vmem:[#allocation18 + $0x1d4] ss:$8 sps:$4 sm:$0xff]  }
 0x73a   : > { %5577 = vmatpush1.bf16.msra.mxu0 %v12007_v63  ;;  %v6036_v63 = vld [vmem:[#allocation21 + $0xc80] sm:$0xff] }
 0x73b   : > { %5578 = vmatprep.subr.bf16.mxu0 %v12012_v0  ;;  %v11042_v0 = vcombine.high %v6020_v61, %v6036_v63 }
 0x73d   : > { %8900 = vmatprep.subr.bf16.mxu1 %v11042_v0  ;;  %v12060_v0 = vld [vmem:[#allocation18 + $0x1e4] ss:$8 sps:$4 sm:$0xff]  }
 0x73e   : > { %5579 = vmatpush1.bf16.msra.mxu0 %v12010_v1  ;;  %v11041_v1 = vcombine.low %v6020_v61, %v6036_v63  ;;  %v12055_v61 = vld [vmem:[#allocation18 + $0x1d0] ss:$8 sps:$4 sm:$0xff]  }
 0x73f   : > { %5580 = vmatprep.subr.bf16.mxu0 %v12015_v3  ;;  %v13830_v3 = vld [vmem:[#allocation17] sm:$0xf] }
 0x740   : > { %v4801_v8 = vrot.slane %v13830_v3, %v13461_v56  ;;  %8901 = vmatpush1.bf16.msra.mxu1 %v11041_v1  ;;  %v4805_v27 = vrot.slane %v13830_v3, %v13467_v59  ;;  %v4813_v10 = vrot.slane %v13830_v3, %v13470_v60  ;;  %v4809_v63 = vrot.slane %v13830_v3, %v13464_v25  ;;  %v12058_v1 = vld [vmem:[#allocation18 + $0x1e0] ss:$8 sps:$4 sm:$0xff]  }
 0x742   : > { %5581 = vmatpush1.bf16.msra.mxu0 %v12013_v6  ;;  %v6052_v6 = vld [vmem:[#allocation21 + $0xd00] sm:$0xff] }
 0x743   : > { %5591 = vmatprep.subr.bf16.mxu0 %v12018_v36  ;;  %v6068_v36 = vld [vmem:[#allocation21 + $0xd80] sm:$0xff] }
 0x744   : > { %v11074_v7 = vcombine.high %v6052_v6, %v6068_v36  ;;  %v11073_v9 = vcombine.low %v6052_v6, %v6068_v36  ;;  %v12063_v36 = vld [vmem:[#allocation18 + $0x1f4] ss:$8 sps:$4 sm:$0xff]  }
 0x746   : > { %8902 = vmatprep.subr.bf16.mxu1 %v11074_v7  ;;  %v5638_v7 = vld [vmem:[#allocation21 + $0x10] sm:$0xff] }
 0x747   : > { %8903 = vmatpush1.bf16.msra.mxu1 %v11073_v9  ;;  %v12061_v9 = vld [vmem:[#allocation18 + $0x1f0] ss:$8 sps:$4 sm:$0xff]  }
 0x7d8   : > { %v4975_v14 = vpop.f32.mrb[0].mxu0  ;;  %v13838_v11 = vpop.f32.mrb[0].mxu1 }
 0x7d9   : > { %v11295_v16 = vadd.f32 %v4975_v14, %v4801_v8  ;;  %v4977_v12 = vpop.f32.mrb[1].mxu0  ;;  %v5141_v38 = vpop.f32.mrb[1].mxu1  ;;  %v11297_v6 = vadd.f32 %v13838_v11, %v4809_v63  ;;  %v5654_v8 = vld [vmem:[#allocation21 + $0x90] sm:$0xff] }
 0x7da   : > { %v11296_v40 = vadd.f32 %v4977_v12, %v4805_v27  ;;  %v11298_v2 = vadd.f32 %v5141_v38, %v4813_v10  ;;  %v4979_v41 = vpop.f32.mrb[2].mxu0  ;;  %v5143_v15 = vpop.f32.mrb[2].mxu1  ;;  %v10662_v10 = vcombine.high %v5638_v7, %v5654_v8  ;;  %v5670_v14 = vld [vmem:[#allocation21 + $0x110] sm:$0xff]  ;;  %v10661_v12 = vcombine.low %v5638_v7, %v5654_v8 }
 0x7db   : > { %v5146_v21 = vmax.f32 %v11295_v16, 0.0  ;;  %v4980_v22 = vpop.f32.mrb[3].mxu0  ;;  %v5144_v23 = vpop.f32.mrb[3].mxu1  ;;  %v5148_v27 = vmax.f32 %v11297_v6, 0.0  ;;  %v5686_v16 = vld [vmem:[#allocation21 + $0x190] sm:$0xff] }
 0x7dc   : > { %v5147_v35 = vmax.f32 %v11296_v40, 0.0  ;;  %v5149_v24 = vmax.f32 %v11298_v2, 0.0  ;;  %v10694_v38 = vcombine.high %v5670_v14, %v5686_v16  ;;  %v5702_v40 = vld [vmem:[#allocation21 + $0x210] sm:$0xff]  ;;  %v10693_v11 = vcombine.low %v5670_v14, %v5686_v16  ;;  %v6100_v14 = vld [vmem:[#allocation21 + $0xe80] sm:$0xff] }
 0x7dd   : > { %v5150_v13 = vpack.c.bf16 %v5146_v21, %v5146_v21  ;;  %v5152_v3 = vpack.c.bf16 %v5148_v27, %v5148_v27  ;;  %v5718_v2 = vld [vmem:[#allocation21 + $0x290] sm:$0xff] }
 0x7de   : > { %v5151_v47 = vpack.c.bf16 %v5147_v35, %v5147_v35  ;;  %v5153_v19 = vpack.c.bf16 %v5149_v24, %v5149_v24  ;;  %v10726_v41 = vcombine.high %v5702_v40, %v5718_v2  ;;  %v5734_v15 = vld [vmem:[#allocation21 + $0x310] sm:$0xff]  ;;  %v10725_v22 = vcombine.low %v5702_v40, %v5718_v2 }
 0x7df   : > { %v5750_v21 = vld [vmem:[#allocation21 + $0x390] sm:$0xff] }
 0x7e0   : > { %5582 = vmatprep.mubr.bf16.mxu0 %v5151_v47  ;;  %v10758_v23 = vcombine.high %v5734_v15, %v5750_v21  ;;  %v5766_v35 = vld [vmem:[#allocation21 + $0x410] sm:$0xff]  ;;  %v10757_v47 = vcombine.low %v5734_v15, %v5750_v21 }
 0x7e1   : > { %5583 = vmatmul.mubr.bf16.vlgmr.msra.gmra.mrb[4].mxu0 %v5150_v13  ;;  %v5782_v24 = vld [vmem:[#allocation21 + $0x490] sm:$0xff] }
 0x7e2   : > { %5592 = vmatpush1.bf16.msra.mxu0 %v12016_v29  ;;  %5623 = vmatprep.mubr.bf16.mxu0 %v5153_v19  ;;  %v10790_v29 = vcombine.high %v5766_v35, %v5782_v24  ;;  %v5798_v13 = vld [vmem:[#allocation21 + $0x510] sm:$0xff]  ;;  %v10789_v19 = vcombine.low %v5766_v35, %v5782_v24 }
 0x7e3   : > { %5593 = vmatprep.subr.bf16.mxu0 %v12021_v37  ;;  %v5814_v37 = vld [vmem:[#allocation21 + $0x590] sm:$0xff] }
 0x7e4   : > { %v6022_v63 = vld [vmem:[#allocation21 + $0xc10] sm:$0xff] }
 0x7e5   : > { %v6070_v7 = vld [vmem:[#allocation21 + $0xd90] sm:$0xff] }
 0x7e6   : > { %5594 = vmatpush1.bf16.msra.mxu0 %v12019_v20  ;;  %v10822_v20 = vcombine.high %v5798_v13, %v5814_v37  ;;  %v6086_v16 = vld [vmem:[#allocation21 + $0xe10] sm:$0xff] }
 0x7e7   : > { %5595 = vmatprep.subr.bf16.mxu0 %v12024_v30  ;;  %v5830_v30 = vld [vmem:[#allocation21 + $0x610] sm:$0xff] }
 0x7e8   : > { %v6118_v15 = vld [vmem:[#allocation21 + $0xf10] sm:$0xff] }
 0x7ea   : > { %5596 = vmatpush1.bf16.msra.mxu0 %v12022_v31  ;;  %v5846_v31 = vld [vmem:[#allocation21 + $0x690] sm:$0xff] }
 0x7eb   : > { %5597 = vmatprep.subr.bf16.mxu0 %v12027_v28  ;;  %v10821_v28 = vcombine.low %v5798_v13, %v5814_v37  ;;  %v5640_v13 = vld [vmem:[#allocation21 + $0x20] sm:$0xff] }
 0x7ee   : > { %5598 = vmatpush1.bf16.msra.mxu0 %v12025_v32  ;;  %v10854_v32 = vcombine.high %v5830_v30, %v5846_v31 }
 0x7ef   : > { %5599 = vmatprep.subr.bf16.mxu0 %v12030_v17  ;;  %v5862_v17 = vld [vmem:[#allocation21 + $0x710] sm:$0xff] }
 0x7f2   : > { %5600 = vmatpush1.bf16.msra.mxu0 %v12028_v33  ;;  %v5878_v33 = vld [vmem:[#allocation21 + $0x790] sm:$0xff] }
 0x7f3   : > { %5601 = vmatprep.subr.bf16.mxu0 %v12033_v34  ;;  %v10853_v34 = vcombine.low %v5830_v30, %v5846_v31 }
 0x7f6   : > { %5602 = vmatpush1.bf16.msra.mxu0 %v12031_v43  ;;  %v10886_v43 = vcombine.high %v5862_v17, %v5878_v33 }
 0x7f7   : > { %5603 = vmatprep.subr.bf16.mxu0 %v12036_v26  ;;  %v5894_v26 = vld [vmem:[#allocation21 + $0x810] sm:$0xff] }
 0x7fa   : > { %5604 = vmatpush1.bf16.msra.mxu0 %v12034_v39  ;;  %v5910_v39 = vld [vmem:[#allocation21 + $0x890] sm:$0xff] }
 0x7fb   : > { %5605 = vmatprep.subr.bf16.mxu0 %v12039_v42  ;;  %v10885_v42 = vcombine.low %v5862_v17, %v5878_v33 }
 0x7fe   : > { %5606 = vmatpush1.bf16.msra.mxu0 %v12037_v44  ;;  %v10918_v44 = vcombine.high %v5894_v26, %v5910_v39 }
 0x7ff   : > { %5607 = vmatprep.subr.bf16.mxu0 %v12042_v45  ;;  %v5926_v45 = vld [vmem:[#allocation21 + $0x910] sm:$0xff] }
 0x802   : > { %5608 = vmatpush1.bf16.msra.mxu0 %v12040_v46  ;;  %v5942_v46 = vld [vmem:[#allocation21 + $0x990] sm:$0xff] }
 0x803   : > { %5609 = vmatprep.subr.bf16.mxu0 %v12045_v48  ;;  %v10917_v48 = vcombine.low %v5894_v26, %v5910_v39 }
 0x806   : > { %5610 = vmatpush1.bf16.msra.mxu0 %v12043_v49  ;;  %v10950_v49 = vcombine.high %v5926_v45, %v5942_v46 }
 0x807   : > { %5611 = vmatprep.subr.bf16.mxu0 %v12048_v51  ;;  %v5958_v51 = vld [vmem:[#allocation21 + $0xa10] sm:$0xff] }
 0x80a   : > { %5612 = vmatpush1.bf16.msra.mxu0 %v12046_v52  ;;  %v5974_v52 = vld [vmem:[#allocation21 + $0xa90] sm:$0xff] }
 0x80b   : > { %5613 = vmatprep.subr.bf16.mxu0 %v12051_v54  ;;  %v10949_v54 = vcombine.low %v5926_v45, %v5942_v46  ;;  %v5669_v46 = vld [vmem:[#allocation21 + $0x108] sm:$0xff] }
 0x80e   : > { %5614 = vmatpush1.bf16.msra.mxu0 %v12049_v55  ;;  %v10982_v55 = vcombine.high %v5958_v51, %v5974_v52 }
 0x80f   : > { %5615 = vmatprep.subr.bf16.mxu0 %v12054_v57  ;;  %v5990_v57 = vld [vmem:[#allocation21 + $0xb10] sm:$0xff] }
 0x812   : > { %5616 = vmatpush1.bf16.msra.mxu0 %v12052_v18  ;;  %v6006_v18 = vld [vmem:[#allocation21 + $0xb90] sm:$0xff] }
 0x813   : > { %5617 = vmatprep.subr.bf16.mxu0 %v12057_v58  ;;  %v10981_v58 = vcombine.low %v5958_v51, %v5974_v52  ;;  %v5688_v51 = vld [vmem:[#allocation21 + $0x1a0] sm:$0xff] }
 0x816   : > { %5618 = vmatpush1.bf16.msra.mxu0 %v12055_v61  ;;  %v11014_v61 = vcombine.high %v5990_v57, %v6006_v18 }
 0x817   : > { %5619 = vmatprep.subr.bf16.mxu0 %v12060_v0  ;;  %v6038_v0 = vld [vmem:[#allocation21 + $0xc90] sm:$0xff] }
 0x818   : > { %v11046_v6 = vcombine.high %v6022_v63, %v6038_v0  ;;  %v11045_v8 = vcombine.low %v6022_v63, %v6038_v0  ;;  %v5720_v63 = vld [vmem:[#allocation21 + $0x2a0] sm:$0xff] }
 0x81a   : > { %5620 = vmatpush1.bf16.msra.mxu0 %v12058_v1  ;;  %v11013_v1 = vcombine.low %v5990_v57, %v6006_v18 }
 0x81b   : > { %5621 = vmatprep.subr.bf16.mxu0 %v12063_v36  ;;  %v6054_v36 = vld [vmem:[#allocation21 + $0xd10] sm:$0xff] }
 0x81c   : > { %v11077_v27 = vcombine.low %v6054_v36, %v6070_v7 }
 0x81e   : > { %5622 = vmatpush1.bf16.msra.mxu0 %v12061_v9  ;;  %v11078_v9 = vcombine.high %v6054_v36, %v6070_v7  ;;  %v5733_v7 = vld [vmem:[#allocation21 + $0x308] sm:$0xff] }
 0x81f   : > { %8958 = vmatprep.subr.bf16.mxu0 %v10662_v10  ;;  %v6084_v10 = vld [vmem:[#allocation21 + $0xe00] sm:$0xff] }
 0x821   : > { %5624 = vmatmul.mubr.bf16.vlgmr.msra.gmra.mrb[4].mxu0 %v5152_v3  ;;  %v6102_v3 = vld [vmem:[#allocation21 + $0xe90] sm:$0xff] }
 0x822   : > { %8959 = vmatpush1.bf16.msra.mxu0 %v10661_v12  ;;  %v11106_v12 = vcombine.high %v6084_v10, %v6100_v14  ;;  %v11109_v40 = vcombine.low %v6086_v16, %v6102_v3  ;;  %v11110_v2 = vcombine.high %v6086_v16, %v6102_v3  ;;  %v5765_v3 = vld [vmem:[#allocation21 + $0x408] sm:$0xff] }
 0x823   : > { %8960 = vmatprep.subr.bf16.mxu0 %v10694_v38  ;;  %v11105_v38 = vcombine.low %v6084_v10, %v6100_v14 }
 0x824   : > { %8904 = vmatprep.subr.bf16.mxu1 %v11106_v12 }
 0x825   : > { %8905 = vmatpush1.bf16.msra.mxu1 %v11105_v38  ;;  %v5781_v38 = vld [vmem:[#allocation21 + $0x488] sm:$0xff] }
 0x826   : > { %8961 = vmatpush1.bf16.msra.mxu0 %v10693_v11  ;;  %v6116_v11 = vld [vmem:[#allocation21 + $0xf00] sm:$0xff] }
 0x827   : > { %8962 = vmatprep.subr.bf16.mxu0 %v10726_v41  ;;  %v6132_v41 = vld [vmem:[#allocation21 + $0xf80] sm:$0xff] }
 0x828   : > { %v11138_v21 = vcombine.high %v6116_v11, %v6132_v41 }
 0x82a   : > { %8963 = vmatpush1.bf16.msra.mxu0 %v10725_v22  ;;  %v6134_v22 = vld [vmem:[#allocation21 + $0xf90] sm:$0xff]  ;;  %8906 = vmatprep.subr.bf16.mxu1 %v11138_v21 }
 0x82b   : > { %8964 = vmatprep.subr.bf16.mxu0 %v10758_v23  ;;  %v11137_v23 = vcombine.low %v6116_v11, %v6132_v41  ;;  %v11141_v35 = vcombine.low %v6118_v15, %v6134_v22  ;;  %v11142_v24 = vcombine.high %v6118_v15, %v6134_v22  ;;  %v10788_v15 = vcombine.high %v5765_v3, %v5781_v38  ;;  %v5797_v22 = vld [vmem:[#allocation21 + $0x508] sm:$0xff] }
 0x82d   : > { %8907 = vmatpush1.bf16.msra.mxu1 %v11137_v23  ;;  %v5813_v23 = vld [vmem:[#allocation21 + $0x588] sm:$0xff] }
 0x82e   : > { %8965 = vmatpush1.bf16.msra.mxu0 %v10757_v47  ;;  %v5637_v47 = vld [vmem:[#allocation21 + $0x8] sm:$0xff] }
 0x82f   : > { %8966 = vmatprep.subr.bf16.mxu0 %v10790_v29  ;;  %v5653_v29 = vld [vmem:[#allocation21 + $0x88] sm:$0xff] }
 0x830   : > { %v10660_v37 = vcombine.high %v5637_v47, %v5653_v29 }
 0x832   : > { %8967 = vmatpush1.bf16.msra.mxu0 %v10789_v19  ;;  %v5656_v19 = vld [vmem:[#allocation21 + $0xa0] sm:$0xff]  ;;  %8917 = vmatprep.subr.bf16.mxu1 %v10660_v37 }
 0x833   : > { %8968 = vmatprep.subr.bf16.mxu0 %v10822_v20  ;;  %v10659_v20 = vcombine.low %v5637_v47, %v5653_v29  ;;  %v10665_v30 = vcombine.low %v5640_v13, %v5656_v19  ;;  %v10666_v31 = vcombine.high %v5640_v13, %v5656_v19  ;;  %v10787_v47 = vcombine.low %v5765_v3, %v5781_v38  ;;  %v5829_v19 = vld [vmem:[#allocation21 + $0x608] sm:$0xff] }
 0x834   : > { %v10820_v13 = vcombine.high %v5797_v22, %v5813_v23 }
 0x836   : > { %8969 = vmatpush1.bf16.msra.mxu0 %v10821_v28  ;;  %v5218_v28 = vld [vmem:[#allocation20] sm:$0x3] }
 0x837   : > { %8970 = vmatprep.subr.bf16.mxu0 %v10854_v32  ;;  %v5543_v32 = vrot.slane %v5218_v28, %v13461_v56  ;;  %v5547_v17 = vrot.slane %v5218_v28, %v13467_v59  ;;  %v10819_v28 = vcombine.low %v5797_v22, %v5813_v23 }
 0x83a   : > { %8971 = vmatpush1.bf16.msra.mxu0 %v10853_v34 }
 0x83b   : > { %8972 = vmatprep.subr.bf16.mxu0 %v10886_v43 }
 0x83e   : > { %8973 = vmatpush1.bf16.msra.mxu0 %v10885_v42 }
 0x83f   : > { %8974 = vmatprep.subr.bf16.mxu0 %v10918_v44 }
 0x842   : > { %8975 = vmatpush1.bf16.msra.mxu0 %v10917_v48  ;;  %v5685_v48 = vld [vmem:[#allocation21 + $0x188] sm:$0xff] }
 0x843   : > { %8976 = vmatprep.subr.bf16.mxu0 %v10950_v49  ;;  %v5672_v49 = vld [vmem:[#allocation21 + $0x120] sm:$0xff]  ;;  %v10692_v57 = vcombine.high %v5669_v46, %v5685_v48  ;;  %v10691_v0 = vcombine.low %v5669_v46, %v5685_v48  ;;  %v5893_v48 = vld [vmem:[#allocation21 + $0x808] sm:$0xff] }
 0x844   : > { %v10698_v18 = vcombine.high %v5672_v49, %v5688_v51 }
 0x846   : > { %8977 = vmatpush1.bf16.msra.mxu0 %v10949_v54 }
 0x847   : > { %8978 = vmatprep.subr.bf16.mxu0 %v10982_v55  ;;  %v5701_v55 = vld [vmem:[#allocation21 + $0x208] sm:$0xff] }
 0x84a   : > { %8979 = vmatpush1.bf16.msra.mxu0 %v10981_v58  ;;  %v5717_v58 = vld [vmem:[#allocation21 + $0x288] sm:$0xff] }
 0x84b   : > { %8980 = vmatprep.subr.bf16.mxu0 %v11014_v61  ;;  %v5704_v61 = vld [vmem:[#allocation21 + $0x220] sm:$0xff]  ;;  %v10723_v10 = vcombine.low %v5701_v55, %v5717_v58 }
 0x84c   : > { %v10730_v36 = vcombine.high %v5704_v61, %v5720_v63  ;;  %v10729_v14 = vcombine.low %v5704_v61, %v5720_v63  ;;  %v5925_v63 = vld [vmem:[#allocation21 + $0x908] sm:$0xff] }
 0x84e   : > { %8981 = vmatpush1.bf16.msra.mxu0 %v11013_v1  ;;  %v10697_v1 = vcombine.low %v5672_v49, %v5688_v51  ;;  %v5909_v49 = vld [vmem:[#allocation21 + $0x888] sm:$0xff]  ;;  %v5896_v51 = vld [vmem:[#allocation21 + $0x820] sm:$0xff] }
 0x84f   : > { %8982 = vmatprep.subr.bf16.mxu0 %v11046_v6  ;;  %v10724_v6 = vcombine.high %v5701_v55, %v5717_v58  ;;  %v5912_v55 = vld [vmem:[#allocation21 + $0x8a0] sm:$0xff]  ;;  %v10916_v58 = vcombine.high %v5893_v48, %v5909_v49 }
 0x850   : > { %v10922_v61 = vcombine.high %v5896_v51, %v5912_v55 }
 0x852   : > { %8983 = vmatpush1.bf16.msra.mxu0 %v11045_v8  ;;  %v5749_v8 = vld [vmem:[#allocation21 + $0x388] sm:$0xff] }
 0x853   : > { %8984 = vmatprep.subr.bf16.mxu0 %v11078_v9  ;;  %v5736_v9 = vld [vmem:[#allocation21 + $0x320] sm:$0xff]  ;;  %v10756_v16 = vcombine.high %v5733_v7, %v5749_v8  ;;  %v10755_v11 = vcombine.low %v5733_v7, %v5749_v8  ;;  %v10921_v7 = vcombine.low %v5896_v51, %v5912_v55  ;;  %v6117_v55 = vld [vmem:[#allocation21 + $0xf08] sm:$0xff] }
 0x856   : > { %8985 = vmatpush1.bf16.msra.mxu0 %v11077_v27  ;;  %v5752_v27 = vld [vmem:[#allocation21 + $0x3a0] sm:$0xff] }
 0x857   : > { %8986 = vmatprep.subr.bf16.mxu0 %v11110_v2  ;;  %v10762_v12 = vcombine.high %v5736_v9, %v5752_v27  ;;  %v5784_v2 = vld [vmem:[#allocation21 + $0x4a0] sm:$0xff]  ;;  %v10761_v41 = vcombine.low %v5736_v9, %v5752_v27  ;;  %v5957_v27 = vld [vmem:[#allocation21 + $0xa08] sm:$0xff] }
 0x85a   : > { %8987 = vmatpush1.bf16.msra.mxu0 %v11109_v40  ;;  %v5768_v40 = vld [vmem:[#allocation21 + $0x420] sm:$0xff] }
 0x85b   : > { %8988 = vmatprep.subr.bf16.mxu0 %v11142_v24  ;;  %v10794_v21 = vcombine.high %v5768_v40, %v5784_v2  ;;  %v5816_v24 = vld [vmem:[#allocation21 + $0x5a0] sm:$0xff]  ;;  %v10793_v29 = vcombine.low %v5768_v40, %v5784_v2  ;;  %v5989_v2 = vld [vmem:[#allocation21 + $0xb08] sm:$0xff] }
 0x85e   : > { %8989 = vmatpush1.bf16.msra.mxu0 %v11141_v35  ;;  %v5800_v35 = vld [vmem:[#allocation21 + $0x520] sm:$0xff] }
 0x85f   : > { %9040 = vmatprep.subr.bf16.mxu0 %v10666_v31  ;;  %v10826_v37 = vcombine.high %v5800_v35, %v5816_v24  ;;  %v5848_v31 = vld [vmem:[#allocation21 + $0x6a0] sm:$0xff] }
 0x8f4   : > { %v5625_v33 = vpop.f32.mrb[4].mxu0 }
 0x8f5   : > { %v11299_v34 = vadd.f32 %v5625_v33, %v5543_v32  ;;  %v5627_v43 = vpop.f32.mrb[5].mxu0  ;;  %v10825_v32 = vcombine.low %v5800_v35, %v5816_v24  ;;  %v6021_v24 = vld [vmem:[#allocation21 + $0xc08] sm:$0xff] }
 0x8f6   : > { %v11300_v26 = vadd.f32 %v5627_v43, %v5547_v17  ;;  %v5629_v39 = vpop.f32.mrb[6].mxu0  ;;  %v5877_v43 = vld [vmem:[#allocation21 + $0x788] sm:$0xff] }
 0x8f7   : > { %v5632_v42 = vmax.f32 %v11299_v34, 0.0  ;;  %v5630_v44 = vpop.f32.mrb[7].mxu0  ;;  %v5861_v34 = vld [vmem:[#allocation21 + $0x708] sm:$0xff]  ;;  %v5880_v39 = vld [vmem:[#allocation21 + $0x7a0] sm:$0xff] }
 0x8f8   : > { %v5633_v45 = vmax.f32 %v11300_v26, 0.0  ;;  %v5864_v26 = vld [vmem:[#allocation21 + $0x720] sm:$0xff] }
 0x8f9   : > { %v13847_v54 = vpack.c.bf16 %v5632_v42, %v5632_v42  ;;  %v10890_v46 = vcombine.high %v5864_v26, %v5880_v39 }
 0x8fa   : > { %v13845_v52 = vpack.c.bf16 %v5633_v45, %v5633_v45  ;;  %v10884_v45 = vcombine.high %v5861_v34, %v5877_v43 }
 0x8fc   : > { %8908 = vmatprep.mubr.bf16.mxu1 %v13845_v52  ;;  %8990 = vmatprep.mubr.bf16.mxu0 %v13845_v52 }
 0x8fd   : > { %8909 = vmatmul.mubr.bf16.vlgmr.msra.gmra.mrb[4].mxu1 %v13847_v54  ;;  %8991 = vmatmul.mubr.bf16.vlgmr.msra.gmra.mrb[8].mxu0 %v13847_v54 }
 0x8fe   : > { %8918 = vmatpush1.bf16.msra.mxu1 %v10659_v20  ;;  %9041 = vmatpush1.bf16.msra.mxu0 %v10665_v30  ;;  %v5845_v20 = vld [vmem:[#allocation21 + $0x688] sm:$0xff]  ;;  %v5832_v30 = vld [vmem:[#allocation21 + $0x620] sm:$0xff] }
 0x8ff   : > { %8949 = vmatprep.mubr.bf16.mxu1 %v13845_v52  ;;  %9072 = vmatprep.mubr.bf16.mxu0 %v13845_v52  ;;  %v10852_v17 = vcombine.high %v5829_v19, %v5845_v20  ;;  %v10858_v33 = vcombine.high %v5832_v30, %v5848_v31  ;;  %v10851_v42 = vcombine.low %v5829_v19, %v5845_v20 }
 0x900   : > { %8919 = vmatprep.subr.bf16.mxu1 %v10692_v57  ;;  %9042 = vmatprep.subr.bf16.mxu0 %v10698_v18  ;;  %v10857_v44 = vcombine.low %v5832_v30, %v5848_v31  ;;  %v10883_v57 = vcombine.low %v5861_v34, %v5877_v43  ;;  %v10889_v18 = vcombine.low %v5864_v26, %v5880_v39  ;;  %v6053_v31 = vld [vmem:[#allocation21 + $0xd08] sm:$0xff] }
 0x901   : > { %v6085_v39 = vld [vmem:[#allocation21 + $0xe08] sm:$0xff] }
 0x902   : > { %8920 = vmatpush1.bf16.msra.mxu1 %v10691_v0  ;;  %9043 = vmatpush1.bf16.msra.mxu0 %v10697_v1  ;;  %v5941_v0 = vld [vmem:[#allocation21 + $0x988] sm:$0xff]  ;;  %v5928_v1 = vld [vmem:[#allocation21 + $0x920] sm:$0xff] }
 0x903   : > { %8921 = vmatprep.subr.bf16.mxu1 %v10724_v6  ;;  %9044 = vmatprep.subr.bf16.mxu0 %v10730_v36  ;;  %v5944_v6 = vld [vmem:[#allocation21 + $0x9a0] sm:$0xff]  ;;  %v10915_v36 = vcombine.low %v5893_v48, %v5909_v49  ;;  %v10948_v8 = vcombine.high %v5925_v63, %v5941_v0 }
 0x904   : > { %v10954_v9 = vcombine.high %v5928_v1, %v5944_v6  ;;  %v10953_v3 = vcombine.low %v5928_v1, %v5944_v6  ;;  %v5639_v6 = vld [vmem:[#allocation21 + $0x18] sm:$0xff] }
 0x906   : > { %8922 = vmatpush1.bf16.msra.mxu1 %v10723_v10  ;;  %9045 = vmatpush1.bf16.msra.mxu0 %v10729_v14  ;;  %v5973_v10 = vld [vmem:[#allocation21 + $0xa88] sm:$0xff]  ;;  %v5960_v14 = vld [vmem:[#allocation21 + $0xa20] sm:$0xff] }
 0x907   : > { %8923 = vmatprep.subr.bf16.mxu1 %v10756_v16  ;;  %9046 = vmatprep.subr.bf16.mxu0 %v10762_v12  ;;  %v5976_v16 = vld [vmem:[#allocation21 + $0xaa0] sm:$0xff]  ;;  %v10947_v12 = vcombine.low %v5925_v63, %v5941_v0  ;;  %v10980_v38 = vcombine.high %v5957_v27, %v5973_v10 }
 0x908   : > { %v10986_v40 = vcombine.high %v5960_v14, %v5976_v16  ;;  %v10985_v22 = vcombine.low %v5960_v14, %v5976_v16  ;;  %v5671_v16 = vld [vmem:[#allocation21 + $0x118] sm:$0xff] }
 0x90a   : > { %8924 = vmatpush1.bf16.msra.mxu1 %v10755_v11  ;;  %9047 = vmatpush1.bf16.msra.mxu0 %v10761_v41  ;;  %v6005_v11 = vld [vmem:[#allocation21 + $0xb88] sm:$0xff]  ;;  %v5992_v41 = vld [vmem:[#allocation21 + $0xb20] sm:$0xff] }
 0x90b   : > { %8925 = vmatprep.subr.bf16.mxu1 %v10788_v15  ;;  %9048 = vmatprep.subr.bf16.mxu0 %v10794_v21  ;;  %v6008_v15 = vld [vmem:[#allocation21 + $0xba0] sm:$0xff]  ;;  %v10979_v21 = vcombine.low %v5957_v27, %v5973_v10  ;;  %v11012_v23 = vcombine.high %v5989_v2, %v6005_v11 }
 0x90c   : > { %v11018_v35 = vcombine.high %v5992_v41, %v6008_v15  ;;  %v11017_v19 = vcombine.low %v5992_v41, %v6008_v15  ;;  %v5703_v15 = vld [vmem:[#allocation21 + $0x218] sm:$0xff] }
 0x90e   : > { %8926 = vmatpush1.bf16.msra.mxu1 %v10787_v47  ;;  %9049 = vmatpush1.bf16.msra.mxu0 %v10793_v29  ;;  %v6037_v47 = vld [vmem:[#allocation21 + $0xc88] sm:$0xff]  ;;  %v6024_v29 = vld [vmem:[#allocation21 + $0xc20] sm:$0xff] }
 0x90f   : > { %8927 = vmatprep.subr.bf16.mxu1 %v10820_v13  ;;  %9050 = vmatprep.subr.bf16.mxu0 %v10826_v37  ;;  %v6040_v13 = vld [vmem:[#allocation21 + $0xca0] sm:$0xff]  ;;  %v11011_v37 = vcombine.low %v5989_v2, %v6005_v11  ;;  %v11044_v20 = vcombine.high %v6021_v24, %v6037_v47 }
 0x910   : > { %v11050_v30 = vcombine.high %v6024_v29, %v6040_v13  ;;  %v11049_v34 = vcombine.low %v6024_v29, %v6040_v13  ;;  %v5735_v13 = vld [vmem:[#allocation21 + $0x318] sm:$0xff] }
 0x912   : > { %8928 = vmatpush1.bf16.msra.mxu1 %v10819_v28  ;;  %9051 = vmatpush1.bf16.msra.mxu0 %v10825_v32  ;;  %v6069_v28 = vld [vmem:[#allocation21 + $0xd88] sm:$0xff]  ;;  %v6056_v32 = vld [vmem:[#allocation21 + $0xd20] sm:$0xff] }
 0x913   : > { %8929 = vmatprep.subr.bf16.mxu1 %v10852_v17  ;;  %9052 = vmatprep.subr.bf16.mxu0 %v10858_v33  ;;  %v6072_v17 = vld [vmem:[#allocation21 + $0xda0] sm:$0xff]  ;;  %v11043_v33 = vcombine.low %v6021_v24, %v6037_v47  ;;  %v11076_v43 = vcombine.high %v6053_v31, %v6069_v28 }
 0x914   : > { %v11082_v26 = vcombine.high %v6056_v32, %v6072_v17  ;;  %v11081_v48 = vcombine.low %v6056_v32, %v6072_v17  ;;  %v5767_v17 = vld [vmem:[#allocation21 + $0x418] sm:$0xff] }
 0x916   : > { %8930 = vmatpush1.bf16.msra.mxu1 %v10851_v42  ;;  %9053 = vmatpush1.bf16.msra.mxu0 %v10857_v44  ;;  %v6101_v42 = vld [vmem:[#allocation21 + $0xe88] sm:$0xff]  ;;  %v6088_v44 = vld [vmem:[#allocation21 + $0xe20] sm:$0xff] }
 0x917   : > { %8931 = vmatprep.subr.bf16.mxu1 %v10884_v45  ;;  %9054 = vmatprep.subr.bf16.mxu0 %v10890_v46  ;;  %v6104_v45 = vld [vmem:[#allocation21 + $0xea0] sm:$0xff]  ;;  %v11075_v46 = vcombine.low %v6053_v31, %v6069_v28  ;;  %v11108_v49 = vcombine.high %v6085_v39, %v6101_v42 }
 0x918   : > { %v11114_v51 = vcombine.high %v6088_v44, %v6104_v45  ;;  %v11113_v63 = vcombine.low %v6088_v44, %v6104_v45  ;;  %v5799_v45 = vld [vmem:[#allocation21 + $0x518] sm:$0xff] }
 0x91a   : > { %8932 = vmatpush1.bf16.msra.mxu1 %v10883_v57  ;;  %9055 = vmatpush1.bf16.msra.mxu0 %v10889_v18  ;;  %v6133_v57 = vld [vmem:[#allocation21 + $0xf88] sm:$0xff]  ;;  %v6120_v18 = vld [vmem:[#allocation21 + $0xf20] sm:$0xff] }
 0x91b   : > { %8933 = vmatprep.subr.bf16.mxu1 %v10916_v58  ;;  %9056 = vmatprep.subr.bf16.mxu0 %v10922_v61  ;;  %v6136_v58 = vld [vmem:[#allocation21 + $0xfa0] sm:$0xff]  ;;  %v11107_v61 = vcombine.low %v6085_v39, %v6101_v42  ;;  %v11140_v0 = vcombine.high %v6117_v55, %v6133_v57 }
 0x91c   : > { %v11146_v1 = vcombine.high %v6120_v18, %v6136_v58  ;;  %v11145_v27 = vcombine.low %v6120_v18, %v6136_v58  ;;  %v5831_v58 = vld [vmem:[#allocation21 + $0x618] sm:$0xff] }
 0x91e   : > { %8934 = vmatpush1.bf16.msra.mxu1 %v10915_v36  ;;  %9057 = vmatpush1.bf16.msra.mxu0 %v10921_v7  ;;  %v5655_v36 = vld [vmem:[#allocation21 + $0x98] sm:$0xff]  ;;  %v5642_v7 = vld [vmem:[#allocation21 + $0x30] sm:$0xff] }
 0x91f   : > { %8935 = vmatprep.subr.bf16.mxu1 %v10948_v8  ;;  %9058 = vmatprep.subr.bf16.mxu0 %v10954_v9  ;;  %v5658_v8 = vld [vmem:[#allocation21 + $0xb0] sm:$0xff]  ;;  %v11139_v9 = vcombine.low %v6117_v55, %v6133_v57  ;;  %v10664_v10 = vcombine.high %v5639_v6, %v5655_v36 }
 0x920   : > { %v10670_v14 = vcombine.high %v5642_v7, %v5658_v8  ;;  %v10669_v2 = vcombine.low %v5642_v7, %v5658_v8  ;;  %v5863_v8 = vld [vmem:[#allocation21 + $0x718] sm:$0xff] }
 0x922   : > { %8936 = vmatpush1.bf16.msra.mxu1 %v10947_v12  ;;  %9059 = vmatpush1.bf16.msra.mxu0 %v10953_v3  ;;  %v5687_v12 = vld [vmem:[#allocation21 + $0x198] sm:$0xff]  ;;  %v5674_v3 = vld [vmem:[#allocation21 + $0x130] sm:$0xff] }
 0x923   : > { %8937 = vmatprep.subr.bf16.mxu1 %v10980_v38  ;;  %9060 = vmatprep.subr.bf16.mxu0 %v10986_v40  ;;  %v5690_v38 = vld [vmem:[#allocation21 + $0x1b0] sm:$0xff]  ;;  %v10663_v40 = vcombine.low %v5639_v6, %v5655_v36  ;;  %v10696_v11 = vcombine.high %v5671_v16, %v5687_v12 }
 0x924   : > { %v10702_v41 = vcombine.high %v5674_v3, %v5690_v38  ;;  %v10701_v24 = vcombine.low %v5674_v3, %v5690_v38  ;;  %v5895_v38 = vld [vmem:[#allocation21 + $0x818] sm:$0xff] }
 0x926   : > { %8938 = vmatpush1.bf16.msra.mxu1 %v10979_v21  ;;  %9061 = vmatpush1.bf16.msra.mxu0 %v10985_v22  ;;  %v5719_v21 = vld [vmem:[#allocation21 + $0x298] sm:$0xff]  ;;  %v5706_v22 = vld [vmem:[#allocation21 + $0x230] sm:$0xff] }
 0x927   : > { %8939 = vmatprep.subr.bf16.mxu1 %v11012_v23  ;;  %9062 = vmatprep.subr.bf16.mxu0 %v11018_v35  ;;  %v5722_v23 = vld [vmem:[#allocation21 + $0x2b0] sm:$0xff]  ;;  %v10695_v35 = vcombine.low %v5671_v16, %v5687_v12  ;;  %v10728_v47 = vcombine.high %v5703_v15, %v5719_v21 }
 0x928   : > { %v10734_v29 = vcombine.high %v5706_v22, %v5722_v23  ;;  %v10733_v31 = vcombine.low %v5706_v22, %v5722_v23  ;;  %v5927_v23 = vld [vmem:[#allocation21 + $0x918] sm:$0xff] }
 0x92a   : > { %8940 = vmatpush1.bf16.msra.mxu1 %v11011_v37  ;;  %9063 = vmatpush1.bf16.msra.mxu0 %v11017_v19  ;;  %v5751_v37 = vld [vmem:[#allocation21 + $0x398] sm:$0xff]  ;;  %v5738_v19 = vld [vmem:[#allocation21 + $0x330] sm:$0xff] }
 0x92b   : > { %8941 = vmatprep.subr.bf16.mxu1 %v11044_v20  ;;  %9064 = vmatprep.subr.bf16.mxu0 %v11050_v30  ;;  %v5754_v20 = vld [vmem:[#allocation21 + $0x3b0] sm:$0xff]  ;;  %v10727_v30 = vcombine.low %v5703_v15, %v5719_v21  ;;  %v10760_v28 = vcombine.high %v5735_v13, %v5751_v37 }
 0x92c   : > { %v10766_v32 = vcombine.high %v5738_v19, %v5754_v20  ;;  %v10765_v39 = vcombine.low %v5738_v19, %v5754_v20  ;;  %v5959_v20 = vld [vmem:[#allocation21 + $0xa18] sm:$0xff] }
 0x92e   : > { %8942 = vmatpush1.bf16.msra.mxu1 %v11043_v33  ;;  %9065 = vmatpush1.bf16.msra.mxu0 %v11049_v34  ;;  %v5783_v33 = vld [vmem:[#allocation21 + $0x498] sm:$0xff]  ;;  %v5770_v34 = vld [vmem:[#allocation21 + $0x430] sm:$0xff] }
 0x92f   : > { %8943 = vmatprep.subr.bf16.mxu1 %v11076_v43  ;;  %9066 = vmatprep.subr.bf16.mxu0 %v11082_v26  ;;  %v5786_v43 = vld [vmem:[#allocation21 + $0x4b0] sm:$0xff]  ;;  %v10759_v26 = vcombine.low %v5735_v13, %v5751_v37  ;;  %v10792_v42 = vcombine.high %v5767_v17, %v5783_v33 }
 0x930   : > { %v10798_v44 = vcombine.high %v5770_v34, %v5786_v43  ;;  %v10797_v55 = vcombine.low %v5770_v34, %v5786_v43  ;;  %v5991_v43 = vld [vmem:[#allocation21 + $0xb18] sm:$0xff] }
 0x932   : > { %8944 = vmatpush1.bf16.msra.mxu1 %v11075_v46  ;;  %9067 = vmatpush1.bf16.msra.mxu0 %v11081_v48  ;;  %v5815_v46 = vld [vmem:[#allocation21 + $0x598] sm:$0xff]  ;;  %v5802_v48 = vld [vmem:[#allocation21 + $0x530] sm:$0xff] }
 0x933   : > { %8945 = vmatprep.subr.bf16.mxu1 %v11108_v49  ;;  %9068 = vmatprep.subr.bf16.mxu0 %v11114_v51  ;;  %v5818_v49 = vld [vmem:[#allocation21 + $0x5b0] sm:$0xff]  ;;  %v10791_v51 = vcombine.low %v5767_v17, %v5783_v33  ;;  %v10824_v57 = vcombine.high %v5799_v45, %v5815_v46 }
 0x934   : > { %v10830_v18 = vcombine.high %v5802_v48, %v5818_v49  ;;  %v10829_v6 = vcombine.low %v5802_v48, %v5818_v49  ;;  %v6023_v49 = vld [vmem:[#allocation21 + $0xc18] sm:$0xff] }
 0x936   : > { %8946 = vmatpush1.bf16.msra.mxu1 %v11107_v61  ;;  %9069 = vmatpush1.bf16.msra.mxu0 %v11113_v63  ;;  %v5847_v61 = vld [vmem:[#allocation21 + $0x698] sm:$0xff]  ;;  %v5834_v63 = vld [vmem:[#allocation21 + $0x630] sm:$0xff] }
 0x937   : > { %8947 = vmatprep.subr.bf16.mxu1 %v11140_v0  ;;  %9070 = vmatprep.subr.bf16.mxu0 %v11146_v1  ;;  %v5850_v0 = vld [vmem:[#allocation21 + $0x6b0] sm:$0xff]  ;;  %v10823_v1 = vcombine.low %v5799_v45, %v5815_v46  ;;  %v10856_v36 = vcombine.high %v5831_v58, %v5847_v61 }
 0x938   : > { %v10862_v7 = vcombine.high %v5834_v63, %v5850_v0  ;;  %v10861_v16 = vcombine.low %v5834_v63, %v5850_v0  ;;  %v6055_v0 = vld [vmem:[#allocation21 + $0xd18] sm:$0xff] }
 0x93a   : > { %8948 = vmatpush1.bf16.msra.mxu1 %v11139_v9  ;;  %9071 = vmatpush1.bf16.msra.mxu0 %v11145_v27  ;;  %v5879_v9 = vld [vmem:[#allocation21 + $0x798] sm:$0xff]  ;;  %v5866_v27 = vld [vmem:[#allocation21 + $0x730] sm:$0xff] }
 0x93b   : > { %8999 = vmatprep.subr.bf16.mxu1 %v10664_v10  ;;  %9122 = vmatprep.subr.bf16.mxu0 %v10670_v14  ;;  %v5882_v10 = vld [vmem:[#allocation21 + $0x7b0] sm:$0xff]  ;;  %v10855_v14 = vcombine.low %v5831_v58, %v5847_v61  ;;  %v10888_v12 = vcombine.high %v5863_v8, %v5879_v9 }
 0x93c   : > { %v10894_v3 = vcombine.high %v5866_v27, %v5882_v10  ;;  %v10893_v15 = vcombine.low %v5866_v27, %v5882_v10  ;;  %v6087_v10 = vld [vmem:[#allocation21 + $0xe18] sm:$0xff] }
 0x93d   : > { %8950 = vmatmul.mubr.bf16.vlgmr.msra.gmra.mrb[8].mxu1 %v13847_v54  ;;  %9073 = vmatmul.mubr.bf16.vlgmr.msra.gmra.mrb[12].mxu0 %v13847_v54 }
 0x93e   : > { %9000 = vmatpush1.bf16.msra.mxu1 %v10663_v40  ;;  %9031 = vmatprep.mubr.bf16.mxu1 %v13845_v52  ;;  %v5911_v40 = vld [vmem:[#allocation21 + $0x898] sm:$0xff] }
 0x93f   : > { %9123 = vmatpush1.bf16.msra.mxu0 %v10669_v2  ;;  %9154 = vmatprep.mubr.bf16.mxu0 %v13845_v52  ;;  %v5898_v2 = vld [vmem:[#allocation21 + $0x830] sm:$0xff]  ;;  %v10920_v21 = vcombine.high %v5895_v38, %v5911_v40 }
 0x940   : > { %9001 = vmatprep.subr.bf16.mxu1 %v10696_v11  ;;  %9124 = vmatprep.subr.bf16.mxu0 %v10702_v41  ;;  %v5914_v11 = vld [vmem:[#allocation21 + $0x8b0] sm:$0xff]  ;;  %v10887_v41 = vcombine.low %v5863_v8, %v5879_v9 }
 0x941   : > { %v10926_v22 = vcombine.high %v5898_v2, %v5914_v11  ;;  %v10925_v13 = vcombine.low %v5898_v2, %v5914_v11  ;;  %v6119_v11 = vld [vmem:[#allocation21 + $0xf18] sm:$0xff] }
 0x942   : > { %9002 = vmatpush1.bf16.msra.mxu1 %v10695_v35  ;;  %v5943_v35 = vld [vmem:[#allocation21 + $0x998] sm:$0xff] }
 0x943   : > { %9125 = vmatpush1.bf16.msra.mxu0 %v10701_v24  ;;  %9003 = vmatprep.subr.bf16.mxu1 %v10728_v47  ;;  %v5930_v24 = vld [vmem:[#allocation21 + $0x930] sm:$0xff]  ;;  %v10952_v37 = vcombine.high %v5927_v23, %v5943_v35 }
 0x944   : > { %9126 = vmatprep.subr.bf16.mxu0 %v10734_v29  ;;  %v5946_v47 = vld [vmem:[#allocation21 + $0x9b0] sm:$0xff]  ;;  %v10919_v29 = vcombine.low %v5895_v38, %v5911_v40 }
 0x945   : > { %v10958_v19 = vcombine.high %v5930_v24, %v5946_v47  ;;  %v10957_v17 = vcombine.low %v5930_v24, %v5946_v47  ;;  %v5641_v47 = vld [vmem:[#allocation21 + $0x28] sm:$0xff] }
 0x946   : > { %9004 = vmatpush1.bf16.msra.mxu1 %v10727_v30  ;;  %v5975_v30 = vld [vmem:[#allocation21 + $0xa98] sm:$0xff] }
 0x947   : > { %9127 = vmatpush1.bf16.msra.mxu0 %v10733_v31  ;;  %9005 = vmatprep.subr.bf16.mxu1 %v10760_v28  ;;  %v5962_v31 = vld [vmem:[#allocation21 + $0xa30] sm:$0xff]  ;;  %v10984_v33 = vcombine.high %v5959_v20, %v5975_v30 }
 0x948   : > { %9128 = vmatprep.subr.bf16.mxu0 %v10766_v32  ;;  %v5978_v28 = vld [vmem:[#allocation21 + $0xab0] sm:$0xff]  ;;  %v10951_v32 = vcombine.low %v5927_v23, %v5943_v35 }
 0x949   : > { %v10990_v34 = vcombine.high %v5962_v31, %v5978_v28  ;;  %v10989_v45 = vcombine.low %v5962_v31, %v5978_v28  ;;  %v5673_v28 = vld [vmem:[#allocation21 + $0x128] sm:$0xff] }
 0x94a   : > { %9006 = vmatpush1.bf16.msra.mxu1 %v10759_v26  ;;  %v6007_v26 = vld [vmem:[#allocation21 + $0xb98] sm:$0xff] }
 0x94b   : > { %9129 = vmatpush1.bf16.msra.mxu0 %v10765_v39  ;;  %9007 = vmatprep.subr.bf16.mxu1 %v10792_v42  ;;  %v5994_v39 = vld [vmem:[#allocation21 + $0xb30] sm:$0xff]  ;;  %v11016_v46 = vcombine.high %v5991_v43, %v6007_v26 }
 0x94c   : > { %9130 = vmatprep.subr.bf16.mxu0 %v10798_v44  ;;  %v6010_v42 = vld [vmem:[#allocation21 + $0xbb0] sm:$0xff]  ;;  %v10983_v44 = vcombine.low %v5959_v20, %v5975_v30 }
 0x94d   : > { %v11022_v48 = vcombine.high %v5994_v39, %v6010_v42  ;;  %v11021_v58 = vcombine.low %v5994_v39, %v6010_v42  ;;  %v5705_v39 = vld [vmem:[#allocation21 + $0x228] sm:$0xff] }
 0x94e   : > { %9008 = vmatpush1.bf16.msra.mxu1 %v10791_v51  ;;  %v6039_v51 = vld [vmem:[#allocation21 + $0xc98] sm:$0xff]  ;;  %v5721_v42 = vld [vmem:[#allocation21 + $0x2a8] sm:$0xff] }
 0x94f   : > { %9131 = vmatpush1.bf16.msra.mxu0 %v10797_v55  ;;  %9009 = vmatprep.subr.bf16.mxu1 %v10824_v57  ;;  %v6026_v55 = vld [vmem:[#allocation21 + $0xc30] sm:$0xff]  ;;  %v11048_v61 = vcombine.high %v6023_v49, %v6039_v51 }
 0x950   : > { %9132 = vmatprep.subr.bf16.mxu0 %v10830_v18  ;;  %v6042_v57 = vld [vmem:[#allocation21 + $0xcb0] sm:$0xff]  ;;  %v11015_v18 = vcombine.low %v5991_v43, %v6007_v26 }
 0x951   : > { %v11054_v63 = vcombine.high %v6026_v55, %v6042_v57  ;;  %v11053_v8 = vcombine.low %v6026_v55, %v6042_v57  ;;  %v5737_v57 = vld [vmem:[#allocation21 + $0x328] sm:$0xff] }
 0x952   : > { %9010 = vmatpush1.bf16.msra.mxu1 %v10823_v1  ;;  %v6071_v1 = vld [vmem:[#allocation21 + $0xd98] sm:$0xff] }
 0x953   : > { %9133 = vmatpush1.bf16.msra.mxu0 %v10829_v6  ;;  %9011 = vmatprep.subr.bf16.mxu1 %v10856_v36  ;;  %v6058_v6 = vld [vmem:[#allocation21 + $0xd30] sm:$0xff]  ;;  %v11080_v9 = vcombine.high %v6055_v0, %v6071_v1 }
 0x954   : > { %9134 = vmatprep.subr.bf16.mxu0 %v10862_v7  ;;  %v6074_v36 = vld [vmem:[#allocation21 + $0xdb0] sm:$0xff]  ;;  %v11047_v7 = vcombine.low %v6023_v49, %v6039_v51  ;;  %v10732_v51 = vcombine.high %v5705_v39, %v5721_v42 }
 0x955   : > { %v11086_v27 = vcombine.high %v6058_v6, %v6074_v36  ;;  %v11085_v38 = vcombine.low %v6058_v6, %v6074_v36  ;;  %v5769_v36 = vld [vmem:[#allocation21 + $0x428] sm:$0xff] }
 0x956   : > { %9012 = vmatpush1.bf16.msra.mxu1 %v10855_v14  ;;  %v6103_v14 = vld [vmem:[#allocation21 + $0xe98] sm:$0xff] }
 0x957   : > { %9135 = vmatpush1.bf16.msra.mxu0 %v10861_v16  ;;  %9013 = vmatprep.subr.bf16.mxu1 %v10888_v12  ;;  %v6090_v16 = vld [vmem:[#allocation21 + $0xe30] sm:$0xff]  ;;  %v11112_v40 = vcombine.high %v6087_v10, %v6103_v14 }
 0x958   : > { %9136 = vmatprep.subr.bf16.mxu0 %v10894_v3  ;;  %v6106_v12 = vld [vmem:[#allocation21 + $0xeb0] sm:$0xff]  ;;  %v11079_v3 = vcombine.low %v6055_v0, %v6071_v1 }
 0x959   : > { %v11118_v2 = vcombine.high %v6090_v16, %v6106_v12  ;;  %v11117_v23 = vcombine.low %v6090_v16, %v6106_v12  ;;  %v5801_v12 = vld [vmem:[#allocation21 + $0x528] sm:$0xff] }
 0x95a   : > { %9014 = vmatpush1.bf16.msra.mxu1 %v10887_v41  ;;  %v6135_v41 = vld [vmem:[#allocation21 + $0xf98] sm:$0xff] }
 0x95b   : > { %9137 = vmatpush1.bf16.msra.mxu0 %v10893_v15  ;;  %9015 = vmatprep.subr.bf16.mxu1 %v10920_v21  ;;  %v6122_v15 = vld [vmem:[#allocation21 + $0xf30] sm:$0xff]  ;;  %v11144_v35 = vcombine.high %v6119_v11, %v6135_v41 }
 0x95c   : > { %9138 = vmatprep.subr.bf16.mxu0 %v10926_v22  ;;  %v6138_v21 = vld [vmem:[#allocation21 + $0xfb0] sm:$0xff]  ;;  %v11111_v22 = vcombine.low %v6087_v10, %v6103_v14 }
 0x95d   : > { %v11150_v24 = vcombine.high %v6122_v15, %v6138_v21  ;;  %v11149_v20 = vcombine.low %v6122_v15, %v6138_v21  ;;  %v5833_v21 = vld [vmem:[#allocation21 + $0x628] sm:$0xff] }
 0x95e   : > { %9016 = vmatpush1.bf16.msra.mxu1 %v10919_v29  ;;  %v5657_v29 = vld [vmem:[#allocation21 + $0xa8] sm:$0xff] }
 0x95f   : > { %9139 = vmatpush1.bf16.msra.mxu0 %v10925_v13  ;;  %9017 = vmatprep.subr.bf16.mxu1 %v10952_v37  ;;  %v5644_v13 = vld [vmem:[#allocation21 + $0x40] sm:$0xff]  ;;  %v10668_v30 = vcombine.high %v5641_v47, %v5657_v29 }
 0x960   : > { %9140 = vmatprep.subr.bf16.mxu0 %v10958_v19  ;;  %v5660_v37 = vld [vmem:[#allocation21 + $0xc0] sm:$0xff]  ;;  %v11143_v19 = vcombine.low %v6119_v11, %v6135_v41 }
 0x961   : > { %v10674_v31 = vcombine.high %v5644_v13, %v5660_v37  ;;  %v10673_v43 = vcombine.low %v5644_v13, %v5660_v37  ;;  %v5865_v37 = vld [vmem:[#allocation21 + $0x728] sm:$0xff] }
 0x962   : > { %9018 = vmatpush1.bf16.msra.mxu1 %v10951_v32  ;;  %v5689_v32 = vld [vmem:[#allocation21 + $0x1a8] sm:$0xff] }
 0x963   : > { %9141 = vmatpush1.bf16.msra.mxu0 %v10957_v17  ;;  %9019 = vmatprep.subr.bf16.mxu1 %v10984_v33  ;;  %v10667_v17 = vcombine.low %v5641_v47, %v5657_v29  ;;  %v5676_v33 = vld [vmem:[#allocation21 + $0x140] sm:$0xff]  ;;  %v10700_v26 = vcombine.high %v5673_v28, %v5689_v32 }
 0x964   : > { %9142 = vmatprep.subr.bf16.mxu0 %v10990_v34  ;;  %v5692_v34 = vld [vmem:[#allocation21 + $0x1c0] sm:$0xff] }
 0x965   : > { %v10705_v49 = vcombine.low %v5676_v33, %v5692_v34 }
 0x966   : > { %9020 = vmatpush1.bf16.msra.mxu1 %v10983_v44  ;;  %v10706_v44 = vcombine.high %v5676_v33, %v5692_v34  ;;  %v5897_v33 = vld [vmem:[#allocation21 + $0x828] sm:$0xff] }
 0x967   : > { %9143 = vmatpush1.bf16.msra.mxu0 %v10989_v45  ;;  %9021 = vmatprep.subr.bf16.mxu1 %v11016_v46  ;;  %v5708_v45 = vld [vmem:[#allocation21 + $0x240] sm:$0xff]  ;;  %v5913_v34 = vld [vmem:[#allocation21 + $0x8a8] sm:$0xff] }
 0x968   : > { %9144 = vmatprep.subr.bf16.mxu0 %v11022_v48  ;;  %v5724_v46 = vld [vmem:[#allocation21 + $0x2c0] sm:$0xff]  ;;  %v10699_v48 = vcombine.low %v5673_v28, %v5689_v32 }
 0x969   : > { %v10738_v55 = vcombine.high %v5708_v45, %v5724_v46  ;;  %v10737_v0 = vcombine.low %v5708_v45, %v5724_v46  ;;  %v5929_v46 = vld [vmem:[#allocation21 + $0x928] sm:$0xff] }
 0x96a   : > { %9022 = vmatpush1.bf16.msra.mxu1 %v11015_v18  ;;  %v5753_v18 = vld [vmem:[#allocation21 + $0x3a8] sm:$0xff] }
 0x96b   : > { %9145 = vmatpush1.bf16.msra.mxu0 %v11021_v58  ;;  %9023 = vmatprep.subr.bf16.mxu1 %v11048_v61  ;;  %v5740_v58 = vld [vmem:[#allocation21 + $0x340] sm:$0xff]  ;;  %v10764_v1 = vcombine.high %v5737_v57, %v5753_v18 }
 0x96c   : > { %9146 = vmatprep.subr.bf16.mxu0 %v11054_v63  ;;  %v5756_v61 = vld [vmem:[#allocation21 + $0x3c0] sm:$0xff]  ;;  %v10731_v63 = vcombine.low %v5705_v39, %v5721_v42 }
 0x96d   : > { %v10770_v6 = vcombine.high %v5740_v58, %v5756_v61  ;;  %v10769_v10 = vcombine.low %v5740_v58, %v5756_v61  ;;  %v5961_v61 = vld [vmem:[#allocation21 + $0xa28] sm:$0xff] }
 0x96e   : > { %9024 = vmatpush1.bf16.msra.mxu1 %v11047_v7  ;;  %v5785_v7 = vld [vmem:[#allocation21 + $0x4a8] sm:$0xff] }
 0x96f   : > { %9147 = vmatpush1.bf16.msra.mxu0 %v11053_v8  ;;  %9025 = vmatprep.subr.bf16.mxu1 %v11080_v9  ;;  %v5772_v8 = vld [vmem:[#allocation21 + $0x440] sm:$0xff]  ;;  %v10796_v14 = vcombine.high %v5769_v36, %v5785_v7 }
 0x970   : > { %9148 = vmatprep.subr.bf16.mxu0 %v11086_v27  ;;  %v5788_v9 = vld [vmem:[#allocation21 + $0x4c0] sm:$0xff]  ;;  %v10763_v27 = vcombine.low %v5737_v57, %v5753_v18 }
 0x971   : > { %v10802_v16 = vcombine.high %v5772_v8, %v5788_v9  ;;  %v10801_v11 = vcombine.low %v5772_v8, %v5788_v9  ;;  %v5993_v9 = vld [vmem:[#allocation21 + $0xb28] sm:$0xff] }
 0x972   : > { %9026 = vmatpush1.bf16.msra.mxu1 %v11079_v3  ;;  %v5817_v3 = vld [vmem:[#allocation21 + $0x5a8] sm:$0xff] }
 0x973   : > { %9149 = vmatpush1.bf16.msra.mxu0 %v11085_v38  ;;  %9027 = vmatprep.subr.bf16.mxu1 %v11112_v40  ;;  %v5804_v38 = vld [vmem:[#allocation21 + $0x540] sm:$0xff]  ;;  %v10828_v41 = vcombine.high %v5801_v12, %v5817_v3 }
 0x974   : > { %9150 = vmatprep.subr.bf16.mxu0 %v11118_v2  ;;  %v5820_v40 = vld [vmem:[#allocation21 + $0x5c0] sm:$0xff]  ;;  %v10795_v2 = vcombine.low %v5769_v36, %v5785_v7 }
 0x975   : > { %v10834_v15 = vcombine.high %v5804_v38, %v5820_v40  ;;  %v10833_v47 = vcombine.low %v5804_v38, %v5820_v40  ;;  %v6025_v40 = vld [vmem:[#allocation21 + $0xc28] sm:$0xff] }
 0x976   : > { %9028 = vmatpush1.bf16.msra.mxu1 %v11111_v22  ;;  %v5849_v22 = vld [vmem:[#allocation21 + $0x6a8] sm:$0xff] }
 0x977   : > { %9151 = vmatpush1.bf16.msra.mxu0 %v11117_v23  ;;  %9029 = vmatprep.subr.bf16.mxu1 %v11144_v35  ;;  %v5836_v23 = vld [vmem:[#allocation21 + $0x640] sm:$0xff]  ;;  %v10860_v29 = vcombine.high %v5833_v21, %v5849_v22 }
 0x978   : > { %9152 = vmatprep.subr.bf16.mxu0 %v11150_v24  ;;  %v5852_v35 = vld [vmem:[#allocation21 + $0x6c0] sm:$0xff]  ;;  %v10827_v24 = vcombine.low %v5801_v12, %v5817_v3 }
 0x979   : > { %v10866_v13 = vcombine.high %v5836_v23, %v5852_v35  ;;  %v10865_v28 = vcombine.low %v5836_v23, %v5852_v35  ;;  %v6057_v35 = vld [vmem:[#allocation21 + $0xd28] sm:$0xff] }
 0x97a   : > { %9030 = vmatpush1.bf16.msra.mxu1 %v11143_v19  ;;  %v5881_v19 = vld [vmem:[#allocation21 + $0x7a8] sm:$0xff] }
 0x97b   : > { %9153 = vmatpush1.bf16.msra.mxu0 %v11149_v20  ;;  %9081 = vmatprep.subr.bf16.mxu1 %v10668_v30  ;;  %v5868_v20 = vld [vmem:[#allocation21 + $0x740] sm:$0xff]  ;;  %v10892_v32 = vcombine.high %v5865_v37, %v5881_v19  ;;  %v10891_v39 = vcombine.low %v5865_v37, %v5881_v19 }
 0x97c   : > { %9204 = vmatprep.subr.bf16.mxu0 %v10674_v31  ;;  %v5884_v30 = vld [vmem:[#allocation21 + $0x7c0] sm:$0xff]  ;;  %v10859_v31 = vcombine.low %v5833_v21, %v5849_v22 }
 0x97d   : > { %9032 = vmatmul.mubr.bf16.vlgmr.msra.gmra.mrb[12].mxu1 %v13847_v54  ;;  %v10897_v42 = vcombine.low %v5868_v20, %v5884_v30 }
 0x97e   : > { %9155 = vmatmul.mubr.bf16.vlgmr.msra.gmra.mrb[16].mxu0 %v13847_v54  ;;  %9082 = vmatpush1.bf16.msra.mxu1 %v10667_v17  ;;  %v10898_v17 = vcombine.high %v5868_v20, %v5884_v30  ;;  %v6089_v30 = vld [vmem:[#allocation21 + $0xe28] sm:$0xff] }
 0x97f   : > { %9113 = vmatprep.mubr.bf16.mxu1 %v13845_v52  ;;  %9205 = vmatpush1.bf16.msra.mxu0 %v10673_v43  ;;  %v5900_v43 = vld [vmem:[#allocation21 + $0x840] sm:$0xff] }
 0x980   : > { %9236 = vmatprep.mubr.bf16.mxu0 %v13845_v52  ;;  %9083 = vmatprep.subr.bf16.mxu1 %v10700_v26  ;;  %v5916_v26 = vld [vmem:[#allocation21 + $0x8c0] sm:$0xff] }
 0x981   : > { %9206 = vmatprep.subr.bf16.mxu0 %v10706_v44  ;;  %v10924_v44 = vcombine.high %v5897_v33, %v5913_v34  ;;  %v10930_v45 = vcombine.high %v5900_v43, %v5916_v26  ;;  %v10929_v57 = vcombine.low %v5900_v43, %v5916_v26  ;;  %v6121_v26 = vld [vmem:[#allocation21 + $0xf28] sm:$0xff] }
 0x982   : > { %9084 = vmatpush1.bf16.msra.mxu1 %v10699_v48  ;;  %v5945_v48 = vld [vmem:[#allocation21 + $0x9a8] sm:$0xff] }
 0x983   : > { %9207 = vmatpush1.bf16.msra.mxu0 %v10705_v49  ;;  %9085 = vmatprep.subr.bf16.mxu1 %v10732_v51  ;;  %v5932_v49 = vld [vmem:[#allocation21 + $0x940] sm:$0xff]  ;;  %v10956_v18 = vcombine.high %v5929_v46, %v5945_v48 }
 0x984   : > { %9208 = vmatprep.subr.bf16.mxu0 %v10738_v55  ;;  %v5948_v51 = vld [vmem:[#allocation21 + $0x9c0] sm:$0xff]  ;;  %v10923_v55 = vcombine.low %v5897_v33, %v5913_v34 }
 0x985   : > { %v10962_v58 = vcombine.high %v5932_v49, %v5948_v51  ;;  %v10961_v36 = vcombine.low %v5932_v49, %v5948_v51  ;;  %v5643_v51 = vld [vmem:[#allocation21 + $0x38] sm:$0xff] }
 0x986   : > { %9086 = vmatpush1.bf16.msra.mxu1 %v10731_v63  ;;  %v5977_v63 = vld [vmem:[#allocation21 + $0xaa8] sm:$0xff] }
 0x987   : > { %9209 = vmatpush1.bf16.msra.mxu0 %v10737_v0  ;;  %9087 = vmatprep.subr.bf16.mxu1 %v10764_v1  ;;  %v5964_v0 = vld [vmem:[#allocation21 + $0xa40] sm:$0xff]  ;;  %v10988_v7 = vcombine.high %v5961_v61, %v5977_v63 }
 0x988   : > { %9210 = vmatprep.subr.bf16.mxu0 %v10770_v6  ;;  %v5980_v1 = vld [vmem:[#allocation21 + $0xac0] sm:$0xff]  ;;  %v10955_v6 = vcombine.low %v5929_v46, %v5945_v48 }
 0x989   : > { %v10994_v8 = vcombine.high %v5964_v0, %v5980_v1  ;;  %v10993_v12 = vcombine.low %v5964_v0, %v5980_v1  ;;  %v5675_v1 = vld [vmem:[#allocation21 + $0x138] sm:$0xff] }
 0x98a   : > { %9088 = vmatpush1.bf16.msra.mxu1 %v10763_v27  ;;  %v6009_v27 = vld [vmem:[#allocation21 + $0xba8] sm:$0xff] }
 0x98b   : > { %9211 = vmatpush1.bf16.msra.mxu0 %v10769_v10  ;;  %9089 = vmatprep.subr.bf16.mxu1 %v10796_v14  ;;  %v5996_v10 = vld [vmem:[#allocation21 + $0xb40] sm:$0xff]  ;;  %v11020_v3 = vcombine.high %v5993_v9, %v6009_v27 }
 0x98c   : > { %9212 = vmatprep.subr.bf16.mxu0 %v10802_v16  ;;  %v6012_v14 = vld [vmem:[#allocation21 + $0xbc0] sm:$0xff]  ;;  %v10987_v16 = vcombine.low %v5961_v61, %v5977_v63 }
 0x98d   : > { %v11026_v38 = vcombine.high %v5996_v10, %v6012_v14  ;;  %v11025_v21 = vcombine.low %v5996_v10, %v6012_v14  ;;  %v5707_v10 = vld [vmem:[#allocation21 + $0x238] sm:$0xff] }
 0x98e   : > { %9090 = vmatpush1.bf16.msra.mxu1 %v10795_v2  ;;  %v6041_v2 = vld [vmem:[#allocation21 + $0xca8] sm:$0xff]  ;;  %v5723_v14 = vld [vmem:[#allocation21 + $0x2b8] sm:$0xff] }
 0x98f   : > { %9213 = vmatpush1.bf16.msra.mxu0 %v10801_v11  ;;  %9091 = vmatprep.subr.bf16.mxu1 %v10828_v41  ;;  %v6028_v11 = vld [vmem:[#allocation21 + $0xc40] sm:$0xff]  ;;  %v11052_v22 = vcombine.high %v6025_v40, %v6041_v2 }
 0x990   : > { %9214 = vmatprep.subr.bf16.mxu0 %v10834_v15  ;;  %v6044_v41 = vld [vmem:[#allocation21 + $0xcc0] sm:$0xff]  ;;  %v11019_v15 = vcombine.low %v5993_v9, %v6009_v27 }
 0x991   : > { %v11058_v23 = vcombine.high %v6028_v11, %v6044_v41  ;;  %v11057_v37 = vcombine.low %v6028_v11, %v6044_v41  ;;  %v5739_v41 = vld [vmem:[#allocation21 + $0x338] sm:$0xff] }
 0x992   : > { %9092 = vmatpush1.bf16.msra.mxu1 %v10827_v24  ;;  %v6073_v24 = vld [vmem:[#allocation21 + $0xda8] sm:$0xff] }
 0x993   : > { %9215 = vmatpush1.bf16.msra.mxu0 %v10833_v47  ;;  %9093 = vmatprep.subr.bf16.mxu1 %v10860_v29  ;;  %v6060_v47 = vld [vmem:[#allocation21 + $0xd40] sm:$0xff]  ;;  %v11084_v19 = vcombine.high %v6057_v35, %v6073_v24 }
 0x994   : > { %9216 = vmatprep.subr.bf16.mxu0 %v10866_v13  ;;  %v6076_v29 = vld [vmem:[#allocation21 + $0xdc0] sm:$0xff]  ;;  %v11051_v13 = vcombine.low %v6025_v40, %v6041_v2  ;;  %v10736_v2 = vcombine.high %v5707_v10, %v5723_v14 }
 0x995   : > { %v11090_v20 = vcombine.high %v6060_v47, %v6076_v29  ;;  %v11089_v33 = vcombine.low %v6060_v47, %v6076_v29  ;;  %v5771_v29 = vld [vmem:[#allocation21 + $0x438] sm:$0xff] }
 0x996   : > { %9094 = vmatpush1.bf16.msra.mxu1 %v10859_v31  ;;  %v6105_v31 = vld [vmem:[#allocation21 + $0xea8] sm:$0xff] }
 0x997   : > { %9217 = vmatpush1.bf16.msra.mxu0 %v10865_v28  ;;  %9095 = vmatprep.subr.bf16.mxu1 %v10892_v32  ;;  %v6092_v28 = vld [vmem:[#allocation21 + $0xe40] sm:$0xff]  ;;  %v11116_v34 = vcombine.high %v6089_v30, %v6105_v31 }
 0x998   : > { %9218 = vmatprep.subr.bf16.mxu0 %v10898_v17  ;;  %v6108_v32 = vld [vmem:[#allocation21 + $0xec0] sm:$0xff]  ;;  %v11083_v17 = vcombine.low %v6057_v35, %v6073_v24 }
 0x999   : > { %v11122_v43 = vcombine.high %v6092_v28, %v6108_v32  ;;  %v11121_v46 = vcombine.low %v6092_v28, %v6108_v32  ;;  %v5803_v32 = vld [vmem:[#allocation21 + $0x538] sm:$0xff] }
 0x99a   : > { %9096 = vmatpush1.bf16.msra.mxu1 %v10891_v39  ;;  %v6137_v39 = vld [vmem:[#allocation21 + $0xfa8] sm:$0xff] }
 0x99b   : > { %9219 = vmatpush1.bf16.msra.mxu0 %v10897_v42  ;;  %9097 = vmatprep.subr.bf16.mxu1 %v10924_v44  ;;  %v6124_v42 = vld [vmem:[#allocation21 + $0xf40] sm:$0xff]  ;;  %v11148_v48 = vcombine.high %v6121_v26, %v6137_v39 }
 0x99c   : > { %9220 = vmatprep.subr.bf16.mxu0 %v10930_v45  ;;  %v6140_v44 = vld [vmem:[#allocation21 + $0xfc0] sm:$0xff]  ;;  %v11115_v45 = vcombine.low %v6089_v30, %v6105_v31 }
 0x99d   : > { %v11154_v49 = vcombine.high %v6124_v42, %v6140_v44  ;;  %v11153_v61 = vcombine.low %v6124_v42, %v6140_v44  ;;  %v13869_v42 = vld [vmem:[#allocation24] sm:$0xff] }
 0x99e   : > { %9098 = vmatpush1.bf16.msra.mxu1 %v10923_v55  ;;  %v5659_v55 = vld [vmem:[#allocation21 + $0xb8] sm:$0xff] }
 0x99f   : > { %9221 = vmatpush1.bf16.msra.mxu0 %v10929_v57  ;;  %9099 = vmatprep.subr.bf16.mxu1 %v10956_v18  ;;  %v5646_v57 = vld [vmem:[#allocation21 + $0x50] sm:$0xff]  ;;  %v10672_v63 = vcombine.high %v5643_v51, %v5659_v55 }
 0x9a0   : > { %9222 = vmatprep.subr.bf16.mxu0 %v10962_v58  ;;  %v5662_v18 = vld [vmem:[#allocation21 + $0xd0] sm:$0xff]  ;;  %v11147_v58 = vcombine.low %v6121_v26, %v6137_v39  ;;  %v13867_v26 = vld [vmem:[#allocation23] sm:$0xff] }
 0x9a1   : > { %v10678_v0 = vcombine.high %v5646_v57, %v5662_v18  ;;  %v10677_v9 = vcombine.low %v5646_v57, %v5662_v18  ;;  %v5854_v57 = vld [vmem:[#allocation21 + $0x6d0] sm:$0xff]  ;;  %v9543_v18 = vrot.slane %v13869_v42, %v13461_v56 }
 0x9a2   : > { %9100 = vmatpush1.bf16.msra.mxu1 %v10955_v6  ;;  %v5691_v6 = vld [vmem:[#allocation21 + $0x1b8] sm:$0xff] }
 0x9a3   : > { %9223 = vmatpush1.bf16.msra.mxu0 %v10961_v36  ;;  %9101 = vmatprep.subr.bf16.mxu1 %v10988_v7  ;;  %v10671_v36 = vcombine.low %v5643_v51, %v5659_v55  ;;  %v5678_v7 = vld [vmem:[#allocation21 + $0x150] sm:$0xff]  ;;  %v10704_v27 = vcombine.high %v5675_v1, %v5691_v6  ;;  %v8735_v51 = vrot.slane %v13867_v26, %v13621_v50 }
 0x9a4   : > { %9224 = vmatprep.subr.bf16.mxu0 %v10994_v8  ;;  %v5694_v8 = vld [vmem:[#allocation21 + $0x1d0] sm:$0xff] }
 0x9a5   : > { %v10709_v40 = vcombine.low %v5678_v7, %v5694_v8  ;;  %v5838_v55 = vld [vmem:[#allocation21 + $0x650] sm:$0xff] }
 0x9a6   : > { %9102 = vmatpush1.bf16.msra.mxu1 %v10987_v16  ;;  %v10710_v16 = vcombine.high %v5678_v7, %v5694_v8  ;;  %v9547_v8 = vrot.slane %v13869_v42, %v13467_v59 }
 0x9a7   : > { %9225 = vmatpush1.bf16.msra.mxu0 %v10993_v12  ;;  %9103 = vmatprep.subr.bf16.mxu1 %v11020_v3  ;;  %v5710_v12 = vld [vmem:[#allocation21 + $0x250] sm:$0xff] }
 0x9a8   : > { %9226 = vmatprep.subr.bf16.mxu0 %v11026_v38  ;;  %v5726_v3 = vld [vmem:[#allocation21 + $0x2d0] sm:$0xff]  ;;  %v10703_v38 = vcombine.low %v5675_v1, %v5691_v6 }
 0x9a9   : > { %v10742_v11 = vcombine.high %v5710_v12, %v5726_v3  ;;  %v10741_v35 = vcombine.low %v5710_v12, %v5726_v3 }
 0x9aa   : > { %9104 = vmatpush1.bf16.msra.mxu1 %v11019_v15  ;;  %v5755_v15 = vld [vmem:[#allocation21 + $0x3b8] sm:$0xff] }
 0x9ab   : > { %9227 = vmatpush1.bf16.msra.mxu0 %v11025_v21  ;;  %9105 = vmatprep.subr.bf16.mxu1 %v11052_v22  ;;  %v5742_v21 = vld [vmem:[#allocation21 + $0x350] sm:$0xff]  ;;  %v10768_v24 = vcombine.high %v5739_v41, %v5755_v15 }
 0x9ac   : > { %9228 = vmatprep.subr.bf16.mxu0 %v11058_v23  ;;  %v5758_v22 = vld [vmem:[#allocation21 + $0x3d0] sm:$0xff]  ;;  %v10735_v23 = vcombine.low %v5707_v10, %v5723_v14  ;;  %v5867_v10 = vld [vmem:[#allocation21 + $0x738] sm:$0xff] }
 0x9ad   : > { %v10774_v47 = vcombine.high %v5742_v21, %v5758_v22  ;;  %v10773_v30 = vcombine.low %v5742_v21, %v5758_v22  ;;  %v5883_v14 = vld [vmem:[#allocation21 + $0x7b8] sm:$0xff] }
 0x9ae   : > { %9106 = vmatpush1.bf16.msra.mxu1 %v11051_v13  ;;  %v5787_v13 = vld [vmem:[#allocation21 + $0x4b8] sm:$0xff] }
 0x9af   : > { %9229 = vmatpush1.bf16.msra.mxu0 %v11057_v37  ;;  %9107 = vmatprep.subr.bf16.mxu1 %v11084_v19  ;;  %v5774_v37 = vld [vmem:[#allocation21 + $0x450] sm:$0xff]  ;;  %v10800_v31 = vcombine.high %v5771_v29, %v5787_v13 }
 0x9b0   : > { %9230 = vmatprep.subr.bf16.mxu0 %v11090_v20  ;;  %v5790_v19 = vld [vmem:[#allocation21 + $0x4d0] sm:$0xff]  ;;  %v10767_v20 = vcombine.low %v5739_v41, %v5755_v15 }
 0x9b1   : > { %v10806_v28 = vcombine.high %v5774_v37, %v5790_v19  ;;  %v10805_v39 = vcombine.low %v5774_v37, %v5790_v19 }
 0x9b2   : > { %9108 = vmatpush1.bf16.msra.mxu1 %v11083_v17  ;;  %v5819_v17 = vld [vmem:[#allocation21 + $0x5b8] sm:$0xff] }
 0x9b3   : > { %9231 = vmatpush1.bf16.msra.mxu0 %v11089_v33  ;;  %9109 = vmatprep.subr.bf16.mxu1 %v11116_v34  ;;  %v5806_v33 = vld [vmem:[#allocation21 + $0x550] sm:$0xff]  ;;  %v10832_v44 = vcombine.high %v5803_v32, %v5819_v17 }
 0x9b4   : > { %9232 = vmatprep.subr.bf16.mxu0 %v11122_v43  ;;  %v5822_v34 = vld [vmem:[#allocation21 + $0x5d0] sm:$0xff]  ;;  %v10799_v43 = vcombine.low %v5771_v29, %v5787_v13  ;;  %v10896_v13 = vcombine.high %v5867_v10, %v5883_v14 }
 0x9b5   : > { %v10837_v1 = vcombine.low %v5806_v33, %v5822_v34 }
 0x9b6   : > { %9110 = vmatpush1.bf16.msra.mxu1 %v11115_v45  ;;  %v10838_v45 = vcombine.high %v5806_v33, %v5822_v34  ;;  %v10895_v34 = vcombine.low %v5867_v10, %v5883_v14  ;;  %v6014_v10 = vld [vmem:[#allocation21 + $0xbd0] sm:$0xff] }
 0x9b7   : > { %9233 = vmatpush1.bf16.msra.mxu0 %v11121_v46  ;;  %9111 = vmatprep.subr.bf16.mxu1 %v11148_v48  ;;  %v5835_v46 = vld [vmem:[#allocation21 + $0x638] sm:$0xff] }
 0x9b8   : > { %9234 = vmatprep.subr.bf16.mxu0 %v11154_v49  ;;  %v5851_v48 = vld [vmem:[#allocation21 + $0x6b8] sm:$0xff]  ;;  %v8719_v49 = vrot.slane %v13867_v26, %v13461_v56 }
 0x9b9   : > { %v10864_v6 = vcombine.high %v5835_v46, %v5851_v48  ;;  %v10863_v22 = vcombine.low %v5835_v46, %v5851_v48  ;;  %v5947_v46 = vld [vmem:[#allocation21 + $0x9b8] sm:$0xff]  ;;  %v5934_v48 = vld [vmem:[#allocation21 + $0x950] sm:$0xff] }
 0x9ba   : > { %9112 = vmatpush1.bf16.msra.mxu1 %v11147_v58  ;;  %v10831_v58 = vcombine.low %v5803_v32, %v5819_v17  ;;  %v5918_v32 = vld [vmem:[#allocation21 + $0x8d0] sm:$0xff] }
 0x9bb   : > { %9235 = vmatpush1.bf16.msra.mxu0 %v11153_v61  ;;  %9163 = vmatprep.subr.bf16.mxu1 %v10672_v63  ;;  %v8723_v61 = vrot.slane %v13867_v26, %v13467_v59  ;;  %v8739_v63 = vrot.slane %v13867_v26, %v13629_v4 }
 0x9bc   : > { %9286 = vmatprep.subr.bf16.mxu0 %v10678_v0  ;;  %v9559_v0 = vrot.slane %v13869_v42, %v13621_v50 }
 0x9bd   : > { %9114 = vmatmul.mubr.bf16.vlgmr.msra.gmra.mrb[16].mxu1 %v13847_v54 }
 0x9be   : > { %9237 = vmatmul.mubr.bf16.vlgmr.msra.gmra.mrb[20].mxu0 %v13847_v54  ;;  %9164 = vmatpush1.bf16.msra.mxu1 %v10671_v36 }
 0x9bf   : > { %9195 = vmatprep.mubr.bf16.mxu1 %v13845_v52  ;;  %9287 = vmatpush1.bf16.msra.mxu0 %v10677_v9  ;;  %v9563_v9 = vrot.slane %v13869_v42, %v13629_v4 }
 0x9c0   : > { %9318 = vmatprep.mubr.bf16.mxu0 %v13845_v52  ;;  %9165 = vmatprep.subr.bf16.mxu1 %v10704_v27  ;;  %v10870_v27 = vcombine.high %v5838_v55, %v5854_v57 }
 0x9c1   : > { %9288 = vmatprep.subr.bf16.mxu0 %v10710_v16 }
 0x9c2   : > { %9166 = vmatpush1.bf16.msra.mxu1 %v10703_v38 }
 0x9c3   : > { %9289 = vmatpush1.bf16.msra.mxu0 %v10709_v40  ;;  %9167 = vmatprep.subr.bf16.mxu1 %v10736_v2  ;;  %v5870_v40 = vld [vmem:[#allocation21 + $0x750] sm:$0xff] }
 0x9c4   : > { %9290 = vmatprep.subr.bf16.mxu0 %v10742_v11  ;;  %v5886_v2 = vld [vmem:[#allocation21 + $0x7d0] sm:$0xff] }
 0x9c6   : > { %9168 = vmatpush1.bf16.msra.mxu1 %v10735_v23  ;;  %v10869_v23 = vcombine.low %v5838_v55, %v5854_v57 }
 0x9c7   : > { %9291 = vmatpush1.bf16.msra.mxu0 %v10741_v35  ;;  %9169 = vmatprep.subr.bf16.mxu1 %v10768_v24 }
 0x9c8   : > { %9292 = vmatprep.subr.bf16.mxu0 %v10774_v47 }
 0x9ca   : > { %9170 = vmatpush1.bf16.msra.mxu1 %v10767_v20  ;;  %v10902_v20 = vcombine.high %v5870_v40, %v5886_v2 }
 0x9cb   : > { %9293 = vmatpush1.bf16.msra.mxu0 %v10773_v30  ;;  %9171 = vmatprep.subr.bf16.mxu1 %v10800_v31  ;;  %v5899_v30 = vld [vmem:[#allocation21 + $0x838] sm:$0xff] }
 0x9cc   : > { %9294 = vmatprep.subr.bf16.mxu0 %v10806_v28  ;;  %v5915_v31 = vld [vmem:[#allocation21 + $0x8b8] sm:$0xff]  ;;  %v5902_v28 = vld [vmem:[#allocation21 + $0x850] sm:$0xff] }
 0x9cd   : > { %v10933_v55 = vcombine.low %v5902_v28, %v5918_v32 }
 0x9ce   : > { %9172 = vmatpush1.bf16.msra.mxu1 %v10799_v43  ;;  %v10901_v43 = vcombine.low %v5870_v40, %v5886_v2  ;;  %v6043_v40 = vld [vmem:[#allocation21 + $0xcb8] sm:$0xff]  ;;  %v6030_v2 = vld [vmem:[#allocation21 + $0xc50] sm:$0xff] }
 0x9cf   : > { %9295 = vmatpush1.bf16.msra.mxu0 %v10805_v39  ;;  %9173 = vmatprep.subr.bf16.mxu1 %v10832_v44  ;;  %v10928_v39 = vcombine.high %v5899_v30, %v5915_v31  ;;  %v10934_v44 = vcombine.high %v5902_v28, %v5918_v32  ;;  %v6091_v32 = vld [vmem:[#allocation21 + $0xe38] sm:$0xff] }
 0x9d0   : > { %v8910_v36 = vpop.f32.mrb[4].mxu1  ;;  %v8992_v7 = vpop.f32.mrb[8].mxu0  ;;  %9296 = vmatprep.subr.bf16.mxu0 %v10838_v45  ;;  %v5931_v45 = vld [vmem:[#allocation21 + $0x938] sm:$0xff] }
 0x9d1   : > { %v8911_v16 = vadd.f32 %v8910_v36, %v8719_v49  ;;  %v8993_v12 = vadd.f32 %v8992_v7, %v8735_v51  ;;  %v8912_v3 = vpop.f32.mrb[5].mxu1  ;;  %v8994_v38 = vpop.f32.mrb[9].mxu0  ;;  %v5950_v49 = vld [vmem:[#allocation21 + $0x9d0] sm:$0xff]  ;;  %v10927_v51 = vcombine.low %v5899_v30, %v5915_v31  ;;  %v10960_v57 = vcombine.high %v5931_v45, %v5947_v46 }
 0x9d2   : > { %v8913_v11 = vadd.f32 %v8912_v3, %v8723_v61  ;;  %v8995_v41 = vadd.f32 %v8994_v38, %v8739_v63  ;;  %9174 = vmatpush1.bf16.msra.mxu1 %v10831_v58  ;;  %v8914_v15 = vpop.f32.mrb[6].mxu1  ;;  %v8996_v21 = vpop.f32.mrb[10].mxu0  ;;  %v5963_v58 = vld [vmem:[#allocation21 + $0xa38] sm:$0xff]  ;;  %v5966_v63 = vld [vmem:[#allocation21 + $0xa50] sm:$0xff] }
 0x9d3   : > { %v13887_v35 = vadd.f32 %v9543_v18, %v8911_v16  ;;  %v13889_v24 = vadd.f32 %v9559_v0, %v8993_v12  ;;  %9297 = vmatpush1.bf16.msra.mxu0 %v10837_v1  ;;  %v8915_v47 = vpop.f32.mrb[7].mxu1  ;;  %v8997_v29 = vpop.f32.mrb[11].mxu0  ;;  %9175 = vmatprep.subr.bf16.mxu1 %v10864_v6  ;;  %v10966_v18 = vcombine.high %v5934_v48, %v5950_v49  ;;  %v5979_v61 = vld [vmem:[#allocation21 + $0xab8] sm:$0xff]  ;;  %v5982_v0 = vld [vmem:[#allocation21 + $0xad0] sm:$0xff] }
 0x9d4   : > { %v13891_v37 = vadd.f32 %v9547_v8, %v8913_v11  ;;  %v13893_v19 = vadd.f32 %v9563_v9, %v8995_v41  ;;  %9298 = vmatprep.subr.bf16.mxu0 %v10870_v27  ;;  %v10959_v1 = vcombine.low %v5931_v45, %v5947_v46  ;;  %v10965_v6 = vcombine.low %v5934_v48, %v5950_v49  ;;  %v5995_v8 = vld [vmem:[#allocation21 + $0xb38] sm:$0xff]  ;;  %v5998_v27 = vld [vmem:[#allocation21 + $0xb50] sm:$0xff] }
 0x9d5   : > { %v10992_v36 = vcombine.high %v5963_v58, %v5979_v61  ;;  %v10998_v7 = vcombine.high %v5966_v63, %v5982_v0  ;;  %v6011_v9 = vld [vmem:[#allocation21 + $0xbb8] sm:$0xff]  ;;  %v10991_v14 = vcombine.low %v5963_v58, %v5979_v61  ;;  %v10997_v16 = vcombine.low %v5966_v63, %v5982_v0  ;;  %v6046_v11 = vld [vmem:[#allocation21 + $0xcd0] sm:$0xff]  ;;  %v5645_v0 = vld [vmem:[#allocation21 + $0x48] sm:$0xff] }
 0x9d6   : > { %v9764_v17 = vcombine.low %v13887_v35, %v13891_v37  ;;  %v9766_v33 = vcombine.low %v13889_v24, %v13893_v19  ;;  %9176 = vmatpush1.bf16.msra.mxu1 %v10863_v22  ;;  %v11024_v12 = vcombine.high %v5995_v8, %v6011_v9  ;;  %v11030_v3 = vcombine.high %v5998_v27, %v6014_v10  ;;  %v6027_v38 = vld [vmem:[#allocation21 + $0xc38] sm:$0xff]  ;;  %v6062_v29 = vld [vmem:[#allocation21 + $0xd50] sm:$0xff] }
 0x9d7   : > { %9299 = vmatpush1.bf16.msra.mxu0 %v10869_v23  ;;  %9177 = vmatprep.subr.bf16.mxu1 %v10896_v13  ;;  %v11023_v41 = vcombine.low %v5995_v8, %v6011_v9  ;;  %v11029_v15 = vcombine.low %v5998_v27, %v6014_v10  ;;  %v11056_v21 = vcombine.high %v6027_v38, %v6043_v40  ;;  %v6059_v23 = vld [vmem:[#allocation21 + $0xd38] sm:$0xff]  ;;  %v6078_v13 = vld [vmem:[#allocation21 + $0xdd0] sm:$0xff]  ;;  %v5677_v10 = vld [vmem:[#allocation21 + $0x148] sm:$0xff] }
 0x9d8   : > { %9300 = vmatprep.subr.bf16.mxu0 %v10902_v20  ;;  %v11062_v22 = vcombine.high %v6030_v2, %v6046_v11  ;;  %v6075_v47 = vld [vmem:[#allocation21 + $0xdb8] sm:$0xff]  ;;  %v11055_v20 = vcombine.low %v6027_v38, %v6043_v40  ;;  %v11061_v30 = vcombine.low %v6030_v2, %v6046_v11  ;;  %v11094_v28 = vcombine.high %v6062_v29, %v6078_v13  ;;  %v5709_v2 = vld [vmem:[#allocation21 + $0x248] sm:$0xff] }
 0x9d9   : > { %v11088_v31 = vcombine.high %v6059_v23, %v6075_v47  ;;  %v11093_v45 = vcombine.low %v6062_v29, %v6078_v13  ;;  %v6123_v49 = vld [vmem:[#allocation21 + $0xf38] sm:$0xff]  ;;  %v5725_v11 = vld [vmem:[#allocation21 + $0x2c8] sm:$0xff] }
 0x9da   : > { %9178 = vmatpush1.bf16.msra.mxu1 %v10895_v34  ;;  %v6107_v34 = vld [vmem:[#allocation21 + $0xeb8] sm:$0xff]  ;;  %v5741_v13 = vld [vmem:[#allocation21 + $0x348] sm:$0xff] }
 0x9db   : > { %9301 = vmatpush1.bf16.msra.mxu0 %v10901_v43  ;;  %9179 = vmatprep.subr.bf16.mxu1 %v10928_v39  ;;  %v6094_v43 = vld [vmem:[#allocation21 + $0xe50] sm:$0xff]  ;;  %v11120_v46 = vcombine.high %v6091_v32, %v6107_v34 }
 0x9dc   : > { %9302 = vmatprep.subr.bf16.mxu0 %v10934_v44  ;;  %v6110_v39 = vld [vmem:[#allocation21 + $0xed0] sm:$0xff]  ;;  %v11087_v44 = vcombine.low %v6059_v23, %v6075_v47  ;;  %v10740_v47 = vcombine.high %v5709_v2, %v5725_v11 }
 0x9dd   : > { %v11126_v48 = vcombine.high %v6094_v43, %v6110_v39  ;;  %v11125_v58 = vcombine.low %v6094_v43, %v6110_v39  ;;  %v5773_v39 = vld [vmem:[#allocation21 + $0x448] sm:$0xff] }
 0x9de   : > { %9180 = vmatpush1.bf16.msra.mxu1 %v10927_v51  ;;  %v6139_v51 = vld [vmem:[#allocation21 + $0xfb8] sm:$0xff] }
 0x9df   : > { %9303 = vmatpush1.bf16.msra.mxu0 %v10933_v55  ;;  %9181 = vmatprep.subr.bf16.mxu1 %v10960_v57  ;;  %v6126_v55 = vld [vmem:[#allocation21 + $0xf50] sm:$0xff]  ;;  %v11152_v61 = vcombine.high %v6123_v49, %v6139_v51 }
 0x9e0   : > { %9304 = vmatprep.subr.bf16.mxu0 %v10966_v18  ;;  %v6142_v57 = vld [vmem:[#allocation21 + $0xfd0] sm:$0xff]  ;;  %v11119_v18 = vcombine.low %v6091_v32, %v6107_v34 }
 0x9e1   : > { %v11158_v63 = vcombine.high %v6126_v55, %v6142_v57  ;;  %v11157_v8 = vcombine.low %v6126_v55, %v6142_v57  ;;  %v5805_v57 = vld [vmem:[#allocation21 + $0x548] sm:$0xff] }
 0x9e2   : > { %9182 = vmatpush1.bf16.msra.mxu1 %v10959_v1  ;;  %v5661_v1 = vld [vmem:[#allocation21 + $0xc8] sm:$0xff] }
 0x9e3   : > { %9305 = vmatpush1.bf16.msra.mxu0 %v10965_v6  ;;  %9183 = vmatprep.subr.bf16.mxu1 %v10992_v36  ;;  %v5648_v6 = vld [vmem:[#allocation21 + $0x60] sm:$0xff]  ;;  %v10676_v9 = vcombine.high %v5645_v0, %v5661_v1 }
 0x9e4   : > { %9306 = vmatprep.subr.bf16.mxu0 %v10998_v7  ;;  %v5664_v36 = vld [vmem:[#allocation21 + $0xe0] sm:$0xff]  ;;  %v11151_v7 = vcombine.low %v6123_v49, %v6139_v51 }
 0x9e5   : > { %v10682_v27 = vcombine.high %v5648_v6, %v5664_v36  ;;  %v10681_v38 = vcombine.low %v5648_v6, %v5664_v36  ;;  %v12639_v36 = vmov 1966171168  }
 0x9e6   : > { %9184 = vmatpush1.bf16.msra.mxu1 %v10991_v14  ;;  %v5693_v14 = vld [vmem:[#allocation21 + $0x1c8] sm:$0xff] }
 0x9e7   : > { %9307 = vmatpush1.bf16.msra.mxu0 %v10997_v16  ;;  %9185 = vmatprep.subr.bf16.mxu1 %v11024_v12  ;;  %v10675_v16 = vcombine.low %v5645_v0, %v5661_v1  ;;  %v5680_v12 = vld [vmem:[#allocation21 + $0x160] sm:$0xff]  ;;  %v10708_v40 = vcombine.high %v5677_v10, %v5693_v14  ;;  %v13903_v0 = vld [vmem:[#allocation23 + $0x8] sm:$0xff] }
 0x9e8   : > { %9308 = vmatprep.subr.bf16.mxu0 %v11030_v3  ;;  %v5696_v3 = vld [vmem:[#allocation21 + $0x1e0] sm:$0xff] }
 0x9e9   : > { %v10713_v23 = vcombine.low %v5680_v12, %v5696_v3 }
 0x9ea   : > { %9186 = vmatpush1.bf16.msra.mxu1 %v11023_v41  ;;  %v10714_v41 = vcombine.high %v5680_v12, %v5696_v3  ;;  %v5840_v12 = vld [vmem:[#allocation21 + $0x660] sm:$0xff] }
 0x9eb   : > { %9309 = vmatpush1.bf16.msra.mxu0 %v11029_v15  ;;  %9187 = vmatprep.subr.bf16.mxu1 %v11056_v21  ;;  %v5712_v15 = vld [vmem:[#allocation21 + $0x260] sm:$0xff] }
 0x9ec   : > { %9310 = vmatprep.subr.bf16.mxu0 %v11062_v22  ;;  %v5728_v21 = vld [vmem:[#allocation21 + $0x2e0] sm:$0xff]  ;;  %v10707_v22 = vcombine.low %v5677_v10, %v5693_v14  ;;  %v5853_v10 = vld [vmem:[#allocation21 + $0x6c8] sm:$0xff]  ;;  %v8727_v14 = vrot.slane %v13867_v26, %v13464_v25 }
 0x9ed   : > { %v10746_v29 = vcombine.high %v5712_v15, %v5728_v21  ;;  %v10745_v32 = vcombine.low %v5712_v15, %v5728_v21  ;;  %v5856_v3 = vld [vmem:[#allocation21 + $0x6e0] sm:$0xff] }
 0x9ee   : > { %9188 = vmatpush1.bf16.msra.mxu1 %v11055_v20  ;;  %v5757_v20 = vld [vmem:[#allocation21 + $0x3c8] sm:$0xff] }
 0x9ef   : > { %9311 = vmatpush1.bf16.msra.mxu0 %v11061_v30  ;;  %9189 = vmatprep.subr.bf16.mxu1 %v11088_v31  ;;  %v5744_v30 = vld [vmem:[#allocation21 + $0x360] sm:$0xff]  ;;  %v10772_v34 = vcombine.high %v5741_v13, %v5757_v20 }
 0x9f0   : > { %9312 = vmatprep.subr.bf16.mxu0 %v11094_v28  ;;  %v5760_v31 = vld [vmem:[#allocation21 + $0x3e0] sm:$0xff]  ;;  %v10739_v28 = vcombine.low %v5709_v2, %v5725_v11  ;;  %v8755_v2 = vrot.slane %v13903_v0, %v13467_v59 }
 0x9f1   : > { %v10778_v43 = vcombine.high %v5744_v30, %v5760_v31  ;;  %v10777_v49 = vcombine.low %v5744_v30, %v5760_v31  ;;  %v5869_v30 = vld [vmem:[#allocation21 + $0x748] sm:$0xff] }
 0x9f2   : > { %9190 = vmatpush1.bf16.msra.mxu1 %v11087_v44  ;;  %v5789_v44 = vld [vmem:[#allocation21 + $0x4c8] sm:$0xff] }
 0x9f3   : > { %9313 = vmatpush1.bf16.msra.mxu0 %v11093_v45  ;;  %9191 = vmatprep.subr.bf16.mxu1 %v11120_v46  ;;  %v5776_v45 = vld [vmem:[#allocation21 + $0x460] sm:$0xff]  ;;  %v10804_v51 = vcombine.high %v5773_v39, %v5789_v44  ;;  %v5885_v31 = vld [vmem:[#allocation21 + $0x7c8] sm:$0xff] }
 0x9f4   : > { %9314 = vmatprep.subr.bf16.mxu0 %v11126_v48  ;;  %v5792_v46 = vld [vmem:[#allocation21 + $0x4e0] sm:$0xff]  ;;  %v10771_v48 = vcombine.low %v5741_v13, %v5757_v20  ;;  %v10874_v20 = vcombine.high %v5840_v12, %v5856_v3 }
 0x9f5   : > { %v10810_v55 = vcombine.high %v5776_v45, %v5792_v46  ;;  %v10809_v1 = vcombine.low %v5776_v45, %v5792_v46 }
 0x9f6   : > { %9192 = vmatpush1.bf16.msra.mxu1 %v11119_v18  ;;  %v5821_v18 = vld [vmem:[#allocation21 + $0x5c8] sm:$0xff] }
 0x9f7   : > { %9315 = vmatpush1.bf16.msra.mxu0 %v11125_v58  ;;  %9193 = vmatprep.subr.bf16.mxu1 %v11152_v61  ;;  %v5808_v58 = vld [vmem:[#allocation21 + $0x560] sm:$0xff]  ;;  %v10836_v6 = vcombine.high %v5805_v57, %v5821_v18  ;;  %v10835_v11 = vcombine.low %v5805_v57, %v5821_v18 }
 0x9f8   : > { %9316 = vmatprep.subr.bf16.mxu0 %v11158_v63  ;;  %v5824_v61 = vld [vmem:[#allocation21 + $0x5e0] sm:$0xff]  ;;  %v10803_v63 = vcombine.low %v5773_v39, %v5789_v44 }
 0x9f9   : > { %v10841_v15 = vcombine.low %v5808_v58, %v5824_v61  ;;  %v5872_v39 = vld [vmem:[#allocation21 + $0x760] sm:$0xff] }
 0x9fa   : > { %9194 = vmatpush1.bf16.msra.mxu1 %v11151_v7  ;;  %v9769_v7 = vunpack.c.l.s4 %v12639_v36  ;;  %v5888_v44 = vld [vmem:[#allocation21 + $0x7e0] sm:$0xff] }
 0x9fb   : > { %9317 = vmatpush1.bf16.msra.mxu0 %v11157_v8  ;;  %9245 = vmatprep.subr.bf16.mxu1 %v10676_v9  ;;  %v13905_v8 = vld [vmem:[#allocation24 + $0x8] sm:$0xff]  ;;  %v10842_v9 = vcombine.high %v5808_v58, %v5824_v61 }
 0x9fc   : > { %9368 = vmatprep.subr.bf16.mxu0 %v10682_v27  ;;  %v5837_v27 = vld [vmem:[#allocation21 + $0x648] sm:$0xff]  ;;  %v9579_v13 = vrot.slane %v13905_v8, %v13467_v59 }
 0x9fd   : > { %9196 = vmatmul.mubr.bf16.vlgmr.msra.gmra.mrb[20].mxu1 %v13847_v54  ;;  %v10868_v21 = vcombine.high %v5837_v27, %v5853_v10 }
 0x9fe   : > { %9319 = vmatmul.mubr.bf16.vlgmr.msra.gmra.mrb[24].mxu0 %v13847_v54  ;;  %9246 = vmatpush1.bf16.msra.mxu1 %v10675_v16  ;;  %v8751_v16 = vrot.slane %v13903_v0, %v13461_v56 }
 0x9ff   : > { %9277 = vmatprep.mubr.bf16.mxu1 %v13845_v52  ;;  %9369 = vmatpush1.bf16.msra.mxu0 %v10681_v38  ;;  %v9551_v38 = vrot.slane %v13869_v42, %v13464_v25 }
 0xa00   : > { %9400 = vmatprep.mubr.bf16.mxu0 %v13845_v52  ;;  %9247 = vmatprep.subr.bf16.mxu1 %v10708_v40  ;;  %v8731_v40 = vrot.slane %v13867_v26, %v13470_v60 }
 0xa01   : > { %9370 = vmatprep.subr.bf16.mxu0 %v10714_v41  ;;  %v9575_v41 = vrot.slane %v13905_v8, %v13461_v56 }
 0xa02   : > { %9248 = vmatpush1.bf16.msra.mxu1 %v10707_v22  ;;  %v9770_v22 = vunpack.c.0.s8 %v9769_v7  ;;  %v10906_v7 = vcombine.high %v5872_v39, %v5888_v44 }
 0xa03   : > { %9371 = vmatpush1.bf16.msra.mxu0 %v10713_v23  ;;  %9249 = vmatprep.subr.bf16.mxu1 %v10740_v47 }
 0xa04   : > { %9372 = vmatprep.subr.bf16.mxu0 %v10746_v29  ;;  %v9555_v29 = vrot.slane %v13869_v42, %v13470_v60 }
 0xa06   : > { %9250 = vmatpush1.bf16.msra.mxu1 %v10739_v28 }
 0xa07   : > { %9373 = vmatpush1.bf16.msra.mxu0 %v10745_v32  ;;  %9251 = vmatprep.subr.bf16.mxu1 %v10772_v34 }
 0xa08   : > { %9374 = vmatprep.subr.bf16.mxu0 %v10778_v43 }
 0xa0a   : > { %9252 = vmatpush1.bf16.msra.mxu1 %v10771_v48 }
 0xa0b   : > { %9375 = vmatpush1.bf16.msra.mxu0 %v10777_v49  ;;  %9253 = vmatprep.subr.bf16.mxu1 %v10804_v51  ;;  %v10867_v51 = vcombine.low %v5837_v27, %v5853_v10  ;;  %v5904_v27 = vld [vmem:[#allocation21 + $0x860] sm:$0xff] }
 0xa0c   : > { %9376 = vmatprep.subr.bf16.mxu0 %v10810_v55  ;;  %v10873_v55 = vcombine.low %v5840_v12, %v5856_v3  ;;  %v5920_v10 = vld [vmem:[#allocation21 + $0x8e0] sm:$0xff]  ;;  %v10899_v3 = vcombine.low %v5869_v30, %v5885_v31 }
 0xa0e   : > { %9254 = vmatpush1.bf16.msra.mxu1 %v10803_v63  ;;  %v10900_v63 = vcombine.high %v5869_v30, %v5885_v31  ;;  %v5984_v30 = vld [vmem:[#allocation21 + $0xae0] sm:$0xff] }
 0xa0f   : > { %9377 = vmatpush1.bf16.msra.mxu0 %v10809_v1  ;;  %9255 = vmatprep.subr.bf16.mxu1 %v10836_v6  ;;  %v13926_v1 = vsub.s32 %v9770_v22, %v13456_v53  ;;  %v5952_v22 = vld [vmem:[#allocation21 + $0x9e0] sm:$0xff] }
 0xa10   : > { %v8951_v23 = vpop.f32.mrb[8].mxu1  ;;  %v9074_v47 = vpop.f32.mrb[12].mxu0  ;;  %9378 = vmatprep.subr.bf16.mxu0 %v10842_v9  ;;  %v5901_v9 = vld [vmem:[#allocation21 + $0x848] sm:$0xff] }
 0xa11   : > { %v8952_v28 = vadd.f32 %v8951_v23, %v8727_v14  ;;  %v9075_v32 = vadd.f32 %v9074_v47, %v8751_v16  ;;  %v8953_v34 = vpop.f32.mrb[9].mxu1  ;;  %v9076_v43 = vpop.f32.mrb[13].mxu0  ;;  %v5917_v14 = vld [vmem:[#allocation21 + $0x8c8] sm:$0xff] }
 0xa12   : > { %v8954_v45 = vadd.f32 %v8953_v34, %v8731_v40  ;;  %v9077_v46 = vadd.f32 %v9076_v43, %v8755_v2  ;;  %v8955_v48 = vpop.f32.mrb[10].mxu1  ;;  %v9078_v49 = vpop.f32.mrb[14].mxu0  ;;  %9256 = vmatpush1.bf16.msra.mxu1 %v10835_v11  ;;  %v10932_v53 = vcombine.high %v5901_v9, %v5917_v14  ;;  %v13936_v40 = vrot.slane %v9764_v17, %v13926_v1  ;;  %v5965_v17 = vld [vmem:[#allocation21 + $0xa48] sm:$0xff] }
 0xa13   : > { %v9702_v57 = vadd.f32 %v9551_v38, %v8952_v28  ;;  %v13923_v18 = vadd.f32 %v9575_v41, %v9075_v32  ;;  %9379 = vmatpush1.bf16.msra.mxu0 %v10841_v15  ;;  %v8956_v58 = vpop.f32.mrb[11].mxu1  ;;  %v9079_v61 = vpop.f32.mrb[15].mxu0  ;;  %9257 = vmatprep.subr.bf16.mxu1 %v10868_v21  ;;  %v10905_v38 = vcombine.low %v5872_v39, %v5888_v44  ;;  %v5933_v41 = vld [vmem:[#allocation21 + $0x948] sm:$0xff]  ;;  %v5936_v21 = vld [vmem:[#allocation21 + $0x960] sm:$0xff] }
 0xa14   : > { %v9703_v6 = vadd.f32 %v9555_v29, %v8954_v45  ;;  %v13928_v36 = vadd.f32 %v9579_v13, %v9077_v46  ;;  %9380 = vmatprep.subr.bf16.mxu0 %v10874_v20  ;;  %v10938_v11 = vcombine.high %v5904_v27, %v5920_v10  ;;  %v5949_v15 = vld [vmem:[#allocation21 + $0x9c8] sm:$0xff]  ;;  %v10931_v47 = vcombine.low %v5901_v9, %v5917_v14  ;;  %v5968_v20 = vld [vmem:[#allocation21 + $0xa60] sm:$0xff] }
 0xa15   : > { %v10937_v29 = vcombine.low %v5904_v27, %v5920_v10  ;;  %v10964_v35 = vcombine.high %v5933_v41, %v5949_v15  ;;  %v10970_v37 = vcombine.high %v5936_v21, %v5952_v22  ;;  %v5981_v13 = vld [vmem:[#allocation21 + $0xac8] sm:$0xff]  ;;  %v10963_v31 = vcombine.low %v5933_v41, %v5949_v15  ;;  %v6000_v44 = vld [vmem:[#allocation21 + $0xb60] sm:$0xff] }
 0xa16   : > { %v9765_v16 = vcombine.low %v9702_v57, %v9703_v6  ;;  %v9813_v12 = vcombine.low %v13923_v18, %v13928_v36  ;;  %9258 = vmatpush1.bf16.msra.mxu1 %v10867_v51  ;;  %v10969_v28 = vcombine.low %v5936_v21, %v5952_v22  ;;  %v10996_v32 = vcombine.high %v5965_v17, %v5981_v13  ;;  %v5997_v43 = vld [vmem:[#allocation21 + $0xb48] sm:$0xff]  ;;  %v6016_v45 = vld [vmem:[#allocation21 + $0xbe0] sm:$0xff] }
 0xa17   : > { %9381 = vmatpush1.bf16.msra.mxu0 %v10873_v55  ;;  %9259 = vmatprep.subr.bf16.mxu1 %v10900_v63  ;;  %v11002_v34 = vcombine.high %v5968_v20, %v5984_v30  ;;  %v6013_v39 = vld [vmem:[#allocation21 + $0xbc8] sm:$0xff]  ;;  %v10995_v46 = vcombine.low %v5965_v17, %v5981_v13  ;;  %v11001_v48 = vcombine.low %v5968_v20, %v5984_v30  ;;  %v6032_v58 = vld [vmem:[#allocation21 + $0xc60] sm:$0xff] }
 0xa18   : > { %v13939_v2 = vrot.slane %v9765_v16, %v13926_v1  ;;  %9382 = vmatprep.subr.bf16.mxu0 %v10906_v7  ;;  %v11028_v49 = vcombine.high %v5997_v43, %v6013_v39  ;;  %v11034_v51 = vcombine.high %v6000_v44, %v6016_v45  ;;  %v6029_v55 = vld [vmem:[#allocation21 + $0xc48] sm:$0xff]  ;;  %v6048_v61 = vld [vmem:[#allocation21 + $0xce0] sm:$0xff]  ;;  %v11027_v63 = vcombine.low %v5997_v43, %v6013_v39  ;;  %v5647_v43 = vld [vmem:[#allocation21 + $0x58] sm:$0xff] }
 0xa19   : > { %v6045_v57 = vld [vmem:[#allocation21 + $0xcc8] sm:$0xff]  ;;  %v11033_v6 = vcombine.low %v6000_v44, %v6016_v45  ;;  %v11066_v9 = vcombine.high %v6032_v58, %v6048_v61  ;;  %v6064_v10 = vld [vmem:[#allocation21 + $0xd60] sm:$0xff]  ;;  %v5663_v39 = vld [vmem:[#allocation21 + $0xd8] sm:$0xff] }
 0xa1a   : > { %v9796_v23 = vcombine.low %v13936_v40, %v13939_v2  ;;  %9260 = vmatpush1.bf16.msra.mxu1 %v10899_v3  ;;  %v11060_v7 = vcombine.high %v6029_v55, %v6045_v57  ;;  %v6061_v14 = vld [vmem:[#allocation21 + $0xd48] sm:$0xff]  ;;  %v6080_v16 = vld [vmem:[#allocation21 + $0xde0] sm:$0xff]  ;;  %v11059_v3 = vcombine.low %v6029_v55, %v6045_v57  ;;  %v5650_v44 = vld [vmem:[#allocation21 + $0x70] sm:$0xff] }
 0xa1b   : > { %9383 = vmatpush1.bf16.msra.mxu0 %v10905_v38  ;;  %9261 = vmatprep.subr.bf16.mxu1 %v10932_v53  ;;  %v6077_v27 = vld [vmem:[#allocation21 + $0xdc8] sm:$0xff]  ;;  %v11065_v38 = vcombine.low %v6032_v58, %v6048_v61  ;;  %v6096_v21 = vld [vmem:[#allocation21 + $0xe60] sm:$0xff]  ;;  %v5666_v45 = vld [vmem:[#allocation21 + $0xf0] sm:$0xff]  ;;  %v10679_v58 = vcombine.low %v5647_v43, %v5663_v39 }
 0xa1c   : > { %9384 = vmatprep.subr.bf16.mxu0 %v10938_v11  ;;  %v11092_v53 = vcombine.high %v6061_v14, %v6077_v27  ;;  %v11098_v11 = vcombine.high %v6064_v10, %v6080_v16  ;;  %v6093_v41 = vld [vmem:[#allocation21 + $0xe48] sm:$0xff]  ;;  %v6112_v22 = vld [vmem:[#allocation21 + $0xee0] sm:$0xff]  ;;  %v5679_v55 = vld [vmem:[#allocation21 + $0x158] sm:$0xff]  ;;  %v9804_v24 = vrot.slane %v9796_v23, %v13926_v1 }
 0xa1d   : > { %v6109_v15 = vld [vmem:[#allocation21 + $0xec8] sm:$0xff]  ;;  %v6128_v20 = vld [vmem:[#allocation21 + $0xf60] sm:$0xff]  ;;  %v5695_v57 = vld [vmem:[#allocation21 + $0x1d8] sm:$0xff] }
 0xa1e   : > { %9262 = vmatpush1.bf16.msra.mxu1 %v10931_v47  ;;  %v11091_v47 = vcombine.low %v6061_v14, %v6077_v27  ;;  %v6125_v17 = vld [vmem:[#allocation21 + $0xf48] sm:$0xff]  ;;  %v6144_v30 = vld [vmem:[#allocation21 + $0xfe0] sm:$0xff]  ;;  %v5682_v61 = vld [vmem:[#allocation21 + $0x170] sm:$0xff] }
 0xa1f   : > { %9385 = vmatpush1.bf16.msra.mxu0 %v10937_v29  ;;  %9263 = vmatprep.subr.bf16.mxu1 %v10964_v35  ;;  %v11097_v29 = vcombine.low %v6064_v10, %v6080_v16  ;;  %v11124_v35 = vcombine.high %v6093_v41, %v6109_v15  ;;  %v6141_v13 = vld [vmem:[#allocation21 + $0xfc8] sm:$0xff]  ;;  %v5727_v14 = vld [vmem:[#allocation21 + $0x2d8] sm:$0xff]  ;;  %v5714_v10 = vld [vmem:[#allocation21 + $0x270] sm:$0xff] }
 0xa20   : > { %9386 = vmatprep.subr.bf16.mxu0 %v10970_v37  ;;  %v11130_v37 = vcombine.high %v6096_v21, %v6112_v22  ;;  %v5730_v16 = vld [vmem:[#allocation21 + $0x2f0] sm:$0xff]  ;;  %v5999_v2 = vld [vmem:[#allocation21 + $0xb58] sm:$0xff]  ;;  %v6001_v36 = vld [vmem:[#allocation21 + $0xb68] sm:$0xff] }
 0xa21   : > { %v6015_v23 = vld [vmem:[#allocation21 + $0xbd8] sm:$0xff] }
 0xa22   : > { %9264 = vmatpush1.bf16.msra.mxu1 %v10963_v31  ;;  %v11123_v31 = vcombine.low %v6093_v41, %v6109_v15  ;;  %v5743_v41 = vld [vmem:[#allocation21 + $0x358] sm:$0xff] }
 0xa23   : > { %9387 = vmatpush1.bf16.msra.mxu0 %v10969_v28  ;;  %9265 = vmatprep.subr.bf16.mxu1 %v10996_v32  ;;  %v11129_v28 = vcombine.low %v6096_v21, %v6112_v22  ;;  %v11156_v32 = vcombine.high %v6125_v17, %v6141_v13  ;;  %v5759_v15 = vld [vmem:[#allocation21 + $0x3d8] sm:$0xff]  ;;  %v5746_v21 = vld [vmem:[#allocation21 + $0x370] sm:$0xff] }
 0xa24   : > { %9388 = vmatprep.subr.bf16.mxu0 %v11002_v34  ;;  %v11162_v34 = vcombine.high %v6128_v20, %v6144_v30  ;;  %v5762_v22 = vld [vmem:[#allocation21 + $0x3f0] sm:$0xff] }
 0xa26   : > { %9266 = vmatpush1.bf16.msra.mxu1 %v10995_v46  ;;  %v11155_v46 = vcombine.low %v6125_v17, %v6141_v13  ;;  %v5775_v17 = vld [vmem:[#allocation21 + $0x458] sm:$0xff] }
 0xa27   : > { %9389 = vmatpush1.bf16.msra.mxu0 %v11001_v48  ;;  %9267 = vmatprep.subr.bf16.mxu1 %v11028_v49  ;;  %v11161_v48 = vcombine.low %v6128_v20, %v6144_v30  ;;  %v10680_v49 = vcombine.high %v5647_v43, %v5663_v39  ;;  %v5791_v13 = vld [vmem:[#allocation21 + $0x4d8] sm:$0xff]  ;;  %v5778_v20 = vld [vmem:[#allocation21 + $0x470] sm:$0xff] }
 0xa28   : > { %9390 = vmatprep.subr.bf16.mxu0 %v11034_v51  ;;  %v10686_v51 = vcombine.high %v5650_v44, %v5666_v45  ;;  %v5794_v30 = vld [vmem:[#allocation21 + $0x4f0] sm:$0xff]  ;;  %v5807_v43 = vld [vmem:[#allocation21 + $0x558] sm:$0xff] }
 0xa29   : > { %v5823_v39 = vld [vmem:[#allocation21 + $0x5d8] sm:$0xff] }
 0xa2a   : > { %9268 = vmatpush1.bf16.msra.mxu1 %v11027_v63  ;;  %v5698_v63 = vld [vmem:[#allocation21 + $0x1f0] sm:$0xff] }
 0xa2b   : > { %9391 = vmatpush1.bf16.msra.mxu0 %v11033_v6  ;;  %9269 = vmatprep.subr.bf16.mxu1 %v11060_v7  ;;  %v10685_v6 = vcombine.low %v5650_v44, %v5666_v45  ;;  %v10712_v7 = vcombine.high %v5679_v55, %v5695_v57  ;;  %v10718_v27 = vcombine.high %v5682_v61, %v5698_v63  ;;  %v5810_v44 = vld [vmem:[#allocation21 + $0x570] sm:$0xff] }
 0xa2c   : > { %9392 = vmatprep.subr.bf16.mxu0 %v11066_v9  ;;  %v5711_v9 = vld [vmem:[#allocation21 + $0x258] sm:$0xff]  ;;  %v5826_v45 = vld [vmem:[#allocation21 + $0x5f0] sm:$0xff] }
 0xa2e   : > { %9270 = vmatpush1.bf16.msra.mxu1 %v11059_v3  ;;  %v10711_v3 = vcombine.low %v5679_v55, %v5695_v57  ;;  %v5839_v55 = vld [vmem:[#allocation21 + $0x658] sm:$0xff] }
 0xa2f   : > { %9393 = vmatpush1.bf16.msra.mxu0 %v11065_v38  ;;  %9271 = vmatprep.subr.bf16.mxu1 %v11092_v53  ;;  %v10717_v38 = vcombine.low %v5682_v61, %v5698_v63  ;;  %v10744_v53 = vcombine.high %v5711_v9, %v5727_v14  ;;  %v5855_v57 = vld [vmem:[#allocation21 + $0x6d8] sm:$0xff]  ;;  %v5842_v61 = vld [vmem:[#allocation21 + $0x670] sm:$0xff] }
 0xa30   : > { %9394 = vmatprep.subr.bf16.mxu0 %v11098_v11  ;;  %v10750_v11 = vcombine.high %v5714_v10, %v5730_v16  ;;  %v5858_v63 = vld [vmem:[#allocation21 + $0x6f0] sm:$0xff] }
 0xa32   : > { %9272 = vmatpush1.bf16.msra.mxu1 %v11091_v47  ;;  %v10743_v47 = vcombine.low %v5711_v9, %v5727_v14  ;;  %v8747_v9 = vrot.slane %v13867_v26, %v13632_v5  ;;  %v10839_v14 = vcombine.low %v5807_v43, %v5823_v39 }
 0xa33   : > { %9395 = vmatpush1.bf16.msra.mxu0 %v11097_v29  ;;  %9273 = vmatprep.subr.bf16.mxu1 %v11124_v35  ;;  %v10749_v29 = vcombine.low %v5714_v10, %v5730_v16  ;;  %v10776_v35 = vcombine.high %v5743_v41, %v5759_v15  ;;  %v10845_v10 = vcombine.low %v5810_v44, %v5826_v45 }
 0xa34   : > { %9396 = vmatprep.subr.bf16.mxu0 %v11130_v37  ;;  %v10782_v37 = vcombine.high %v5746_v21, %v5762_v22  ;;  %v10872_v16 = vcombine.high %v5839_v55, %v5855_v57 }
 0xa36   : > { %9274 = vmatpush1.bf16.msra.mxu1 %v11123_v31  ;;  %v10775_v31 = vcombine.low %v5743_v41, %v5759_v15  ;;  %v5871_v41 = vld [vmem:[#allocation21 + $0x758] sm:$0xff] }
 0xa37   : > { %9397 = vmatpush1.bf16.msra.mxu0 %v11129_v28  ;;  %9275 = vmatprep.subr.bf16.mxu1 %v11156_v32  ;;  %v10781_v28 = vcombine.low %v5746_v21, %v5762_v22  ;;  %v10808_v32 = vcombine.high %v5775_v17, %v5791_v13  ;;  %v5887_v15 = vld [vmem:[#allocation21 + $0x7d8] sm:$0xff] }
 0xa38   : > { %9398 = vmatprep.subr.bf16.mxu0 %v11162_v34  ;;  %v10814_v34 = vcombine.high %v5778_v20, %v5794_v30 }
 0xa3a   : > { %9276 = vmatpush1.bf16.msra.mxu1 %v11155_v46  ;;  %v10807_v46 = vcombine.low %v5775_v17, %v5791_v13 }
 0xa3b   : > { %9399 = vmatpush1.bf16.msra.mxu0 %v11161_v48  ;;  %9327 = vmatprep.subr.bf16.mxu1 %v10680_v49  ;;  %v10813_v48 = vcombine.low %v5778_v20, %v5794_v30  ;;  %v10840_v49 = vcombine.high %v5807_v43, %v5823_v39  ;;  %v10871_v30 = vcombine.low %v5839_v55, %v5855_v57  ;;  %v5922_v55 = vld [vmem:[#allocation21 + $0x8f0] sm:$0xff] }
 0xa3c   : > { %9450 = vmatprep.subr.bf16.mxu0 %v10686_v51  ;;  %v10846_v51 = vcombine.high %v5810_v44, %v5826_v45  ;;  %v10904_v43 = vcombine.high %v5871_v41, %v5887_v15 }
 0xa3d   : > { %9278 = vmatmul.mubr.bf16.vlgmr.msra.gmra.mrb[24].mxu1 %v13847_v54 }
 0xa3e   : > { %9401 = vmatmul.mubr.bf16.vlgmr.msra.gmra.mrb[28].mxu0 %v13847_v54  ;;  %9328 = vmatpush1.bf16.msra.mxu1 %v10679_v58  ;;  %v8743_v58 = vrot.slane %v13867_v26, %v13624_v62 }
 0xa3f   : > { %9359 = vmatprep.mubr.bf16.mxu1 %v13845_v52  ;;  %9451 = vmatpush1.bf16.msra.mxu0 %v10685_v6  ;;  %v9567_v6 = vrot.slane %v13869_v42, %v13624_v62 }
 0xa40   : > { %9482 = vmatprep.mubr.bf16.mxu0 %v13845_v52  ;;  %9329 = vmatprep.subr.bf16.mxu1 %v10712_v7  ;;  %v8767_v7 = vrot.slane %v13903_v0, %v13621_v50 }
 0xa41   : > { %9452 = vmatprep.subr.bf16.mxu0 %v10718_v27  ;;  %v8771_v27 = vrot.slane %v13903_v0, %v13629_v4 }
 0xa42   : > { %9330 = vmatpush1.bf16.msra.mxu1 %v10711_v3 }
 0xa43   : > { %9453 = vmatpush1.bf16.msra.mxu0 %v10717_v38  ;;  %9331 = vmatprep.subr.bf16.mxu1 %v10744_v53  ;;  %v9591_v38 = vrot.slane %v13905_v8, %v13621_v50  ;;  %v9571_v53 = vrot.slane %v13869_v42, %v13632_v5 }
 0xa44   : > { %9454 = vmatprep.subr.bf16.mxu0 %v10750_v11  ;;  %v10878_v11 = vcombine.high %v5842_v61, %v5858_v63 }
 0xa46   : > { %9332 = vmatpush1.bf16.msra.mxu1 %v10743_v47  ;;  %v9595_v47 = vrot.slane %v13905_v8, %v13629_v4 }
 0xa47   : > { %9455 = vmatpush1.bf16.msra.mxu0 %v10749_v29  ;;  %9333 = vmatprep.subr.bf16.mxu1 %v10776_v35  ;;  %v5874_v29 = vld [vmem:[#allocation21 + $0x770] sm:$0xff] }
 0xa48   : > { %9456 = vmatprep.subr.bf16.mxu0 %v10782_v37  ;;  %v5890_v35 = vld [vmem:[#allocation21 + $0x7f0] sm:$0xff] }
 0xa4a   : > { %9334 = vmatpush1.bf16.msra.mxu1 %v10775_v31  ;;  %v10877_v31 = vcombine.low %v5842_v61, %v5858_v63  ;;  %v10903_v61 = vcombine.low %v5871_v41, %v5887_v15 }
 0xa4b   : > { %9457 = vmatpush1.bf16.msra.mxu0 %v10781_v28  ;;  %9335 = vmatprep.subr.bf16.mxu1 %v10808_v32 }
 0xa4c   : > { %9458 = vmatprep.subr.bf16.mxu0 %v10814_v34 }
 0xa4e   : > { %9336 = vmatpush1.bf16.msra.mxu1 %v10807_v46  ;;  %v10910_v46 = vcombine.high %v5874_v29, %v5890_v35 }
 0xa4f   : > { %9459 = vmatpush1.bf16.msra.mxu0 %v10813_v48  ;;  %9337 = vmatprep.subr.bf16.mxu1 %v10840_v49  ;;  %v5903_v48 = vld [vmem:[#allocation21 + $0x858] sm:$0xff] }
 0xa50   : > { %v9033_v3 = vpop.f32.mrb[12].mxu1  ;;  %9460 = vmatprep.subr.bf16.mxu0 %v10846_v51  ;;  %v5919_v49 = vld [vmem:[#allocation21 + $0x8d8] sm:$0xff] }
 0xa51   : > { %v9034_v26 = vadd.f32 %v9033_v3, %v8743_v58  ;;  %v9156_v21 = vpop.f32.mrb[16].mxu0  ;;  %v9035_v22 = vpop.f32.mrb[13].mxu1  ;;  %v5906_v58 = vld [vmem:[#allocation21 + $0x870] sm:$0xff] }
 0xa52   : > { %v9157_v37 = vadd.f32 %v9156_v21, %v8767_v7  ;;  %v9036_v17 = vadd.f32 %v9035_v22, %v8747_v9  ;;  %v9158_v13 = vpop.f32.mrb[17].mxu0  ;;  %v9037_v20 = vpop.f32.mrb[14].mxu1  ;;  %9338 = vmatpush1.bf16.msra.mxu1 %v10839_v14  ;;  %v10936_v7 = vcombine.high %v5903_v48, %v5919_v49  ;;  %v9788_v9 = vrot.slane %v9766_v33, %v13926_v1  ;;  %v5938_v3 = vld [vmem:[#allocation21 + $0x970] sm:$0xff]  ;;  %v5983_v21 = vld [vmem:[#allocation21 + $0xad8] sm:$0xff] }
 0xa53   : > { %v9706_v42 = vadd.f32 %v9567_v6, %v9034_v26  ;;  %v9159_v28 = vadd.f32 %v9158_v13, %v8771_v27  ;;  %v9160_v32 = vpop.f32.mrb[18].mxu0  ;;  %9461 = vmatpush1.bf16.msra.mxu0 %v10845_v10  ;;  %v9038_v34 = vpop.f32.mrb[15].mxu1  ;;  %9339 = vmatprep.subr.bf16.mxu1 %v10872_v16  ;;  %v10909_v6 = vcombine.low %v5874_v29, %v5890_v35  ;;  %v5935_v10 = vld [vmem:[#allocation21 + $0x958] sm:$0xff]  ;;  %v5970_v22 = vld [vmem:[#allocation21 + $0xa70] sm:$0xff] }
 0xa54   : > { %v13963_v39 = vadd.f32 %v9591_v38, %v9157_v37  ;;  %v9707_v44 = vadd.f32 %v9571_v53, %v9036_v17  ;;  %v9161_v45 = vpop.f32.mrb[19].mxu0  ;;  %9462 = vmatprep.subr.bf16.mxu0 %v10878_v11  ;;  %v10942_v27 = vcombine.high %v5906_v58, %v5922_v55  ;;  %v5951_v16 = vld [vmem:[#allocation21 + $0x9d8] sm:$0xff]  ;;  %v5954_v38 = vld [vmem:[#allocation21 + $0x9f0] sm:$0xff]  ;;  %v10935_v11 = vcombine.low %v5903_v48, %v5919_v49 }
 0xa55   : > { %v13965_v51 = vadd.f32 %v9595_v47, %v9159_v28  ;;  %v10941_v41 = vcombine.low %v5906_v58, %v5922_v55  ;;  %v10968_v15 = vcombine.high %v5935_v10, %v5951_v16  ;;  %v10974_v33 = vcombine.high %v5938_v3, %v5954_v38  ;;  %v5967_v26 = vld [vmem:[#allocation21 + $0xa58] sm:$0xff]  ;;  %v5986_v47 = vld [vmem:[#allocation21 + $0xaf0] sm:$0xff] }
 0xa56   : > { %v9767_v57 = vcombine.low %v9706_v42, %v9707_v44  ;;  %9340 = vmatpush1.bf16.msra.mxu1 %v10871_v30  ;;  %v10967_v35 = vcombine.low %v5935_v10, %v5951_v16  ;;  %v10973_v37 = vcombine.low %v5938_v3, %v5954_v38  ;;  %v11000_v17 = vcombine.high %v5967_v26, %v5983_v21  ;;  %v6002_v13 = vld [vmem:[#allocation21 + $0xb70] sm:$0xff]  ;;  %v6031_v32 = vld [vmem:[#allocation21 + $0xc58] sm:$0xff] }
 0xa57   : > { %v9815_v63 = vcombine.low %v13963_v39, %v13965_v51  ;;  %9463 = vmatpush1.bf16.msra.mxu0 %v10877_v31  ;;  %9341 = vmatprep.subr.bf16.mxu1 %v10904_v43  ;;  %v11006_v40 = vcombine.high %v5970_v22, %v5986_v47  ;;  %v6018_v20 = vld [vmem:[#allocation21 + $0xbf0] sm:$0xff]  ;;  %v10999_v30 = vcombine.low %v5967_v26, %v5983_v21  ;;  %v6047_v34 = vld [vmem:[#allocation21 + $0xcd8] sm:$0xff] }
 0xa58   : > { %v9795_v14 = vrot.slane %v9767_v57, %v13926_v1  ;;  %9464 = vmatprep.subr.bf16.mxu0 %v10910_v46  ;;  %v11005_v31 = vcombine.low %v5970_v22, %v5986_v47  ;;  %v11032_v42 = vcombine.high %v5999_v2, %v6015_v23  ;;  %v11038_v28 = vcombine.high %v6002_v13, %v6018_v20  ;;  %v6034_v43 = vld [vmem:[#allocation21 + $0xc70] sm:$0xff]  ;;  %v6063_v58 = vld [vmem:[#allocation21 + $0xd58] sm:$0xff] }
 0xa59   : > { %v6050_v44 = vld [vmem:[#allocation21 + $0xcf0] sm:$0xff]  ;;  %v11031_v45 = vcombine.low %v5999_v2, %v6015_v23  ;;  %v11037_v46 = vcombine.low %v6002_v13, %v6018_v20  ;;  %v11064_v48 = vcombine.high %v6031_v32, %v6047_v34  ;;  %v6079_v55 = vld [vmem:[#allocation21 + $0xdd8] sm:$0xff]  ;;  %v5681_v2 = vld [vmem:[#allocation21 + $0x168] sm:$0xff] }
 0xa5a   : > { %v9797_v53 = vcombine.low %v9788_v9, %v9795_v14  ;;  %9342 = vmatpush1.bf16.msra.mxu1 %v10903_v61  ;;  %v11070_v49 = vcombine.high %v6034_v43, %v6050_v44  ;;  %v6066_v57 = vld [vmem:[#allocation21 + $0xd70] sm:$0xff]  ;;  %v11096_v9 = vcombine.high %v6063_v58, %v6079_v55  ;;  %v6111_v10 = vld [vmem:[#allocation21 + $0xed8] sm:$0xff]  ;;  %v11095_v38 = vcombine.low %v6063_v58, %v6079_v55  ;;  %v5697_v23 = vld [vmem:[#allocation21 + $0x1e8] sm:$0xff] }
 0xa5b   : > { %9465 = vmatpush1.bf16.msra.mxu0 %v10909_v6  ;;  %9343 = vmatprep.subr.bf16.mxu1 %v10936_v7  ;;  %v6082_v61 = vld [vmem:[#allocation21 + $0xdf0] sm:$0xff]  ;;  %v11063_v6 = vcombine.low %v6031_v32, %v6047_v34  ;;  %v11069_v7 = vcombine.low %v6034_v43, %v6050_v44  ;;  %v10716_v20 = vcombine.high %v5681_v2, %v5697_v23  ;;  %v5745_v32 = vld [vmem:[#allocation21 + $0x368] sm:$0xff]  ;;  %v5987_v39 = vld [vmem:[#allocation21 + $0xaf8] sm:$0xff] }
 0xa5c   : > { %v9811_v19 = vrot.slane %v9797_v53, %v13926_v1  ;;  %9466 = vmatprep.subr.bf16.mxu0 %v10942_v27  ;;  %v11102_v14 = vcombine.high %v6066_v57, %v6082_v61  ;;  %v6095_v27 = vld [vmem:[#allocation21 + $0xe58] sm:$0xff]  ;;  %v6098_v16 = vld [vmem:[#allocation21 + $0xe70] sm:$0xff]  ;;  %v11101_v53 = vcombine.low %v6066_v57, %v6082_v61  ;;  %v5761_v34 = vld [vmem:[#allocation21 + $0x3e8] sm:$0xff] }
 0xa5d   : > { %v6114_v3 = vld [vmem:[#allocation21 + $0xef0] sm:$0xff]  ;;  %v11127_v26 = vcombine.low %v6095_v27, %v6111_v10  ;;  %v10780_v44 = vcombine.high %v5745_v32, %v5761_v34  ;;  %v5809_v58 = vld [vmem:[#allocation21 + $0x568] sm:$0xff] }
 0xa5e   : > { %v9812_v29 = vcombine.low %v9804_v24, %v9811_v19  ;;  %9344 = vmatpush1.bf16.msra.mxu1 %v10935_v11  ;;  %v11128_v11 = vcombine.high %v6095_v27, %v6111_v10  ;;  %v6143_v24 = vld [vmem:[#allocation21 + $0xfd8] sm:$0xff]  ;;  %v6130_v19 = vld [vmem:[#allocation21 + $0xf70] sm:$0xff]  ;;  %v11133_v21 = vcombine.low %v6098_v16, %v6114_v3  ;;  %v5825_v55 = vld [vmem:[#allocation21 + $0x5e8] sm:$0xff] }
 0xa5f   : > { %9467 = vmatpush1.bf16.msra.mxu0 %v10941_v41  ;;  %9345 = vmatprep.subr.bf16.mxu1 %v10968_v15  ;;  %v11134_v41 = vcombine.high %v6098_v16, %v6114_v3  ;;  %v6127_v15 = vld [vmem:[#allocation21 + $0xf58] sm:$0xff]  ;;  %v13983_v61 = vld [vmem:[#allocation23 + $0x10] sm:$0xff]  ;;  %v8763_v16 = vrot.slane %v13903_v0, %v13470_v60  ;;  %v10843_v3 = vcombine.low %v5809_v58, %v5825_v55 }
 0xa60   : > { %9964 = vst [vmem:[%s13795_s5] sm:$0xff] %v9812_v29  ;;  %9468 = vmatprep.subr.bf16.mxu0 %v10974_v33  ;;  %v6146_v33 = vld [vmem:[#allocation21 + $0xff0] sm:$0xff]  ;;  %v11160_v22 = vcombine.high %v6127_v15, %v6143_v24  ;;  %v5649_v29 = vld [vmem:[#allocation21 + $0x68] sm:$0xff]  ;;  %v8783_v10 = vrot.slane %v13983_v61, %v13461_v56 }
 0xa61   : > { %v11166_v47 = vcombine.high %v6130_v19, %v6146_v33  ;;  %v13987_v27 = vld [vmem:[#allocation24 + $0x10] sm:$0xff] }
 0xa62   : > { %9346 = vmatpush1.bf16.msra.mxu1 %v10967_v35  ;;  %v5665_v35 = vld [vmem:[#allocation21 + $0xe8] sm:$0xff] }
 0xa63   : > { %9469 = vmatpush1.bf16.msra.mxu0 %v10973_v37  ;;  %9347 = vmatprep.subr.bf16.mxu1 %v11000_v17  ;;  %v11159_v37 = vcombine.low %v6127_v15, %v6143_v24  ;;  %v11165_v17 = vcombine.low %v6130_v19, %v6146_v33  ;;  %v10683_v13 = vcombine.low %v5649_v29, %v5665_v35  ;;  %v5873_v19 = vld [vmem:[#allocation21 + $0x768] sm:$0xff] }
 0xa64   : > { %9470 = vmatprep.subr.bf16.mxu0 %v11006_v40  ;;  %v10684_v40 = vcombine.high %v5649_v29, %v5665_v35  ;;  %v9607_v15 = vrot.slane %v13987_v27, %v13461_v56  ;;  %v9587_v24 = vrot.slane %v13905_v8, %v13470_v60  ;;  %v5889_v33 = vld [vmem:[#allocation21 + $0x7e8] sm:$0xff] }
 0xa66   : > { %9348 = vmatpush1.bf16.msra.mxu1 %v10999_v30  ;;  %v5713_v30 = vld [vmem:[#allocation21 + $0x268] sm:$0xff] }
 0xa67   : > { %9471 = vmatpush1.bf16.msra.mxu0 %v11005_v31  ;;  %9349 = vmatprep.subr.bf16.mxu1 %v11032_v42  ;;  %v5729_v31 = vld [vmem:[#allocation21 + $0x2e8] sm:$0xff]  ;;  %v10715_v42 = vcombine.low %v5681_v2, %v5697_v23 }
 0xa68   : > { %9472 = vmatprep.subr.bf16.mxu0 %v11038_v28  ;;  %v10748_v28 = vcombine.high %v5713_v30, %v5729_v31  ;;  %v10747_v43 = vcombine.low %v5713_v30, %v5729_v31 }
 0xa6a   : > { %9350 = vmatpush1.bf16.msra.mxu1 %v11031_v45  ;;  %v5777_v45 = vld [vmem:[#allocation21 + $0x468] sm:$0xff] }
 0xa6b   : > { %9473 = vmatpush1.bf16.msra.mxu0 %v11037_v46  ;;  %9351 = vmatprep.subr.bf16.mxu1 %v11064_v48  ;;  %v5793_v46 = vld [vmem:[#allocation21 + $0x4e8] sm:$0xff]  ;;  %v10779_v48 = vcombine.low %v5745_v32, %v5761_v34 }
 0xa6c   : > { %9474 = vmatprep.subr.bf16.mxu0 %v11070_v49  ;;  %v10812_v49 = vcombine.high %v5777_v45, %v5793_v46  ;;  %v10811_v57 = vcombine.low %v5777_v45, %v5793_v46  ;;  %v14013_v46 = vrot.slane %v9813_v12, %v13926_v1  ;;  %v6017_v12 = vld [vmem:[#allocation21 + $0xbe8] sm:$0xff] }
 0xa6e   : > { %9352 = vmatpush1.bf16.msra.mxu1 %v11063_v6  ;;  %v10844_v6 = vcombine.high %v5809_v58, %v5825_v55  ;;  %v5953_v58 = vld [vmem:[#allocation21 + $0x9e8] sm:$0xff] }
 0xa6f   : > { %9475 = vmatpush1.bf16.msra.mxu0 %v11069_v7  ;;  %9353 = vmatprep.subr.bf16.mxu1 %v11096_v9  ;;  %v5841_v7 = vld [vmem:[#allocation21 + $0x668] sm:$0xff] }
 0xa70   : > { %9476 = vmatprep.subr.bf16.mxu0 %v11102_v14  ;;  %v5857_v9 = vld [vmem:[#allocation21 + $0x6e8] sm:$0xff]  ;;  %v8759_v14 = vrot.slane %v13903_v0, %v13464_v25 }
 0xa72   : > { %9354 = vmatpush1.bf16.msra.mxu1 %v11095_v38  ;;  %v9583_v38 = vrot.slane %v13905_v8, %v13464_v25  ;;  %v10908_v8 = vcombine.high %v5873_v19, %v5889_v33 }
 0xa73   : > { %9477 = vmatpush1.bf16.msra.mxu0 %v11101_v53  ;;  %9355 = vmatprep.subr.bf16.mxu1 %v11128_v11  ;;  %v8787_v53 = vrot.slane %v13983_v61, %v13467_v59  ;;  %v10876_v11 = vcombine.high %v5841_v7, %v5857_v9 }
 0xa74   : > { %9478 = vmatprep.subr.bf16.mxu0 %v11134_v41 }
 0xa76   : > { %9356 = vmatpush1.bf16.msra.mxu1 %v11127_v26 }
 0xa77   : > { %9479 = vmatpush1.bf16.msra.mxu0 %v11133_v21  ;;  %9357 = vmatprep.subr.bf16.mxu1 %v11160_v22  ;;  %v9611_v22 = vrot.slane %v13987_v27, %v13467_v59 }
 0xa78   : > { %9480 = vmatprep.subr.bf16.mxu0 %v11166_v47 }
 0xa7a   : > { %9358 = vmatpush1.bf16.msra.mxu1 %v11159_v37 }
 0xa7b   : > { %9481 = vmatpush1.bf16.msra.mxu0 %v11165_v17  ;;  %9409 = vmatprep.subr.bf16.mxu1 %v10684_v40  ;;  %v10875_v17 = vcombine.low %v5841_v7, %v5857_v9  ;;  %v5969_v7 = vld [vmem:[#allocation21 + $0xa68] sm:$0xff] }
 0xa7c   : > { %v5985_v9 = vld [vmem:[#allocation21 + $0xae8] sm:$0xff] }
 0xa7d   : > { %9360 = vmatmul.mubr.bf16.vlgmr.msra.gmra.mrb[28].mxu1 %v13847_v54  ;;  %v11004_v18 = vcombine.high %v5969_v7, %v5985_v9 }
 0xa7e   : > { %9483 = vmatmul.mubr.bf16.vlgmr.msra.gmra.mrb[32].mxu0 %v13847_v54  ;;  %9410 = vmatpush1.bf16.msra.mxu1 %v10683_v13 }
 0xa7f   : > { %9441 = vmatprep.mubr.bf16.mxu1 %v13845_v52  ;;  %9411 = vmatprep.subr.bf16.mxu1 %v10716_v20 }
 0xa82   : > { %9412 = vmatpush1.bf16.msra.mxu1 %v10715_v42  ;;  %v5905_v42 = vld [vmem:[#allocation21 + $0x868] sm:$0xff] }
 0xa83   : > { %9413 = vmatprep.subr.bf16.mxu1 %v10748_v28  ;;  %v5921_v28 = vld [vmem:[#allocation21 + $0x8e8] sm:$0xff] }
 0xa84   : > { %v10940_v45 = vcombine.high %v5905_v42, %v5921_v28 }
 0xa86   : > { %9414 = vmatpush1.bf16.msra.mxu1 %v10747_v43  ;;  %v10907_v43 = vcombine.low %v5873_v19, %v5889_v33  ;;  %v6097_v33 = vld [vmem:[#allocation21 + $0xe68] sm:$0xff] }
 0xa87   : > { %9415 = vmatprep.subr.bf16.mxu1 %v10780_v44 }
 0xa8a   : > { %9416 = vmatpush1.bf16.msra.mxu1 %v10779_v48 }
 0xa8b   : > { %9417 = vmatprep.subr.bf16.mxu1 %v10812_v49  ;;  %v5937_v49 = vld [vmem:[#allocation21 + $0x968] sm:$0xff] }
 0xa8e   : > { %9418 = vmatpush1.bf16.msra.mxu1 %v10811_v57  ;;  %v10939_v57 = vcombine.low %v5905_v42, %v5921_v28  ;;  %v5731_v42 = vld [vmem:[#allocation21 + $0x2f8] sm:$0xff] }
 0xa8f   : > { %9419 = vmatprep.subr.bf16.mxu1 %v10844_v6  ;;  %v10972_v6 = vcombine.high %v5937_v49, %v5953_v58 }
 0xa90   : > { %v9115_v41 = vpop.f32.mrb[16].mxu1 }
 0xa91   : > { %v9116_v26 = vadd.f32 %v9115_v41, %v8759_v14  ;;  %v9238_v0 = vpop.f32.mrb[20].mxu0  ;;  %v9117_v21 = vpop.f32.mrb[17].mxu1  ;;  %v10971_v14 = vcombine.low %v5937_v49, %v5953_v58  ;;  %v6065_v41 = vld [vmem:[#allocation21 + $0xd68] sm:$0xff] }
 0xa92   : > { %v9239_v47 = vadd.f32 %v9238_v0, %v8783_v10  ;;  %v9118_v29 = vadd.f32 %v9117_v21, %v8763_v16  ;;  %v9240_v35 = vpop.f32.mrb[21].mxu0  ;;  %v9119_v37 = vpop.f32.mrb[18].mxu1  ;;  %9420 = vmatpush1.bf16.msra.mxu1 %v10843_v3  ;;  %v11003_v10 = vcombine.low %v5969_v7, %v5985_v9  ;;  %v11036_v16 = vcombine.high %v6001_v36, %v6017_v12  ;;  %v6033_v3 = vld [vmem:[#allocation21 + $0xc68] sm:$0xff] }
 0xa93   : > { %v9710_v40 = vadd.f32 %v9583_v38, %v9116_v26  ;;  %v9241_v2 = vadd.f32 %v9240_v35, %v8787_v53  ;;  %v9242_v23 = vpop.f32.mrb[22].mxu0  ;;  %v9120_v13 = vpop.f32.mrb[19].mxu1  ;;  %9421 = vmatprep.subr.bf16.mxu1 %v10876_v11  ;;  %v6049_v38 = vld [vmem:[#allocation21 + $0xce8] sm:$0xff]  ;;  %v11035_v53 = vcombine.low %v6001_v36, %v6017_v12  ;;  %v5651_v37 = vld [vmem:[#allocation21 + $0x78] sm:$0xff] }
 0xa94   : > { %v14003_v20 = vadd.f32 %v9607_v15, %v9239_v47  ;;  %v9711_v30 = vadd.f32 %v9587_v24, %v9118_v29  ;;  %v9243_v31 = vpop.f32.mrb[23].mxu0  ;;  %v11068_v11 = vcombine.high %v6033_v3, %v6049_v38  ;;  %v6081_v15 = vld [vmem:[#allocation21 + $0xde8] sm:$0xff]  ;;  %v11067_v24 = vcombine.low %v6033_v3, %v6049_v38  ;;  %v5683_v23 = vld [vmem:[#allocation21 + $0x178] sm:$0xff] }
 0xa95   : > { %v14005_v32 = vadd.f32 %v9611_v22, %v9241_v2  ;;  %v11100_v19 = vcombine.high %v6065_v41, %v6081_v15  ;;  %v6113_v26 = vld [vmem:[#allocation21 + $0xee8] sm:$0xff]  ;;  %v11099_v0 = vcombine.low %v6065_v41, %v6081_v15  ;;  %v5699_v13 = vld [vmem:[#allocation21 + $0x1f8] sm:$0xff]  ;;  %v8799_v38 = vrot.slane %v13983_v61, %v13621_v50 }
 0xa96   : > { %v9814_v34 = vcombine.low %v9710_v40, %v9711_v30  ;;  %9422 = vmatpush1.bf16.msra.mxu1 %v10875_v17  ;;  %v11132_v21 = vcombine.high %v6097_v33, %v6113_v26  ;;  %v6129_v22 = vld [vmem:[#allocation21 + $0xf68] sm:$0xff]  ;;  %v11131_v29 = vcombine.low %v6097_v33, %v6113_v26  ;;  %v5667_v17 = vld [vmem:[#allocation21 + $0xf8] sm:$0xff]  ;;  %v10720_v30 = vcombine.high %v5683_v23, %v5699_v13 }
 0xa97   : > { %v9862_v44 = vcombine.low %v14003_v20, %v14005_v32  ;;  %9423 = vmatprep.subr.bf16.mxu1 %v10908_v8  ;;  %v6145_v47 = vld [vmem:[#allocation21 + $0xfe8] sm:$0xff]  ;;  %v10688_v2 = vcombine.high %v5651_v37, %v5667_v17  ;;  %v10687_v8 = vcombine.low %v5651_v37, %v5667_v17  ;;  %v5715_v31 = vld [vmem:[#allocation21 + $0x278] sm:$0xff]  ;;  %v10719_v28 = vcombine.low %v5683_v23, %v5699_v13 }
 0xa98   : > { %v14016_v48 = vrot.slane %v9814_v34, %v13926_v1  ;;  %v11164_v35 = vcombine.high %v6129_v22, %v6145_v47  ;;  %v11163_v40 = vcombine.low %v6129_v22, %v6145_v47  ;;  %v10752_v34 = vcombine.high %v5715_v31, %v5731_v42  ;;  %v5843_v12 = vld [vmem:[#allocation21 + $0x678] sm:$0xff]  ;;  %v12066_v41 = vld [vmem:[#allocation24 + $0x8] sm:$0xff] }
 0xa99   : > { %v10751_v49 = vcombine.low %v5715_v31, %v5731_v42  ;;  %v9599_v15 = vrot.slane %v12066_v41, %v13624_v62  ;;  %v9623_v26 = vrot.slane %v13987_v27, %v13621_v50  ;;  %v5891_v22 = vld [vmem:[#allocation21 + $0x7f8] sm:$0xff]  ;;  %v9627_v37 = vrot.slane %v13987_v27, %v13629_v4 }
 0xa9a   : > { %v9845_v55 = vcombine.low %v14013_v46, %v14016_v48  ;;  %9424 = vmatpush1.bf16.msra.mxu1 %v10907_v43  ;;  %v5747_v43 = vld [vmem:[#allocation21 + $0x378] sm:$0xff] }
 0xa9b   : > { %9425 = vmatprep.subr.bf16.mxu1 %v10940_v45  ;;  %v5763_v45 = vld [vmem:[#allocation21 + $0x3f8] sm:$0xff] }
 0xa9c   : > { %v10784_v58 = vcombine.high %v5747_v43, %v5763_v45  ;;  %v10783_v7 = vcombine.low %v5747_v43, %v5763_v45 }
 0xa9e   : > { %9426 = vmatpush1.bf16.msra.mxu1 %v10939_v57  ;;  %v5779_v57 = vld [vmem:[#allocation21 + $0x478] sm:$0xff] }
 0xa9f   : > { %9427 = vmatprep.subr.bf16.mxu1 %v10972_v6  ;;  %v5795_v6 = vld [vmem:[#allocation21 + $0x4f8] sm:$0xff] }
 0xaa0   : > { %v10816_v9 = vcombine.high %v5779_v57, %v5795_v6  ;;  %v10815_v36 = vcombine.low %v5779_v57, %v5795_v6 }
 0xaa2   : > { %9428 = vmatpush1.bf16.msra.mxu1 %v10971_v14  ;;  %v5811_v14 = vld [vmem:[#allocation21 + $0x578] sm:$0xff] }
 0xaa3   : > { %9429 = vmatprep.subr.bf16.mxu1 %v11004_v18  ;;  %v5827_v18 = vld [vmem:[#allocation21 + $0x5f8] sm:$0xff] }
 0xaa6   : > { %9430 = vmatpush1.bf16.msra.mxu1 %v11003_v10  ;;  %v5859_v10 = vld [vmem:[#allocation21 + $0x6f8] sm:$0xff] }
 0xaa7   : > { %9431 = vmatprep.subr.bf16.mxu1 %v11036_v16  ;;  %v12065_v16 = vld [vmem:[#allocation23 + $0x8] sm:$0xff]  ;;  %v10879_v13 = vcombine.low %v5843_v12, %v5859_v10 }
 0xaa8   : > { %v8775_v3 = vrot.slane %v12065_v16, %v13624_v62 }
 0xaaa   : > { %9432 = vmatpush1.bf16.msra.mxu1 %v11035_v53  ;;  %v8779_v53 = vrot.slane %v12065_v16, %v13632_v5 }
 0xaab   : > { %9433 = vmatprep.subr.bf16.mxu1 %v11068_v11  ;;  %v10847_v11 = vcombine.low %v5811_v14, %v5827_v18 }
 0xaae   : > { %9434 = vmatpush1.bf16.msra.mxu1 %v11067_v24  ;;  %v8803_v24 = vrot.slane %v13983_v61, %v13629_v4 }
 0xaaf   : > { %9435 = vmatprep.subr.bf16.mxu1 %v11100_v19  ;;  %v10880_v19 = vcombine.high %v5843_v12, %v5859_v10  ;;  %v5955_v12 = vld [vmem:[#allocation21 + $0x9f8] sm:$0xff] }
 0xab2   : > { %9436 = vmatpush1.bf16.msra.mxu1 %v11099_v0  ;;  %v9603_v0 = vrot.slane %v12066_v41, %v13632_v5 }
 0xab3   : > { %9437 = vmatprep.subr.bf16.mxu1 %v11132_v21  ;;  %v5875_v21 = vld [vmem:[#allocation21 + $0x778] sm:$0xff] }
 0xab6   : > { %9438 = vmatpush1.bf16.msra.mxu1 %v11131_v29 }
 0xab7   : > { %9439 = vmatprep.subr.bf16.mxu1 %v11164_v35 }
 0xaba   : > { %9440 = vmatpush1.bf16.msra.mxu1 %v11163_v40 }
 0xabb   : > { %9491 = vmatprep.subr.bf16.mxu1 %v10688_v2 }
 0xabd   : > { %9442 = vmatmul.mubr.bf16.vlgmr.msra.gmra.mrb[32].mxu1 %v13847_v54 }
 0xabe   : > { %9492 = vmatpush1.bf16.msra.mxu1 %v10687_v8  ;;  %9523 = vmatprep.mubr.bf16.mxu1 %v13845_v52  ;;  %v10848_v52 = vcombine.high %v5811_v14, %v5827_v18  ;;  %v9837_v18 = vrot.slane %v9815_v63, %v13926_v1 }
 0xabf   : > { %9493 = vmatprep.subr.bf16.mxu1 %v10720_v30 }
 0xac2   : > { %9494 = vmatpush1.bf16.msra.mxu1 %v10719_v28  ;;  %v10912_v28 = vcombine.high %v5875_v21, %v5891_v22 }
 0xac3   : > { %9495 = vmatprep.subr.bf16.mxu1 %v10752_v34 }
 0xac6   : > { %9496 = vmatpush1.bf16.msra.mxu1 %v10751_v49  ;;  %v5907_v49 = vld [vmem:[#allocation21 + $0x878] sm:$0xff] }
 0xac7   : > { %9497 = vmatprep.subr.bf16.mxu1 %v10784_v58  ;;  %v5923_v58 = vld [vmem:[#allocation21 + $0x8f8] sm:$0xff] }
 0xac8   : > { %v10944_v14 = vcombine.high %v5907_v49, %v5923_v58  ;;  %v10943_v16 = vcombine.low %v5907_v49, %v5923_v58 }
 0xaca   : > { %9498 = vmatpush1.bf16.msra.mxu1 %v10783_v7  ;;  %v10911_v7 = vcombine.low %v5875_v21, %v5891_v22  ;;  %v6083_v21 = vld [vmem:[#allocation21 + $0xdf8] sm:$0xff] }
 0xacb   : > { %9499 = vmatprep.subr.bf16.mxu1 %v10816_v9 }
 0xace   : > { %9500 = vmatpush1.bf16.msra.mxu1 %v10815_v36 }
 0xacf   : > { %9501 = vmatprep.subr.bf16.mxu1 %v10848_v52  ;;  %v5939_v52 = vld [vmem:[#allocation21 + $0x978] sm:$0xff] }
 0xad0   : > { %v9197_v33 = vpop.f32.mrb[20].mxu1  ;;  %v10975_v63 = vcombine.low %v5939_v52, %v5955_v12 }
 0xad1   : > { %v9198_v47 = vadd.f32 %v9197_v33, %v8775_v3  ;;  %v9320_v29 = vpop.f32.mrb[24].mxu0  ;;  %v9199_v35 = vpop.f32.mrb[21].mxu1  ;;  %v10976_v3 = vcombine.high %v5939_v52, %v5955_v12 }
 0xad2   : > { %v9321_v17 = vadd.f32 %v9320_v29, %v8799_v38  ;;  %v9200_v40 = vadd.f32 %v9199_v35, %v8779_v53  ;;  %v9322_v2 = vpop.f32.mrb[25].mxu0  ;;  %v9201_v23 = vpop.f32.mrb[22].mxu1  ;;  %9502 = vmatpush1.bf16.msra.mxu1 %v10847_v11  ;;  %v9853_v38 = vrot.slane %v9845_v55, %v13926_v1  ;;  %v5971_v11 = vld [vmem:[#allocation21 + $0xa78] sm:$0xff] }
 0xad3   : > { %v9714_v8 = vadd.f32 %v9599_v15, %v9198_v47  ;;  %v9323_v30 = vadd.f32 %v9322_v2, %v8803_v24  ;;  %v9324_v31 = vpop.f32.mrb[26].mxu0  ;;  %v9202_v42 = vpop.f32.mrb[23].mxu1  ;;  %9503 = vmatprep.subr.bf16.mxu1 %v10880_v19  ;;  %v11008_v41 = vcombine.high %v5971_v11, %v5987_v39  ;;  %v6003_v15 = vld [vmem:[#allocation21 + $0xb78] sm:$0xff]  ;;  %v11007_v19 = vcombine.low %v5971_v11, %v5987_v39 }
 0xad4   : > { %v14034_v34 = vadd.f32 %v9623_v26, %v9321_v17  ;;  %v9715_v43 = vadd.f32 %v9603_v0, %v9200_v40  ;;  %v9325_v45 = vpop.f32.mrb[27].mxu0  ;;  %v6019_v24 = vld [vmem:[#allocation21 + $0xbf8] sm:$0xff]  ;;  %v8791_v31 = vrot.slane %v13983_v61, %v13464_v25 }
 0xad5   : > { %v14036_v57 = vadd.f32 %v9627_v37, %v9323_v30  ;;  %v11040_v33 = vcombine.high %v6003_v15, %v6019_v24  ;;  %v6035_v26 = vld [vmem:[#allocation21 + $0xc78] sm:$0xff]  ;;  %v11039_v46 = vcombine.low %v6003_v15, %v6019_v24  ;;  %v9615_v45 = vrot.slane %v13987_v27, %v13464_v25 }
 0xad6   : > { %v9816_v6 = vcombine.low %v9714_v8, %v9715_v43  ;;  %9504 = vmatpush1.bf16.msra.mxu1 %v10879_v13  ;;  %v6051_v0 = vld [vmem:[#allocation21 + $0xcf8] sm:$0xff]  ;;  %v8795_v43 = vrot.slane %v13983_v61, %v13470_v60  ;;  %v9872_v24 = vrot.slane %v9862_v44, %v13926_v1  ;;  %v9635_v44 = vrot.slane %v13987_v27, %v13632_v5 }
 0xad7   : > { %v9864_v9 = vcombine.low %v14034_v34, %v14036_v57  ;;  %9505 = vmatprep.subr.bf16.mxu1 %v10912_v28  ;;  %v11072_v48 = vcombine.high %v6035_v26, %v6051_v0  ;;  %v6067_v55 = vld [vmem:[#allocation21 + $0xd78] sm:$0xff]  ;;  %v11071_v22 = vcombine.low %v6035_v26, %v6051_v0  ;;  %v8811_v0 = vrot.slane %v13983_v61, %v13632_v5 }
 0xad8   : > { %v9844_v36 = vrot.slane %v9816_v6, %v13926_v1  ;;  %v11104_v47 = vcombine.high %v6067_v55, %v6083_v21  ;;  %v6099_v29 = vld [vmem:[#allocation21 + $0xe78] sm:$0xff]  ;;  %v11103_v37 = vcombine.low %v6067_v55, %v6083_v21  ;;  %v9619_v6 = vrot.slane %v13987_v27, %v13470_v60 }
 0xad9   : > { %v6115_v35 = vld [vmem:[#allocation21 + $0xef8] sm:$0xff] }
 0xada   : > { %v9846_v10 = vcombine.low %v9837_v18, %v9844_v36  ;;  %9506 = vmatpush1.bf16.msra.mxu1 %v10911_v7  ;;  %v11136_v17 = vcombine.high %v6099_v29, %v6115_v35  ;;  %v6131_v40 = vld [vmem:[#allocation21 + $0xf78] sm:$0xff]  ;;  %v11135_v23 = vcombine.low %v6099_v29, %v6115_v35 }
 0xadb   : > { %9507 = vmatprep.subr.bf16.mxu1 %v10944_v14  ;;  %v6147_v2 = vld [vmem:[#allocation21 + $0xff8] sm:$0xff] }
 0xadc   : > { %v9860_v53 = vrot.slane %v9846_v10, %v13926_v1  ;;  %v11168_v13 = vcombine.high %v6131_v40, %v6147_v2  ;;  %v11167_v8 = vcombine.low %v6131_v40, %v6147_v2  ;;  %v14052_v30 = vld [vmem:[#allocation23 + $0x18] sm:$0xff] }
 0xadd   : > { %v14056_v42 = vld [vmem:[#allocation24 + $0x18] sm:$0xff]  ;;  %v8815_v28 = vrot.slane %v14052_v30, %v13461_v56  ;;  %v8819_v49 = vrot.slane %v14052_v30, %v13467_v59  ;;  %v8831_v26 = vrot.slane %v14052_v30, %v13621_v50 }
 0xade   : > { %v9861_v51 = vcombine.low %v9853_v38, %v9860_v53  ;;  %9508 = vmatpush1.bf16.msra.mxu1 %v10943_v16  ;;  %v9639_v58 = vrot.slane %v14056_v42, %v13461_v56  ;;  %v9643_v36 = vrot.slane %v14056_v42, %v13467_v59  ;;  %v9655_v32 = vrot.slane %v14056_v42, %v13621_v50 }
 0xadf   : > { %9509 = vmatprep.subr.bf16.mxu1 %v10976_v3  ;;  %v9651_v57 = vrot.slane %v14056_v42, %v13470_v60 }
 0xae0   : > { %9965 = vst [vmem:[%s13795_s5 + $0x8] sm:$0xff] %v9861_v51 }
 0xae2   : > { %9510 = vmatpush1.bf16.msra.mxu1 %v10975_v63 }
 0xae3   : > { %9511 = vmatprep.subr.bf16.mxu1 %v11008_v41 }
 0xae6   : > { %9512 = vmatpush1.bf16.msra.mxu1 %v11007_v19 }
 0xae7   : > { %9513 = vmatprep.subr.bf16.mxu1 %v11040_v33  ;;  %v8807_v33 = vrot.slane %v13983_v61, %v13624_v62 }
 0xaea   : > { %9514 = vmatpush1.bf16.msra.mxu1 %v11039_v46  ;;  %v9631_v46 = vrot.slane %v13987_v27, %v13624_v62 }
 0xaeb   : > { %9515 = vmatprep.subr.bf16.mxu1 %v11072_v48  ;;  %v8835_v48 = vrot.slane %v14052_v30, %v13629_v4 }
 0xaee   : > { %9516 = vmatpush1.bf16.msra.mxu1 %v11071_v22 }
 0xaef   : > { %9517 = vmatprep.subr.bf16.mxu1 %v11104_v47  ;;  %v9659_v47 = vrot.slane %v14056_v42, %v13629_v4  ;;  %v9886_v4 = vrot.slane %v9864_v9, %v13926_v1 }
 0xaf2   : > { %9518 = vmatpush1.bf16.msra.mxu1 %v11103_v37 }
 0xaf3   : > { %9519 = vmatprep.subr.bf16.mxu1 %v11136_v17 }
 0xaf6   : > { %9520 = vmatpush1.bf16.msra.mxu1 %v11135_v23 }
 0xaf7   : > { %9521 = vmatprep.subr.bf16.mxu1 %v11168_v13 }
 0xafa   : > { %9522 = vmatpush1.bf16.msra.mxu1 %v11167_v8 }
 0xafd   : > { %9524 = vmatmul.mubr.bf16.vlgmr.msra.gmra.mrb[36].mxu1 %v13847_v54 }
 0xb10   : > { %v9279_v54 = vpop.f32.mrb[24].mxu1 }
 0xb11   : > { %v9280_v7 = vadd.f32 %v9279_v54, %v8791_v31  ;;  %v9402_v14 = vpop.f32.mrb[28].mxu0  ;;  %v9281_v18 = vpop.f32.mrb[25].mxu1 }
 0xb12   : > { %v9403_v52 = vadd.f32 %v9402_v14, %v8815_v28  ;;  %v9282_v12 = vadd.f32 %v9281_v18, %v8795_v43  ;;  %v9404_v10 = vpop.f32.mrb[29].mxu0  ;;  %v9283_v16 = vpop.f32.mrb[26].mxu1  ;;  %v9647_v14 = vrot.slane %v14056_v42, %v13464_v25 }
 0xb13   : > { %v9718_v3 = vadd.f32 %v9615_v45, %v9280_v7  ;;  %v9405_v38 = vadd.f32 %v9404_v10, %v8819_v49  ;;  %v9406_v53 = vpop.f32.mrb[30].mxu0  ;;  %v9284_v11 = vpop.f32.mrb[27].mxu1  ;;  %v8827_v7 = vrot.slane %v14052_v30, %v13470_v60  ;;  %v9663_v60 = vrot.slane %v14056_v42, %v13624_v62 }
 0xb14   : > { %v9724_v39 = vadd.f32 %v9639_v58, %v9403_v52  ;;  %v9719_v51 = vadd.f32 %v9619_v6, %v9282_v12  ;;  %v9407_v56 = vpop.f32.mrb[31].mxu0  ;;  %v8823_v6 = vrot.slane %v14052_v30, %v13464_v25  ;;  %v8839_v25 = vrot.slane %v14052_v30, %v13624_v62 }
 0xb15   : > { %v9725_v63 = vadd.f32 %v9643_v36, %v9405_v38  ;;  %v9667_v56 = vrot.slane %v14056_v42, %v13632_v5 }
 0xb16   : > { %v9863_v41 = vcombine.low %v9718_v3, %v9719_v51 }
 0xb17   : > { %v9911_v15 = vcombine.low %v9724_v39, %v9725_v63  ;;  %v8843_v39 = vrot.slane %v14052_v30, %v13632_v5 }
 0xb18   : > { %v9879_v59 = vrot.slane %v9863_v41, %v13926_v1 }
 0xb19   : > { %v9921_v38 = vrot.slane %v9911_v15, %v13926_v1 }
 0xb1a   : > { %v9894_v19 = vcombine.low %v9872_v24, %v9879_v59 }
 0xb1c   : > { %v9902_v49 = vrot.slane %v9894_v19, %v13926_v1 }
 0xb50   : > { %v9361_v20 = vpop.f32.mrb[28].mxu1 }
 0xb51   : > { %v9362_v55 = vadd.f32 %v9361_v20, %v8807_v33  ;;  %v9484_v21 = vpop.f32.mrb[32].mxu0  ;;  %v9363_v22 = vpop.f32.mrb[29].mxu1 }
 0xb52   : > { %v9485_v61 = vadd.f32 %v9484_v21, %v8831_v26  ;;  %v9364_v29 = vadd.f32 %v9363_v22, %v8811_v0  ;;  %v9486_v35 = vpop.f32.mrb[33].mxu0  ;;  %v9365_v37 = vpop.f32.mrb[30].mxu1 }
 0xb53   : > { %v9722_v17 = vadd.f32 %v9631_v46, %v9362_v55  ;;  %v9487_v40 = vadd.f32 %v9486_v35, %v8835_v48  ;;  %v9488_v2 = vpop.f32.mrb[34].mxu0  ;;  %v9366_v23 = vpop.f32.mrb[31].mxu1 }
 0xb54   : > { %v9728_v13 = vadd.f32 %v9655_v32, %v9485_v61  ;;  %v9723_v50 = vadd.f32 %v9635_v44, %v9364_v29  ;;  %v9489_v8 = vpop.f32.mrb[35].mxu0 }
 0xb55   : > { %v9729_v31 = vadd.f32 %v9659_v47, %v9487_v40 }
 0xb56   : > { %v9865_v27 = vcombine.low %v9722_v17, %v9723_v50 }
 0xb57   : > { %v9913_v28 = vcombine.low %v9728_v13, %v9729_v31 }
 0xb58   : > { %v9893_v43 = vrot.slane %v9865_v27, %v13926_v1 }
 0xb59   : > { %v9935_v0 = vrot.slane %v9913_v28, %v13926_v1 }
 0xb5a   : > { %v9895_v45 = vcombine.low %v9886_v4, %v9893_v43 }
 0xb5c   : > { %v9909_v54 = vrot.slane %v9895_v45, %v13926_v1 }
 0xb5e   : > { %v9910_v58 = vcombine.low %v9902_v49, %v9909_v54 }
 0xb60   : > { %9966 = vst [vmem:[%s13795_s5 + $0x10] sm:$0xff] %v9910_v58 }
 0xb90   : > { %v9443_v34 = vpop.f32.mrb[32].mxu1 }
 0xb91   : > { %v9444_v9 = vadd.f32 %v9443_v34, %v8823_v6  ;;  %v9445_v18 = vpop.f32.mrb[33].mxu1 }
 0xb92   : > { %v9446_v36 = vadd.f32 %v9445_v18, %v8827_v7  ;;  %v9447_v52 = vpop.f32.mrb[34].mxu1 }
 0xb93   : > { %v9726_v12 = vadd.f32 %v9647_v14, %v9444_v9  ;;  %v9448_v10 = vpop.f32.mrb[35].mxu1 }
 0xb94   : > { %v9727_v16 = vadd.f32 %v9651_v57, %v9446_v36 }
 0xb96   : > { %v9912_v3 = vcombine.low %v9726_v12, %v9727_v16 }
 0xb98   : > { %v9928_v53 = vrot.slane %v9912_v3, %v13926_v1 }
 0xb9a   : > { %v9943_v11 = vcombine.low %v9921_v38, %v9928_v53 }
 0xb9c   : > { %v9951_v62 = vrot.slane %v9943_v11, %v13926_v1 }
 0xbd0   : > { %v9525_v51 = vpop.f32.mrb[36].mxu1 }
 0xbd1   : > { %v9526_v63 = vadd.f32 %v9525_v51, %v8839_v25  ;;  %v9527_v41 = vpop.f32.mrb[37].mxu1 }
 0xbd2   : > { %v9528_v15 = vadd.f32 %v9527_v41, %v8843_v39  ;;  %v9529_v24 = vpop.f32.mrb[38].mxu1 }
 0xbd3   : > { %v9730_v59 = vadd.f32 %v9663_v60, %v9526_v63  ;;  %v9530_v19 = vpop.f32.mrb[39].mxu1 }
 0xbd4   : > { %v9731_v33 = vadd.f32 %v9667_v56, %v9528_v15 }
 0xbd6   : > { %v9914_v26 = vcombine.low %v9730_v59, %v9731_v33 }
 0xbd8   : > { %v9942_v30 = vrot.slane %v9914_v26, %v13926_v1 }
 0xbda   : > { %v9944_v46 = vcombine.low %v9935_v0, %v9942_v30 }
 0xbdc   : > { %v9958_v48 = vrot.slane %v9944_v46, %v13926_v1 }
 0xbde   : > { %v9959_v20 = vcombine.low %v9951_v62, %v9958_v48 }
 0xbe0   : > { %9967 = vst [vmem:[%s13795_s5 + $0x18] sm:$0xff] %v9959_v20 }
 0xbe1 PF: > { %s14282_s20 = sld [smem:[#allocation43_spill]]  ;;  %s14284_s1 = sld [smem:[#allocation56_spill]] }
 0xbe2   : > { %s9983_s16 = sshll.u32 %s13795_s5, 4  ;;  %s9969_s3 = scalar_lea.sflag [#allocation5], %s674_s22  ;;  %s9984_s16 = int_to_ptr.vmem [resolvable:$true] %s9983_s16 }
 0xbe3   : > { %s12461_s19 = scalar_lea.vmem %s9984_s16, 512  ;;  %p14285_p10 = scmp.ne.s32.totalorder %s14266_s2, 0 }
 0xbe4   : > { %p12462_p4 = scmp.ne.s32.totalorder %s9984_s16, %s12461_s19  ;;  %s12640_s6 = smov [#allocation26]  }
 0xbe5   : > { %s12465_s18 = sshll.u32 %s12640_s6, 4  ;;  %s12466_s18 = int_to_ptr.vmem [resolvable:$false] %s12465_s18 }
 0xbe6   : > { %p12463_p7 = pnand %p12462_p4, %p14285_p10  ;;  %s12467_s30 = scalar_lea.vmem %s12466_s18, 1024 }
 0xbe7   : > { %s11174_s27 = sshll.u32 %s14282_s20, 9  ;;  %p12468_p11 = scmp.lt.s32.totalorder %s9984_s16, %s12466_s18 }
 0xbe8   : > { %s14128_s24 = scalar_lea.hbm %s14284_s1, %s11174_s27  ;;  %p12464_p1 = pneg %p12463_p7 }
 0xbe9   : > { %p12469_p2 = scmp.lt.s32.totalorder %s12467_s30, %s12461_s19 }
 0xbeb   : > { %p12470_p12 = por %p12469_p2, %p12468_p11 }
 0xbed   : > { %p12471_p6 = pnand %p12470_p12, %p12464_p1 }
 0xbef   : > { %12474 = shalt.err (!%p12471_p6)
}
 0xbf0   : > { %s12475_s22 = scalar_lea.hbm %s14128_s24, 512  ;;  %s12479_s25 = scalar_lea.hbm %s14284_s1, 1024 }
 0xbf1   : > { %p12476_p8 = scmp.ne.s32.totalorder %s14128_s24, %s12475_s22  ;;  %p12480_p0 = scmp.lt.u32.totalorder %s14128_s24, %s14284_s1 }
 0xbf2   : > { %p12481_p3 = scmp.lt.u32.totalorder %s12479_s25, %s12475_s22  ;;  %p12483_p4 = scmp.lt.u32.totalorder %s12475_s22, %s14128_s24 }
 0xbf3   : > { %p12477_p13 = pnand %p12476_p8, %p14285_p10 }
 0xbf4   : > { %p12482_p5 = por %p12481_p3, %p12480_p0 }
 0xbf5   : > { %p12478_p9 = pneg %p12477_p13 }
 0xbf6   : > { %p12484_p7 = por %p12483_p4, %p12482_p5 }
 0xbf8   : > { %p12485_p1 = pnand %p12484_p7, %p12478_p9 }
 0xbfa   : > { %12488 = shalt.err (!%p12485_p1)
}
 0xbfb   : > { %11383 = dma.vmem_to_hbm [thread:$0]  (%p14285_p10), %s9984_s16, 512, %s14128_s24, %s9969_s3  }
 0xbfc PF: > { %s14286_s27 = sld [smem:[#allocation36_spill]]  ;;  %p11460_p11 = scmp.ge.s32.totalorder %s12611_s23, 2 }
 0xbfd   : > { %p14287_p2 = scmp.ne.s32.totalorder %s14267_s4, 0 }
 0xbff   : > { %p11430_p12 = pnand %p11460_p11, %p14287_p2 }
 0xc02   : > { %s9995_s7 = sand.u32 1, %s14286_s27  }
 0xc03   : > { %s9996_s17 = scalar_lea.sflag [#allocation5], %s9995_s7 }
 0xc04   : > { %12566 = dma.done.wait (!%p11430_p12), %s9996_s17, 512  }
 0xc05   : > { %12568 = vsyncadd (!%p11430_p12), %s9996_s17, 4294966784  ;;  %s37_s23 = sadd.s32 1, %s12611_s23   ;;  %s14288_s29 = sld [smem:[#allocation37_spill]] }
 0xc06   : > { %p34_p6 = scmp.ge.s32.totalorder %s37_s23, 6   ;;  %s14289_s30 = sld [smem:[#allocation38_spill]] }
 0xc07   : > { %s14290_s16 = sld [smem:[#allocation40_spill]]  ;;  %s14291_s17 = sld [smem:[#allocation41_spill]] }
 0xc08   : > { %s14292_s20 = sld [smem:[#allocation44_spill]]  ;;  %s14293_s15 = smov %s14305_s28 }
 0xc09   : > { %s14294_s18 = smov %s13095_s0  ;;  %s14295_s19 = smov %s12603_s21 }
 0xc0a   : > { %s14296_s21 = smov %s14299_s14  ;;  %s14297_s22 = smov %s14303_s26 }
 0xc0b   :  { %36 = sbr.rel (!%p34_p6) target bundleno = 27 (0x1b), region = 185 }
 0xc12   :  { %10001 = vsyncpa [#allocation4], 1 }
 0xc13   :  { %10003 = vsyncpa [#allocation4 + $0x1], 1 }
 0xc14   :  { %10004 = vsyncpa [#allocation7], 1 }
 0xc15   :  { %10005 = vsyncpa [#allocation10], 1 }
 0xc16   :  { %10006 = vsyncpa [#allocation13], 1 }
 0xc17   :  { %10007 = vsyncpa [#allocation16], 1 }
 0xc18   :  { %10008 = vsyncpa [#allocation19], 1 }
 0xc19   :  { %10009 = vsyncpa [#allocation22], 1 }
 0xc1a   :  { %10010 = vsyncpa [#allocation25], 1 }
 0xc1b   :  { %10011 = vsyncpa [#allocation5], 1 }
 0xc1c   :  { %10013 = vsyncpa [#allocation5 + $0x1], 1 }

</bundles_post_ra>
